<compile_context>
chip_gen: v7x
topology: tpu7x:2x2x1
jax: 0.10.0
libtpu: 0.0.40
codegen_flags: <defaults>
</compile_context>

<pallas_src>
import numpy as np
import jax
import jax.numpy as jnp
from jax.experimental import pallas as pl
from jax.experimental.pallas import tpu as pltpu


def _round_up(x, m):
    return ((x + m - 1) // m) * m


# ----------------------------------------------------------------------------
# Kernel 1: recurrent decode (attention + LSTM cell).
# Single invocation (no grid); in-kernel fori_loop over time; h/c carried in
# vregs; everything VMEM resident; emits hn per step in bf16.
# TODO(synk): for very long sequences / large batch where (T,B,4Dp)+(T,B,Dp)
#             no longer fit VMEM, fall back to a grid=(T,) streaming form, and
#             add a leading "parallel" batch-block axis to use v7x's 2nd core.
# ----------------------------------------------------------------------------

def _recurrent_decode_kernel(enc_ref, att1_ref, embg_ref,
                             w_init_ref, b_init_ref,
                             w_da_ref, b_da_ref,
                             w_att_ref, w_beta_ref, b_beta_ref,
                             w_iz_ref, w_hh_ref,
                             hn_ref):
    B, P, Ep = enc_ref.shape
    T = embg_ref.shape[0]
    Dp = w_hh_ref.shape[0]

    # Loop-invariant loads / casts, hoisted once (JAX does not CSE these in loops).
    enc_bf = enc_ref[...]                                   # (B, P, Ep) bf16
    enc_f32 = enc_bf.astype(jnp.float32)                    # for alpha-weighted sum
    att1 = att1_ref[...]                                    # (B, P, Ap) f32, b_enc_att folded
    w_da = w_da_ref[...]                                    # (Dp, Ap) bf16
    b_da = b_da_ref[...]                                    # (1, Ap)  f32
    w_att3 = w_att_ref[...].astype(jnp.float32).reshape(1, 1, -1)   # (1,1,Ap)
    w_beta = w_beta_ref[...].astype(jnp.float32)            # (1, Dp)
    b_beta = b_beta_ref[...]                                 # (1, 1)
    w_iz = w_iz_ref[...]                                     # (Ep, 4*Dp) bf16
    w_hh = w_hh_ref[...]                                     # (Dp, 4*Dp) bf16

    # h0 / c0 = init_h / init_c(mean over pixels); packed into one (Ep, 2*Dp) linear.
    mean = jnp.mean(enc_f32, axis=1)                         # (B, Ep)
    hc0 = (jnp.dot(mean.astype(jnp.bfloat16), w_init_ref[...],
                   preferred_element_type=jnp.float32) + b_init_ref[...])
    h0 = hc0[:, :Dp]
    c0 = hc0[:, Dp:]

    def step(t, carry):
        h, c = carry                                         # (B, Dp) f32 each
        h_bf = h.astype(jnp.bfloat16)

        # --- attention (encoder-side projection precomputed outside the loop) ---
        att2 = jnp.dot(h_bf, w_da, preferred_element_type=jnp.float32) + b_da     # (B, Ap)
        pre = jnp.maximum(att1 + att2[:, None, :], 0.0)                            # (B, P, Ap)
        # att(.) bias adds a per-row constant to the scores -> cancels in softmax.
        e = jnp.sum(pre * w_att3, axis=-1)                                         # (B, P)
        m = jnp.max(e, axis=-1, keepdims=True)
        ex = jnp.exp(e - m)
        alpha = ex / jnp.sum(ex, axis=-1, keepdims=True)                           # exact softmax

        # alpha-weighted encoding: VPU multiply + sublane reduce (M=1 matvec avoided)
        z = jnp.sum(alpha[:, :, None] * enc_f32, axis=1)                           # (B, Ep)

        # beta gate (reference applies it WITHOUT sigmoid)
        gate = jnp.sum(h * w_beta, axis=-1, keepdims=True) + b_beta                # (B, 1)
        awe = gate * z                                                             # (B, Ep)

        # --- LSTM cell; emb-side pre-activations (+ b_ih + b_hh) precomputed ---
        gates = (embg_ref[t]
                 + jnp.dot(awe.astype(jnp.bfloat16), w_iz,
                           preferred_element_type=jnp.float32)
                 + jnp.dot(h_bf, w_hh, preferred_element_type=jnp.float32))        # (B, 4*Dp)
        i_g = jax.nn.sigmoid(gates[:, 0 * Dp:1 * Dp])
        f_g = jax.nn.sigmoid(gates[:, 1 * Dp:2 * Dp])
        g_g = jnp.tanh(gates[:, 2 * Dp:3 * Dp])
        o_g = jax.nn.sigmoid(gates[:, 3 * Dp:4 * Dp])
        cn = f_g * c + i_g * g_g
        hn = o_g * jnp.tanh(cn)

        hn_ref[t] = hn.astype(hn_ref.dtype)
        return hn, cn

    jax.lax.fori_loop(0, T, step, (h0, c0), unroll=(T <= 8))


def recurrent_decode_call(enc_p, att1_pre, embg, params):
    dims = params['dims']
    B = enc_p.shape[0]
    T = embg.shape[0]
    Dp = dims['Dp']

    weights = (params['w_init'], params['b_init'],
               params['w_dec_att'], params['b_dec_att'],
               params['w_att'],
               params['w_beta'], params['b_beta'],
               params['w_ih_awe'], params['w_hh'])

    def vmem():
        return pl.BlockSpec(memory_space=pltpu.MemorySpace.VMEM)

    n_in = 3 + len(weights)
    return pl.pallas_call(
        _recurrent_decode_kernel,
        out_shape=jax.ShapeDtypeStruct((T, B, Dp), jnp.bfloat16),
        in_specs=[vmem() for _ in range(n_in)],
        out_specs=vmem(),
        compiler_params=pltpu.CompilerParams(vmem_limit_bytes=32 * 1024 * 1024),
    )(enc_p, att1_pre, embg, *weights)


# ----------------------------------------------------------------------------
# Kernel 2: time-batched vocab projection (fc), tiled over V ("parallel" axis),
# decode-length mask applied here.  M = T*B rows -> far better MXU row
# utilization than the per-step M=B matmul, and w_fc is not resident in the
# recurrent kernel.
# TODO(synk): for very large T*B also tile the row axis.
# ----------------------------------------------------------------------------

def _fc_kernel(hn_ref, mask_ref, w_fc_ref, b_fc_ref, out_ref):
    preds = (jnp.dot(hn_ref[...], w_fc_ref[...], preferred_element_type=jnp.float32)
             + b_fc_ref[...])
    out_ref[...] = preds * mask_ref[...]


def fc_projection_call(hn_flat, mask, w_fc, b_fc):
    TB, Dp = hn_flat.shape
    Vp = w_fc.shape[1]
    tv = next(t for t in (512, 256, 128) if Vp % t == 0)
    return pl.pallas_call(
        _fc_kernel,
        out_shape=jax.ShapeDtypeStruct((TB, Vp), jnp.float32),
        grid=(Vp // tv,),
        in_specs=[pl.BlockSpec((TB, Dp), lambda v: (0, 0)),
                  pl.BlockSpec((TB, 1), lambda v: (0, 0)),
                  pl.BlockSpec((Dp, tv), lambda v: (0, v)),
                  pl.BlockSpec((1, tv), lambda v: (0, v))],
        out_specs=pl.BlockSpec((TB, tv), lambda v: (0, v)),
        compiler_params=pltpu.CompilerParams(
            dimension_semantics=("parallel",),
            vmem_limit_bytes=32 * 1024 * 1024),
    )(hn_flat, mask, w_fc, b_fc)


# ----------------------------------------------------------------------------
# Parameters (deterministic, mirrors __init__; stored pre-padded / bf16)
# ----------------------------------------------------------------------------

def init_params(key, *, encoder_dim, decoder_dim, attention_dim, embed_dim,
                vocab_size, lane=128):
    # TODO(synk): at production dims on v6e/v7x, use lane=256 padding to fill the
    #             256-wide MXU; 128 matches v5e and the tiny test dims here.
    E, D, A, Em, V = encoder_dim, decoder_dim, attention_dim, embed_dim, vocab_size
    Ep, Dp, Ap, Emp, Vp = (_round_up(x, lane) for x in (E, D, A, Em, V))
    ks = jax.random.split(key, 12)

    def lin(k, fan_in, fan_out):
        bound = 1.0 / np.sqrt(fan_in)
        kw, kb = jax.random.split(k)
        w = jax.random.uniform(kw, (fan_in, fan_out), jnp.float32, -bound, bound)
        b = jax.random.uniform(kb, (1, fan_out), jnp.float32, -bound, bound)
        return w, b

    def pad2(w, shape):
        return jnp.zeros(shape, jnp.float32).at[:w.shape[0], :w.shape[1]].set(w)

    p = {'dims': dict(E=E, D=D, A=A, Em=Em, V=V,
                      Ep=Ep, Dp=Dp, Ap=Ap, Emp=Emp, Vp=Vp)}

    # Attention
    w_ea, b_ea = lin(ks[0], E, A)
    w_da, b_da = lin(ks[1], D, A)
    w_at, b_at = lin(ks[2], A, 1)
    p['w_enc_att'] = pad2(w_ea, (Ep, Ap)).astype(jnp.bfloat16)
    p['b_enc_att'] = pad2(b_ea, (1, Ap))
    p['w_dec_att'] = pad2(w_da, (Dp, Ap)).astype(jnp.bfloat16)
    p['b_dec_att'] = pad2(b_da, (1, Ap))
    p['w_att'] = pad2(w_at.T, (1, Ap)).astype(jnp.bfloat16)   # row vector
    p['b_att'] = b_at   # (1,1): constant shift of the scores -> cancels in softmax (unused)

    # beta gate
    w_b, b_b = lin(ks[3], D, 1)
    p['w_beta'] = pad2(w_b.T, (1, Dp)).astype(jnp.bfloat16)
    p['b_beta'] = b_b

    # init_h / init_c packed side by side into (Ep, 2*Dp)
    w_ih0, b_ih0 = lin(ks[4], E, D)
    w_ic0, b_ic0 = lin(ks[5], E, D)
    w_init = (jnp.zeros((Ep, 2 * Dp), jnp.float32)
              .at[:E, :D].set(w_ih0).at[:E, Dp:Dp + D].set(w_ic0))
    b_init = (jnp.zeros((1, 2 * Dp), jnp.float32)
              .at[:, :D].set(b_ih0).at[:, Dp:Dp + D].set(b_ic0))
    p['w_init'] = w_init.astype(jnp.bfloat16)
    p['b_init'] = b_init

    # LSTMCell: input = Em + E, hidden = D; gates i,f,g,o repacked on Dp boundaries.
    w_ih, b_ih = lin(ks[6], Em + E, 4 * D)
    w_hh, b_hh = lin(ks[7], D, 4 * D)

    def pad_gate_w(w, rows_logical, rows_padded):
        out = jnp.zeros((rows_padded, 4 * Dp), jnp.float32)
        for g in range(4):
            out = out.at[:rows_logical, g * Dp:g * Dp + D].set(w[:, g * D:(g + 1) * D])
        return out

    def pad_gate_b(b):
        out = jnp.zeros((1, 4 * Dp), jnp.float32)
        for g in range(4):
            out = out.at[:, g * Dp:g * Dp + D].set(b[:, g * D:(g + 1) * D])
        return out

    p['w_ih_emb'] = pad_gate_w(w_ih[:Em], Em, Emp).astype(jnp.bfloat16)
    p['w_ih_awe'] = pad_gate_w(w_ih[Em:], E, Ep).astype(jnp.bfloat16)
    p['w_hh'] = pad_gate_w(w_hh, D, Dp).astype(jnp.bfloat16)
    p['b_gate'] = pad_gate_b(b_ih + b_hh)          # b_ih + b_hh folded once at init

    # embedding: uniform_(-0.1, 0.1), columns padded to Emp
    emb_tbl = jax.random.uniform(ks[8], (V, Em), jnp.float32, -0.1, 0.1)
    p['embedding'] = jnp.pad(emb_tbl, ((0, 0), (0, Emp - Em)))

    # fc: weight uniform_(-0.1, 0.1), bias 0
    w_fc = jax.random.uniform(ks[9], (D, V), jnp.float32, -0.1, 0.1)
    p['w_fc'] = pad2(w_fc, (Dp, Vp)).astype(jnp.bfloat16)
    p['b_fc'] = jnp.zeros((1, Vp), jnp.float32)
    # TODO(synk): self.init (Linear) and self.bn (BatchNorm1d) are never used in forward; omitted.
    return p


# ----------------------------------------------------------------------------
# Forward pass (mirrors DecoderWithAttention.forward)
# ----------------------------------------------------------------------------

def decoder_forward(params, encoder_out, encoded_captions, caption_lengths):
    dims = params['dims']
    B = encoder_out.shape[0]
    E, Ep, Dp, V, Vp = dims['E'], dims['Ep'], dims['Dp'], dims['V'], dims['Vp']

    enc = encoder_out.reshape(B, -1, E)                     # (B, P, E)
    P = enc.shape[1]

    lens = jnp.squeeze(caption_lengths, axis=1)
    sort_ind = jnp.argsort(-lens)                           # descending sort
    lens_sorted = lens[sort_ind]
    enc = enc[sort_ind]
    caps = encoded_captions[sort_ind]

    # host-side, mirrors `(caption_lengths - 1).tolist()`
    decode_lengths = np.asarray(jax.device_get(lens_sorted)) - 1
    T = int(decode_lengths.max())

    # --- pad batch to a multiple of 8 sublanes, lanes to 128, cast to bf16 ---
    Bp = _round_up(B, 8)
    enc_p = jnp.zeros((Bp, P, Ep), jnp.bfloat16).at[:B, :, :E].set(enc.astype(jnp.bfloat16))
    caps_p = jnp.zeros((Bp, caps.shape[1]), caps.dtype).at[:B].set(caps)
    dl = jnp.zeros((Bp,), jnp.int32).at[:B].set(jnp.asarray(decode_lengths, dtype=jnp.int32))

    # --- hoisted, time-invariant precomputation (runs once, outside the recurrence) ---
    # encoder-side attention projection
    att1_pre = (jnp.einsum('bpe,ea->bpa', enc_p, params['w_enc_att'],
                           preferred_element_type=jnp.float32)
                + params['b_enc_att'])                       # (Bp, P, Ap) f32
    # embedding -> LSTM input-gate pre-activations, batched over all T steps at once
    emb = params['embedding'][caps_p[:, :T]].astype(jnp.bfloat16)        # (Bp, T, Emp)
    embg = (jnp.einsum('bte,eg->btg', emb, params['w_ih_emb'],
                       preferred_element_type=jnp.float32)
            + params['b_gate'])                              # (Bp, T, 4*Dp) f32
    embg = jnp.transpose(embg, (1, 0, 2))                    # (T, Bp, 4*Dp), time-major

    # --- Pallas kernel 1: serial recurrence; emits hn per step (bf16) ---
    hn_steps = recurrent_decode_call(enc_p, att1_pre, embg, params)      # (T, Bp, Dp)

    # --- Pallas kernel 2: time-batched fc + decode-length mask ---
    active = (dl[None, :] > jnp.arange(T)[:, None]).astype(jnp.float32)  # (T, Bp)
    preds_flat = fc_projection_call(hn_steps.reshape(T * Bp, Dp),
                                    active.reshape(T * Bp, 1),
                                    params['w_fc'], params['b_fc'])      # (T*Bp, Vp)

    predictions = jnp.transpose(preds_flat.reshape(T, Bp, Vp), (1, 0, 2))[:B, :, :V]

    # The reference PyTorch forward allocates `alphas` but never writes it.
    alphas = jnp.zeros((B, T, P), jnp.float32)

    return predictions, caps, decode_lengths.tolist(), alphas, sort_ind


# ----------------------------------------------------------------------------
# Main
# ----------------------------------------------------------------------------

if __name__ == "__main__":
    key = jax.random.PRNGKey(0)
    k_param, k_enc, k_cap = jax.random.split(key, 3)

    # Small shapes consistent with the module's forward.
    B, H, W = 4, 4, 4            # enc_image_size = 4 -> num_pixels = 16
    encoder_dim = 32
    decoder_dim = 32
    attention_dim = 32
    embed_dim = 16
    vocab_size = 40
    max_cap_len = 8

    params = init_params(k_param,
                         encoder_dim=encoder_dim,
                         decoder_dim=decoder_dim,
                         attention_dim=attention_dim,
                         embed_dim=embed_dim,
                         vocab_size=vocab_size)

    encoder_out = jax.random.normal(k_enc, (B, H, W, encoder_dim), jnp.float32)
    encoded_captions = jax.random.randint(k_cap, (B, max_cap_len), 0, vocab_size,
                                          dtype=jnp.int32)
    caption_lengths = jnp.array([[5], [8], [3], [6]], dtype=jnp.int32)

    predictions, caps_sorted, decode_lengths, alphas, sort_ind = decoder_forward(
        params, encoder_out, encoded_captions, caption_lengths)

    jax.block_until_ready((predictions, caps_sorted, alphas, sort_ind))
    assert predictions.shape == (B, max(decode_lengths), vocab_size)
    assert alphas.shape == (B, max(decode_lengths), H * W)
    assert bool(jnp.all(jnp.isfinite(predictions)))
    print("KERNEL_OK")
</pallas_src>

<mosaic_0001>
module attributes {stable_mosaic.version = 11 : i64} {
  func.func @_recurrent_decode_kernel(%arg0: memref<8x16x128xbf16, #tpu.memory_space<vmem>>, %arg1: memref<8x16x128xf32, #tpu.memory_space<vmem>>, %arg2: memref<7x8x512xf32, #tpu.memory_space<vmem>>, %arg3: memref<128x256xbf16, #tpu.memory_space<vmem>>, %arg4: memref<1x256xf32, #tpu.memory_space<vmem>>, %arg5: memref<128x128xbf16, #tpu.memory_space<vmem>>, %arg6: memref<1x128xf32, #tpu.memory_space<vmem>>, %arg7: memref<1x128xbf16, #tpu.memory_space<vmem>>, %arg8: memref<1x128xbf16, #tpu.memory_space<vmem>>, %arg9: memref<1x1xf32, #tpu.memory_space<vmem>>, %arg10: memref<128x512xbf16, #tpu.memory_space<vmem>>, %arg11: memref<128x512xbf16, #tpu.memory_space<vmem>>, %arg12: memref<7x8x128xbf16, #tpu.memory_space<vmem>>) attributes {dimension_semantics = [], scalar_prefetch = 0 : i64, scratch_operands = 0 : i64, tpu.core_type = #tpu.core_type<tc>} {
    %c0 = arith.constant 0 : index
    %c0_0 = arith.constant 0 : index
    %c0_1 = arith.constant 0 : index
    %0 = vector.load %arg0[%c0, %c0_0, %c0_1] : memref<8x16x128xbf16, #tpu.memory_space<vmem>>, vector<8x16x128xbf16>
    %1 = arith.extf %0 : vector<8x16x128xbf16> to vector<8x16x128xf32>
    %c0_2 = arith.constant 0 : index
    %c0_3 = arith.constant 0 : index
    %c0_4 = arith.constant 0 : index
    %2 = vector.load %arg1[%c0_2, %c0_3, %c0_4] : memref<8x16x128xf32, #tpu.memory_space<vmem>>, vector<8x16x128xf32>
    %c0_5 = arith.constant 0 : index
    %c0_6 = arith.constant 0 : index
    %3 = vector.load %arg5[%c0_5, %c0_6] : memref<128x128xbf16, #tpu.memory_space<vmem>>, vector<128x128xbf16>
    %c0_7 = arith.constant 0 : index
    %c0_8 = arith.constant 0 : index
    %4 = vector.load %arg6[%c0_7, %c0_8] : memref<1x128xf32, #tpu.memory_space<vmem>>, vector<1x128xf32>
    %c0_9 = arith.constant 0 : index
    %c0_10 = arith.constant 0 : index
    %5 = vector.load %arg7[%c0_9, %c0_10] : memref<1x128xbf16, #tpu.memory_space<vmem>>, vector<1x128xbf16>
    %6 = arith.extf %5 : vector<1x128xbf16> to vector<1x128xf32>
    %7 = vector.shape_cast %6 : vector<1x128xf32> to vector<1x1x128xf32>
    %c0_11 = arith.constant 0 : index
    %c0_12 = arith.constant 0 : index
    %8 = vector.load %arg8[%c0_11, %c0_12] : memref<1x128xbf16, #tpu.memory_space<vmem>>, vector<1x128xbf16>
    %9 = arith.extf %8 : vector<1x128xbf16> to vector<1x128xf32>
    %c0_13 = arith.constant 0 : index
    %c0_14 = arith.constant 0 : index
    %10 = vector.load %arg9[%c0_13, %c0_14] : memref<1x1xf32, #tpu.memory_space<vmem>>, vector<1x1xf32>
    %c0_15 = arith.constant 0 : index
    %c0_16 = arith.constant 0 : index
    %11 = vector.load %arg10[%c0_15, %c0_16] : memref<128x512xbf16, #tpu.memory_space<vmem>>, vector<128x512xbf16>
    %c0_17 = arith.constant 0 : index
    %c0_18 = arith.constant 0 : index
    %12 = vector.load %arg11[%c0_17, %c0_18] : memref<128x512xbf16, #tpu.memory_space<vmem>>, vector<128x512xbf16>
    %cst = arith.constant dense<0.000000e+00> : vector<8x128xf32>
    %13 = vector.multi_reduction <add>, %1, %cst [1] : vector<8x16x128xf32> to vector<8x128xf32>
    %cst_19 = arith.constant 1.600000e+01 : f32
    %14 = vector.broadcast %cst_19 : f32 to vector<8x128xf32>
    %15 = arith.divf %13, %14 : vector<8x128xf32>
    %16 = arith.truncf %15 : vector<8x128xf32> to vector<8x128xbf16>
    %c0_20 = arith.constant 0 : index
    %c0_21 = arith.constant 0 : index
    %17 = vector.load %arg3[%c0_20, %c0_21] : memref<128x256xbf16, #tpu.memory_space<vmem>>, vector<128x256xbf16>
    %cst_22 = arith.constant dense<0.000000e+00> : vector<8x256xf32>
    %18 = tpu.matmul %16, %17, %cst_22 {dimension_numbers = #tpu.dot_dimension_numbers<[1], [0], [0], [1], [0, 0, 1, 1], [], []>} : vector<8x128xbf16>, vector<128x256xbf16>, vector<8x256xf32> -> vector<8x256xf32>
    %c0_23 = arith.constant 0 : index
    %c0_24 = arith.constant 0 : index
    %19 = vector.load %arg4[%c0_23, %c0_24] : memref<1x256xf32, #tpu.memory_space<vmem>>, vector<1x256xf32>
    %20 = vector.broadcast %19 : vector<1x256xf32> to vector<8x256xf32>
    %21 = arith.addf %18, %20 : vector<8x256xf32>
    %22 = vector.extract_strided_slice %21 {offsets = [0, 0], sizes = [8, 128], strides = [1, 1]} : vector<8x256xf32> to vector<8x128xf32>
    %23 = vector.extract_strided_slice %21 {offsets = [0, 128], sizes = [8, 128], strides = [1, 1]} : vector<8x256xf32> to vector<8x128xf32>
    %c0_i32 = arith.constant 0 : i32
    %24 = arith.truncf %22 : vector<8x128xf32> to vector<8x128xbf16>
    %cst_25 = arith.constant dense<0.000000e+00> : vector<8x128xf32>
    %25 = tpu.matmul %24, %3, %cst_25 {dimension_numbers = #tpu.dot_dimension_numbers<[1], [0], [0], [1], [0, 0, 1, 1], [], []>} : vector<8x128xbf16>, vector<128x128xbf16>, vector<8x128xf32> -> vector<8x128xf32>
    %26 = vector.broadcast %4 : vector<1x128xf32> to vector<8x128xf32>
    %27 = arith.addf %25, %26 : vector<8x128xf32>
    %28 = vector.shape_cast %27 : vector<8x128xf32> to vector<8x1x128xf32>
    %29 = vector.broadcast %28 : vector<8x1x128xf32> to vector<8x16x128xf32>
    %30 = arith.addf %2, %29 : vector<8x16x128xf32>
    %cst_26 = arith.constant 0.000000e+00 : f32
    %31 = vector.broadcast %cst_26 : f32 to vector<8x16x128xf32>
    %32 = arith.maximumf %30, %31 : vector<8x16x128xf32>
    %33 = vector.broadcast %7 : vector<1x1x128xf32> to vector<8x16x128xf32>
    %34 = arith.mulf %32, %33 : vector<8x16x128xf32>
    %cst_27 = arith.constant dense<0.000000e+00> : vector<8x16xf32>
    %35 = vector.multi_reduction <add>, %34, %cst_27 [2] : vector<8x16x128xf32> to vector<8x16xf32>
    %cst_28 = arith.constant dense<0xFF800000> : vector<8xf32>
    %36 = vector.multi_reduction <maximumf>, %35, %cst_28 [1] : vector<8x16xf32> to vector<8xf32>
    %37 = vector.shape_cast %36 : vector<8xf32> to vector<8x1xf32>
    %38 = vector.broadcast %37 : vector<8x1xf32> to vector<8x16xf32>
    %39 = arith.subf %35, %38 : vector<8x16xf32>
    %40 = math.exp %39 : vector<8x16xf32>
    %cst_29 = arith.constant dense<0.000000e+00> : vector<8xf32>
    %41 = vector.multi_reduction <add>, %40, %cst_29 [1] : vector<8x16xf32> to vector<8xf32>
    %42 = vector.shape_cast %41 : vector<8xf32> to vector<8x1xf32>
    %43 = vector.broadcast %42 : vector<8x1xf32> to vector<8x16xf32>
    %44 = arith.divf %40, %43 : vector<8x16xf32>
    %45 = vector.shape_cast %44 : vector<8x16xf32> to vector<8x16x1xf32>
    %46 = vector.broadcast %45 : vector<8x16x1xf32> to vector<8x16x128xf32>
    %47 = arith.mulf %46, %1 : vector<8x16x128xf32>
    %cst_30 = arith.constant dense<0.000000e+00> : vector<8x128xf32>
    %48 = vector.multi_reduction <add>, %47, %cst_30 [1] : vector<8x16x128xf32> to vector<8x128xf32>
    %49 = vector.broadcast %9 : vector<1x128xf32> to vector<8x128xf32>
    %50 = arith.mulf %22, %49 : vector<8x128xf32>
    %cst_31 = arith.constant dense<0.000000e+00> : vector<8xf32>
    %51 = vector.multi_reduction <add>, %50, %cst_31 [1] : vector<8x128xf32> to vector<8xf32>
    %52 = vector.shape_cast %51 : vector<8xf32> to vector<8x1xf32>
    %53 = vector.broadcast %10 : vector<1x1xf32> to vector<8x1xf32>
    %54 = arith.addf %52, %53 : vector<8x1xf32>
    %55 = vector.broadcast %54 : vector<8x1xf32> to vector<8x128xf32>
    %56 = arith.mulf %55, %48 : vector<8x128xf32>
    %57 = arith.index_cast %c0_i32 : i32 to index
    %c0_32 = arith.constant 0 : index
    %c0_33 = arith.constant 0 : index
    %58 = vector.load %arg2[%57, %c0_32, %c0_33] : memref<7x8x512xf32, #tpu.memory_space<vmem>>, vector<1x8x512xf32>
    %59 = vector.shape_cast %58 : vector<1x8x512xf32> to vector<8x512xf32>
    %60 = arith.truncf %56 : vector<8x128xf32> to vector<8x128xbf16>
    %cst_34 = arith.constant dense<0.000000e+00> : vector<8x512xf32>
    %61 = tpu.matmul %60, %11, %cst_34 {dimension_numbers = #tpu.dot_dimension_numbers<[1], [0], [0], [1], [0, 0, 1, 1], [], []>} : vector<8x128xbf16>, vector<128x512xbf16>, vector<8x512xf32> -> vector<8x512xf32>
    %62 = arith.addf %59, %61 : vector<8x512xf32>
    %cst_35 = arith.constant dense<0.000000e+00> : vector<8x512xf32>
    %63 = tpu.matmul %24, %12, %cst_35 {dimension_numbers = #tpu.dot_dimension_numbers<[1], [0], [0], [1], [0, 0, 1, 1], [], []>} : vector<8x128xbf16>, vector<128x512xbf16>, vector<8x512xf32> -> vector<8x512xf32>
    %64 = arith.addf %62, %63 : vector<8x512xf32>
    %65 = vector.extract_strided_slice %64 {offsets = [0, 0], sizes = [8, 128], strides = [1, 1]} : vector<8x512xf32> to vector<8x128xf32>
    %66 = arith.negf %65 : vector<8x128xf32>
    %67 = math.exp %66 : vector<8x128xf32>
    %cst_36 = arith.constant 1.000000e+00 : f32
    %68 = vector.broadcast %cst_36 : f32 to vector<8x128xf32>
    %69 = arith.addf %68, %67 : vector<8x128xf32>
    %70 = arith.divf %68, %69 : vector<8x128xf32>
    %71 = vector.extract_strided_slice %64 {offsets = [0, 128], sizes = [8, 128], strides = [1, 1]} : vector<8x512xf32> to vector<8x128xf32>
    %72 = arith.negf %71 : vector<8x128xf32>
    %73 = math.exp %72 : vector<8x128xf32>
    %cst_37 = arith.constant 1.000000e+00 : f32
    %74 = vector.broadcast %cst_37 : f32 to vector<8x128xf32>
    %75 = arith.addf %74, %73 : vector<8x128xf32>
    %76 = arith.divf %74, %75 : vector<8x128xf32>
    %77 = vector.extract_strided_slice %64 {offsets = [0, 256], sizes = [8, 128], strides = [1, 1]} : vector<8x512xf32> to vector<8x128xf32>
    %78 = math.tanh %77 : vector<8x128xf32>
    %79 = vector.extract_strided_slice %64 {offsets = [0, 384], sizes = [8, 128], strides = [1, 1]} : vector<8x512xf32> to vector<8x128xf32>
    %80 = arith.negf %79 : vector<8x128xf32>
    %81 = math.exp %80 : vector<8x128xf32>
    %cst_38 = arith.constant 1.000000e+00 : f32
    %82 = vector.broadcast %cst_38 : f32 to vector<8x128xf32>
    %83 = arith.addf %82, %81 : vector<8x128xf32>
    %84 = arith.divf %82, %83 : vector<8x128xf32>
    %85 = arith.mulf %76, %23 : vector<8x128xf32>
    %86 = arith.mulf %70, %78 : vector<8x128xf32>
    %87 = arith.addf %85, %86 : vector<8x128xf32>
    %88 = math.tanh %87 : vector<8x128xf32>
    %89 = arith.mulf %84, %88 : vector<8x128xf32>
    %90 = arith.truncf %89 : vector<8x128xf32> to vector<8x128xbf16>
    %91 = arith.index_cast %c0_i32 : i32 to index
    %c0_39 = arith.constant 0 : index
    %c0_40 = arith.constant 0 : index
    %92 = vector.load %arg12[%91, %c0_39, %c0_40] : memref<7x8x128xbf16, #tpu.memory_space<vmem>>, vector<1x8x128xbf16>
    %93 = vector.shape_cast %92 : vector<1x8x128xbf16> to vector<8x128xbf16>
    %94 = vector.shape_cast %90 : vector<8x128xbf16> to vector<1x8x128xbf16>
    tpu.vector_store %arg12[%91, %c0_39, %c0_40], %94 {strides = array<i32>} : memref<7x8x128xbf16, #tpu.memory_space<vmem>>, vector<1x8x128xbf16>,
    %c1_i32 = arith.constant 1 : i32
    %95 = arith.truncf %89 : vector<8x128xf32> to vector<8x128xbf16>
    %cst_41 = arith.constant dense<0.000000e+00> : vector<8x128xf32>
    %96 = tpu.matmul %95, %3, %cst_41 {dimension_numbers = #tpu.dot_dimension_numbers<[1], [0], [0], [1], [0, 0, 1, 1], [], []>} : vector<8x128xbf16>, vector<128x128xbf16>, vector<8x128xf32> -> vector<8x128xf32>
    %97 = vector.broadcast %4 : vector<1x128xf32> to vector<8x128xf32>
    %98 = arith.addf %96, %97 : vector<8x128xf32>
    %99 = vector.shape_cast %98 : vector<8x128xf32> to vector<8x1x128xf32>
    %100 = vector.broadcast %99 : vector<8x1x128xf32> to vector<8x16x128xf32>
    %101 = arith.addf %2, %100 : vector<8x16x128xf32>
    %cst_42 = arith.constant 0.000000e+00 : f32
    %102 = vector.broadcast %cst_42 : f32 to vector<8x16x128xf32>
    %103 = arith.maximumf %101, %102 : vector<8x16x128xf32>
    %104 = vector.broadcast %7 : vector<1x1x128xf32> to vector<8x16x128xf32>
    %105 = arith.mulf %103, %104 : vector<8x16x128xf32>
    %cst_43 = arith.constant dense<0.000000e+00> : vector<8x16xf32>
    %106 = vector.multi_reduction <add>, %105, %cst_43 [2] : vector<8x16x128xf32> to vector<8x16xf32>
    %cst_44 = arith.constant dense<0xFF800000> : vector<8xf32>
    %107 = vector.multi_reduction <maximumf>, %106, %cst_44 [1] : vector<8x16xf32> to vector<8xf32>
    %108 = vector.shape_cast %107 : vector<8xf32> to vector<8x1xf32>
    %109 = vector.broadcast %108 : vector<8x1xf32> to vector<8x16xf32>
    %110 = arith.subf %106, %109 : vector<8x16xf32>
    %111 = math.exp %110 : vector<8x16xf32>
    %cst_45 = arith.constant dense<0.000000e+00> : vector<8xf32>
    %112 = vector.multi_reduction <add>, %111, %cst_45 [1] : vector<8x16xf32> to vector<8xf32>
    %113 = vector.shape_cast %112 : vector<8xf32> to vector<8x1xf32>
    %114 = vector.broadcast %113 : vector<8x1xf32> to vector<8x16xf32>
    %115 = arith.divf %111, %114 : vector<8x16xf32>
    %116 = vector.shape_cast %115 : vector<8x16xf32> to vector<8x16x1xf32>
    %117 = vector.broadcast %116 : vector<8x16x1xf32> to vector<8x16x128xf32>
    %118 = arith.mulf %117, %1 : vector<8x16x128xf32>
    %cst_46 = arith.constant dense<0.000000e+00> : vector<8x128xf32>
    %119 = vector.multi_reduction <add>, %118, %cst_46 [1] : vector<8x16x128xf32> to vector<8x128xf32>
    %120 = vector.broadcast %9 : vector<1x128xf32> to vector<8x128xf32>
    %121 = arith.mulf %89, %120 : vector<8x128xf32>
    %cst_47 = arith.constant dense<0.000000e+00> : vector<8xf32>
    %122 = vector.multi_reduction <add>, %121, %cst_47 [1] : vector<8x128xf32> to vector<8xf32>
    %123 = vector.shape_cast %122 : vector<8xf32> to vector<8x1xf32>
    %124 = vector.broadcast %10 : vector<1x1xf32> to vector<8x1xf32>
    %125 = arith.addf %123, %124 : vector<8x1xf32>
    %126 = vector.broadcast %125 : vector<8x1xf32> to vector<8x128xf32>
    %127 = arith.mulf %126, %119 : vector<8x128xf32>
    %128 = arith.index_cast %c1_i32 : i32 to index
    %c0_48 = arith.constant 0 : index
    %c0_49 = arith.constant 0 : index
    %129 = vector.load %arg2[%128, %c0_48, %c0_49] : memref<7x8x512xf32, #tpu.memory_space<vmem>>, vector<1x8x512xf32>
    %130 = vector.shape_cast %129 : vector<1x8x512xf32> to vector<8x512xf32>
    %131 = arith.truncf %127 : vector<8x128xf32> to vector<8x128xbf16>
    %cst_50 = arith.constant dense<0.000000e+00> : vector<8x512xf32>
    %132 = tpu.matmul %131, %11, %cst_50 {dimension_numbers = #tpu.dot_dimension_numbers<[1], [0], [0], [1], [0, 0, 1, 1], [], []>} : vector<8x128xbf16>, vector<128x512xbf16>, vector<8x512xf32> -> vector<8x512xf32>
    %133 = arith.addf %130, %132 : vector<8x512xf32>
    %cst_51 = arith.constant dense<0.000000e+00> : vector<8x512xf32>
    %134 = tpu.matmul %95, %12, %cst_51 {dimension_numbers = #tpu.dot_dimension_numbers<[1], [0], [0], [1], [0, 0, 1, 1], [], []>} : vector<8x128xbf16>, vector<128x512xbf16>, vector<8x512xf32> -> vector<8x512xf32>
    %135 = arith.addf %133, %134 : vector<8x512xf32>
    %136 = vector.extract_strided_slice %135 {offsets = [0, 0], sizes = [8, 128], strides = [1, 1]} : vector<8x512xf32> to vector<8x128xf32>
    %137 = arith.negf %136 : vector<8x128xf32>
    %138 = math.exp %137 : vector<8x128xf32>
    %cst_52 = arith.constant 1.000000e+00 : f32
    %139 = vector.broadcast %cst_52 : f32 to vector<8x128xf32>
    %140 = arith.addf %139, %138 : vector<8x128xf32>
    %141 = arith.divf %139, %140 : vector<8x128xf32>
    %142 = vector.extract_strided_slice %135 {offsets = [0, 128], sizes = [8, 128], strides = [1, 1]} : vector<8x512xf32> to vector<8x128xf32>
    %143 = arith.negf %142 : vector<8x128xf32>
    %144 = math.exp %143 : vector<8x128xf32>
    %cst_53 = arith.constant 1.000000e+00 : f32
    %145 = vector.broadcast %cst_53 : f32 to vector<8x128xf32>
    %146 = arith.addf %145, %144 : vector<8x128xf32>
    %147 = arith.divf %145, %146 : vector<8x128xf32>
    %148 = vector.extract_strided_slice %135 {offsets = [0, 256], sizes = [8, 128], strides = [1, 1]} : vector<8x512xf32> to vector<8x128xf32>
    %149 = math.tanh %148 : vector<8x128xf32>
    %150 = vector.extract_strided_slice %135 {offsets = [0, 384], sizes = [8, 128], strides = [1, 1]} : vector<8x512xf32> to vector<8x128xf32>
    %151 = arith.negf %150 : vector<8x128xf32>
    %152 = math.exp %151 : vector<8x128xf32>
    %cst_54 = arith.constant 1.000000e+00 : f32
    %153 = vector.broadcast %cst_54 : f32 to vector<8x128xf32>
    %154 = arith.addf %153, %152 : vector<8x128xf32>
    %155 = arith.divf %153, %154 : vector<8x128xf32>
    %156 = arith.mulf %147, %87 : vector<8x128xf32>
    %157 = arith.mulf %141, %149 : vector<8x128xf32>
    %158 = arith.addf %156, %157 : vector<8x128xf32>
    %159 = math.tanh %158 : vector<8x128xf32>
    %160 = arith.mulf %155, %159 : vector<8x128xf32>
    %161 = arith.truncf %160 : vector<8x128xf32> to vector<8x128xbf16>
    %162 = arith.index_cast %c1_i32 : i32 to index
    %c0_55 = arith.constant 0 : index
    %c0_56 = arith.constant 0 : index
    %163 = vector.load %arg12[%162, %c0_55, %c0_56] : memref<7x8x128xbf16, #tpu.memory_space<vmem>>, vector<1x8x128xbf16>
    %164 = vector.shape_cast %163 : vector<1x8x128xbf16> to vector<8x128xbf16>
    %165 = vector.shape_cast %161 : vector<8x128xbf16> to vector<1x8x128xbf16>
    tpu.vector_store %arg12[%162, %c0_55, %c0_56], %165 {strides = array<i32>} : memref<7x8x128xbf16, #tpu.memory_space<vmem>>, vector<1x8x128xbf16>,
    %c2_i32 = arith.constant 2 : i32
    %166 = arith.truncf %160 : vector<8x128xf32> to vector<8x128xbf16>
    %cst_57 = arith.constant dense<0.000000e+00> : vector<8x128xf32>
    %167 = tpu.matmul %166, %3, %cst_57 {dimension_numbers = #tpu.dot_dimension_numbers<[1], [0], [0], [1], [0, 0, 1, 1], [], []>} : vector<8x128xbf16>, vector<128x128xbf16>, vector<8x128xf32> -> vector<8x128xf32>
    %168 = vector.broadcast %4 : vector<1x128xf32> to vector<8x128xf32>
    %169 = arith.addf %167, %168 : vector<8x128xf32>
    %170 = vector.shape_cast %169 : vector<8x128xf32> to vector<8x1x128xf32>
    %171 = vector.broadcast %170 : vector<8x1x128xf32> to vector<8x16x128xf32>
    %172 = arith.addf %2, %171 : vector<8x16x128xf32>
    %cst_58 = arith.constant 0.000000e+00 : f32
    %173 = vector.broadcast %cst_58 : f32 to vector<8x16x128xf32>
    %174 = arith.maximumf %172, %173 : vector<8x16x128xf32>
    %175 = vector.broadcast %7 : vector<1x1x128xf32> to vector<8x16x128xf32>
    %176 = arith.mulf %174, %175 : vector<8x16x128xf32>
    %cst_59 = arith.constant dense<0.000000e+00> : vector<8x16xf32>
    %177 = vector.multi_reduction <add>, %176, %cst_59 [2] : vector<8x16x128xf32> to vector<8x16xf32>
    %cst_60 = arith.constant dense<0xFF800000> : vector<8xf32>
    %178 = vector.multi_reduction <maximumf>, %177, %cst_60 [1] : vector<8x16xf32> to vector<8xf32>
    %179 = vector.shape_cast %178 : vector<8xf32> to vector<8x1xf32>
    %180 = vector.broadcast %179 : vector<8x1xf32> to vector<8x16xf32>
    %181 = arith.subf %177, %180 : vector<8x16xf32>
    %182 = math.exp %181 : vector<8x16xf32>
    %cst_61 = arith.constant dense<0.000000e+00> : vector<8xf32>
    %183 = vector.multi_reduction <add>, %182, %cst_61 [1] : vector<8x16xf32> to vector<8xf32>
    %184 = vector.shape_cast %183 : vector<8xf32> to vector<8x1xf32>
    %185 = vector.broadcast %184 : vector<8x1xf32> to vector<8x16xf32>
    %186 = arith.divf %182, %185 : vector<8x16xf32>
    %187 = vector.shape_cast %186 : vector<8x16xf32> to vector<8x16x1xf32>
    %188 = vector.broadcast %187 : vector<8x16x1xf32> to vector<8x16x128xf32>
    %189 = arith.mulf %188, %1 : vector<8x16x128xf32>
    %cst_62 = arith.constant dense<0.000000e+00> : vector<8x128xf32>
    %190 = vector.multi_reduction <add>, %189, %cst_62 [1] : vector<8x16x128xf32> to vector<8x128xf32>
    %191 = vector.broadcast %9 : vector<1x128xf32> to vector<8x128xf32>
    %192 = arith.mulf %160, %191 : vector<8x128xf32>
    %cst_63 = arith.constant dense<0.000000e+00> : vector<8xf32>
    %193 = vector.multi_reduction <add>, %192, %cst_63 [1] : vector<8x128xf32> to vector<8xf32>
    %194 = vector.shape_cast %193 : vector<8xf32> to vector<8x1xf32>
    %195 = vector.broadcast %10 : vector<1x1xf32> to vector<8x1xf32>
    %196 = arith.addf %194, %195 : vector<8x1xf32>
    %197 = vector.broadcast %196 : vector<8x1xf32> to vector<8x128xf32>
    %198 = arith.mulf %197, %190 : vector<8x128xf32>
    %199 = arith.index_cast %c2_i32 : i32 to index
    %c0_64 = arith.constant 0 : index
    %c0_65 = arith.constant 0 : index
    %200 = vector.load %arg2[%199, %c0_64, %c0_65] : memref<7x8x512xf32, #tpu.memory_space<vmem>>, vector<1x8x512xf32>
    %201 = vector.shape_cast %200 : vector<1x8x512xf32> to vector<8x512xf32>
    %202 = arith.truncf %198 : vector<8x128xf32> to vector<8x128xbf16>
    %cst_66 = arith.constant dense<0.000000e+00> : vector<8x512xf32>
    %203 = tpu.matmul %202, %11, %cst_66 {dimension_numbers = #tpu.dot_dimension_numbers<[1], [0], [0], [1], [0, 0, 1, 1], [], []>} : vector<8x128xbf16>, vector<128x512xbf16>, vector<8x512xf32> -> vector<8x512xf32>
    %204 = arith.addf %201, %203 : vector<8x512xf32>
    %cst_67 = arith.constant dense<0.000000e+00> : vector<8x512xf32>
    %205 = tpu.matmul %166, %12, %cst_67 {dimension_numbers = #tpu.dot_dimension_numbers<[1], [0], [0], [1], [0, 0, 1, 1], [], []>} : vector<8x128xbf16>, vector<128x512xbf16>, vector<8x512xf32> -> vector<8x512xf32>
    %206 = arith.addf %204, %205 : vector<8x512xf32>
    %207 = vector.extract_strided_slice %206 {offsets = [0, 0], sizes = [8, 128], strides = [1, 1]} : vector<8x512xf32> to vector<8x128xf32>
    %208 = arith.negf %207 : vector<8x128xf32>
    %209 = math.exp %208 : vector<8x128xf32>
    %cst_68 = arith.constant 1.000000e+00 : f32
    %210 = vector.broadcast %cst_68 : f32 to vector<8x128xf32>
    %211 = arith.addf %210, %209 : vector<8x128xf32>
    %212 = arith.divf %210, %211 : vector<8x128xf32>
    %213 = vector.extract_strided_slice %206 {offsets = [0, 128], sizes = [8, 128], strides = [1, 1]} : vector<8x512xf32> to vector<8x128xf32>
    %214 = arith.negf %213 : vector<8x128xf32>
    %215 = math.exp %214 : vector<8x128xf32>
    %cst_69 = arith.constant 1.000000e+00 : f32
    %216 = vector.broadcast %cst_69 : f32 to vector<8x128xf32>
    %217 = arith.addf %216, %215 : vector<8x128xf32>
    %218 = arith.divf %216, %217 : vector<8x128xf32>
    %219 = vector.extract_strided_slice %206 {offsets = [0, 256], sizes = [8, 128], strides = [1, 1]} : vector<8x512xf32> to vector<8x128xf32>
    %220 = math.tanh %219 : vector<8x128xf32>
    %221 = vector.extract_strided_slice %206 {offsets = [0, 384], sizes = [8, 128], strides = [1, 1]} : vector<8x512xf32> to vector<8x128xf32>
    %222 = arith.negf %221 : vector<8x128xf32>
    %223 = math.exp %222 : vector<8x128xf32>
    %cst_70 = arith.constant 1.000000e+00 : f32
    %224 = vector.broadcast %cst_70 : f32 to vector<8x128xf32>
    %225 = arith.addf %224, %223 : vector<8x128xf32>
    %226 = arith.divf %224, %225 : vector<8x128xf32>
    %227 = arith.mulf %218, %158 : vector<8x128xf32>
    %228 = arith.mulf %212, %220 : vector<8x128xf32>
    %229 = arith.addf %227, %228 : vector<8x128xf32>
    %230 = math.tanh %229 : vector<8x128xf32>
    %231 = arith.mulf %226, %230 : vector<8x128xf32>
    %232 = arith.truncf %231 : vector<8x128xf32> to vector<8x128xbf16>
    %233 = arith.index_cast %c2_i32 : i32 to index
    %c0_71 = arith.constant 0 : index
    %c0_72 = arith.constant 0 : index
    %234 = vector.load %arg12[%233, %c0_71, %c0_72] : memref<7x8x128xbf16, #tpu.memory_space<vmem>>, vector<1x8x128xbf16>
    %235 = vector.shape_cast %234 : vector<1x8x128xbf16> to vector<8x128xbf16>
    %236 = vector.shape_cast %232 : vector<8x128xbf16> to vector<1x8x128xbf16>
    tpu.vector_store %arg12[%233, %c0_71, %c0_72], %236 {strides = array<i32>} : memref<7x8x128xbf16, #tpu.memory_space<vmem>>, vector<1x8x128xbf16>,
    %c3_i32 = arith.constant 3 : i32
    %237 = arith.truncf %231 : vector<8x128xf32> to vector<8x128xbf16>
    %cst_73 = arith.constant dense<0.000000e+00> : vector<8x128xf32>
    %238 = tpu.matmul %237, %3, %cst_73 {dimension_numbers = #tpu.dot_dimension_numbers<[1], [0], [0], [1], [0, 0, 1, 1], [], []>} : vector<8x128xbf16>, vector<128x128xbf16>, vector<8x128xf32> -> vector<8x128xf32>
    %239 = vector.broadcast %4 : vector<1x128xf32> to vector<8x128xf32>
    %240 = arith.addf %238, %239 : vector<8x128xf32>
    %241 = vector.shape_cast %240 : vector<8x128xf32> to vector<8x1x128xf32>
    %242 = vector.broadcast %241 : vector<8x1x128xf32> to vector<8x16x128xf32>
    %243 = arith.addf %2, %242 : vector<8x16x128xf32>
    %cst_74 = arith.constant 0.000000e+00 : f32
    %244 = vector.broadcast %cst_74 : f32 to vector<8x16x128xf32>
    %245 = arith.maximumf %243, %244 : vector<8x16x128xf32>
    %246 = vector.broadcast %7 : vector<1x1x128xf32> to vector<8x16x128xf32>
    %247 = arith.mulf %245, %246 : vector<8x16x128xf32>
    %cst_75 = arith.constant dense<0.000000e+00> : vector<8x16xf32>
    %248 = vector.multi_reduction <add>, %247, %cst_75 [2] : vector<8x16x128xf32> to vector<8x16xf32>
    %cst_76 = arith.constant dense<0xFF800000> : vector<8xf32>
    %249 = vector.multi_reduction <maximumf>, %248, %cst_76 [1] : vector<8x16xf32> to vector<8xf32>
    %250 = vector.shape_cast %249 : vector<8xf32> to vector<8x1xf32>
    %251 = vector.broadcast %250 : vector<8x1xf32> to vector<8x16xf32>
    %252 = arith.subf %248, %251 : vector<8x16xf32>
    %253 = math.exp %252 : vector<8x16xf32>
    %cst_77 = arith.constant dense<0.000000e+00> : vector<8xf32>
    %254 = vector.multi_reduction <add>, %253, %cst_77 [1] : vector<8x16xf32> to vector<8xf32>
    %255 = vector.shape_cast %254 : vector<8xf32> to vector<8x1xf32>
    %256 = vector.broadcast %255 : vector<8x1xf32> to vector<8x16xf32>
    %257 = arith.divf %253, %256 : vector<8x16xf32>
    %258 = vector.shape_cast %257 : vector<8x16xf32> to vector<8x16x1xf32>
    %259 = vector.broadcast %258 : vector<8x16x1xf32> to vector<8x16x128xf32>
    %260 = arith.mulf %259, %1 : vector<8x16x128xf32>
    %cst_78 = arith.constant dense<0.000000e+00> : vector<8x128xf32>
    %261 = vector.multi_reduction <add>, %260, %cst_78 [1] : vector<8x16x128xf32> to vector<8x128xf32>
    %262 = vector.broadcast %9 : vector<1x128xf32> to vector<8x128xf32>
    %263 = arith.mulf %231, %262 : vector<8x128xf32>
    %cst_79 = arith.constant dense<0.000000e+00> : vector<8xf32>
    %264 = vector.multi_reduction <add>, %263, %cst_79 [1] : vector<8x128xf32> to vector<8xf32>
    %265 = vector.shape_cast %264 : vector<8xf32> to vector<8x1xf32>
    %266 = vector.broadcast %10 : vector<1x1xf32> to vector<8x1xf32>
    %267 = arith.addf %265, %266 : vector<8x1xf32>
    %268 = vector.broadcast %267 : vector<8x1xf32> to vector<8x128xf32>
    %269 = arith.mulf %268, %261 : vector<8x128xf32>
    %270 = arith.index_cast %c3_i32 : i32 to index
    %c0_80 = arith.constant 0 : index
    %c0_81 = arith.constant 0 : index
    %271 = vector.load %arg2[%270, %c0_80, %c0_81] : memref<7x8x512xf32, #tpu.memory_space<vmem>>, vector<1x8x512xf32>
    %272 = vector.shape_cast %271 : vector<1x8x512xf32> to vector<8x512xf32>
    %273 = arith.truncf %269 : vector<8x128xf32> to vector<8x128xbf16>
    %cst_82 = arith.constant dense<0.000000e+00> : vector<8x512xf32>
    %274 = tpu.matmul %273, %11, %cst_82 {dimension_numbers = #tpu.dot_dimension_numbers<[1], [0], [0], [1], [0, 0, 1, 1], [], []>} : vector<8x128xbf16>, vector<128x512xbf16>, vector<8x512xf32> -> vector<8x512xf32>
    %275 = arith.addf %272, %274 : vector<8x512xf32>
    %cst_83 = arith.constant dense<0.000000e+00> : vector<8x512xf32>
    %276 = tpu.matmul %237, %12, %cst_83 {dimension_numbers = #tpu.dot_dimension_numbers<[1], [0], [0], [1], [0, 0, 1, 1], [], []>} : vector<8x128xbf16>, vector<128x512xbf16>, vector<8x512xf32> -> vector<8x512xf32>
    %277 = arith.addf %275, %276 : vector<8x512xf32>
    %278 = vector.extract_strided_slice %277 {offsets = [0, 0], sizes = [8, 128], strides = [1, 1]} : vector<8x512xf32> to vector<8x128xf32>
    %279 = arith.negf %278 : vector<8x128xf32>
    %280 = math.exp %279 : vector<8x128xf32>
    %cst_84 = arith.constant 1.000000e+00 : f32
    %281 = vector.broadcast %cst_84 : f32 to vector<8x128xf32>
    %282 = arith.addf %281, %280 : vector<8x128xf32>
    %283 = arith.divf %281, %282 : vector<8x128xf32>
    %284 = vector.extract_strided_slice %277 {offsets = [0, 128], sizes = [8, 128], strides = [1, 1]} : vector<8x512xf32> to vector<8x128xf32>
    %285 = arith.negf %284 : vector<8x128xf32>
    %286 = math.exp %285 : vector<8x128xf32>
    %cst_85 = arith.constant 1.000000e+00 : f32
    %287 = vector.broadcast %cst_85 : f32 to vector<8x128xf32>
    %288 = arith.addf %287, %286 : vector<8x128xf32>
    %289 = arith.divf %287, %288 : vector<8x128xf32>
    %290 = vector.extract_strided_slice %277 {offsets = [0, 256], sizes = [8, 128], strides = [1, 1]} : vector<8x512xf32> to vector<8x128xf32>
    %291 = math.tanh %290 : vector<8x128xf32>
    %292 = vector.extract_strided_slice %277 {offsets = [0, 384], sizes = [8, 128], strides = [1, 1]} : vector<8x512xf32> to vector<8x128xf32>
    %293 = arith.negf %292 : vector<8x128xf32>
    %294 = math.exp %293 : vector<8x128xf32>
    %cst_86 = arith.constant 1.000000e+00 : f32
    %295 = vector.broadcast %cst_86 : f32 to vector<8x128xf32>
    %296 = arith.addf %295, %294 : vector<8x128xf32>
    %297 = arith.divf %295, %296 : vector<8x128xf32>
    %298 = arith.mulf %289, %229 : vector<8x128xf32>
    %299 = arith.mulf %283, %291 : vector<8x128xf32>
    %300 = arith.addf %298, %299 : vector<8x128xf32>
    %301 = math.tanh %300 : vector<8x128xf32>
    %302 = arith.mulf %297, %301 : vector<8x128xf32>
    %303 = arith.truncf %302 : vector<8x128xf32> to vector<8x128xbf16>
    %304 = arith.index_cast %c3_i32 : i32 to index
    %c0_87 = arith.constant 0 : index
    %c0_88 = arith.constant 0 : index
    %305 = vector.load %arg12[%304, %c0_87, %c0_88] : memref<7x8x128xbf16, #tpu.memory_space<vmem>>, vector<1x8x128xbf16>
    %306 = vector.shape_cast %305 : vector<1x8x128xbf16> to vector<8x128xbf16>
    %307 = vector.shape_cast %303 : vector<8x128xbf16> to vector<1x8x128xbf16>
    tpu.vector_store %arg12[%304, %c0_87, %c0_88], %307 {strides = array<i32>} : memref<7x8x128xbf16, #tpu.memory_space<vmem>>, vector<1x8x128xbf16>,
    %c4_i32 = arith.constant 4 : i32
    %308 = arith.truncf %302 : vector<8x128xf32> to vector<8x128xbf16>
    %cst_89 = arith.constant dense<0.000000e+00> : vector<8x128xf32>
    %309 = tpu.matmul %308, %3, %cst_89 {dimension_numbers = #tpu.dot_dimension_numbers<[1], [0], [0], [1], [0, 0, 1, 1], [], []>} : vector<8x128xbf16>, vector<128x128xbf16>, vector<8x128xf32> -> vector<8x128xf32>
    %310 = vector.broadcast %4 : vector<1x128xf32> to vector<8x128xf32>
    %311 = arith.addf %309, %310 : vector<8x128xf32>
    %312 = vector.shape_cast %311 : vector<8x128xf32> to vector<8x1x128xf32>
    %313 = vector.broadcast %312 : vector<8x1x128xf32> to vector<8x16x128xf32>
    %314 = arith.addf %2, %313 : vector<8x16x128xf32>
    %cst_90 = arith.constant 0.000000e+00 : f32
    %315 = vector.broadcast %cst_90 : f32 to vector<8x16x128xf32>
    %316 = arith.maximumf %314, %315 : vector<8x16x128xf32>
    %317 = vector.broadcast %7 : vector<1x1x128xf32> to vector<8x16x128xf32>
    %318 = arith.mulf %316, %317 : vector<8x16x128xf32>
    %cst_91 = arith.constant dense<0.000000e+00> : vector<8x16xf32>
    %319 = vector.multi_reduction <add>, %318, %cst_91 [2] : vector<8x16x128xf32> to vector<8x16xf32>
    %cst_92 = arith.constant dense<0xFF800000> : vector<8xf32>
    %320 = vector.multi_reduction <maximumf>, %319, %cst_92 [1] : vector<8x16xf32> to vector<8xf32>
    %321 = vector.shape_cast %320 : vector<8xf32> to vector<8x1xf32>
    %322 = vector.broadcast %321 : vector<8x1xf32> to vector<8x16xf32>
    %323 = arith.subf %319, %322 : vector<8x16xf32>
    %324 = math.exp %323 : vector<8x16xf32>
    %cst_93 = arith.constant dense<0.000000e+00> : vector<8xf32>
    %325 = vector.multi_reduction <add>, %324, %cst_93 [1] : vector<8x16xf32> to vector<8xf32>
    %326 = vector.shape_cast %325 : vector<8xf32> to vector<8x1xf32>
    %327 = vector.broadcast %326 : vector<8x1xf32> to vector<8x16xf32>
    %328 = arith.divf %324, %327 : vector<8x16xf32>
    %329 = vector.shape_cast %328 : vector<8x16xf32> to vector<8x16x1xf32>
    %330 = vector.broadcast %329 : vector<8x16x1xf32> to vector<8x16x128xf32>
    %331 = arith.mulf %330, %1 : vector<8x16x128xf32>
    %cst_94 = arith.constant dense<0.000000e+00> : vector<8x128xf32>
    %332 = vector.multi_reduction <add>, %331, %cst_94 [1] : vector<8x16x128xf32> to vector<8x128xf32>
    %333 = vector.broadcast %9 : vector<1x128xf32> to vector<8x128xf32>
    %334 = arith.mulf %302, %333 : vector<8x128xf32>
    %cst_95 = arith.constant dense<0.000000e+00> : vector<8xf32>
    %335 = vector.multi_reduction <add>, %334, %cst_95 [1] : vector<8x128xf32> to vector<8xf32>
    %336 = vector.shape_cast %335 : vector<8xf32> to vector<8x1xf32>
    %337 = vector.broadcast %10 : vector<1x1xf32> to vector<8x1xf32>
    %338 = arith.addf %336, %337 : vector<8x1xf32>
    %339 = vector.broadcast %338 : vector<8x1xf32> to vector<8x128xf32>
    %340 = arith.mulf %339, %332 : vector<8x128xf32>
    %341 = arith.index_cast %c4_i32 : i32 to index
    %c0_96 = arith.constant 0 : index
    %c0_97 = arith.constant 0 : index
    %342 = vector.load %arg2[%341, %c0_96, %c0_97] : memref<7x8x512xf32, #tpu.memory_space<vmem>>, vector<1x8x512xf32>
    %343 = vector.shape_cast %342 : vector<1x8x512xf32> to vector<8x512xf32>
    %344 = arith.truncf %340 : vector<8x128xf32> to vector<8x128xbf16>
    %cst_98 = arith.constant dense<0.000000e+00> : vector<8x512xf32>
    %345 = tpu.matmul %344, %11, %cst_98 {dimension_numbers = #tpu.dot_dimension_numbers<[1], [0], [0], [1], [0, 0, 1, 1], [], []>} : vector<8x128xbf16>, vector<128x512xbf16>, vector<8x512xf32> -> vector<8x512xf32>
    %346 = arith.addf %343, %345 : vector<8x512xf32>
    %cst_99 = arith.constant dense<0.000000e+00> : vector<8x512xf32>
    %347 = tpu.matmul %308, %12, %cst_99 {dimension_numbers = #tpu.dot_dimension_numbers<[1], [0], [0], [1], [0, 0, 1, 1], [], []>} : vector<8x128xbf16>, vector<128x512xbf16>, vector<8x512xf32> -> vector<8x512xf32>
    %348 = arith.addf %346, %347 : vector<8x512xf32>
    %349 = vector.extract_strided_slice %348 {offsets = [0, 0], sizes = [8, 128], strides = [1, 1]} : vector<8x512xf32> to vector<8x128xf32>
    %350 = arith.negf %349 : vector<8x128xf32>
    %351 = math.exp %350 : vector<8x128xf32>
    %cst_100 = arith.constant 1.000000e+00 : f32
    %352 = vector.broadcast %cst_100 : f32 to vector<8x128xf32>
    %353 = arith.addf %352, %351 : vector<8x128xf32>
    %354 = arith.divf %352, %353 : vector<8x128xf32>
    %355 = vector.extract_strided_slice %348 {offsets = [0, 128], sizes = [8, 128], strides = [1, 1]} : vector<8x512xf32> to vector<8x128xf32>
    %356 = arith.negf %355 : vector<8x128xf32>
    %357 = math.exp %356 : vector<8x128xf32>
    %cst_101 = arith.constant 1.000000e+00 : f32
    %358 = vector.broadcast %cst_101 : f32 to vector<8x128xf32>
    %359 = arith.addf %358, %357 : vector<8x128xf32>
    %360 = arith.divf %358, %359 : vector<8x128xf32>
    %361 = vector.extract_strided_slice %348 {offsets = [0, 256], sizes = [8, 128], strides = [1, 1]} : vector<8x512xf32> to vector<8x128xf32>
    %362 = math.tanh %361 : vector<8x128xf32>
    %363 = vector.extract_strided_slice %348 {offsets = [0, 384], sizes = [8, 128], strides = [1, 1]} : vector<8x512xf32> to vector<8x128xf32>
    %364 = arith.negf %363 : vector<8x128xf32>
    %365 = math.exp %364 : vector<8x128xf32>
    %cst_102 = arith.constant 1.000000e+00 : f32
    %366 = vector.broadcast %cst_102 : f32 to vector<8x128xf32>
    %367 = arith.addf %366, %365 : vector<8x128xf32>
    %368 = arith.divf %366, %367 : vector<8x128xf32>
    %369 = arith.mulf %360, %300 : vector<8x128xf32>
    %370 = arith.mulf %354, %362 : vector<8x128xf32>
    %371 = arith.addf %369, %370 : vector<8x128xf32>
    %372 = math.tanh %371 : vector<8x128xf32>
    %373 = arith.mulf %368, %372 : vector<8x128xf32>
    %374 = arith.truncf %373 : vector<8x128xf32> to vector<8x128xbf16>
    %375 = arith.index_cast %c4_i32 : i32 to index
    %c0_103 = arith.constant 0 : index
    %c0_104 = arith.constant 0 : index
    %376 = vector.load %arg12[%375, %c0_103, %c0_104] : memref<7x8x128xbf16, #tpu.memory_space<vmem>>, vector<1x8x128xbf16>
    %377 = vector.shape_cast %376 : vector<1x8x128xbf16> to vector<8x128xbf16>
    %378 = vector.shape_cast %374 : vector<8x128xbf16> to vector<1x8x128xbf16>
    tpu.vector_store %arg12[%375, %c0_103, %c0_104], %378 {strides = array<i32>} : memref<7x8x128xbf16, #tpu.memory_space<vmem>>, vector<1x8x128xbf16>,
    %c5_i32 = arith.constant 5 : i32
    %379 = arith.truncf %373 : vector<8x128xf32> to vector<8x128xbf16>
    %cst_105 = arith.constant dense<0.000000e+00> : vector<8x128xf32>
    %380 = tpu.matmul %379, %3, %cst_105 {dimension_numbers = #tpu.dot_dimension_numbers<[1], [0], [0], [1], [0, 0, 1, 1], [], []>} : vector<8x128xbf16>, vector<128x128xbf16>, vector<8x128xf32> -> vector<8x128xf32>
    %381 = vector.broadcast %4 : vector<1x128xf32> to vector<8x128xf32>
    %382 = arith.addf %380, %381 : vector<8x128xf32>
    %383 = vector.shape_cast %382 : vector<8x128xf32> to vector<8x1x128xf32>
    %384 = vector.broadcast %383 : vector<8x1x128xf32> to vector<8x16x128xf32>
    %385 = arith.addf %2, %384 : vector<8x16x128xf32>
    %cst_106 = arith.constant 0.000000e+00 : f32
    %386 = vector.broadcast %cst_106 : f32 to vector<8x16x128xf32>
    %387 = arith.maximumf %385, %386 : vector<8x16x128xf32>
    %388 = vector.broadcast %7 : vector<1x1x128xf32> to vector<8x16x128xf32>
    %389 = arith.mulf %387, %388 : vector<8x16x128xf32>
    %cst_107 = arith.constant dense<0.000000e+00> : vector<8x16xf32>
    %390 = vector.multi_reduction <add>, %389, %cst_107 [2] : vector<8x16x128xf32> to vector<8x16xf32>
    %cst_108 = arith.constant dense<0xFF800000> : vector<8xf32>
    %391 = vector.multi_reduction <maximumf>, %390, %cst_108 [1] : vector<8x16xf32> to vector<8xf32>
    %392 = vector.shape_cast %391 : vector<8xf32> to vector<8x1xf32>
    %393 = vector.broadcast %392 : vector<8x1xf32> to vector<8x16xf32>
    %394 = arith.subf %390, %393 : vector<8x16xf32>
    %395 = math.exp %394 : vector<8x16xf32>
    %cst_109 = arith.constant dense<0.000000e+00> : vector<8xf32>
    %396 = vector.multi_reduction <add>, %395, %cst_109 [1] : vector<8x16xf32> to vector<8xf32>
    %397 = vector.shape_cast %396 : vector<8xf32> to vector<8x1xf32>
    %398 = vector.broadcast %397 : vector<8x1xf32> to vector<8x16xf32>
    %399 = arith.divf %395, %398 : vector<8x16xf32>
    %400 = vector.shape_cast %399 : vector<8x16xf32> to vector<8x16x1xf32>
    %401 = vector.broadcast %400 : vector<8x16x1xf32> to vector<8x16x128xf32>
    %402 = arith.mulf %401, %1 : vector<8x16x128xf32>
    %cst_110 = arith.constant dense<0.000000e+00> : vector<8x128xf32>
    %403 = vector.multi_reduction <add>, %402, %cst_110 [1] : vector<8x16x128xf32> to vector<8x128xf32>
    %404 = vector.broadcast %9 : vector<1x128xf32> to vector<8x128xf32>
    %405 = arith.mulf %373, %404 : vector<8x128xf32>
    %cst_111 = arith.constant dense<0.000000e+00> : vector<8xf32>
    %406 = vector.multi_reduction <add>, %405, %cst_111 [1] : vector<8x128xf32> to vector<8xf32>
    %407 = vector.shape_cast %406 : vector<8xf32> to vector<8x1xf32>
    %408 = vector.broadcast %10 : vector<1x1xf32> to vector<8x1xf32>
    %409 = arith.addf %407, %408 : vector<8x1xf32>
    %410 = vector.broadcast %409 : vector<8x1xf32> to vector<8x128xf32>
    %411 = arith.mulf %410, %403 : vector<8x128xf32>
    %412 = arith.index_cast %c5_i32 : i32 to index
    %c0_112 = arith.constant 0 : index
    %c0_113 = arith.constant 0 : index
    %413 = vector.load %arg2[%412, %c0_112, %c0_113] : memref<7x8x512xf32, #tpu.memory_space<vmem>>, vector<1x8x512xf32>
    %414 = vector.shape_cast %413 : vector<1x8x512xf32> to vector<8x512xf32>
    %415 = arith.truncf %411 : vector<8x128xf32> to vector<8x128xbf16>
    %cst_114 = arith.constant dense<0.000000e+00> : vector<8x512xf32>
    %416 = tpu.matmul %415, %11, %cst_114 {dimension_numbers = #tpu.dot_dimension_numbers<[1], [0], [0], [1], [0, 0, 1, 1], [], []>} : vector<8x128xbf16>, vector<128x512xbf16>, vector<8x512xf32> -> vector<8x512xf32>
    %417 = arith.addf %414, %416 : vector<8x512xf32>
    %cst_115 = arith.constant dense<0.000000e+00> : vector<8x512xf32>
    %418 = tpu.matmul %379, %12, %cst_115 {dimension_numbers = #tpu.dot_dimension_numbers<[1], [0], [0], [1], [0, 0, 1, 1], [], []>} : vector<8x128xbf16>, vector<128x512xbf16>, vector<8x512xf32> -> vector<8x512xf32>
    %419 = arith.addf %417, %418 : vector<8x512xf32>
    %420 = vector.extract_strided_slice %419 {offsets = [0, 0], sizes = [8, 128], strides = [1, 1]} : vector<8x512xf32> to vector<8x128xf32>
    %421 = arith.negf %420 : vector<8x128xf32>
    %422 = math.exp %421 : vector<8x128xf32>
    %cst_116 = arith.constant 1.000000e+00 : f32
    %423 = vector.broadcast %cst_116 : f32 to vector<8x128xf32>
    %424 = arith.addf %423, %422 : vector<8x128xf32>
    %425 = arith.divf %423, %424 : vector<8x128xf32>
    %426 = vector.extract_strided_slice %419 {offsets = [0, 128], sizes = [8, 128], strides = [1, 1]} : vector<8x512xf32> to vector<8x128xf32>
    %427 = arith.negf %426 : vector<8x128xf32>
    %428 = math.exp %427 : vector<8x128xf32>
    %cst_117 = arith.constant 1.000000e+00 : f32
    %429 = vector.broadcast %cst_117 : f32 to vector<8x128xf32>
    %430 = arith.addf %429, %428 : vector<8x128xf32>
    %431 = arith.divf %429, %430 : vector<8x128xf32>
    %432 = vector.extract_strided_slice %419 {offsets = [0, 256], sizes = [8, 128], strides = [1, 1]} : vector<8x512xf32> to vector<8x128xf32>
    %433 = math.tanh %432 : vector<8x128xf32>
    %434 = vector.extract_strided_slice %419 {offsets = [0, 384], sizes = [8, 128], strides = [1, 1]} : vector<8x512xf32> to vector<8x128xf32>
    %435 = arith.negf %434 : vector<8x128xf32>
    %436 = math.exp %435 : vector<8x128xf32>
    %cst_118 = arith.constant 1.000000e+00 : f32
    %437 = vector.broadcast %cst_118 : f32 to vector<8x128xf32>
    %438 = arith.addf %437, %436 : vector<8x128xf32>
    %439 = arith.divf %437, %438 : vector<8x128xf32>
    %440 = arith.mulf %431, %371 : vector<8x128xf32>
    %441 = arith.mulf %425, %433 : vector<8x128xf32>
    %442 = arith.addf %440, %441 : vector<8x128xf32>
    %443 = math.tanh %442 : vector<8x128xf32>
    %444 = arith.mulf %439, %443 : vector<8x128xf32>
    %445 = arith.truncf %444 : vector<8x128xf32> to vector<8x128xbf16>
    %446 = arith.index_cast %c5_i32 : i32 to index
    %c0_119 = arith.constant 0 : index
    %c0_120 = arith.constant 0 : index
    %447 = vector.load %arg12[%446, %c0_119, %c0_120] : memref<7x8x128xbf16, #tpu.memory_space<vmem>>, vector<1x8x128xbf16>
    %448 = vector.shape_cast %447 : vector<1x8x128xbf16> to vector<8x128xbf16>
    %449 = vector.shape_cast %445 : vector<8x128xbf16> to vector<1x8x128xbf16>
    tpu.vector_store %arg12[%446, %c0_119, %c0_120], %449 {strides = array<i32>} : memref<7x8x128xbf16, #tpu.memory_space<vmem>>, vector<1x8x128xbf16>,
    %c6_i32 = arith.constant 6 : i32
    %450 = arith.truncf %444 : vector<8x128xf32> to vector<8x128xbf16>
    %cst_121 = arith.constant dense<0.000000e+00> : vector<8x128xf32>
    %451 = tpu.matmul %450, %3, %cst_121 {dimension_numbers = #tpu.dot_dimension_numbers<[1], [0], [0], [1], [0, 0, 1, 1], [], []>} : vector<8x128xbf16>, vector<128x128xbf16>, vector<8x128xf32> -> vector<8x128xf32>
    %452 = vector.broadcast %4 : vector<1x128xf32> to vector<8x128xf32>
    %453 = arith.addf %451, %452 : vector<8x128xf32>
    %454 = vector.shape_cast %453 : vector<8x128xf32> to vector<8x1x128xf32>
    %455 = vector.broadcast %454 : vector<8x1x128xf32> to vector<8x16x128xf32>
    %456 = arith.addf %2, %455 : vector<8x16x128xf32>
    %cst_122 = arith.constant 0.000000e+00 : f32
    %457 = vector.broadcast %cst_122 : f32 to vector<8x16x128xf32>
    %458 = arith.maximumf %456, %457 : vector<8x16x128xf32>
    %459 = vector.broadcast %7 : vector<1x1x128xf32> to vector<8x16x128xf32>
    %460 = arith.mulf %458, %459 : vector<8x16x128xf32>
    %cst_123 = arith.constant dense<0.000000e+00> : vector<8x16xf32>
    %461 = vector.multi_reduction <add>, %460, %cst_123 [2] : vector<8x16x128xf32> to vector<8x16xf32>
    %cst_124 = arith.constant dense<0xFF800000> : vector<8xf32>
    %462 = vector.multi_reduction <maximumf>, %461, %cst_124 [1] : vector<8x16xf32> to vector<8xf32>
    %463 = vector.shape_cast %462 : vector<8xf32> to vector<8x1xf32>
    %464 = vector.broadcast %463 : vector<8x1xf32> to vector<8x16xf32>
    %465 = arith.subf %461, %464 : vector<8x16xf32>
    %466 = math.exp %465 : vector<8x16xf32>
    %cst_125 = arith.constant dense<0.000000e+00> : vector<8xf32>
    %467 = vector.multi_reduction <add>, %466, %cst_125 [1] : vector<8x16xf32> to vector<8xf32>
    %468 = vector.shape_cast %467 : vector<8xf32> to vector<8x1xf32>
    %469 = vector.broadcast %468 : vector<8x1xf32> to vector<8x16xf32>
    %470 = arith.divf %466, %469 : vector<8x16xf32>
    %471 = vector.shape_cast %470 : vector<8x16xf32> to vector<8x16x1xf32>
    %472 = vector.broadcast %471 : vector<8x16x1xf32> to vector<8x16x128xf32>
    %473 = arith.mulf %472, %1 : vector<8x16x128xf32>
    %cst_126 = arith.constant dense<0.000000e+00> : vector<8x128xf32>
    %474 = vector.multi_reduction <add>, %473, %cst_126 [1] : vector<8x16x128xf32> to vector<8x128xf32>
    %475 = vector.broadcast %9 : vector<1x128xf32> to vector<8x128xf32>
    %476 = arith.mulf %444, %475 : vector<8x128xf32>
    %cst_127 = arith.constant dense<0.000000e+00> : vector<8xf32>
    %477 = vector.multi_reduction <add>, %476, %cst_127 [1] : vector<8x128xf32> to vector<8xf32>
    %478 = vector.shape_cast %477 : vector<8xf32> to vector<8x1xf32>
    %479 = vector.broadcast %10 : vector<1x1xf32> to vector<8x1xf32>
    %480 = arith.addf %478, %479 : vector<8x1xf32>
    %481 = vector.broadcast %480 : vector<8x1xf32> to vector<8x128xf32>
    %482 = arith.mulf %481, %474 : vector<8x128xf32>
    %483 = arith.index_cast %c6_i32 : i32 to index
    %c0_128 = arith.constant 0 : index
    %c0_129 = arith.constant 0 : index
    %484 = vector.load %arg2[%483, %c0_128, %c0_129] : memref<7x8x512xf32, #tpu.memory_space<vmem>>, vector<1x8x512xf32>
    %485 = vector.shape_cast %484 : vector<1x8x512xf32> to vector<8x512xf32>
    %486 = arith.truncf %482 : vector<8x128xf32> to vector<8x128xbf16>
    %cst_130 = arith.constant dense<0.000000e+00> : vector<8x512xf32>
    %487 = tpu.matmul %486, %11, %cst_130 {dimension_numbers = #tpu.dot_dimension_numbers<[1], [0], [0], [1], [0, 0, 1, 1], [], []>} : vector<8x128xbf16>, vector<128x512xbf16>, vector<8x512xf32> -> vector<8x512xf32>
    %488 = arith.addf %485, %487 : vector<8x512xf32>
    %cst_131 = arith.constant dense<0.000000e+00> : vector<8x512xf32>
    %489 = tpu.matmul %450, %12, %cst_131 {dimension_numbers = #tpu.dot_dimension_numbers<[1], [0], [0], [1], [0, 0, 1, 1], [], []>} : vector<8x128xbf16>, vector<128x512xbf16>, vector<8x512xf32> -> vector<8x512xf32>
    %490 = arith.addf %488, %489 : vector<8x512xf32>
    %491 = vector.extract_strided_slice %490 {offsets = [0, 0], sizes = [8, 128], strides = [1, 1]} : vector<8x512xf32> to vector<8x128xf32>
    %492 = arith.negf %491 : vector<8x128xf32>
    %493 = math.exp %492 : vector<8x128xf32>
    %cst_132 = arith.constant 1.000000e+00 : f32
    %494 = vector.broadcast %cst_132 : f32 to vector<8x128xf32>
    %495 = arith.addf %494, %493 : vector<8x128xf32>
    %496 = arith.divf %494, %495 : vector<8x128xf32>
    %497 = vector.extract_strided_slice %490 {offsets = [0, 128], sizes = [8, 128], strides = [1, 1]} : vector<8x512xf32> to vector<8x128xf32>
    %498 = arith.negf %497 : vector<8x128xf32>
    %499 = math.exp %498 : vector<8x128xf32>
    %cst_133 = arith.constant 1.000000e+00 : f32
    %500 = vector.broadcast %cst_133 : f32 to vector<8x128xf32>
    %501 = arith.addf %500, %499 : vector<8x128xf32>
    %502 = arith.divf %500, %501 : vector<8x128xf32>
    %503 = vector.extract_strided_slice %490 {offsets = [0, 256], sizes = [8, 128], strides = [1, 1]} : vector<8x512xf32> to vector<8x128xf32>
    %504 = math.tanh %503 : vector<8x128xf32>
    %505 = vector.extract_strided_slice %490 {offsets = [0, 384], sizes = [8, 128], strides = [1, 1]} : vector<8x512xf32> to vector<8x128xf32>
    %506 = arith.negf %505 : vector<8x128xf32>
    %507 = math.exp %506 : vector<8x128xf32>
    %cst_134 = arith.constant 1.000000e+00 : f32
    %508 = vector.broadcast %cst_134 : f32 to vector<8x128xf32>
    %509 = arith.addf %508, %507 : vector<8x128xf32>
    %510 = arith.divf %508, %509 : vector<8x128xf32>
    %511 = arith.mulf %502, %442 : vector<8x128xf32>
    %512 = arith.mulf %496, %504 : vector<8x128xf32>
    %513 = arith.addf %511, %512 : vector<8x128xf32>
    %514 = math.tanh %513 : vector<8x128xf32>
    %515 = arith.mulf %510, %514 : vector<8x128xf32>
    %516 = arith.truncf %515 : vector<8x128xf32> to vector<8x128xbf16>
    %517 = arith.index_cast %c6_i32 : i32 to index
    %c0_135 = arith.constant 0 : index
    %c0_136 = arith.constant 0 : index
    %518 = vector.load %arg12[%517, %c0_135, %c0_136] : memref<7x8x128xbf16, #tpu.memory_space<vmem>>, vector<1x8x128xbf16>
    %519 = vector.shape_cast %518 : vector<1x8x128xbf16> to vector<8x128xbf16>
    %520 = vector.shape_cast %516 : vector<8x128xbf16> to vector<1x8x128xbf16>
    tpu.vector_store %arg12[%517, %c0_135, %c0_136], %520 {strides = array<i32>} : memref<7x8x128xbf16, #tpu.memory_space<vmem>>, vector<1x8x128xbf16>,
    %c7_i32 = arith.constant 7 : i32
    return
  }
}

</mosaic_0001>

<bundles_post_ra>
// kernel: tpu_custom_call.1
= control target key start
LH: loop header
LB: loop body
LE: loop exit
PB: predicated region body
PF: predicated region fallthrough
CT: control target
= control target key end

     0   :  { %s12025_s0 = inlined_call_operand.hbm [shape: bf16[8,16,128], index: 0, kind: input, shape index: {}]   ;;  %s12026_s1 = inlined_call_operand.hbm [shape: f32[8,16,128], index: 1, kind: input, shape index: {}]   ;;  %s12027_s2 = inlined_call_operand.hbm [shape: f32[7,8,512], index: 2, kind: input, shape index: {}]   ;;  %s12028_s3 = inlined_call_operand.hbm [shape: bf16[128,256], index: 3, kind: input, shape index: {}]   ;;  %s12029_s4 = inlined_call_operand.vmem [shape: f32[1,256], index: 4, kind: input, shape index: {}]   ;;  %s12030_s5 = inlined_call_operand.hbm [shape: bf16[128,128], index: 5, kind: input, shape index: {}]   ;;  %s12031_s6 = inlined_call_operand.vmem [shape: f32[1,128], index: 6, kind: input, shape index: {}]   ;;  %s12032_s7 = inlined_call_operand.vmem [shape: bf16[1,128], index: 7, kind: input, shape index: {}]   ;;  %s12033_s8 = inlined_call_operand.vmem [shape: bf16[1,128], index: 8, kind: input, shape index: {}]   ;;  %s12034_s9 = inlined_call_operand.<no memory space> [shape: f32[1,1], index: 9, kind: input, shape index: {}]   ;;  %s12035_s10 = inlined_call_operand.hbm [shape: bf16[128,512], index: 10, kind: input, shape index: {}]   ;;  %s12036_s11 = inlined_call_operand.hbm [shape: bf16[128,512], index: 11, kind: input, shape index: {}]   ;;  %s12037_s12 = inlined_call_operand.hbm [shape: bf16[7,8,128], index: 12, kind: output, shape index: {}]  }
   0x1   :  { %v17_v0 = vstv %s12034_s9 }
   0x2   :  { %18 = vst [vmem:[#allocation2] sm:$0x1] %v17_v0 }
   0x3   :  { %19 = vsyncpa [#allocation4], 0 }
   0x4   :  { %20 = vsyncpa [#allocation7], 0 }
   0x5   :  { %21 = vsyncpa [#allocation10], 0 }
   0x6   :  { %22 = vsyncpa [#allocation13], 0 }
   0x7   :  { %23 = vsyncpa [#allocation5], 0  ;;  %s9619_s23 = smov [#allocation6]   ;;  %s9433_s27 = scalar_lea.hbm %s12026_s1, 2048 }
   0x8   :  { %s41_s24 = sshll.u32 %s9619_s23, 4  ;;  %p9434_p0 = scmp.ne.s32.totalorder %s12026_s1, %s9433_s27  ;;  %s42_s24 = int_to_ptr.vmem [resolvable:$true] %s41_s24 }
   0x9   :  { %p9437_p1 = scmp.lt.u32.totalorder %s9433_s27, %s12026_s1 }
   0xb   :  { %p9439_p2 = pnand %p9437_p1, %p9434_p0 }
   0xd   :  { %9442 = shalt.err (!%p9439_p2)
}
   0xe   :  { %s9443_s9 = scalar_lea.vmem %s42_s24, 2048  ;;  %p9448_p4 = scmp.lt.s32.totalorder %s42_s24, %s42_s24 }
   0xf   :  { %p9444_p3 = scmp.ne.s32.totalorder %s42_s24, %s9443_s9  ;;  %p9449_p5 = scmp.lt.s32.totalorder %s9443_s9, %s9443_s9 }
  0x11   :  { %p9450_p6 = por %p9449_p5, %p9448_p4 }
  0x13   :  { %p9451_p7 = pnand %p9450_p6, %p9444_p3 }
  0x15   :  { %9454 = shalt.err (!%p9451_p7)
}
  0x16   :  { %s9620_s14 = smov 128   ;;  %s9621_s15 = smov 8  }
  0x17   :  { %47 = dma.hbm_to_vmem [thread:$0]  %s12026_s1, 2048, %s42_s24, [#allocation7], %s9620_s14, %s9620_s14, %s9621_s15  }
  0x18   :  { %s9622_s18 = smov [#allocation9]   ;;  %s9623_s20 = smov [#allocation12]  }
  0x19   :  { %s65_s19 = sshll.u32 %s9622_s18, 4  ;;  %s99_s21 = sshll.u32 %s9623_s20, 4  ;;  %s66_s19 = int_to_ptr.vmem [resolvable:$true] %s65_s19  ;;  %s100_s21 = int_to_ptr.vmem [resolvable:$true] %s99_s21 }
  0x1a   :  { %s9455_s25 = scalar_lea.hbm %s12028_s3, 2048 }
  0x1b   :  { %p9456_p8 = scmp.ne.s32.totalorder %s12028_s3, %s9455_s25  ;;  %p9459_p9 = scmp.lt.u32.totalorder %s9455_s25, %s12028_s3 }
  0x1d   :  { %p9461_p10 = pnand %p9459_p9, %p9456_p8 }
  0x1f   :  { %9464 = shalt.err (!%p9461_p10)
}
  0x20   :  { %s9465_s1 = scalar_lea.vmem %s66_s19, 2048  ;;  %p9470_p12 = scmp.lt.s32.totalorder %s66_s19, %s66_s19 }
  0x21   :  { %p9466_p11 = scmp.ne.s32.totalorder %s66_s19, %s9465_s1  ;;  %p9471_p13 = scmp.lt.s32.totalorder %s9465_s1, %s9465_s1 }
  0x23   :  { %p9472_p0 = por %p9471_p13, %p9470_p12 }
  0x25   :  { %p9473_p1 = pnand %p9472_p0, %p9466_p11 }
  0x27   :  { %9476 = shalt.err (!%p9473_p1)
}
  0x28   :  { %71 = dma.hbm_to_vmem [thread:$0]  %s12028_s3, 2048, %s66_s19, [#allocation10], %s9620_s14, %s9620_s14, %s9621_s15  }
  0x29   :  { %s9477_s16 = scalar_lea.hbm %s12035_s10, 4096 }
  0x2a   :  { %p9478_p2 = scmp.ne.s32.totalorder %s12035_s10, %s9477_s16  ;;  %p9481_p3 = scmp.lt.u32.totalorder %s9477_s16, %s12035_s10 }
  0x2c   :  { %p9483_p4 = pnand %p9481_p3, %p9478_p2 }
  0x2e   :  { %9486 = shalt.err (!%p9483_p4)
}
  0x2f   :  { %s9487_s23 = scalar_lea.vmem %s100_s21, 4096  ;;  %p9492_p6 = scmp.lt.s32.totalorder %s100_s21, %s100_s21 }
  0x30   :  { %p9488_p5 = scmp.ne.s32.totalorder %s100_s21, %s9487_s23  ;;  %p9493_p7 = scmp.lt.s32.totalorder %s9487_s23, %s9487_s23 }
  0x32   :  { %p9494_p8 = por %p9493_p7, %p9492_p6 }
  0x34   :  { %p9495_p9 = pnand %p9494_p8, %p9488_p5 }
  0x36   :  { %9498 = shalt.err (!%p9495_p9)
}
  0x37   :  { %s9624_s3 = smov 256   ;;  %s9625_s14 = smov 16  }
  0x38   :  { %105 = dma.hbm_to_vmem [thread:$0]  %s12035_s10, 4096, %s100_s21, [#allocation13], %s9624_s3, %s9624_s3, %s9625_s14  }
  0x39   :  { %s9626_s25 = smov [#allocation3]   ;;  %s9499_s29 = scalar_lea.hbm %s12025_s0, 1024 }
  0x3a   :  { %s29_s26 = sshll.u32 %s9626_s25, 4  ;;  %p9500_p10 = scmp.ne.s32.totalorder %s12025_s0, %s9499_s29  ;;  %s30_s26 = int_to_ptr.vmem [resolvable:$true] %s29_s26 }
  0x3b   :  { %p9503_p11 = scmp.lt.u32.totalorder %s9499_s29, %s12025_s0 }
  0x3d   :  { %p9505_p12 = pnand %p9503_p11, %p9500_p10 }
  0x3f   :  { %9508 = shalt.err (!%p9505_p12)
}
  0x40   :  { %s9509_s9 = scalar_lea.vmem %s30_s26, 1024  ;;  %p9514_p0 = scmp.lt.s32.totalorder %s30_s26, %s30_s26 }
  0x41   :  { %p9510_p13 = scmp.ne.s32.totalorder %s30_s26, %s9509_s9  ;;  %p9515_p1 = scmp.lt.s32.totalorder %s9509_s9, %s9509_s9 }
  0x43   :  { %p9516_p2 = por %p9515_p1, %p9514_p0 }
  0x45   :  { %p9517_p3 = pnand %p9516_p2, %p9510_p13 }
  0x47   :  { %9520 = shalt.err (!%p9517_p3)
}
  0x48   :  { %s9627_s10 = smov 64   ;;  %s9628_s21 = smov 4  }
  0x49   :  { %35 = dma.hbm_to_vmem [thread:$0]  %s12025_s0, 1024, %s30_s26, [#allocation4], %s9627_s10, %s9627_s10, %s9628_s21  }
  0x4a   :  { %s9629_s18 = smov [#allocation8]   ;;  %s9521_s15 = scalar_lea.hbm %s12027_s2, 3584 }
  0x4b   :  { %s53_s20 = sshll.u32 %s9629_s18, 4  ;;  %p9522_p4 = scmp.ne.s32.totalorder %s12027_s2, %s9521_s15  ;;  %s54_s20 = int_to_ptr.vmem [resolvable:$true] %s53_s20 }
  0x4c   :  { %p9525_p5 = scmp.lt.u32.totalorder %s9521_s15, %s12027_s2 }
  0x4e   :  { %p9527_p6 = pnand %p9525_p5, %p9522_p4 }
  0x50   :  { %9530 = shalt.err (!%p9527_p6)
}
  0x51   :  { %s9531_s29 = scalar_lea.vmem %s54_s20, 3584  ;;  %p9536_p8 = scmp.lt.s32.totalorder %s54_s20, %s54_s20 }
  0x52   :  { %p9532_p7 = scmp.ne.s32.totalorder %s54_s20, %s9531_s29  ;;  %p9537_p9 = scmp.lt.s32.totalorder %s9531_s29, %s9531_s29 }
  0x54   :  { %p9538_p10 = por %p9537_p9, %p9536_p8 }
  0x56   :  { %p9539_p11 = pnand %p9538_p10, %p9532_p7 }
  0x58   :  { %9542 = shalt.err (!%p9539_p11)
}
  0x59   :  { %s9630_s0 = smov 512   ;;  %s9631_s26 = smov 32  }
  0x5a   :  { %59 = dma.hbm_to_vmem [thread:$0]  %s12027_s2, 3584, %s54_s20, [#allocation7], %s9630_s0, %s9630_s0, %s9631_s26  }
  0x5b   :  { %s9632_s30 = smov [#allocation11]   ;;  %s9633_s9 = smov [#allocation14]  }
  0x5c   :  { %s79_s13 = sshll.u32 %s9632_s30, 4  ;;  %s111_s16 = sshll.u32 %s9633_s9, 4  ;;  %s80_s13 = int_to_ptr.vmem [resolvable:$true] %s79_s13  ;;  %s112_s16 = int_to_ptr.vmem [resolvable:$true] %s111_s16 }
  0x5d   :  { %s9543_s22 = scalar_lea.hbm %s12030_s5, 1024 }
  0x5e   :  { %p9544_p12 = scmp.ne.s32.totalorder %s12030_s5, %s9543_s22  ;;  %p9547_p13 = scmp.lt.u32.totalorder %s9543_s22, %s12030_s5 }
  0x60   :  { %p9549_p0 = pnand %p9547_p13, %p9544_p12 }
  0x62   :  { %9552 = shalt.err (!%p9549_p0)
}
  0x63   :  { %s9553_s2 = scalar_lea.vmem %s80_s13, 1024  ;;  %p9558_p2 = scmp.lt.s32.totalorder %s80_s13, %s80_s13 }
  0x64   :  { %p9554_p1 = scmp.ne.s32.totalorder %s80_s13, %s9553_s2  ;;  %p9559_p3 = scmp.lt.s32.totalorder %s9553_s2, %s9553_s2 }
  0x66   :  { %p9560_p4 = por %p9559_p3, %p9558_p2 }
  0x68   :  { %p9561_p5 = pnand %p9560_p4, %p9554_p1 }
  0x6a   :  { %9564 = shalt.err (!%p9561_p5)
}
  0x6b   :  { %85 = dma.hbm_to_vmem [thread:$0]  %s12030_s5, 1024, %s80_s13, [#allocation10], %s9627_s10, %s9627_s10, %s9628_s21  }
  0x6c   :  { %s9565_s0 = scalar_lea.hbm %s12036_s11, 4096 }
  0x6d   :  { %p9566_p6 = scmp.ne.s32.totalorder %s12036_s11, %s9565_s0  ;;  %p9569_p7 = scmp.lt.u32.totalorder %s9565_s0, %s12036_s11 }
  0x6f   :  { %p9571_p8 = pnand %p9569_p7, %p9566_p6 }
  0x71   :  { %9574 = shalt.err (!%p9571_p8)
}
  0x72   :  { %s9575_s9 = scalar_lea.vmem %s112_s16, 4096  ;;  %p9580_p10 = scmp.lt.s32.totalorder %s112_s16, %s112_s16 }
  0x73   :  { %p9576_p9 = scmp.ne.s32.totalorder %s112_s16, %s9575_s9  ;;  %p9581_p11 = scmp.lt.s32.totalorder %s9575_s9, %s9575_s9 }
  0x75   :  { %p9582_p12 = por %p9581_p11, %p9580_p10 }
  0x77   :  { %p9583_p13 = pnand %p9582_p12, %p9576_p9 }
  0x79   :  { %9586 = shalt.err (!%p9583_p13)
}
  0x7a   :  { %117 = dma.hbm_to_vmem [thread:$0]  %s12036_s11, 4096, %s112_s16, [#allocation13], %s9624_s3, %s9624_s3, %s9625_s14  }
  0x7b   :  { %9609 = dma.done.wait [#allocation4], 1024  }
  0x7c   :  { %9610 = vsyncadd [#allocation4], 4294966272 }
  0x7d   :  { %9611 = dma.done.wait [#allocation7], 5632  }
  0x7e   :  { %9612 = vsyncadd [#allocation7], 4294961664 }
  0x7f   :  { %9613 = dma.done.wait [#allocation10], 3072  }
  0x80   :  { %9614 = vsyncadd [#allocation10], 4294964224 }
  0x81   :  { %9615 = dma.done.wait [#allocation13], 8192  }
  0x82   :  { %9616 = vsyncadd [#allocation13], 4294959104  ;;  %v12040_v1 = vmov 0   ;;  %v12038_v2 = vmov 0.0   ;;  %v8350_v3 = vld [vmem:[#allocation9 + $0x4] ss:$8 sps:$4 sm:$0xff]  }
  0x83   :  { %519 = vmatprep.mubr.bf16.mxu0 %v12040_v1  ;;  %8349 = vset.pattern.permute.xlu0 %v12040_v1  ;;  %v8352_v4 = vld [vmem:[#allocation9] ss:$8 sps:$4 sm:$0xff]   ;;  %v8353_v5 = vld [vmem:[#allocation9 + $0x14] ss:$8 sps:$4 sm:$0xff]   ;;  %v8355_v6 = vld [vmem:[#allocation9 + $0x10] ss:$8 sps:$4 sm:$0xff]  }
  0x84   :  { %8348 = vset.pattern.permute.xlu1 %v12040_v1  ;;  %8104 = vmatprep.subr.bf16.mxu1 %v12038_v2  ;;  %v8356_v7 = vld [vmem:[#allocation9 + $0x24] ss:$8 sps:$4 sm:$0xff]   ;;  %v8358_v8 = vld [vmem:[#allocation9 + $0x20] ss:$8 sps:$4 sm:$0xff]   ;;  %v8359_v9 = vld [vmem:[#allocation9 + $0x34] ss:$8 sps:$4 sm:$0xff]  }
  0x85   :  { %487 = vmatprep.subr.bf16.mxu0 %v8350_v3  ;;  %v8361_v10 = vld [vmem:[#allocation9 + $0x30] ss:$8 sps:$4 sm:$0xff]   ;;  %v8362_v11 = vld [vmem:[#allocation9 + $0x44] ss:$8 sps:$4 sm:$0xff]   ;;  %v8364_v35 = vld [vmem:[#allocation9 + $0x40] ss:$8 sps:$4 sm:$0xff]  }
  0x86   :  { %488 = vmatpush1.bf16.msra.mxu0 %v8352_v4  ;;  %v8003_v12 = vld [vmem:[#allocation3] sm:$0xff]   ;;  %v8034_v15 = vld [vmem:[#allocation3 + $0x8] sm:$0xff]   ;;  %v8035_v16 = vld [vmem:[#allocation3 + $0x10] sm:$0xff]   ;;  %vm391_vm0 = vcmask 1041409   ;;  %vm393_vm1 = vcmask 1042434   ;;  %vm395_vm2 = vcmask 1043459  }
  0x87   :  { %489 = vmatprep.subr.bf16.mxu0 %v8353_v5  ;;  %v9807_v13 = vunpack.c.l.bf16 %v8003_v12  ;;  %v9809_v14 = vunpack.c.h.bf16 %v8003_v12  ;;  %v8036_v17 = vld [vmem:[#allocation3 + $0x18] sm:$0xff]   ;;  %v9811_v18 = vunpack.c.l.bf16 %v8034_v15  ;;  %v9813_v19 = vunpack.c.h.bf16 %v8034_v15  ;;  %v8037_v22 = vld [vmem:[#allocation3 + $0x20] sm:$0xff]   ;;  %v8038_v23 = vld [vmem:[#allocation3 + $0x28] sm:$0xff]  }
  0x88   :  { %v9815_v20 = vunpack.c.l.bf16 %v8035_v16  ;;  %v9817_v21 = vunpack.c.h.bf16 %v8035_v16  ;;  %v8039_v24 = vld [vmem:[#allocation3 + $0x30] sm:$0xff]   ;;  %v9819_v25 = vunpack.c.l.bf16 %v8036_v17  ;;  %v9821_v26 = vunpack.c.h.bf16 %v8036_v17  ;;  %v8040_v29 = vld [vmem:[#allocation3 + $0x38] sm:$0xff]   ;;  %v8374_v34 = vld [vmem:[#allocation11] sm:$0xff]  }
  0x89   :  { %12140 = vst [vmem:[#allocation21_spill] sm:$0xff] %v9807_v13  ;;  %12141 = vst [vmem:[#allocation22_spill] sm:$0xff] %v9809_v14  ;;  %v9823_v27 = vunpack.c.l.bf16 %v8037_v22  ;;  %v9825_v28 = vunpack.c.h.bf16 %v8037_v22  ;;  %v9827_v30 = vunpack.c.l.bf16 %v8038_v23  ;;  %v9829_v31 = vunpack.c.h.bf16 %v8038_v23  ;;  %v8365_v40 = vld [vmem:[#allocation9 + $0x54] ss:$8 sps:$4 sm:$0xff]   ;;  %v8367_v45 = vld [vmem:[#allocation9 + $0x50] ss:$8 sps:$4 sm:$0xff]   ;;  %8105 = vmatpush3.bf16.msra.mxu1 %v8374_v34 }
  0x8a   :  { %490 = vmatpush1.bf16.msra.mxu0 %v8355_v6  ;;  %12142 = vst [vmem:[#allocation23_spill] sm:$0xff] %v9811_v18  ;;  %12143 = vst [vmem:[#allocation24_spill] sm:$0xff] %v9813_v19  ;;  %v9831_v32 = vunpack.c.l.bf16 %v8039_v24  ;;  %v9833_v33 = vunpack.c.h.bf16 %v8039_v24  ;;  %v9835_v36 = vunpack.c.l.bf16 %v8040_v29  ;;  %v9837_v37 = vunpack.c.h.bf16 %v8040_v29  ;;  %v8375_v50 = vld [vmem:[#allocation11 + $0x8] sm:$0xff]   ;;  %8106 = vmatprep.subr.bf16.mxu1 %v12038_v2  ;;  %v8377_v23 = vld [vmem:[#allocation11 + $0x18] sm:$0xff]  }
  0x8b   :  { %491 = vmatprep.subr.bf16.mxu0 %v8356_v7  ;;  %12144 = vst [vmem:[#allocation25_spill] sm:$0xff] %v9815_v20  ;;  %12145 = vst [vmem:[#allocation26_spill] sm:$0xff] %v9817_v21  ;;  %v274_v38 = vadd.f32 %v9809_v14, %v9807_v13  ;;  %v281_v39 = vadd.f32 %v9813_v19, %v9811_v18  ;;  %v288_v41 = vadd.f32 %v9817_v21, %v9815_v20  ;;  %v8368_v59 = vld [vmem:[#allocation9 + $0x64] ss:$8 sps:$4 sm:$0xff]   ;;  %v8370_v0 = vld [vmem:[#allocation9 + $0x60] ss:$8 sps:$4 sm:$0xff]  }
  0x8c   :  { %12146 = vst [vmem:[#allocation27_spill] sm:$0xff] %v9819_v25  ;;  %12147 = vst [vmem:[#allocation28_spill] sm:$0xff] %v9821_v26  ;;  %v295_v42 = vadd.f32 %v9821_v26, %v9819_v25  ;;  %v302_v43 = vadd.f32 %v9825_v28, %v9823_v27  ;;  %v309_v44 = vadd.f32 %v9829_v31, %v9827_v30  ;;  %v8376_v7 = vld [vmem:[#allocation11 + $0x10] sm:$0xff]   ;;  %vm397_vm3 = vcmask 1044484  }
  0x8d   :  { %12148 = vst [vmem:[#allocation29_spill] sm:$0xff] %v9823_v27  ;;  %12149 = vst [vmem:[#allocation30_spill] sm:$0xff] %v9825_v28  ;;  %v275_v46 = vrot.slane %v274_v38, 4  ;;  %v282_v47 = vrot.slane %v281_v39, 4  ;;  %v316_v48 = vadd.f32 %v9833_v33, %v9831_v32  ;;  %v323_v49 = vadd.f32 %v9837_v37, %v9835_v36  ;;  %8107 = vmatpush3.bf16.msra.mxu1 %v8375_v50 }
  0x8e   :  { %492 = vmatpush1.bf16.msra.mxu0 %v8358_v8  ;;  %12150 = vst [vmem:[#allocation31_spill] sm:$0xff] %v9827_v30  ;;  %12151 = vst [vmem:[#allocation32_spill] sm:$0xff] %v9829_v31  ;;  %v289_v51 = vrot.slane %v288_v41, 4  ;;  %v296_v52 = vrot.slane %v295_v42, 4  ;;  %v303_v53 = vrot.slane %v302_v43, 4  ;;  %v310_v54 = vrot.slane %v309_v44, 4  ;;  %8108 = vmatprep.subr.bf16.mxu1 %v12038_v2 }
  0x8f   :  { %493 = vmatprep.subr.bf16.mxu0 %v8359_v9  ;;  %12152 = vst [vmem:[#allocation33_spill] sm:$0xff] %v9831_v32  ;;  %12153 = vst [vmem:[#allocation34_spill] sm:$0xff] %v9833_v33  ;;  %v276_v55 = vadd.f32 %v275_v46, %v274_v38  ;;  %v283_v56 = vadd.f32 %v282_v47, %v281_v39  ;;  %v317_v57 = vrot.slane %v316_v48, 4  ;;  %v324_v58 = vrot.slane %v323_v49, 4  ;;  %v8371_v8 = vld [vmem:[#allocation9 + $0x74] ss:$8 sps:$4 sm:$0xff]  }
  0x90   :  { %12154 = vst [vmem:[#allocation35_spill] sm:$0xff] %v9835_v36  ;;  %12155 = vst [vmem:[#allocation36_spill] sm:$0xff] %v9837_v37  ;;  %v290_v60 = vadd.f32 %v289_v51, %v288_v41  ;;  %v297_v61 = vadd.f32 %v296_v52, %v295_v42  ;;  %v304_v62 = vadd.f32 %v303_v53, %v302_v43  ;;  %v8373_v38 = vld [vmem:[#allocation9 + $0x70] ss:$8 sps:$4 sm:$0xff]   ;;  %v8378_v51 = vld [vmem:[#allocation11 + $0x20] sm:$0xff]   ;;  %vm399_vm4 = vcmask 1045509  }
  0x91   :  { %v311_v63 = vadd.f32 %v310_v54, %v309_v44  ;;  %v277_v3 = vrot.slane %v276_v55, 2  ;;  %v284_v4 = vrot.slane %v283_v56, 2  ;;  %v318_v5 = vadd.f32 %v317_v57, %v316_v48  ;;  %8109 = vmatpush3.bf16.msra.mxu1 %v8376_v7 }
  0x92   :  { %494 = vmatpush1.bf16.msra.mxu0 %v8361_v10  ;;  %v325_v6 = vadd.f32 %v324_v58, %v323_v49  ;;  %v291_v9 = vrot.slane %v290_v60, 2  ;;  %v298_v10 = vrot.slane %v297_v61, 2  ;;  %8110 = vmatprep.subr.bf16.mxu1 %v12038_v2  ;;  %vm401_vm5 = vcmask 1046534  }
  0x93   :  { %495 = vmatprep.subr.bf16.mxu0 %v8362_v11  ;;  %v305_v11 = vrot.slane %v304_v62, 2  ;;  %v312_v12 = vrot.slane %v311_v63, 2  ;;  %v278_v15 = vadd.f32 %v277_v3, %v276_v55  ;;  %v285_v16 = vadd.f32 %v284_v4, %v283_v56 }
  0x94   :  { %v319_v17 = vrot.slane %v318_v5, 2  ;;  %v326_v22 = vrot.slane %v325_v6, 2  ;;  %v292_v24 = vadd.f32 %v291_v9, %v290_v60  ;;  %v299_v29 = vadd.f32 %v298_v10, %v297_v61 }
  0x95   :  { %v306_v34 = vadd.f32 %v305_v11, %v304_v62  ;;  %v279_v39 = vrot.slane %v278_v15, 1  ;;  %8111 = vmatpush3.bf16.msra.mxu1 %v8377_v23  ;;  %vm403_vm6 = vcmask 1047559   ;;  %vm9636_vm7 = vmmov 0  }
  0x96   :  { %496 = vmatpush1.bf16.msra.mxu0 %v8364_v35  ;;  %v313_v35 = vadd.f32 %v312_v12, %v311_v63  ;;  %v320_v41 = vadd.f32 %v319_v17, %v318_v5  ;;  %v327_v42 = vadd.f32 %v326_v22, %v325_v6  ;;  %v293_v43 = vrot.slane %v292_v24, 1  ;;  %8112 = vmatprep.subr.bf16.mxu1 %v12038_v2  ;;  %v8379_v6 = vld [vmem:[#allocation11 + $0x28] sm:$0xff]  }
  0x97   :  { %497 = vmatprep.subr.bf16.mxu0 %v8365_v40  ;;  %v286_v40 = vrot.slane %v285_v16, 1  ;;  %v300_v44 = vrot.slane %v299_v29, 1  ;;  %v280_v47 = vadd.f32 %v279_v39, %v278_v15  ;;  %8120 = vmatprep.mubr.msk.bf16.mxu1 %vm9636_vm7, %v12038_v2  ;;  %vm824_vm8 = vcmask 130112  }
  0x98   :  { %v314_v46 = vrot.slane %v313_v35, 1  ;;  %v321_v49 = vrot.slane %v320_v41, 1  ;;  %v328_v50 = vrot.slane %v327_v42, 1  ;;  %v294_v52 = vadd.f32 %v293_v43, %v292_v24 }
  0x99   :  { %v287_v48 = vadd.f32 %v286_v40, %v285_v16  ;;  %v301_v53 = vadd.f32 %v300_v44, %v299_v29  ;;  %v331_v58 = vmul.f32 0.0625, %v280_v47  ;;  %8113 = vmatpush3.bf16.msra.mxu1 %v8378_v51  ;;  %v365_v47 = vlaneseq }
  0x9a   :  { %498 = vmatpush1.bf16.msra.mxu0 %v8367_v45  ;;  %v307_v45 = vrot.slane %v306_v34, 1  ;;  %v315_v55 = vadd.f32 %v314_v46, %v313_v35  ;;  %v322_v56 = vadd.f32 %v321_v49, %v320_v41  ;;  %v329_v57 = vadd.f32 %v328_v50, %v327_v42  ;;  %8114 = vmatprep.subr.bf16.mxu1 %v12038_v2  ;;  %v8381_v46 = vld [vmem:[#allocation11 + $0x38] sm:$0xff]  }
  0x9b   :  { %499 = vmatprep.subr.bf16.mxu0 %v8368_v59  ;;  %v332_v59 = vmul.f32 0.0625, %v287_v48  ;;  %v333_v60 = vmul.f32 0.0625, %v294_v52  ;;  %v334_v61 = vmul.f32 0.0625, %v301_v53  ;;  %v339_v4 = vpack.c.bf16 %v331_v58, %v331_v58  ;;  %v363_v50 = vld [vmem:[%s12029_s4] sm:$0x3] }
  0x9c   :  { %v308_v54 = vadd.f32 %v307_v45, %v306_v34  ;;  %v336_v63 = vmul.f32 0.0625, %v315_v55  ;;  %v338_v3 = vmul.f32 0.0625, %v329_v57  ;;  %v8380_v34 = vld [vmem:[#allocation11 + $0x30] sm:$0xff]   ;;  %v9873_v48 = vshrl.u32 %v365_v47, 7 }
  0x9d   :  { %v340_v5 = vpack.c.bf16 %v332_v59, %v332_v59  ;;  %v341_v7 = vpack.c.bf16 %v333_v60, %v333_v60  ;;  %v383_v15 = vunpack.c.l.b16 %v339_v4  ;;  %8115 = vmatpush3.bf16.msra.mxu1 %v8379_v6  ;;  %v9637_v58 = vmov 1966171168  }
  0x9e   :  { %500 = vmatpush1.bf16.msra.mxu0 %v8370_v0  ;;  %v335_v62 = vmul.f32 0.0625, %v308_v54  ;;  %v337_v0 = vmul.f32 0.0625, %v322_v56  ;;  %v344_v10 = vpack.c.bf16 %v336_v63, %v336_v63  ;;  %v346_v12 = vpack.c.bf16 %v338_v3, %v338_v3  ;;  %8116 = vmatprep.subr.bf16.mxu1 %v12038_v2 }
  0x9f   :  { %501 = vmatprep.subr.bf16.mxu0 %v8371_v8  ;;  %v342_v8 = vpack.c.bf16 %v334_v61, %v334_v61  ;;  %v384_v16 = vunpack.c.l.b16 %v340_v5  ;;  %v385_v17 = vunpack.c.l.b16 %v341_v7  ;;  %v9876_v49 = vsub.s32 0, %v9873_v48  ;;  %v7907_v61 = vld [vmem:[%s12031_s6] ss:$0 sm:$0xff] }
  0xa0   :  { %v343_v9 = vpack.c.bf16 %v335_v62, %v335_v62  ;;  %v345_v11 = vpack.c.bf16 %v337_v0, %v337_v0  ;;  %v388_v24 = vunpack.c.l.b16 %v344_v10  ;;  %v390_v39 = vunpack.c.l.b16 %v346_v12  ;;  %v205_v5 = vld [vmem:[%s12032_s7] sm:$0x1] }
  0xa1   :  { %v386_v22 = vunpack.c.l.b16 %v342_v8  ;;  %v392_v29 = vsel %vm391_vm0, %v384_v16, %v383_v15  ;;  %8117 = vmatpush3.bf16.msra.mxu1 %v8380_v34  ;;  %12156 = vst [vmem:[#allocation37_spill] sm:$0xff] %v9876_v49  ;;  %v368_v51 = vrot.slane %v363_v50, %v9876_v49  ;;  %v626_v59 = vunpack.c.l.s4 %v9637_v58  ;;  %v172_v15 = vld [vmem:[#allocation6] sm:$0xff]  ;;  %v173_v16 = vld [vmem:[#allocation6 + $0x8] sm:$0xff] }
  0xa2   :  { %502 = vmatpush1.bf16.msra.mxu0 %v8373_v38  ;;  %v387_v23 = vunpack.c.l.b16 %v343_v9  ;;  %v389_v35 = vunpack.c.l.b16 %v345_v11  ;;  %v394_v38 = vsel %vm393_vm1, %v385_v17, %v392_v29  ;;  %8118 = vmatprep.subr.bf16.mxu1 %v12038_v2  ;;  %v206_v12 = vunpack.c.l.bf16 %v205_v5  ;;  %v180_v58 = vld [vmem:[#allocation6 + $0x40] sm:$0xff] }
  0xa3   :  { %v396_v40 = vsel %vm395_vm2, %v386_v22, %v394_v38  ;;  %v627_v60 = vunpack.c.0.s8 %v626_v59  ;;  %vm897_vm9 = vcmask 130048  }
  0xa4   :  { %v398_v41 = vsel %vm397_vm3, %v387_v23, %v396_v40  ;;  %v9908_v34 = vrot.slane %v206_v12, %v9876_v49 }
  0xa5   :  { %v400_v42 = vsel %vm399_vm4, %v388_v24, %v398_v41  ;;  %8119 = vmatpush3.bf16.msra.mxu1 %v8381_v46  ;;  %v9896_v62 = vsub.s32 %v627_v60, %v9873_v48 }
  0xa6   :  { %v402_v43 = vsel %vm401_vm5, %v389_v35, %v400_v42  ;;  %12160 = vst [vmem:[#allocation41_spill] sm:$0xff] %v9908_v34  ;;  %v174_v35 = vld [vmem:[#allocation6 + $0x10] sm:$0xff]  ;;  %v176_v42 = vld [vmem:[#allocation6 + $0x20] sm:$0xff] }
  0xa7   :  { %v404_v44 = vsel %vm403_vm6, %v390_v39, %v402_v43  ;;  %12159 = vst [vmem:[#allocation40_spill] sm:$0xff] %v9896_v62  ;;  %v175_v39 = vld [vmem:[#allocation6 + $0x18] sm:$0xff] }
  0xa8   :  { %v405_v45 = vpack.c.b16 %v404_v44, %v404_v44 }
  0xaa   :  { %520 = vmatmul.mubr.bf16.vlgmr.msra.gmra.mrb[0].mxu0 %v405_v45 }
  0xab   :  { %1587 = vmatprep.mubr.bf16.mxu0 %v12040_v1 }
 0x17d   :  { %v521_v52 = vpop.f32.mrb[0].mxu0 }
 0x17e   :  { %v9882_v53 = vadd.f32 %v521_v52, %v368_v51  ;;  %v9884_v54 = vpop.f32.mrb[1].mxu0 }
 0x17f   :  { %12157 = vst [vmem:[#allocation38_spill] sm:$0xff] %v9884_v54  ;;  %v525_v55 = vpop.f32.mrb[2].mxu0 }
 0x180   :  { %v9888_v56 = vpack.c.bf16 %v9882_v53, %v9882_v53  ;;  %v526_v57 = vpop.f32.mrb[3].mxu0 }
 0x181   :  { %v177_v57 = vld [vmem:[#allocation6 + $0x28] sm:$0xff] }
 0x182   :  { %12158 = vst [vmem:[#allocation39_spill] sm:$0xff] %v9888_v56  ;;  %8121 = vmatmul.mubr.bf16.vlgmr.msra.gmra.mrb[0].mxu1 %v9888_v56 }
 0x183   :  { %1628 = vmatprep.mubr.bf16.mxu1 %v12040_v1 }
 0x255   :  { %v617_v63 = vpop.f32.mrb[0].mxu1 }
 0x256   :  { %v618_v0 = vadd.f32 %v7907_v61, %v617_v63  ;;  %v8122_v3 = vpop.f32.mrb[1].mxu1 }
 0x257   :  { %v620_v4 = vpop.f32.mrb[2].mxu1 }
 0x258   :  { %v624_v6 = vcombine.high %v618_v0, %v618_v0  ;;  %v631_v7 = vrot.slane %v618_v0, %v9896_v62  ;;  %v8123_v8 = vpop.f32.mrb[3].mxu1 }
 0x25a   :  { %v638_v9 = vrot.slane %v624_v6, %v9896_v62  ;;  %v639_v10 = vcombine.high %v631_v7, %v631_v7  ;;  %v647_v11 = vrot.slane %v631_v7, %v9896_v62  ;;  %v181_v6 = vld [vmem:[#allocation6 + $0x48] sm:$0xff] }
 0x25c   :  { %v669_v17 = vcombine.high %v647_v11, %v647_v11  ;;  %v676_v22 = vrot.slane %v647_v11, %v9876_v49  ;;  %v654_v23 = vrot.slane %v638_v9, %v9896_v62  ;;  %v661_v24 = vrot.slane %v639_v10, %v9896_v62 }
 0x25d   :  { %v640_v44 = vcombine.high %v638_v9, %v638_v9  ;;  %v178_v9 = vld [vmem:[#allocation6 + $0x30] sm:$0xff] }
 0x25e   :  { %v713_v29 = vadd.f32 %v676_v22, %v172_v15  ;;  %v714_v38 = vadd.f32 %v676_v22, %v173_v16  ;;  %v684_v40 = vrot.slane %v669_v17, %v9876_v49  ;;  %v680_v41 = vrot.slane %v661_v24, %v9876_v49  ;;  %v179_v22 = vld [vmem:[#allocation6 + $0x38] sm:$0xff] }
 0x25f   :  { %v692_v50 = vrot.slane %v654_v23, %v9876_v49  ;;  %v671_v59 = vcombine.high %v661_v24, %v661_v24  ;;  %v668_v8 = vrot.slane %v640_v44, %v9896_v62  ;;  %v183_v44 = vld [vmem:[#allocation6 + $0x58] sm:$0xff] }
 0x260   :  { %v729_v43 = vmax.f32 %v713_v29, 0.0  ;;  %v715_v45 = vadd.f32 %v680_v41, %v174_v35  ;;  %v716_v46 = vadd.f32 %v680_v41, %v175_v39  ;;  %v730_v52 = vmax.f32 %v714_v38, 0.0  ;;  %v182_v35 = vld [vmem:[#allocation6 + $0x50] sm:$0xff] }
 0x261   :  { %v717_v55 = vadd.f32 %v684_v40, %v176_v42  ;;  %v718_v0 = vadd.f32 %v684_v40, %v177_v57  ;;  %v721_v3 = vadd.f32 %v692_v50, %v180_v58  ;;  %v688_v7 = vrot.slane %v671_v59, %v9876_v49  ;;  %v185_v59 = vld [vmem:[#allocation6 + $0x68] sm:$0xff] }
 0x262   :  { %v749_v51 = vmul.f32 %v9908_v34, %v729_v43  ;;  %v731_v60 = vmax.f32 %v715_v45, 0.0  ;;  %v732_v63 = vmax.f32 %v716_v46, 0.0  ;;  %v750_v4 = vmul.f32 %v9908_v34, %v730_v52 }
 0x263   :  { %v733_v5 = vmax.f32 %v717_v55, 0.0  ;;  %v734_v11 = vmax.f32 %v718_v0, 0.0  ;;  %v737_v12 = vmax.f32 %v721_v3, 0.0  ;;  %v722_v15 = vadd.f32 %v692_v50, %v181_v6  ;;  %v184_v50 = vld [vmem:[#allocation6 + $0x60] sm:$0xff] }
 0x264   :  { %765 = vadd.xlane.f32.xlu0 %v749_v51  ;;  %v751_v61 = vmul.f32 %v9908_v34, %v731_v60  ;;  %v752_v10 = vmul.f32 %v9908_v34, %v732_v63  ;;  %v719_v17 = vadd.f32 %v688_v7, %v178_v9  ;;  %v696_v24 = vrot.slane %v668_v8, %v9876_v49 }
 0x265   :  { %v753_v16 = vmul.f32 %v9908_v34, %v733_v5  ;;  %v670_v29 = vcombine.high %v654_v23, %v654_v23  ;;  %v754_v38 = vmul.f32 %v9908_v34, %v734_v11  ;;  %v757_v39 = vmul.f32 %v9908_v34, %v737_v12 }
 0x266   :  { %769 = vadd.xlane.f32.xlu1 %v751_v61  ;;  %v738_v40 = vmax.f32 %v722_v15, 0.0  ;;  %v720_v41 = vadd.f32 %v688_v7, %v179_v22  ;;  %v735_v42 = vmax.f32 %v719_v17, 0.0  ;;  %v723_v43 = vadd.f32 %v696_v24, %v182_v35  ;;  %v186_v61 = vld [vmem:[#allocation6 + $0x70] sm:$0xff]  ;;  %v187_v7 = vld [vmem:[#allocation6 + $0x78] sm:$0xff] }
 0x267   :  { %v700_v45 = vrot.slane %v670_v29, %v9876_v49  ;;  %v672_v46 = vcombine.high %v668_v8, %v668_v8  ;;  %v724_v52 = vadd.f32 %v696_v24, %v183_v44 }
 0x268   :  { %767 = vadd.xlane.f32.xlu0 %v750_v4  ;;  %v758_v23 = vmul.f32 %v9908_v34, %v738_v40  ;;  %v736_v51 = vmax.f32 %v720_v41, 0.0  ;;  %v755_v55 = vmul.f32 %v9908_v34, %v735_v42  ;;  %v739_v57 = vmax.f32 %v723_v43, 0.0 }
 0x269   :  { %v725_v58 = vadd.f32 %v700_v45, %v184_v50  ;;  %v704_v60 = vrot.slane %v672_v46, %v9876_v49  ;;  %v740_v0 = vmax.f32 %v724_v52, 0.0  ;;  %v726_v3 = vadd.f32 %v700_v45, %v185_v59 }
 0x26a   :  { %771 = vadd.xlane.f32.xlu1 %v752_v10  ;;  %v756_v63 = vmul.f32 %v9908_v34, %v736_v51  ;;  %v759_v4 = vmul.f32 %v9908_v34, %v739_v57  ;;  %v814_v41 = vand.u32 127, %v365_v47 }
 0x26b   :  { %v741_v5 = vmax.f32 %v725_v58, 0.0  ;;  %v727_v6 = vadd.f32 %v704_v60, %v186_v61  ;;  %v760_v8 = vmul.f32 %v9908_v34, %v740_v0  ;;  %v742_v9 = vmax.f32 %v726_v3, 0.0 }
 0x26c   :  { %773 = vadd.xlane.f32.xlu0 %v753_v16  ;;  %v728_v10 = vadd.f32 %v704_v60, %v187_v7  ;;  %v819_v43 = vadd.s32 4294967288, %v814_v41 }
 0x26d   :  { %v761_v11 = vmul.f32 %v9908_v34, %v741_v5  ;;  %v743_v12 = vmax.f32 %v727_v6, 0.0  ;;  %v762_v15 = vmul.f32 %v9908_v34, %v742_v9 }
 0x26e   :  { %775 = vadd.xlane.f32.xlu1 %v754_v38  ;;  %v744_v16 = vmax.f32 %v728_v10, 0.0  ;;  %v9954_v46 = vsub.s32 %v819_v43, %v9873_v48 }
 0x26f   :  { %v763_v17 = vmul.f32 %v9908_v34, %v743_v12 }
 0x270   :  { %781 = vadd.xlane.f32.xlu0 %v757_v39  ;;  %v764_v22 = vmul.f32 %v9908_v34, %v744_v16  ;;  %12161 = vst [vmem:[#allocation42_spill] sm:$0xff] %v9954_v46 }
 0x272   :  { %783 = vadd.xlane.f32.xlu1 %v758_v23  ;;  %v9959_v23 = vsub.s32 %v814_v41, %v9873_v48 }
 0x274   :  { %777 = vadd.xlane.f32.xlu0 %v755_v55  ;;  %12162 = vst [vmem:[#allocation43_spill] sm:$0xff] %v9959_v23 }
 0x276   :  { %779 = vadd.xlane.f32.xlu1 %v756_v63 }
 0x278   :  { %785 = vadd.xlane.f32.xlu0 %v759_v4 }
 0x27a   :  { %787 = vadd.xlane.f32.xlu1 %v760_v8 }
 0x27c   :  { %789 = vadd.xlane.f32.xlu0 %v761_v11 }
 0x27e   :  { %791 = vadd.xlane.f32.xlu1 %v762_v15 }
 0x280   :  { %793 = vadd.xlane.f32.xlu0 %v763_v17 }
 0x282   :  { %795 = vadd.xlane.f32.xlu1 %v764_v22 }
 0x2f1   :  { %v9934_v24 = vpop.xlane.xlu0 %765 }
 0x2f2   :  { %v818_v61 = vrot.slane %v9934_v24, %v9959_v23 }
 0x2f3   :  { %v9936_v29 = vpop.xlane.xlu1 %769 }
 0x2f4   :  { %v829_v55 = vrot.slane %v9936_v29, %v9959_v23 }
 0x2f5   :  { %v9938_v35 = vpop.xlane.xlu0 %767 }
 0x2f6   :  { %v823_v57 = vrot.slane %v9938_v35, %v9954_v46 }
 0x2f7   :  { %v9940_v38 = vpop.xlane.xlu1 %771 }
 0x2f8   :  { %v833_v51 = vrot.slane %v9940_v38, %v9954_v46  ;;  %v825_v5 = vsel %vm824_vm8, %v823_v57, %v818_v61 }
 0x2f9   :  { %v9942_v39 = vpop.xlane.xlu0 %773 }
 0x2fa   :  { %v838_v59 = vrot.slane %v9942_v39, %v9959_v23  ;;  %v834_v63 = vsel %vm824_vm8, %v833_v51, %v829_v55 }
 0x2fb   :  { %v9944_v40 = vpop.xlane.xlu1 %775  ;;  %v889_v8 = vsel %vm391_vm0, %v834_v63, %v825_v5 }
 0x2fc   :  { %v842_v47 = vrot.slane %v9944_v40, %v9954_v46 }
 0x2fd   :  { %v9947_v42 = vpop.xlane.xlu0 %781 }
 0x2fe   :  { %v843_v4 = vsel %vm824_vm8, %v842_v47, %v838_v59  ;;  %v856_v16 = vrot.slane %v9947_v42, %v9959_v23 }
 0x2ff   :  { %v9949_v44 = vpop.xlane.xlu1 %783  ;;  %v890_v11 = vsel %vm393_vm1, %v843_v4, %v889_v8  ;;  %v10019_v8 = vsub.s32 6, %v9873_v48 }
 0x300   :  { %v860_v9 = vrot.slane %v9949_v44, %v9954_v46 }
 0x301   :  { %v9951_v45 = vpop.xlane.xlu0 %777  ;;  %12164 = vst [vmem:[#allocation45_spill] sm:$0xff] %v10019_v8 }
 0x302   :  { %v847_v0 = vrot.slane %v9951_v45, %v9959_v23  ;;  %v861_v51 = vsel %vm824_vm8, %v860_v9, %v856_v16  ;;  %v10027_v16 = vsub.s32 7, %v9873_v48 }
 0x303   :  { %v9956_v50 = vpop.xlane.xlu1 %779 }
 0x304   :  { %v851_v58 = vrot.slane %v9956_v50, %v9954_v46  ;;  %12165 = vst [vmem:[#allocation46_spill] sm:$0xff] %v10027_v16 }
 0x305   :  { %v786_v52 = vpop.xlane.xlu0 %785 }
 0x306   :  { %v852_v6 = vsel %vm824_vm8, %v851_v58, %v847_v0  ;;  %v865_v12 = vrot.slane %v786_v52, %v9959_v23 }
 0x307   :  { %v9973_v60 = vpop.xlane.xlu1 %787  ;;  %v891_v17 = vsel %vm395_vm2, %v852_v6, %v890_v11  ;;  %v10013_v6 = vsub.s32 5, %v9873_v48 }
 0x308   :  { %v869_v7 = vrot.slane %v9973_v60, %v9954_v46  ;;  %v892_v59 = vsel %vm397_vm3, %v861_v51, %v891_v17  ;;  %v10035_v51 = vsub.s32 2, %v9873_v48 }
 0x309   :  { %v790_v3 = vpop.xlane.xlu0 %789  ;;  %12163 = vst [vmem:[#allocation44_spill] sm:$0xff] %v10013_v6 }
 0x30a   :  { %v874_v22 = vrot.slane %v790_v3, %v9959_v23  ;;  %v870_v43 = vsel %vm824_vm8, %v869_v7, %v865_v12  ;;  %v10016_v7 = vsub.s32 1, %v9873_v48  ;;  %12166 = vst [vmem:[#allocation47_spill] sm:$0xff] %v10035_v51 }
 0x30b   :  { %v9988_v10 = vpop.xlane.xlu1 %791  ;;  %v893_v61 = vsel %vm399_vm4, %v870_v43, %v892_v59 }
 0x30c   :  { %v878_v15 = vrot.slane %v9988_v10, %v9954_v46 }
 0x30d   :  { %v794_v41 = vpop.xlane.xlu0 %793 }
 0x30e   :  { %v879_v55 = vsel %vm824_vm8, %v878_v15, %v874_v22  ;;  %v883_v57 = vrot.slane %v794_v41, %v9959_v23 }
 0x30f   :  { %v10000_v47 = vpop.xlane.xlu1 %795  ;;  %v894_v0 = vsel %vm401_vm5, %v879_v55, %v893_v61 }
 0x310   :  { %v887_v58 = vrot.slane %v10000_v47, %v9954_v46 }
 0x312   :  { %v888_v63 = vsel %vm824_vm8, %v887_v58, %v883_v57 }
 0x313   :  { %v895_v4 = vsel %vm403_vm6, %v888_v63, %v894_v0 }
 0x314   :  { %v898_v5 = vsel %vm897_vm9, %v895_v4, -inf }
 0x315   :  { %899 = vmax.xlane.f32.xlu0 %v898_v5 }
 0x3a2   :  { %v900_v9 = vpop.xlane.xlu0 %899 }
 0x3a3   :  { %v905_v11 = vrot.slane %v900_v9, %v9876_v49  ;;  %v909_v12 = vrot.slane %v900_v9, %v10016_v7  ;;  %v10024_v15 = vrot.slane %v900_v9, %v10013_v6  ;;  %v10030_v17 = vrot.slane %v900_v9, %v10019_v8 }
 0x3a4   :  { %v10040_v61 = vrot.slane %v900_v9, %v10027_v16 }
 0x3a5   :  { %v943_v22 = vsub.f32 %v9938_v35, %v905_v11  ;;  %v942_v43 = vsub.f32 %v9934_v24, %v905_v11  ;;  %v952_v55 = vsub.f32 %v786_v52, %v10024_v15  ;;  %v944_v57 = vsub.f32 %v9936_v29, %v909_v12 }
 0x3a6   :  { %v954_v0 = vsub.f32 %v790_v3, %v10030_v17  ;;  %v913_v35 = vrot.slane %v900_v9, %v10035_v51  ;;  %v945_v4 = vsub.f32 %v9940_v38, %v909_v12  ;;  %v956_v52 = vsub.f32 %v794_v41, %v10040_v61 }
 0x3a7   :  { %v960_v58 = vmul.f32 1.442695, %v943_v22  ;;  %v958_v59 = vmul.f32 1.442695, %v942_v43  ;;  %v978_v63 = vmul.f32 1.442695, %v952_v55 }
 0x3a8   :  { %v962_v24 = vmul.f32 1.442695, %v944_v57  ;;  %v982_v5 = vmul.f32 1.442695, %v954_v0  ;;  %v10047_v29 = vsub.s32 3, %v9873_v48  ;;  %v946_v22 = vsub.f32 %v9942_v39, %v913_v35 }
 0x3a9   :  { %8478 = vpow2.f32 %v960_v58  ;;  %v964_v11 = vmul.f32 1.442695, %v945_v4  ;;  %v986_v43 = vmul.f32 1.442695, %v956_v52  ;;  %v947_v57 = vsub.f32 %v9944_v40, %v913_v35 }
 0x3aa   :  { %8480 = vpow2.f32 %v958_v59  ;;  %12167 = vst [vmem:[#allocation48_spill] sm:$0xff] %v10047_v29  ;;  %v917_v3 = vrot.slane %v900_v9, %v10047_v29  ;;  %v966_v55 = vmul.f32 1.442695, %v946_v22  ;;  %v10059_v41 = vsub.s32 4, %v9873_v48 }
 0x3ab   :  { %8482 = vpow2.f32 %v978_v63  ;;  %v968_v39 = vmul.f32 1.442695, %v947_v57 }
 0x3ac   :  { %8484 = vpow2.f32 %v962_v24  ;;  %12168 = vst [vmem:[#allocation49_spill] sm:$0xff] %v10059_v41  ;;  %v948_v58 = vsub.f32 %v9951_v45, %v917_v3  ;;  %v921_v40 = vrot.slane %v900_v9, %v10059_v41  ;;  %v949_v35 = vsub.f32 %v9956_v50, %v917_v3 }
 0x3ad   :  { %8486 = vpow2.f32 %v982_v5 }
 0x3ae   :  { %8488 = vpow2.f32 %v964_v11  ;;  %v970_v0 = vmul.f32 1.442695, %v948_v58  ;;  %v972_v45 = vmul.f32 1.442695, %v949_v35  ;;  %v950_v4 = vsub.f32 %v9947_v42, %v921_v40 }
 0x3af   :  { %8490 = vpow2.f32 %v986_v43  ;;  %v951_v9 = vsub.f32 %v9949_v44, %v921_v40  ;;  %v953_v42 = vsub.f32 %v9973_v60, %v10024_v15 }
 0x3b0   :  { %8492 = vpow2.f32 %v966_v55  ;;  %v974_v50 = vmul.f32 1.442695, %v950_v4  ;;  %v955_v55 = vsub.f32 %v9988_v10, %v10030_v17 }
 0x3b1   :  { %8494 = vpow2.f32 %v968_v39  ;;  %v976_v22 = vmul.f32 1.442695, %v951_v9  ;;  %v980_v3 = vmul.f32 1.442695, %v953_v42  ;;  %v957_v39 = vsub.f32 %v10000_v47, %v10040_v61  ;;  %v207_v61 = vld [vmem:[%s12033_s8] sm:$0x1] }
 0x3b2   :  { %8496 = vpow2.f32 %v970_v0  ;;  %v984_v44 = vmul.f32 1.442695, %v955_v55  ;;  %v208_v40 = vunpack.c.l.bf16 %v207_v61 }
 0x3b3   :  { %v10052_v38 = vpop.eup %8478  ;;  %8498 = vpow2.f32 %v972_v45  ;;  %v988_v60 = vmul.f32 1.442695, %v957_v39 }
 0x3b4   :  { %v10054_v12 = vpop.eup %8480  ;;  %1010 = vperm.xlu0 %8349, %v10052_v38   ;;  %8500 = vpow2.f32 %v974_v50  ;;  %v10118_v0 = vrot.slane %v208_v40, %v9876_v49 }
 0x3b5   :  { %1007 = vperm.xlu1 %8348, %v10054_v12   ;;  %v10062_v59 = vpop.eup %8482  ;;  %8502 = vpow2.f32 %v976_v22 }
 0x3b6   :  { %v10064_v63 = vpop.eup %8484  ;;  %8504 = vpow2.f32 %v980_v3  ;;  %12169 = vst [vmem:[#allocation50_spill] sm:$0xff] %v10118_v0  ;;  %v1358_v35 = vmul.f32 %v10118_v0, %v9882_v53 }
 0x3b7   :  { %v10070_v48 = vpop.eup %8486  ;;  %8506 = vpow2.f32 %v984_v44 }
 0x3b8   :  { %1037 = vperm.xlu0 %8349, %v10062_v59   ;;  %v10072_v24 = vpop.eup %8488  ;;  %8508 = vpow2.f32 %v988_v60 }
 0x3b9   :  { %1013 = vperm.xlu1 %8348, %v10064_v63   ;;  %v10077_v5 = vpop.eup %8490 }
 0x3ba   :  { %v10079_v52 = vpop.eup %8492 }
 0x3bb   :  { %v10084_v11 = vpop.eup %8494 }
 0x3bc   :  { %1043 = vperm.xlu0 %8349, %v10070_v48   ;;  %v10089_v43 = vpop.eup %8496 }
 0x3bd   :  { %1016 = vperm.xlu1 %8348, %v10072_v24   ;;  %v10094_v57 = vpop.eup %8498 }
 0x3be   :  { %v10099_v58 = vpop.eup %8500 }
 0x3bf   :  { %v10102_v15 = vpop.eup %8502 }
 0x3c0   :  { %1049 = vperm.xlu0 %8349, %v10077_v5   ;;  %v10105_v10 = vpop.eup %8504 }
 0x3c1   :  { %1019 = vperm.xlu1 %8348, %v10079_v52   ;;  %v10108_v17 = vpop.eup %8506 }
 0x3c2   :  { %v10111_v47 = vpop.eup %8508 }
 0x3c5   :  { %1022 = vperm.xlu1 %8348, %v10084_v11  }
 0x3c9   :  { %1025 = vperm.xlu1 %8348, %v10089_v43  }
 0x3cd   :  { %1028 = vperm.xlu1 %8348, %v10094_v57  }
 0x3d1   :  { %1031 = vperm.xlu1 %8348, %v10099_v58  }
 0x3d5   :  { %1034 = vperm.xlu1 %8348, %v10102_v15  }
 0x3d9   :  { %1040 = vperm.xlu1 %8348, %v10105_v10  }
 0x3dd   :  { %1046 = vperm.xlu1 %8348, %v10108_v17  }
 0x3e1   :  { %1052 = vperm.xlu1 %8348, %v10111_v47  }
 0x405   :  { %1359 = vadd.xlane.f32.xlu1 %v1358_v35 }
 0x433   :  { %v1011_v3 = vpop.permute.xlu0 %1010 }
 0x434   :  { %v1008_v45 = vpop.permute.xlu1 %1007  ;;  %v1061_v53 = vrot.slane %v1011_v3, %v9954_v46 }
 0x435   :  { %v1057_v35 = vrot.slane %v1008_v45, %v9959_v23 }
 0x437   :  { %v1038_v39 = vpop.permute.xlu0 %1037  ;;  %v1062_v45 = vsel %vm824_vm8, %v1061_v53, %v1057_v35 }
 0x438   :  { %v1014_v4 = vpop.permute.xlu1 %1013 }
 0x439   :  { %v1066_v0 = vrot.slane %v1014_v4, %v9959_v23  ;;  %v1102_v4 = vrot.slane %v1038_v39, %v9959_v23 }
 0x43b   :  { %v1044_v2 = vpop.permute.xlu0 %1043 }
 0x43c   :  { %v1017_v50 = vpop.permute.xlu1 %1016 }
 0x43d   :  { %v1070_v61 = vrot.slane %v1017_v50, %v9954_v46 }
 0x43f   :  { %v1071_v56 = vsel %vm824_vm8, %v1070_v61, %v1066_v0 }
 0x440   :  { %v1020_v9 = vpop.permute.xlu1 %1019  ;;  %v1126_v0 = vsel %vm391_vm0, %v1071_v56, %v1062_v45 }
 0x441   :  { %v1075_v62 = vrot.slane %v1020_v9, %v9959_v23 }
 0x444   :  { %v1023_v22 = vpop.permute.xlu1 %1022 }
 0x445   :  { %v1079_v40 = vrot.slane %v1023_v22, %v9954_v46 }
 0x447   :  { %v1080_v22 = vsel %vm824_vm8, %v1079_v40, %v1075_v62 }
 0x448   :  { %v1026_v42 = vpop.permute.xlu1 %1025  ;;  %v1127_v62 = vsel %vm393_vm1, %v1080_v22, %v1126_v0 }
 0x449   :  { %v1084_v50 = vrot.slane %v1026_v42, %v9959_v23  ;;  %v1050_v42 = vpop.permute.xlu0 %1049 }
 0x44c   :  { %v1029_v55 = vpop.permute.xlu1 %1028 }
 0x44d   :  { %v1088_v34 = vrot.slane %v1029_v55, %v9954_v46 }
 0x44f   :  { %v1089_v55 = vsel %vm824_vm8, %v1088_v34, %v1084_v50  ;;  %v1120_v34 = vrot.slane %v1050_v42, %v9959_v23 }
 0x450   :  { %v1032_v44 = vpop.permute.xlu1 %1031  ;;  %v1128_v61 = vsel %vm395_vm2, %v1089_v55, %v1127_v62 }
 0x451   :  { %v1093_v3 = vrot.slane %v1032_v44, %v9959_v23 }
 0x454   :  { %v1035_v60 = vpop.permute.xlu1 %1034 }
 0x455   :  { %v1097_v54 = vrot.slane %v1035_v60, %v9954_v46  ;;  %v1111_v60 = vrot.slane %v1044_v2, %v9959_v23 }
 0x458   :  { %v1041_v1 = vpop.permute.xlu1 %1040 }
 0x459   :  { %v1106_v37 = vrot.slane %v1041_v1, %v9954_v46  ;;  %v1098_v1 = vsel %vm824_vm8, %v1097_v54, %v1093_v3 }
 0x45a   :  { %v1129_v2 = vsel %vm397_vm3, %v1098_v1, %v1128_v61 }
 0x45b   :  { %v1107_v44 = vsel %vm824_vm8, %v1106_v37, %v1102_v4 }
 0x45c   :  { %v1047_v36 = vpop.permute.xlu1 %1046  ;;  %v1130_v56 = vsel %vm399_vm4, %v1107_v44, %v1129_v2 }
 0x45d   :  { %v1115_v9 = vrot.slane %v1047_v36, %v9954_v46 }
 0x45f   :  { %v1116_v39 = vsel %vm824_vm8, %v1115_v9, %v1111_v60 }
 0x460   :  { %v1053_v40 = vpop.permute.xlu1 %1052  ;;  %v1131_v54 = vsel %vm401_vm5, %v1116_v39, %v1130_v56 }
 0x461   :  { %v1124_v36 = vrot.slane %v1053_v40, %v9954_v46 }
 0x463   :  { %v1125_v53 = vsel %vm824_vm8, %v1124_v36, %v1120_v34 }
 0x464   :  { %v1132_v35 = vsel %vm403_vm6, %v1125_v53, %v1131_v54 }
 0x465   :  { %v1134_v37 = vsel %vm897_vm9, %v1132_v35, 0.0 }
 0x466   :  { %1135 = vadd.xlane.f32.xlu0 %v1134_v37  ;;  %v7916_v37 = vld [vmem:[#allocation2] ss:$0 sm:$0xff] }
 0x4f3   :  { %v1136_v50 = vpop.xlane.xlu0 %1135 }
 0x4f4   :  { %v1141_v22 = vrot.slane %v1136_v50, %v9876_v49  ;;  %v1145_v3 = vrot.slane %v1136_v50, %v10016_v7  ;;  %v1149_v45 = vrot.slane %v1136_v50, %v10035_v51  ;;  %v1153_v4 = vrot.slane %v1136_v50, %v10047_v29 }
 0x4f5   :  { %v1157_v9 = vrot.slane %v1136_v50, %v10059_v41  ;;  %v1161_v1 = vrot.slane %v1136_v50, %v10013_v6  ;;  %v1165_v40 = vrot.slane %v1136_v50, %v10019_v8  ;;  %v1169_v34 = vrot.slane %v1136_v50, %v10027_v16  ;;  %v1360_v50 = vpop.xlane.xlu1 %1359 }
 0x4f6   :  { %8510 = vrcp.f32 %v1141_v22  ;;  %v10182_v22 = vld [vmem:[#allocation12] ss:$16 sps:$4 sm:$0xff]  }
 0x4f7   :  { %8512 = vrcp.f32 %v1145_v3  ;;  %v10194_v3 = vld [vmem:[#allocation12 + $0x20] ss:$16 sps:$4 sm:$0xff]  }
 0x4f8   :  { %8514 = vrcp.f32 %v1149_v45  ;;  %v10196_v45 = vld [vmem:[#allocation12 + $0x28] ss:$16 sps:$4 sm:$0xff]  }
 0x4f9   :  { %8516 = vrcp.f32 %v1153_v4  ;;  %v10202_v4 = vld [vmem:[#allocation12 + $0x44] ss:$16 sps:$4 sm:$0xff]  }
 0x4fa   :  { %8518 = vrcp.f32 %v1157_v9  ;;  %v10206_v9 = vld [vmem:[#allocation12 + $0x40] ss:$16 sps:$4 sm:$0xff]  }
 0x4fb   :  { %8520 = vrcp.f32 %v1161_v1  ;;  %v10218_v1 = vld [vmem:[#allocation12 + $0x60] ss:$16 sps:$4 sm:$0xff]  }
 0x4fc   :  { %8522 = vrcp.f32 %v1165_v40  ;;  %v10230_v40 = vld [vmem:[#allocation12 + $0x80] ss:$16 sps:$4 sm:$0xff]  }
 0x4fd   :  { %8524 = vrcp.f32 %v1169_v34  ;;  %v10242_v34 = vld [vmem:[#allocation12 + $0xa0] ss:$16 sps:$4 sm:$0xff]  }
 0x500   :  { %v8511_v55 = vpop.eup %8510 }
 0x501   :  { %v1180_v60 = vmul.f32 %v8511_v55, %v10052_v38  ;;  %v1179_v0 = vmul.f32 %v8511_v55, %v10054_v12  ;;  %v8513_v42 = vpop.eup %8512  ;;  %v10204_v55 = vld [vmem:[#allocation12 + $0x4c] ss:$16 sps:$4 sm:$0xff]  }
 0x502   :  { %v1183_v62 = vmul.f32 %v8513_v42, %v10072_v24  ;;  %v1182_v44 = vmul.f32 %v8513_v42, %v10064_v63  ;;  %v8515_v61 = vpop.eup %8514  ;;  %v10214_v42 = vld [vmem:[#allocation12 + $0x6c] ss:$16 sps:$4 sm:$0xff]  }
 0x503   :  { %1209 = vperm.xlu1 %8348, %v1180_v60   ;;  %1204 = vperm.xlu0 %8349, %v1179_v0   ;;  %v1186_v38 = vmul.f32 %v8515_v61, %v10084_v11  ;;  %v1185_v12 = vmul.f32 %v8515_v61, %v10079_v52  ;;  %v8517_v39 = vpop.eup %8516  ;;  %v10208_v60 = vld [vmem:[#allocation12 + $0x48] ss:$16 sps:$4 sm:$0xff]   ;;  %v10212_v0 = vld [vmem:[#allocation12 + $0x64] ss:$16 sps:$4 sm:$0xff]   ;;  %v10228_v61 = vld [vmem:[#allocation12 + $0x8c] ss:$16 sps:$4 sm:$0xff]  }
 0x504   :  { %v1189_v24 = vmul.f32 %v8517_v39, %v10094_v57  ;;  %v1188_v63 = vmul.f32 %v8517_v39, %v10089_v43  ;;  %v8519_v36 = vpop.eup %8518  ;;  %v10240_v39 = vld [vmem:[#allocation12 + $0xac] ss:$16 sps:$4 sm:$0xff]  }
 0x505   :  { %v1192_v2 = vmul.f32 %v8519_v36, %v10102_v15  ;;  %v1191_v11 = vmul.f32 %v8519_v36, %v10099_v58  ;;  %v8521_v56 = vpop.eup %8520  ;;  %v10248_v36 = vld [vmem:[#allocation12 + $0xcc] ss:$16 sps:$4 sm:$0xff]  }
 0x506   :  { %v1195_v52 = vmul.f32 %v8521_v56, %v10105_v10  ;;  %v1194_v53 = vmul.f32 %v8521_v56, %v10062_v59  ;;  %v8523_v54 = vpop.eup %8522  ;;  %v10178_v10 = vld [vmem:[#allocation12 + $0x4] ss:$16 sps:$4 sm:$0xff]   ;;  %v10180_v59 = vld [vmem:[#allocation12 + $0xc] ss:$16 sps:$4 sm:$0xff]   ;;  %12170 = vst [vmem:[#allocation51_spill] sm:$0xff] %v10248_v36 }
 0x507   :  { %1219 = vperm.xlu1 %8348, %v1183_v62   ;;  %1214 = vperm.xlu0 %8349, %v1182_v44   ;;  %v1198_v43 = vmul.f32 %v8523_v54, %v10108_v17  ;;  %v1197_v57 = vmul.f32 %v8523_v54, %v10070_v48  ;;  %v8525_v35 = vpop.eup %8524  ;;  %v10184_v17 = vld [vmem:[#allocation12 + $0x8] ss:$16 sps:$4 sm:$0xff]   ;;  %v1367_v48 = vadd.f32 %v7916_v37, %v1360_v50  ;;  %v10226_v44 = vld [vmem:[#allocation12 + $0x84] ss:$16 sps:$4 sm:$0xff]  }
 0x508   :  { %v1201_v15 = vmul.f32 %v8525_v35, %v10111_v47  ;;  %v1200_v58 = vmul.f32 %v8525_v35, %v10077_v5  ;;  %1555 = vmatprep.subr.bf16.mxu0 %v10178_v10  ;;  %1596 = vmatprep.subr.bf16.mxu1 %v10180_v59  ;;  %v10190_v5 = vld [vmem:[#allocation12 + $0x24] ss:$16 sps:$4 sm:$0xff]   ;;  %v10192_v47 = vld [vmem:[#allocation12 + $0x2c] ss:$16 sps:$4 sm:$0xff]   ;;  %v10220_v62 = vld [vmem:[#allocation12 + $0x68] ss:$16 sps:$4 sm:$0xff]  }
 0x509   :  { %1556 = vmatpush1.bf16.msra.mxu0 %v10182_v22  ;;  %1597 = vmatpush1.bf16.msra.mxu1 %v10184_v17  ;;  %v10260_v56 = vld [vmem:[#allocation12 + $0xe4] ss:$16 sps:$4 sm:$0xff]   ;;  %v10268_v54 = vld [vmem:[#allocation12 + $0xe8] ss:$16 sps:$4 sm:$0xff]  }
 0x50a   :  { %1557 = vmatprep.subr.bf16.mxu0 %v10190_v5  ;;  %1598 = vmatprep.subr.bf16.mxu1 %v10192_v47  ;;  %12173 = vst [vmem:[#allocation54_spill] sm:$0xff] %v10268_v54 }
 0x50b   :  { %1229 = vperm.xlu1 %8348, %v1186_v38   ;;  %1224 = vperm.xlu0 %8349, %v1185_v12   ;;  %v10232_v38 = vld [vmem:[#allocation12 + $0x88] ss:$16 sps:$4 sm:$0xff]   ;;  %v10238_v12 = vld [vmem:[#allocation12 + $0xa4] ss:$16 sps:$4 sm:$0xff]  }
 0x50d   :  { %1558 = vmatpush1.bf16.msra.mxu0 %v10194_v3  ;;  %1599 = vmatpush1.bf16.msra.mxu1 %v10196_v45 }
 0x50e   :  { %1559 = vmatprep.subr.bf16.mxu0 %v10202_v4  ;;  %1600 = vmatprep.subr.bf16.mxu1 %v10204_v55 }
 0x50f   :  { %1239 = vperm.xlu1 %8348, %v1189_v24   ;;  %1234 = vperm.xlu0 %8349, %v1188_v63   ;;  %v10244_v24 = vld [vmem:[#allocation12 + $0xa8] ss:$16 sps:$4 sm:$0xff]   ;;  %v10246_v63 = vld [vmem:[#allocation12 + $0xc4] ss:$16 sps:$4 sm:$0xff]  }
 0x511   :  { %1560 = vmatpush1.bf16.msra.mxu0 %v10206_v9  ;;  %1601 = vmatpush1.bf16.msra.mxu1 %v10208_v60 }
 0x512   :  { %1561 = vmatprep.subr.bf16.mxu0 %v10212_v0  ;;  %1602 = vmatprep.subr.bf16.mxu1 %v10214_v42 }
 0x513   :  { %1249 = vperm.xlu1 %8348, %v1192_v2   ;;  %1244 = vperm.xlu0 %8349, %v1191_v11   ;;  %v10254_v2 = vld [vmem:[#allocation12 + $0xc0] ss:$16 sps:$4 sm:$0xff]   ;;  %v10256_v11 = vld [vmem:[#allocation12 + $0xc8] ss:$16 sps:$4 sm:$0xff]  }
 0x514   :  { %12171 = vst [vmem:[#allocation52_spill] sm:$0xff] %v10256_v11 }
 0x515   :  { %1562 = vmatpush1.bf16.msra.mxu0 %v10218_v1  ;;  %1603 = vmatpush1.bf16.msra.mxu1 %v10220_v62 }
 0x516   :  { %1563 = vmatprep.subr.bf16.mxu0 %v10226_v44  ;;  %1604 = vmatprep.subr.bf16.mxu1 %v10228_v61 }
 0x517   :  { %1259 = vperm.xlu1 %8348, %v1195_v52   ;;  %1254 = vperm.xlu0 %8349, %v1194_v53   ;;  %v10262_v52 = vld [vmem:[#allocation12 + $0xec] ss:$16 sps:$4 sm:$0xff]   ;;  %v10266_v53 = vld [vmem:[#allocation12 + $0xe0] ss:$16 sps:$4 sm:$0xff]  }
 0x518   :  { %12172 = vst [vmem:[#allocation53_spill] sm:$0xff] %v10262_v52 }
 0x519   :  { %1564 = vmatpush1.bf16.msra.mxu0 %v10230_v40  ;;  %1605 = vmatpush1.bf16.msra.mxu1 %v10232_v38 }
 0x51a   :  { %1565 = vmatprep.subr.bf16.mxu0 %v10238_v12  ;;  %1606 = vmatprep.subr.bf16.mxu1 %v10240_v39 }
 0x51b   :  { %1269 = vperm.xlu1 %8348, %v1198_v43   ;;  %1264 = vperm.xlu0 %8349, %v1197_v57   ;;  %v10272_v43 = vld [vmem:[#allocation14 + $0x4] ss:$16 sps:$4 sm:$0xff]   ;;  %v10274_v57 = vld [vmem:[#allocation14 + $0xc] ss:$16 sps:$4 sm:$0xff]  }
 0x51c   :  { %12174 = vst [vmem:[#allocation55_spill] sm:$0xff] %v10274_v57 }
 0x51d   :  { %1566 = vmatpush1.bf16.msra.mxu0 %v10242_v34  ;;  %1607 = vmatpush1.bf16.msra.mxu1 %v10244_v24 }
 0x51e   :  { %1567 = vmatprep.subr.bf16.mxu0 %v10246_v63  ;;  %1608 = vmatprep.subr.bf16.mxu1 %v10248_v36 }
 0x51f   :  { %1279 = vperm.xlu1 %8348, %v1201_v15   ;;  %1274 = vperm.xlu0 %8349, %v1200_v58  }
 0x521   :  { %1568 = vmatpush1.bf16.msra.mxu0 %v10254_v2  ;;  %1609 = vmatpush1.bf16.msra.mxu1 %v10256_v11 }
 0x522   :  { %1569 = vmatprep.subr.bf16.mxu0 %v10260_v56  ;;  %1610 = vmatprep.subr.bf16.mxu1 %v10262_v52 }
 0x523   :  { %1370 = vperm.xlu0 %8349, %v1367_v48  }
 0x525   :  { %1570 = vmatpush1.bf16.msra.mxu0 %v10266_v53  ;;  %1611 = vmatpush1.bf16.msra.mxu1 %v10268_v54 }
 0x526   :  { %1801 = vmatprep.subr.bf16.mxu0 %v10272_v43  ;;  %1842 = vmatprep.subr.bf16.mxu1 %v10274_v57 }
 0x582   :  { %v1205_v35 = vpop.permute.xlu0 %1204  ;;  %v1210_v15 = vpop.permute.xlu1 %1209 }
 0x583   :  { %v1282_v16 = vmul.f32 %v9807_v13, %v1205_v35  ;;  %v1283_v8 = vmul.f32 %v9809_v14, %v1210_v15 }
 0x585   :  { %v1298_v46 = vadd.f32 %v1283_v8, %v1282_v16 }
 0x586   :  { %v1215_v58 = vpop.permute.xlu0 %1214  ;;  %v1220_v37 = vpop.permute.xlu1 %1219 }
 0x587   :  { %v1284_v50 = vmul.f32 %v9811_v18, %v1215_v58  ;;  %v1285_v48 = vmul.f32 %v9813_v19, %v1220_v37  ;;  %v1299_v19 = vrot.slane %v1298_v46, 4 }
 0x589   :  { %v1305_v23 = vadd.f32 %v1285_v48, %v1284_v50  ;;  %v1300_v16 = vadd.f32 %v1299_v19, %v1298_v46 }
 0x58a   :  { %v1225_v6 = vpop.permute.xlu0 %1224  ;;  %v1230_v41 = vpop.permute.xlu1 %1229 }
 0x58b   :  { %v1286_v29 = vmul.f32 %v9815_v20, %v1225_v6  ;;  %v1287_v51 = vmul.f32 %v9817_v21, %v1230_v41  ;;  %v1306_v37 = vrot.slane %v1305_v23, 4  ;;  %v1301_v21 = vrot.slane %v1300_v16, 2 }
 0x58d   :  { %v1312_v49 = vadd.f32 %v1287_v51, %v1286_v29  ;;  %v1307_v50 = vadd.f32 %v1306_v37, %v1305_v23  ;;  %v1302_v37 = vadd.f32 %v1301_v21, %v1300_v16 }
 0x58e   :  { %v1235_v57 = vpop.permute.xlu0 %1234  ;;  %v1240_v54 = vpop.permute.xlu1 %1239 }
 0x58f   :  { %v1288_v52 = vmul.f32 %v9819_v25, %v1235_v57  ;;  %v1289_v58 = vmul.f32 %v9821_v26, %v1240_v54  ;;  %v1313_v35 = vrot.slane %v1312_v49, 4 }
 0x591   :  { %v1319_v13 = vadd.f32 %v1289_v58, %v1288_v52  ;;  %v1314_v51 = vadd.f32 %v1313_v35, %v1312_v49  ;;  %v1308_v52 = vrot.slane %v1307_v50, 2 }
 0x592   :  { %v1245_v15 = vpop.permute.xlu0 %1244  ;;  %v1250_v14 = vpop.permute.xlu1 %1249 }
 0x593   :  { %v1290_v18 = vmul.f32 %v9823_v27, %v1245_v15  ;;  %v1291_v6 = vmul.f32 %v9825_v28, %v1250_v14  ;;  %v1320_v41 = vrot.slane %v1319_v13, 4  ;;  %v1315_v20 = vrot.slane %v1314_v51, 2 }
 0x595   :  { %v1326_v8 = vadd.f32 %v1291_v6, %v1290_v18  ;;  %v1321_v57 = vadd.f32 %v1320_v41, %v1319_v13  ;;  %v1309_v13 = vadd.f32 %v1308_v52, %v1307_v50  ;;  %v1316_v35 = vadd.f32 %v1315_v20, %v1314_v51 }
 0x596   :  { %v1255_v29 = vpop.permute.xlu0 %1254  ;;  %v1260_v48 = vpop.permute.xlu1 %1259  ;;  %v1303_v50 = vrot.slane %v1302_v37, 1 }
 0x597   :  { %v1327_v25 = vrot.slane %v1326_v8, 4  ;;  %v1292_v54 = vmul.f32 %v9827_v30, %v1255_v29  ;;  %v1293_v26 = vmul.f32 %v9829_v31, %v1260_v48  ;;  %v1322_v28 = vrot.slane %v1321_v57, 2  ;;  %v12175_v48 = vld [vmem:[#allocation35_spill] sm:$0xff] }
 0x599   :  { %v1328_v58 = vadd.f32 %v1327_v25, %v1326_v8  ;;  %v1333_v15 = vadd.f32 %v1293_v26, %v1292_v54  ;;  %v1323_v25 = vadd.f32 %v1322_v28, %v1321_v57  ;;  %v12176_v54 = vld [vmem:[#allocation36_spill] sm:$0xff] }
 0x59a   :  { %v1265_v27 = vpop.permute.xlu0 %1264  ;;  %v1270_v14 = vpop.permute.xlu1 %1269 }
 0x59b   :  { %v1294_v18 = vmul.f32 %v9831_v32, %v1265_v27  ;;  %v1295_v19 = vmul.f32 %v9833_v33, %v1270_v14  ;;  %v1329_v49 = vrot.slane %v1328_v58, 2  ;;  %v1334_v46 = vrot.slane %v1333_v15, 4 }
 0x59c   :  { %v1310_v27 = vrot.slane %v1309_v13, 1  ;;  %v1317_v33 = vrot.slane %v1316_v35, 1  ;;  %v1324_v52 = vrot.slane %v1323_v25, 1 }
 0x59d   :  { %v1340_v23 = vadd.f32 %v1295_v19, %v1294_v18  ;;  %v1335_v6 = vadd.f32 %v1334_v46, %v1333_v15  ;;  %v1330_v30 = vadd.f32 %v1329_v49, %v1328_v58  ;;  %v1304_v19 = vadd.f32 %v1303_v50, %v1302_v37  ;;  %v8436_v50 = vld [vmem:[#allocation14 + $0x24] ss:$16 sps:$4 sm:$0xff]  }
 0x59e   :  { %v1275_v41 = vpop.permute.xlu0 %1274  ;;  %v1280_v29 = vpop.permute.xlu1 %1279  ;;  %v1311_v51 = vadd.f32 %v1310_v27, %v1309_v13  ;;  %v1318_v18 = vadd.f32 %v1317_v33, %v1316_v35  ;;  %v1325_v46 = vadd.f32 %v1324_v52, %v1323_v25  ;;  %v8434_v27 = vld [vmem:[#allocation14] ss:$16 sps:$4 sm:$0xff]   ;;  %v8438_v52 = vld [vmem:[#allocation14 + $0x2c] ss:$16 sps:$4 sm:$0xff]  }
 0x59f   :  { %v1341_v8 = vrot.slane %v1340_v23, 4  ;;  %v1296_v26 = vmul.f32 %v12175_v48, %v1275_v41  ;;  %v1297_v31 = vmul.f32 %v12176_v54, %v1280_v29  ;;  %v1336_v11 = vrot.slane %v1335_v6, 2 }
 0x5a0   :  { %v1331_v16 = vrot.slane %v1330_v30, 1 }
 0x5a1   :  { %v1342_v32 = vadd.f32 %v1341_v8, %v1340_v23  ;;  %v1347_v14 = vadd.f32 %v1297_v31, %v1296_v26  ;;  %v1337_v36 = vadd.f32 %v1336_v11, %v1335_v6  ;;  %v1381_v23 = vsel %vm391_vm0, %v1311_v51, %v1304_v19  ;;  %v8444_v51 = vld [vmem:[#allocation14 + $0x4c] ss:$16 sps:$4 sm:$0xff]  }
 0x5a2   :  { %v1332_v49 = vadd.f32 %v1331_v16, %v1330_v30  ;;  %v1382_v6 = vsel %vm393_vm1, %v1318_v18, %v1381_v23  ;;  %v1371_v35 = vpop.permute.xlu0 %1370  ;;  %v8442_v16 = vld [vmem:[#allocation14 + $0x44] ss:$16 sps:$4 sm:$0xff]   ;;  %v8450_v19 = vld [vmem:[#allocation14 + $0x6c] ss:$16 sps:$4 sm:$0xff]   ;;  %v8458_v23 = vld [vmem:[#allocation14 + $0x80] ss:$16 sps:$4 sm:$0xff]  }
 0x5a3   :  { %v1343_v21 = vrot.slane %v1342_v32, 2  ;;  %v1348_v20 = vrot.slane %v1347_v14, 4  ;;  %v1338_v15 = vrot.slane %v1337_v36, 1  ;;  %v1383_v26 = vsel %vm395_vm2, %v1325_v46, %v1382_v6  ;;  %v8448_v18 = vld [vmem:[#allocation14 + $0x64] ss:$16 sps:$4 sm:$0xff]  }
 0x5a4   :  { %v1384_v13 = vsel %vm397_vm3, %v1332_v49, %v1383_v26  ;;  %v8452_v46 = vld [vmem:[#allocation14 + $0x60] ss:$16 sps:$4 sm:$0xff]   ;;  %v8456_v49 = vld [vmem:[#allocation14 + $0x8c] ss:$16 sps:$4 sm:$0xff]   ;;  %v8466_v26 = vld [vmem:[#allocation14 + $0xc4] ss:$16 sps:$4 sm:$0xff]  }
 0x5a5   :  { %v1344_v28 = vadd.f32 %v1343_v21, %v1342_v32  ;;  %v1349_v57 = vadd.f32 %v1348_v20, %v1347_v14  ;;  %v1339_v31 = vadd.f32 %v1338_v15, %v1337_v36  ;;  %v8435_v36 = vld [vmem:[#allocation14 + $0x8] ss:$16 sps:$4 sm:$0xff]   ;;  %v8440_v21 = vld [vmem:[#allocation14 + $0x20] ss:$16 sps:$4 sm:$0xff]   ;;  %v12177_v15 = vmov 0  }
 0x5a6   :  { %v8441_v20 = vld [vmem:[#allocation14 + $0x28] ss:$16 sps:$4 sm:$0xff]   ;;  %v8464_v6 = vld [vmem:[#allocation14 + $0xa0] ss:$16 sps:$4 sm:$0xff]  }
 0x5a7   :  { %v1345_v41 = vrot.slane %v1344_v28, 1  ;;  %v1350_v58 = vrot.slane %v1349_v57, 2  ;;  %v1385_v33 = vsel %vm399_vm4, %v1339_v31, %v1384_v13  ;;  %v8459_v31 = vld [vmem:[#allocation14 + $0x88] ss:$16 sps:$4 sm:$0xff]   ;;  %v8468_v13 = vld [vmem:[#allocation14 + $0xcc] ss:$16 sps:$4 sm:$0xff]  }
 0x5a9   :  { %v1351_v29 = vadd.f32 %v1350_v58, %v1349_v57  ;;  %v1346_v11 = vadd.f32 %v1345_v41, %v1344_v28  ;;  %v8446_v28 = vld [vmem:[#allocation14 + $0x40] ss:$16 sps:$4 sm:$0xff]   ;;  %v8447_v57 = vld [vmem:[#allocation14 + $0x48] ss:$16 sps:$4 sm:$0xff]   ;;  %v8454_v58 = vld [vmem:[#allocation14 + $0x84] ss:$16 sps:$4 sm:$0xff]  }
 0x5aa   :  { %v8453_v41 = vld [vmem:[#allocation14 + $0x68] ss:$16 sps:$4 sm:$0xff]  }
 0x5ab   :  { %v1352_v8 = vrot.slane %v1351_v29, 1  ;;  %v1386_v37 = vsel %vm401_vm5, %v1346_v11, %v1385_v33  ;;  %v8462_v11 = vld [vmem:[#allocation14 + $0xac] ss:$16 sps:$4 sm:$0xff]   ;;  %v8471_v33 = vld [vmem:[#allocation14 + $0xc8] ss:$16 sps:$4 sm:$0xff]  }
 0x5ad   :  { %v1353_v32 = vadd.f32 %v1352_v8, %v1351_v29  ;;  %v8460_v29 = vld [vmem:[#allocation14 + $0xa4] ss:$16 sps:$4 sm:$0xff]   ;;  %v8465_v8 = vld [vmem:[#allocation14 + $0xa8] ss:$16 sps:$4 sm:$0xff]  }
 0x5af   :  { %v1387_v30 = vsel %vm403_vm6, %v1353_v32, %v1386_v37  ;;  %v8470_v32 = vld [vmem:[#allocation14 + $0xc0] ss:$16 sps:$4 sm:$0xff]   ;;  %v8472_v37 = vld [vmem:[#allocation14 + $0xe4] ss:$16 sps:$4 sm:$0xff]  }
 0x5b0   :  { %v1389_v25 = vmul.f32 %v1387_v30, %v1371_v35  ;;  %v8474_v35 = vld [vmem:[#allocation14 + $0xec] ss:$16 sps:$4 sm:$0xff]   ;;  %v8476_v30 = vld [vmem:[#allocation14 + $0xe0] ss:$16 sps:$4 sm:$0xff]  }
 0x5b2   :  { %v1394_v14 = vpack.c.bf16 %v1389_v25, %v1389_v25  ;;  %v8477_v25 = vld [vmem:[#allocation14 + $0xe8] ss:$16 sps:$4 sm:$0xff]  }
 0x5b4   :  { %1588 = vmatmul.mubr.bf16.vlgmr.msra.gmra.mrb[4].mxu0 %v1394_v14  ;;  %1629 = vmatmul.mubr.bf16.vlgmr.msra.gmra.mrb[4].mxu1 %v1394_v14  ;;  %v8926_v14 = vld [vmem:[#allocation11] sm:$0xff]  }
 0x5b5   :  { %1802 = vmatpush1.bf16.msra.mxu0 %v8434_v27  ;;  %1843 = vmatpush1.bf16.msra.mxu1 %v8435_v36  ;;  %v12178_v27 = vmov 0.0   ;;  %v12179_v36 = vld [vmem:[#allocation39_spill] sm:$0xff] }
 0x5b6   :  { %1803 = vmatprep.subr.bf16.mxu0 %v8436_v50  ;;  %1844 = vmatprep.subr.bf16.mxu1 %v8438_v52  ;;  %v8927_v50 = vld [vmem:[#allocation11 + $0x8] sm:$0xff]  }
 0x5b7   :  { %1833 = vmatprep.mubr.bf16.mxu0 %v12177_v15  ;;  %1874 = vmatprep.mubr.bf16.mxu1 %v12177_v15 }
 0x5b9   :  { %1804 = vmatpush1.bf16.msra.mxu0 %v8440_v21  ;;  %1845 = vmatpush1.bf16.msra.mxu1 %v8441_v20 }
 0x5ba   :  { %1805 = vmatprep.subr.bf16.mxu0 %v8442_v16  ;;  %1846 = vmatprep.subr.bf16.mxu1 %v8444_v51 }
 0x5bd   :  { %1806 = vmatpush1.bf16.msra.mxu0 %v8446_v28  ;;  %1847 = vmatpush1.bf16.msra.mxu1 %v8447_v57  ;;  %v1392_v28 = vld [vmem:[#allocation8 + $0x10] sm:$0xff] }
 0x5be   :  { %1807 = vmatprep.subr.bf16.mxu0 %v8448_v18  ;;  %1848 = vmatprep.subr.bf16.mxu1 %v8450_v19 }
 0x5c1   :  { %1808 = vmatpush1.bf16.msra.mxu0 %v8452_v46  ;;  %1849 = vmatpush1.bf16.msra.mxu1 %v8453_v41 }
 0x5c2   :  { %1809 = vmatprep.subr.bf16.mxu0 %v8454_v58  ;;  %1850 = vmatprep.subr.bf16.mxu1 %v8456_v49  ;;  %v8934_v58 = vld [vmem:[%s12029_s4] sm:$0x3] }
 0x5c3   :  { %v372_v49 = vrot.slane %v8934_v58, %v10016_v7 }
 0x5c5   :  { %1810 = vmatpush1.bf16.msra.mxu0 %v8458_v23  ;;  %1851 = vmatpush1.bf16.msra.mxu1 %v8459_v31 }
 0x5c6   :  { %1811 = vmatprep.subr.bf16.mxu0 %v8460_v29  ;;  %1852 = vmatprep.subr.bf16.mxu1 %v8462_v11  ;;  %v12180_v11 = vld [vmem:[#allocation38_spill] sm:$0xff] }
 0x5c9   :  { %1812 = vmatpush1.bf16.msra.mxu0 %v8464_v6  ;;  %1853 = vmatpush1.bf16.msra.mxu1 %v8465_v8  ;;  %v524_v6 = vadd.f32 %v12180_v11, %v372_v49 }
 0x5ca   :  { %1813 = vmatprep.subr.bf16.mxu0 %v8466_v26  ;;  %1854 = vmatprep.subr.bf16.mxu1 %v8468_v13 }
 0x5cd   :  { %1814 = vmatpush1.bf16.msra.mxu0 %v8470_v32  ;;  %1855 = vmatpush1.bf16.msra.mxu1 %v8471_v33 }
 0x5ce   :  { %1815 = vmatprep.subr.bf16.mxu0 %v8472_v37  ;;  %1856 = vmatprep.subr.bf16.mxu1 %v8474_v35 }
 0x5d1   :  { %1816 = vmatpush1.bf16.msra.mxu0 %v8476_v30  ;;  %1857 = vmatpush1.bf16.msra.mxu1 %v8477_v25 }
 0x5d2   :  { %8124 = vmatprep.subr.bf16.mxu0 %v12178_v27  ;;  %2707 = vmatprep.subr.bf16.mxu1 %v10178_v10  ;;  %v8928_v10 = vld [vmem:[#allocation11 + $0x10] sm:$0xff]  }
 0x5d4   :  { %1834 = vmatmul.mubr.bf16.vlgmr.msra.gmra.mrb[4].mxu0 %v12179_v36  ;;  %1875 = vmatmul.mubr.bf16.vlgmr.msra.gmra.mrb[4].mxu1 %v12179_v36 }
 0x5d5   :  { %8125 = vmatpush3.bf16.msra.mxu0 %v8926_v14  ;;  %8140 = vmatprep.mubr.msk.bf16.mxu0 %vm9636_vm7, %v12178_v27 }
 0x5d6   :  { %8126 = vmatprep.subr.bf16.mxu0 %v12178_v27  ;;  %2708 = vmatpush1.bf16.msra.mxu1 %v10182_v22  ;;  %v8929_v22 = vld [vmem:[#allocation11 + $0x18] sm:$0xff]  }
 0x5d7   :  { %2709 = vmatprep.subr.bf16.mxu1 %v10190_v5  ;;  %2739 = vmatprep.mubr.bf16.mxu1 %v12177_v15  ;;  %v8930_v5 = vld [vmem:[#allocation11 + $0x20] sm:$0xff]  }
 0x5d9   :  { %8127 = vmatpush3.bf16.msra.mxu0 %v8927_v50 }
 0x5da   :  { %8128 = vmatprep.subr.bf16.mxu0 %v12178_v27  ;;  %2710 = vmatpush1.bf16.msra.mxu1 %v10194_v3  ;;  %v8931_v3 = vld [vmem:[#allocation11 + $0x28] sm:$0xff]  }
 0x5db   :  { %2711 = vmatprep.subr.bf16.mxu1 %v10202_v4  ;;  %v8932_v4 = vld [vmem:[#allocation11 + $0x30] sm:$0xff]  }
 0x5dd   :  { %8129 = vmatpush3.bf16.msra.mxu0 %v8928_v10 }
 0x5de   :  { %8130 = vmatprep.subr.bf16.mxu0 %v12178_v27  ;;  %2712 = vmatpush1.bf16.msra.mxu1 %v10206_v9  ;;  %v8933_v9 = vld [vmem:[#allocation11 + $0x38] sm:$0xff]  }
 0x5df   :  { %2713 = vmatprep.subr.bf16.mxu1 %v10212_v0  ;;  %v1390_v0 = vld [vmem:[#allocation8] sm:$0xff] }
 0x5e1   :  { %8131 = vmatpush3.bf16.msra.mxu0 %v8929_v22 }
 0x5e2   :  { %8132 = vmatprep.subr.bf16.mxu0 %v12178_v27  ;;  %2714 = vmatpush1.bf16.msra.mxu1 %v10218_v1  ;;  %v1391_v1 = vld [vmem:[#allocation8 + $0x8] sm:$0xff] }
 0x5e3   :  { %2715 = vmatprep.subr.bf16.mxu1 %v10226_v44 }
 0x5e5   :  { %8133 = vmatpush3.bf16.msra.mxu0 %v8930_v5 }
 0x5e6   :  { %8134 = vmatprep.subr.bf16.mxu0 %v12178_v27  ;;  %2716 = vmatpush1.bf16.msra.mxu1 %v10230_v40 }
 0x5e7   :  { %2717 = vmatprep.subr.bf16.mxu1 %v10238_v12 }
 0x5e9   :  { %8135 = vmatpush3.bf16.msra.mxu0 %v8931_v3 }
 0x5ea   :  { %8136 = vmatprep.subr.bf16.mxu0 %v12178_v27  ;;  %2718 = vmatpush1.bf16.msra.mxu1 %v10242_v34 }
 0x5eb   :  { %2719 = vmatprep.subr.bf16.mxu1 %v10246_v63 }
 0x5ed   :  { %8137 = vmatpush3.bf16.msra.mxu0 %v8932_v4 }
 0x5ee   :  { %8138 = vmatprep.subr.bf16.mxu0 %v12178_v27  ;;  %2720 = vmatpush1.bf16.msra.mxu1 %v10254_v2 }
 0x5ef   :  { %2721 = vmatprep.subr.bf16.mxu1 %v10260_v56 }
 0x5f1   :  { %8139 = vmatpush3.bf16.msra.mxu0 %v8933_v9  ;;  %v12187_v9 = vld [vmem:[#allocation37_spill] sm:$0xff] }
 0x5f2   :  { %2748 = vmatprep.subr.bf16.mxu0 %v10180_v59  ;;  %2722 = vmatpush1.bf16.msra.mxu1 %v10266_v53  ;;  %v1393_v59 = vld [vmem:[#allocation8 + $0x18] sm:$0xff] }
 0x5f3   :  { %2793 = vmatprep.subr.bf16.mxu1 %v10272_v43 }
 0x6a7   :  { %v1835_v44 = vpop.f32.mrb[4].mxu0  ;;  %v1876_v40 = vpop.f32.mrb[4].mxu1 }
 0x6a8   :  { %v8244_v12 = vadd.f32 %v1835_v44, %v1390_v0  ;;  %v1837_v34 = vpop.f32.mrb[5].mxu0  ;;  %v1878_v63 = vpop.f32.mrb[5].mxu1  ;;  %v8246_v57 = vadd.f32 %v1876_v40, %v1392_v28 }
 0x6a9   :  { %v8245_v52 = vadd.f32 %v1837_v34, %v1391_v1  ;;  %v1839_v21 = vpop.f32.mrb[6].mxu0  ;;  %v1880_v2 = vpop.f32.mrb[6].mxu1  ;;  %v8247_v53 = vadd.f32 %v1878_v63, %v1393_v59  ;;  %v8937_v63 = vld [vmem:[#allocation6] sm:$0xff] }
 0x6aa   :  { %v7981_v20 = vmul.f32 -1.442695, %v8244_v12  ;;  %v1840_v56 = vpop.f32.mrb[7].mxu0  ;;  %v1881_v16 = vpop.f32.mrb[7].mxu1  ;;  %v8936_v12 = vld [vmem:[#allocation6 + $0x8] sm:$0xff]  ;;  %v8938_v21 = vld [vmem:[#allocation6 + $0x18] sm:$0xff] }
 0x6ab   :  { %v7982_v51 = vmul.f32 -1.442695, %v8245_v52  ;;  %v7983_v43 = vmul.f32 -1.442695, %v8247_v53  ;;  %v8940_v53 = vld [vmem:[#allocation6 + $0x28] sm:$0xff] }
 0x6ac   :  { %8526 = vpow2.f32 %v7981_v20  ;;  %v8939_v20 = vld [vmem:[#allocation6 + $0x10] sm:$0xff] }
 0x6ad   :  { %8528 = vpow2.f32 %v7982_v51 }
 0x6ae   :  { %8530 = vpow2.f32 %v7983_v43  ;;  %v8941_v43 = vld [vmem:[#allocation6 + $0x20] sm:$0xff] }
 0x6af   :  { %8532 = vtanh.f32 %v8246_v57 }
 0x6b6   :  { %v8527_v18 = vpop.eup %8526 }
 0x6b7   :  { %v8529_v19 = vpop.eup %8528  ;;  %v1890_v46 = vadd.f32 1.0, %v8527_v18 }
 0x6b8   :  { %v1896_v41 = vadd.f32 1.0, %v8529_v19  ;;  %v8531_v23 = vpop.eup %8530 }
 0x6b9   :  { %8534 = vrcp.f32 %v1890_v46  ;;  %v8533_v31 = vpop.eup %8532  ;;  %v1903_v13 = vadd.f32 1.0, %v8531_v23  ;;  %v12188_v46 = vld [vmem:[#allocation41_spill] sm:$0xff] }
 0x6ba   :  { %8536 = vrcp.f32 %v1896_v41 }
 0x6bb   :  { %8538 = vrcp.f32 %v1903_v13 }
 0x6c3   :  { %v8535_v29 = vpop.eup %8534 }
 0x6c4   :  { %v8537_v8 = vpop.eup %8536  ;;  %v1907_v26 = vmul.f32 %v8535_v29, %v8533_v31  ;;  %v8942_v29 = vld [vmem:[#allocation6 + $0x48] sm:$0xff] }
 0x6c5   :  { %v1906_v32 = vmul.f32 %v8537_v8, %v524_v6  ;;  %v8539_v37 = vpop.eup %8538  ;;  %v8943_v6 = vld [vmem:[#allocation6 + $0x40] sm:$0xff] }
 0x6c7   :  { %v10341_v33 = vadd.f32 %v1907_v26, %v1906_v32 }
 0x6c9   :  { %8540 = vtanh.f32 %v10341_v33 }
 0x6d3   :  { %v8541_v35 = vpop.eup %8540 }
 0x6d4   :  { %v10344_v30 = vmul.f32 %v8541_v35, %v8539_v37 }
 0x6d6   :  { %v10348_v25 = vpack.c.bf16 %v10344_v30, %v10344_v30 }
 0x6d8   :  { %1912 = vst [vmem:[#allocation15] sm:$0xf] %v10348_v25  ;;  %8141 = vmatmul.mubr.bf16.vlgmr.msra.gmra.mrb[8].mxu0 %v10348_v25 }
 0x6d9   :  { %2749 = vmatpush1.bf16.msra.mxu0 %v10184_v17  ;;  %2780 = vmatprep.mubr.bf16.mxu0 %v12177_v15  ;;  %v12181_v17 = vld [vmem:[#allocation51_spill] sm:$0xff] }
 0x6da   :  { %2750 = vmatprep.subr.bf16.mxu0 %v10192_v47  ;;  %v12182_v47 = vld [vmem:[#allocation52_spill] sm:$0xff] }
 0x6dd   :  { %2751 = vmatpush1.bf16.msra.mxu0 %v10196_v45  ;;  %v12183_v45 = vld [vmem:[#allocation53_spill] sm:$0xff] }
 0x6de   :  { %2752 = vmatprep.subr.bf16.mxu0 %v10204_v55  ;;  %v12184_v55 = vld [vmem:[#allocation54_spill] sm:$0xff] }
 0x6e1   :  { %2753 = vmatpush1.bf16.msra.mxu0 %v10208_v60  ;;  %v12185_v60 = vld [vmem:[#allocation55_spill] sm:$0xff] }
 0x6e2   :  { %2754 = vmatprep.subr.bf16.mxu0 %v10214_v42 }
 0x6e5   :  { %2755 = vmatpush1.bf16.msra.mxu0 %v10220_v62  ;;  %v8935_v62 = vld [vmem:[%s12031_s6] ss:$0 sm:$0xff] }
 0x6e6   :  { %2756 = vmatprep.subr.bf16.mxu0 %v10228_v61 }
 0x6e9   :  { %2757 = vmatpush1.bf16.msra.mxu0 %v10232_v38 }
 0x6ea   :  { %2758 = vmatprep.subr.bf16.mxu0 %v10240_v39 }
 0x6ed   :  { %2759 = vmatpush1.bf16.msra.mxu0 %v10244_v24  ;;  %v12186_v24 = vld [vmem:[#allocation40_spill] sm:$0xff] }
 0x6ee   :  { %2760 = vmatprep.subr.bf16.mxu0 %v12181_v17 }
 0x6f1   :  { %2761 = vmatpush1.bf16.msra.mxu0 %v12182_v47 }
 0x6f2   :  { %2762 = vmatprep.subr.bf16.mxu0 %v12183_v45 }
 0x6f5   :  { %2763 = vmatpush1.bf16.msra.mxu0 %v12184_v55 }
 0x6f6   :  { %2834 = vmatprep.subr.bf16.mxu0 %v12185_v60 }
 0x7ab   :  { %v1947_v42 = vpop.f32.mrb[8].mxu0 }
 0x7ac   :  { %v1948_v61 = vadd.f32 %v8935_v62, %v1947_v42  ;;  %v8142_v38 = vpop.f32.mrb[9].mxu0  ;;  %v8944_v42 = vld [vmem:[#allocation6 + $0x38] sm:$0xff] }
 0x7ad   :  { %v1950_v39 = vpop.f32.mrb[10].mxu0 }
 0x7ae   :  { %v1954_v36 = vcombine.high %v1948_v61, %v1948_v61  ;;  %v1961_v14 = vrot.slane %v1948_v61, %v12186_v24  ;;  %v8143_v50 = vpop.f32.mrb[11].mxu0  ;;  %v8945_v61 = vld [vmem:[#allocation6 + $0x30] sm:$0xff] }
 0x7b0   :  { %v1968_v10 = vrot.slane %v1954_v36, %v12186_v24  ;;  %v1969_v22 = vcombine.high %v1961_v14, %v1961_v14  ;;  %v1977_v5 = vrot.slane %v1961_v14, %v12186_v24 }
 0x7b2   :  { %v1991_v3 = vrot.slane %v1969_v22, %v12186_v24  ;;  %v1999_v4 = vcombine.high %v1977_v5, %v1977_v5  ;;  %v2006_v0 = vrot.slane %v1977_v5, %v12187_v9  ;;  %v1984_v1 = vrot.slane %v1968_v10, %v12186_v24 }
 0x7b3   :  { %v1970_v16 = vcombine.high %v1968_v10, %v1968_v10 }
 0x7b4   :  { %v2010_v44 = vrot.slane %v1991_v3, %v12187_v9  ;;  %v2014_v40 = vrot.slane %v1999_v4, %v12187_v9  ;;  %v2044_v34 = vadd.f32 %v8936_v12, %v2006_v0  ;;  %v2043_v52 = vadd.f32 %v8937_v63, %v2006_v0  ;;  %v8947_v0 = vld [vmem:[#allocation6 + $0x50] sm:$0xff]  ;;  %v8949_v12 = vld [vmem:[#allocation6 + $0x60] sm:$0xff] }
 0x7b5   :  { %v2022_v18 = vrot.slane %v1984_v1, %v12187_v9  ;;  %v2001_v19 = vcombine.high %v1991_v3, %v1991_v3  ;;  %v1998_v26 = vrot.slane %v1970_v16, %v12186_v24  ;;  %v2000_v55 = vcombine.high %v1984_v1, %v1984_v1  ;;  %v8946_v3 = vld [vmem:[#allocation6 + $0x58] sm:$0xff] }
 0x7b6   :  { %v2046_v2 = vadd.f32 %v8938_v21, %v2010_v44  ;;  %v2045_v56 = vadd.f32 %v8939_v20, %v2010_v44  ;;  %v2060_v51 = vmax.f32 %v2044_v34, 0.0  ;;  %v2059_v59 = vmax.f32 %v2043_v52, 0.0  ;;  %v8948_v44 = vld [vmem:[#allocation6 + $0x68] sm:$0xff] }
 0x7b7   :  { %v2048_v28 = vadd.f32 %v8940_v53, %v2014_v40  ;;  %v2047_v57 = vadd.f32 %v8941_v43, %v2014_v40  ;;  %v2052_v11 = vadd.f32 %v8942_v29, %v2022_v18  ;;  %v2051_v8 = vadd.f32 %v8943_v6, %v2022_v18  ;;  %v8950_v53 = vld [vmem:[#allocation6 + $0x78] sm:$0xff]  ;;  %v8951_v43 = vld [vmem:[#allocation6 + $0x70] sm:$0xff] }
 0x7b8   :  { %v2076_v41 = vmul.f32 %v2060_v51, %v12188_v46  ;;  %v2075_v58 = vmul.f32 %v2059_v59, %v12188_v46  ;;  %v2062_v49 = vmax.f32 %v2046_v2, 0.0  ;;  %v2061_v23 = vmax.f32 %v2045_v56, 0.0 }
 0x7b9   :  { %v2064_v31 = vmax.f32 %v2048_v28, 0.0  ;;  %v2063_v37 = vmax.f32 %v2047_v57, 0.0  ;;  %v2018_v35 = vrot.slane %v2001_v19, %v12187_v9  ;;  %v2068_v47 = vmax.f32 %v2052_v11, 0.0 }
 0x7ba   :  { %2093 = vadd.xlane.f32.xlu0 %v2076_v41  ;;  %2091 = vadd.xlane.f32.xlu1 %v2075_v58  ;;  %v2078_v13 = vmul.f32 %v2062_v49, %v12188_v46  ;;  %v2077_v32 = vmul.f32 %v2061_v23, %v12188_v46  ;;  %v2067_v45 = vmax.f32 %v2051_v8, 0.0  ;;  %v2026_v39 = vrot.slane %v1998_v26, %v12187_v9 }
 0x7bb   :  { %v2080_v17 = vmul.f32 %v2064_v31, %v12188_v46  ;;  %v2079_v60 = vmul.f32 %v2063_v37, %v12188_v46  ;;  %v2050_v62 = vadd.f32 %v8944_v42, %v2018_v35  ;;  %v2049_v38 = vadd.f32 %v8945_v61, %v2018_v35 }
 0x7bc   :  { %v2084_v36 = vmul.f32 %v2068_v47, %v12188_v46  ;;  %v2083_v14 = vmul.f32 %v2067_v45, %v12188_v46  ;;  %v2030_v50 = vrot.slane %v2000_v55, %v12187_v9  ;;  %v2002_v10 = vcombine.high %v1998_v26, %v1998_v26  ;;  %v12190_v45 = vld [vmem:[#allocation43_spill] sm:$0xff] }
 0x7bd   :  { %v2066_v22 = vmax.f32 %v2050_v62, 0.0  ;;  %v2065_v5 = vmax.f32 %v2049_v38, 0.0  ;;  %v2054_v4 = vadd.f32 %v8946_v3, %v2026_v39  ;;  %v2053_v1 = vadd.f32 %v8947_v0, %v2026_v39 }
 0x7be   :  { %2097 = vadd.xlane.f32.xlu1 %v2078_v13  ;;  %2095 = vadd.xlane.f32.xlu0 %v2077_v32  ;;  %v2056_v40 = vadd.f32 %v8948_v44, %v2030_v50  ;;  %v2055_v34 = vadd.f32 %v8949_v12, %v2030_v50  ;;  %v2034_v63 = vrot.slane %v2002_v10, %v12187_v9 }
 0x7bf   :  { %v2082_v52 = vmul.f32 %v2066_v22, %v12188_v46  ;;  %v2081_v21 = vmul.f32 %v2065_v5, %v12188_v46  ;;  %v2070_v2 = vmax.f32 %v2054_v4, 0.0  ;;  %v2069_v20 = vmax.f32 %v2053_v1, 0.0 }
 0x7c0   :  { %v2072_v56 = vmax.f32 %v2056_v40, 0.0  ;;  %v2071_v16 = vmax.f32 %v2055_v34, 0.0  ;;  %v2058_v28 = vadd.f32 %v8950_v53, %v2034_v63  ;;  %v2057_v57 = vadd.f32 %v8951_v43, %v2034_v63 }
 0x7c1   :  { %v2086_v51 = vmul.f32 %v2070_v2, %v12188_v46  ;;  %v2085_v59 = vmul.f32 %v2069_v20, %v12188_v46 }
 0x7c2   :  { %2101 = vadd.xlane.f32.xlu1 %v2080_v17  ;;  %2099 = vadd.xlane.f32.xlu0 %v2079_v60  ;;  %v2088_v18 = vmul.f32 %v2072_v56, %v12188_v46  ;;  %v2087_v19 = vmul.f32 %v2071_v16, %v12188_v46  ;;  %v2074_v41 = vmax.f32 %v2058_v28, 0.0  ;;  %v2073_v58 = vmax.f32 %v2057_v57, 0.0  ;;  %v12189_v17 = vld [vmem:[#allocation42_spill] sm:$0xff] }
 0x7c4   :  { %v2090_v49 = vmul.f32 %v2074_v41, %v12188_v46  ;;  %v2089_v23 = vmul.f32 %v2073_v58, %v12188_v46 }
 0x7c6   :  { %2109 = vadd.xlane.f32.xlu1 %v2084_v36  ;;  %2107 = vadd.xlane.f32.xlu0 %v2083_v14 }
 0x7ca   :  { %2105 = vadd.xlane.f32.xlu1 %v2082_v52  ;;  %2103 = vadd.xlane.f32.xlu0 %v2081_v21 }
 0x7ce   :  { %2113 = vadd.xlane.f32.xlu1 %v2086_v51  ;;  %2111 = vadd.xlane.f32.xlu0 %v2085_v59 }
 0x7d2   :  { %2117 = vadd.xlane.f32.xlu1 %v2088_v18  ;;  %2115 = vadd.xlane.f32.xlu0 %v2087_v19 }
 0x7d6   :  { %2121 = vadd.xlane.f32.xlu1 %v2090_v49  ;;  %2119 = vadd.xlane.f32.xlu0 %v2089_v23 }
 0x847   :  { %v2094_v31 = vpop.xlane.xlu0 %2093  ;;  %v2092_v29 = vpop.xlane.xlu1 %2091 }
 0x848   :  { %v2146_v62 = vrot.slane %v2094_v31, %v12189_v17  ;;  %v2142_v61 = vrot.slane %v2092_v29, %v12190_v45 }
 0x84a   :  { %v2147_v22 = vsel %vm824_vm8, %v2146_v62, %v2142_v61 }
 0x84b   :  { %v10402_v11 = vpop.xlane.xlu1 %2097  ;;  %v2096_v6 = vpop.xlane.xlu0 %2095 }
 0x84c   :  { %v2155_v47 = vrot.slane %v10402_v11, %v12189_v17  ;;  %v2151_v55 = vrot.slane %v2096_v6, %v12190_v45 }
 0x84e   :  { %v2156_v50 = vsel %vm824_vm8, %v2155_v47, %v2151_v55  ;;  %v12191_v47 = vld [vmem:[#allocation47_spill] sm:$0xff] }
 0x84f   :  { %v10404_v8 = vpop.xlane.xlu1 %2101  ;;  %v2100_v26 = vpop.xlane.xlu0 %2099  ;;  %v2211_v0 = vsel %vm391_vm0, %v2156_v50, %v2147_v22  ;;  %v12193_v22 = vld [vmem:[#allocation49_spill] sm:$0xff] }
 0x850   :  { %v2164_v60 = vrot.slane %v10404_v8, %v12189_v17  ;;  %v2160_v42 = vrot.slane %v2100_v26, %v12190_v45 }
 0x852   :  { %v2165_v10 = vsel %vm824_vm8, %v2164_v60, %v2160_v42  ;;  %v12192_v60 = vld [vmem:[#allocation48_spill] sm:$0xff] }
 0x853   :  { %v10406_v13 = vpop.xlane.xlu1 %2109  ;;  %v10408_v32 = vpop.xlane.xlu0 %2107  ;;  %v2212_v34 = vsel %vm393_vm1, %v2165_v10, %v2211_v0 }
 0x854   :  { %v2182_v1 = vrot.slane %v10406_v13, %v12189_v17  ;;  %v2178_v44 = vrot.slane %v10408_v32, %v12190_v45 }
 0x856   :  { %v2183_v20 = vsel %vm824_vm8, %v2182_v1, %v2178_v44  ;;  %v12194_v44 = vld [vmem:[#allocation44_spill] sm:$0xff] }
 0x857   :  { %v10410_v37 = vpop.xlane.xlu1 %2105  ;;  %v2104_v35 = vpop.xlane.xlu0 %2103 }
 0x858   :  { %v2173_v38 = vrot.slane %v10410_v37, %v12189_v17  ;;  %v2169_v39 = vrot.slane %v2104_v35, %v12190_v45 }
 0x85a   :  { %v2174_v5 = vsel %vm824_vm8, %v2173_v38, %v2169_v39 }
 0x85b   :  { %v10423_v36 = vpop.xlane.xlu1 %2113  ;;  %v10425_v14 = vpop.xlane.xlu0 %2111  ;;  %v2213_v21 = vsel %vm395_vm2, %v2174_v5, %v2212_v34 }
 0x85c   :  { %v2191_v3 = vrot.slane %v10423_v36, %v12189_v17  ;;  %v2187_v4 = vrot.slane %v10425_v14, %v12190_v45  ;;  %v2214_v28 = vsel %vm397_vm3, %v2183_v20, %v2213_v21 }
 0x85e   :  { %v2192_v2 = vsel %vm824_vm8, %v2191_v3, %v2187_v4 }
 0x85f   :  { %v10440_v40 = vpop.xlane.xlu1 %2117  ;;  %v10442_v12 = vpop.xlane.xlu0 %2115  ;;  %v2215_v43 = vsel %vm399_vm4, %v2192_v2, %v2214_v28 }
 0x860   :  { %v2200_v63 = vrot.slane %v10440_v40, %v12189_v17  ;;  %v2196_v52 = vrot.slane %v10442_v12, %v12190_v45 }
 0x862   :  { %v2201_v51 = vsel %vm824_vm8, %v2200_v63, %v2196_v52 }
 0x863   :  { %v10452_v56 = vpop.xlane.xlu1 %2121  ;;  %v10454_v16 = vpop.xlane.xlu0 %2119  ;;  %v2216_v18 = vsel %vm401_vm5, %v2201_v51, %v2215_v43 }
 0x864   :  { %v2209_v59 = vrot.slane %v10452_v56, %v12189_v17  ;;  %v2205_v53 = vrot.slane %v10454_v16, %v12190_v45 }
 0x866   :  { %v2210_v57 = vsel %vm824_vm8, %v2209_v59, %v2205_v53 }
 0x867   :  { %v2217_v19 = vsel %vm403_vm6, %v2210_v57, %v2216_v18 }
 0x868   :  { %v2219_v41 = vsel %vm897_vm9, %v2217_v19, -inf }
 0x869   :  { %2220 = vmax.xlane.f32.xlu0 %v2219_v41 }
 0x8f6   :  { %v2221_v58 = vpop.xlane.xlu0 %2220 }
 0x8f7   :  { %v2226_v49 = vrot.slane %v2221_v58, %v12187_v9  ;;  %v2230_v23 = vrot.slane %v2221_v58, %v10016_v7  ;;  %v2234_v55 = vrot.slane %v2221_v58, %v12191_v47  ;;  %v2238_v42 = vrot.slane %v2221_v58, %v12192_v60 }
 0x8f8   :  { %v2242_v5 = vrot.slane %v2221_v58, %v12193_v22  ;;  %v2246_v34 = vrot.slane %v2221_v58, %v12194_v44 }
 0x8f9   :  { %v2264_v62 = vsub.f32 %v2094_v31, %v2226_v49  ;;  %v2263_v61 = vsub.f32 %v2092_v29, %v2226_v49  ;;  %v2267_v38 = vsub.f32 %v2100_v26, %v2234_v55  ;;  %v2265_v39 = vsub.f32 %v2096_v6, %v2230_v23  ;;  %v12195_v26 = vld [vmem:[#allocation45_spill] sm:$0xff] }
 0x8fa   :  { %v2269_v4 = vsub.f32 %v2104_v35, %v2238_v42  ;;  %v2266_v1 = vsub.f32 %v10402_v11, %v2230_v23  ;;  %v2271_v31 = vsub.f32 %v10408_v32, %v2242_v5  ;;  %v2268_v6 = vsub.f32 %v10404_v8, %v2234_v55  ;;  %v12196_v32 = vld [vmem:[#allocation46_spill] sm:$0xff] }
 0x8fb   :  { %v2281_v50 = vmul.f32 1.442695, %v2264_v62  ;;  %v2279_v10 = vmul.f32 1.442695, %v2263_v61  ;;  %v2287_v3 = vmul.f32 1.442695, %v2267_v38  ;;  %v2250_v52 = vrot.slane %v2221_v58, %v12195_v26 }
 0x8fc   :  { %v2283_v0 = vmul.f32 1.442695, %v2265_v39  ;;  %v2291_v63 = vmul.f32 1.442695, %v2269_v4  ;;  %v2285_v29 = vmul.f32 1.442695, %v2266_v1  ;;  %v2273_v35 = vsub.f32 %v10425_v14, %v2246_v34 }
 0x8fd   :  { %8542 = vpow2.f32 %v2281_v50  ;;  %v2295_v21 = vmul.f32 1.442695, %v2271_v31  ;;  %v2289_v2 = vmul.f32 1.442695, %v2268_v6  ;;  %v2270_v11 = vsub.f32 %v10410_v37, %v2238_v42 }
 0x8fe   :  { %8544 = vpow2.f32 %v2279_v10  ;;  %v2254_v59 = vrot.slane %v2221_v58, %v12196_v32  ;;  %v2299_v8 = vmul.f32 1.442695, %v2273_v35  ;;  %v2275_v53 = vsub.f32 %v10442_v12, %v2250_v52 }
 0x8ff   :  { %8546 = vpow2.f32 %v2287_v3  ;;  %v2293_v14 = vmul.f32 1.442695, %v2270_v11  ;;  %v2272_v28 = vsub.f32 %v10406_v13, %v2242_v5  ;;  %v2274_v12 = vsub.f32 %v10423_v36, %v2246_v34  ;;  %v12197_v3 = vld [vmem:[#allocation50_spill] sm:$0xff] }
 0x900   :  { %8548 = vpow2.f32 %v2283_v0  ;;  %v2303_v57 = vmul.f32 1.442695, %v2275_v53  ;;  %v2277_v18 = vsub.f32 %v10454_v16, %v2254_v59  ;;  %v2276_v23 = vsub.f32 %v10440_v40, %v2250_v52 }
 0x901   :  { %8550 = vpow2.f32 %v2291_v63  ;;  %v2297_v19 = vmul.f32 1.442695, %v2272_v28  ;;  %v2301_v49 = vmul.f32 1.442695, %v2274_v12  ;;  %v2278_v42 = vsub.f32 %v10452_v56, %v2254_v59 }
 0x902   :  { %8552 = vpow2.f32 %v2285_v29  ;;  %v2307_v13 = vmul.f32 1.442695, %v2277_v18  ;;  %v2305_v36 = vmul.f32 1.442695, %v2276_v23  ;;  %v2675_v4 = vmul.f32 %v10344_v30, %v12197_v3 }
 0x903   :  { %8554 = vpow2.f32 %v2295_v21  ;;  %v2309_v40 = vmul.f32 1.442695, %v2278_v42 }
 0x904   :  { %8556 = vpow2.f32 %v2289_v2 }
 0x905   :  { %8558 = vpow2.f32 %v2299_v8 }
 0x906   :  { %8560 = vpow2.f32 %v2293_v14 }
 0x907   :  { %v10479_v20 = vpop.eup %8542  ;;  %8562 = vpow2.f32 %v2303_v57 }
 0x908   :  { %v10481_v51 = vpop.eup %8544  ;;  %2331 = vperm.xlu0 %8349, %v10479_v20   ;;  %8564 = vpow2.f32 %v2297_v19 }
 0x909   :  { %2328 = vperm.xlu1 %8348, %v10481_v51   ;;  %v10488_v43 = vpop.eup %8546  ;;  %8566 = vpow2.f32 %v2307_v13 }
 0x90a   :  { %v10490_v37 = vpop.eup %8548  ;;  %8568 = vpow2.f32 %v2301_v49 }
 0x90b   :  { %v10496_v41 = vpop.eup %8550  ;;  %8570 = vpow2.f32 %v2305_v36 }
 0x90c   :  { %2340 = vperm.xlu0 %8349, %v10488_v43   ;;  %v10498_v58 = vpop.eup %8552  ;;  %8572 = vpow2.f32 %v2309_v40 }
 0x90d   :  { %2334 = vperm.xlu1 %8348, %v10490_v37   ;;  %v10503_v55 = vpop.eup %8554 }
 0x90e   :  { %v10505_v16 = vpop.eup %8556 }
 0x90f   :  { %v10510_v62 = vpop.eup %8558 }
 0x910   :  { %2346 = vperm.xlu0 %8349, %v10496_v41   ;;  %v10512_v61 = vpop.eup %8560 }
 0x911   :  { %2337 = vperm.xlu1 %8348, %v10498_v58   ;;  %v10516_v38 = vpop.eup %8562 }
 0x912   :  { %v10518_v39 = vpop.eup %8564 }
 0x913   :  { %v10522_v56 = vpop.eup %8566 }
 0x914   :  { %2352 = vperm.xlu0 %8349, %v10503_v55   ;;  %v10524_v50 = vpop.eup %8568 }
 0x915   :  { %2343 = vperm.xlu1 %8348, %v10505_v16   ;;  %v10528_v10 = vpop.eup %8570 }
 0x916   :  { %v10531_v5 = vpop.eup %8572 }
 0x918   :  { %2358 = vperm.xlu0 %8349, %v10510_v62  }
 0x919   :  { %2349 = vperm.xlu1 %8348, %v10512_v61  }
 0x91c   :  { %2364 = vperm.xlu0 %8349, %v10516_v38  }
 0x91d   :  { %2355 = vperm.xlu1 %8348, %v10518_v39  }
 0x920   :  { %2370 = vperm.xlu0 %8349, %v10522_v56  }
 0x921   :  { %2361 = vperm.xlu1 %8348, %v10524_v50  }
 0x925   :  { %2367 = vperm.xlu1 %8348, %v10528_v10  }
 0x929   :  { %2373 = vperm.xlu1 %8348, %v10531_v5  }
 0x94d   :  { %2676 = vadd.xlane.f32.xlu1 %v2675_v4 }
 0x987   :  { %v2332_v0 = vpop.permute.xlu0 %2331 }
 0x988   :  { %v2329_v1 = vpop.permute.xlu1 %2328  ;;  %v2382_v30 = vrot.slane %v2332_v0, %v12189_v17 }
 0x989   :  { %v2378_v14 = vrot.slane %v2329_v1, %v12190_v45 }
 0x98b   :  { %v2341_v34 = vpop.permute.xlu0 %2340  ;;  %v2383_v40 = vsel %vm824_vm8, %v2382_v30, %v2378_v14 }
 0x98c   :  { %v2335_v63 = vpop.permute.xlu1 %2334  ;;  %v2396_v18 = vrot.slane %v2341_v34, %v12190_v45 }
 0x98d   :  { %v2387_v28 = vrot.slane %v2335_v63, %v12190_v45 }
 0x98f   :  { %v2347_v31 = vpop.permute.xlu0 %2346 }
 0x990   :  { %v2338_v29 = vpop.permute.xlu1 %2337  ;;  %v2405_v12 = vrot.slane %v2347_v31, %v12190_v45 }
 0x991   :  { %v2391_v11 = vrot.slane %v2338_v29, %v12189_v17 }
 0x993   :  { %v2353_v6 = vpop.permute.xlu0 %2352  ;;  %v2392_v13 = vsel %vm824_vm8, %v2391_v11, %v2387_v28 }
 0x994   :  { %v2344_v52 = vpop.permute.xlu1 %2343  ;;  %v2414_v23 = vrot.slane %v2353_v6, %v12190_v45  ;;  %v2447_v34 = vsel %vm391_vm0, %v2392_v13, %v2383_v40 }
 0x995   :  { %v2400_v59 = vrot.slane %v2344_v52, %v12189_v17 }
 0x997   :  { %v2359_v35 = vpop.permute.xlu0 %2358  ;;  %v2401_v36 = vsel %vm824_vm8, %v2400_v59, %v2396_v18 }
 0x998   :  { %v2350_v21 = vpop.permute.xlu1 %2349  ;;  %v2423_v4 = vrot.slane %v2359_v35, %v12190_v45  ;;  %v2448_v6 = vsel %vm393_vm1, %v2401_v36, %v2447_v34 }
 0x999   :  { %v2409_v57 = vrot.slane %v2350_v21, %v12189_v17 }
 0x99b   :  { %v2365_v8 = vpop.permute.xlu0 %2364  ;;  %v2410_v0 = vsel %vm824_vm8, %v2409_v57, %v2405_v12 }
 0x99c   :  { %v2356_v2 = vpop.permute.xlu1 %2355  ;;  %v2432_v63 = vrot.slane %v2365_v8, %v12190_v45  ;;  %v2449_v21 = vsel %vm395_vm2, %v2410_v0, %v2448_v6 }
 0x99d   :  { %v2418_v19 = vrot.slane %v2356_v2, %v12189_v17 }
 0x99f   :  { %v2419_v31 = vsel %vm824_vm8, %v2418_v19, %v2414_v23  ;;  %v2371_v29 = vpop.permute.xlu0 %2370 }
 0x9a0   :  { %v2362_v53 = vpop.permute.xlu1 %2361  ;;  %v2441_v11 = vrot.slane %v2371_v29, %v12190_v45 }
 0x9a1   :  { %v2427_v49 = vrot.slane %v2362_v53, %v12189_v17  ;;  %v2450_v53 = vsel %vm397_vm3, %v2419_v31, %v2449_v21 }
 0x9a3   :  { %v2428_v52 = vsel %vm824_vm8, %v2427_v49, %v2423_v4 }
 0x9a4   :  { %v2368_v42 = vpop.permute.xlu1 %2367  ;;  %v2451_v8 = vsel %vm399_vm4, %v2428_v52, %v2450_v53 }
 0x9a5   :  { %v2436_v1 = vrot.slane %v2368_v42, %v12189_v17 }
 0x9a7   :  { %v2437_v35 = vsel %vm824_vm8, %v2436_v1, %v2432_v63 }
 0x9a8   :  { %v2374_v2 = vpop.permute.xlu1 %2373  ;;  %v2452_v14 = vsel %vm401_vm5, %v2437_v35, %v2451_v8 }
 0x9a9   :  { %v2445_v59 = vrot.slane %v2374_v2, %v12189_v17 }
 0x9ab   :  { %v2446_v30 = vsel %vm824_vm8, %v2445_v59, %v2441_v11 }
 0x9ac   :  { %v2453_v28 = vsel %vm403_vm6, %v2446_v30, %v2452_v14 }
 0x9ad   :  { %v2455_v57 = vsel %vm897_vm9, %v2453_v28, 0.0 }
 0x9ae   :  { %2456 = vadd.xlane.f32.xlu0 %v2455_v57 }
 0x9da   :  { %v2677_v53 = vpop.xlane.xlu1 %2676 }
 0xa3b   :  { %v2457_v18 = vpop.xlane.xlu0 %2456 }
 0xa3c   :  { %v2462_v19 = vrot.slane %v2457_v18, %v12187_v9  ;;  %v2466_v12 = vrot.slane %v2457_v18, %v10016_v7  ;;  %v2470_v13 = vrot.slane %v2457_v18, %v12191_v47  ;;  %v2474_v49 = vrot.slane %v2457_v18, %v12192_v60 }
 0xa3d   :  { %v2478_v36 = vrot.slane %v2457_v18, %v12193_v22  ;;  %v2482_v0 = vrot.slane %v2457_v18, %v12194_v44  ;;  %v2486_v31 = vrot.slane %v2457_v18, %v12195_v26  ;;  %v2490_v6 = vrot.slane %v2457_v18, %v12196_v32 }
 0xa3e   :  { %8574 = vrcp.f32 %v2462_v19  ;;  %v12200_v19 = vld [vmem:[#allocation21_spill] sm:$0xff] }
 0xa3f   :  { %8576 = vrcp.f32 %v2466_v12 }
 0xa40   :  { %8578 = vrcp.f32 %v2470_v13  ;;  %v12201_v13 = vld [vmem:[#allocation22_spill] sm:$0xff] }
 0xa41   :  { %8580 = vrcp.f32 %v2474_v49 }
 0xa42   :  { %8582 = vrcp.f32 %v2478_v36 }
 0xa43   :  { %8584 = vrcp.f32 %v2482_v0 }
 0xa44   :  { %8586 = vrcp.f32 %v2486_v31  ;;  %v12204_v31 = vld [vmem:[#allocation27_spill] sm:$0xff] }
 0xa45   :  { %8588 = vrcp.f32 %v2490_v6 }
 0xa48   :  { %v8575_v23 = vpop.eup %8574 }
 0xa49   :  { %v2501_v42 = vmul.f32 %v8575_v23, %v10479_v20  ;;  %v2500_v40 = vmul.f32 %v8575_v23, %v10481_v51  ;;  %v8577_v4 = vpop.eup %8576  ;;  %v12202_v23 = vld [vmem:[#allocation25_spill] sm:$0xff] }
 0xa4a   :  { %v2504_v1 = vmul.f32 %v8577_v4, %v10498_v58  ;;  %v2503_v34 = vmul.f32 %v8577_v4, %v10490_v37  ;;  %v8579_v63 = vpop.eup %8578 }
 0xa4b   :  { %2530 = vperm.xlu1 %8348, %v2501_v42   ;;  %2525 = vperm.xlu0 %8349, %v2500_v40   ;;  %v2507_v20 = vmul.f32 %v8579_v63, %v10505_v16  ;;  %v2506_v51 = vmul.f32 %v8579_v63, %v10488_v43  ;;  %v8581_v29 = vpop.eup %8580  ;;  %v12203_v42 = vld [vmem:[#allocation26_spill] sm:$0xff] }
 0xa4c   :  { %v2510_v58 = vmul.f32 %v8581_v29, %v10512_v61  ;;  %v2509_v37 = vmul.f32 %v8581_v29, %v10496_v41  ;;  %v8583_v52 = vpop.eup %8582 }
 0xa4d   :  { %v2513_v21 = vmul.f32 %v8583_v52, %v10518_v39  ;;  %v2512_v16 = vmul.f32 %v8583_v52, %v10503_v55  ;;  %v8585_v2 = vpop.eup %8584 }
 0xa4e   :  { %v2516_v43 = vmul.f32 %v8585_v2, %v10524_v50  ;;  %v2515_v35 = vmul.f32 %v8585_v2, %v10510_v62  ;;  %v8587_v11 = vpop.eup %8586  ;;  %v8952_v50 = vld [vmem:[#allocation2] ss:$0 sm:$0xff] }
 0xa4f   :  { %2540 = vperm.xlu1 %8348, %v2504_v1   ;;  %2535 = vperm.xlu0 %8349, %v2503_v34   ;;  %v2519_v41 = vmul.f32 %v8587_v11, %v10528_v10  ;;  %v2518_v61 = vmul.f32 %v8587_v11, %v10516_v38  ;;  %v8589_v59 = vpop.eup %8588  ;;  %v2678_v8 = vadd.f32 %v8952_v50, %v2677_v53  ;;  %v12198_v10 = vld [vmem:[#allocation23_spill] sm:$0xff]  ;;  %v12199_v38 = vld [vmem:[#allocation24_spill] sm:$0xff]  ;;  %v12206_v2 = vld [vmem:[#allocation29_spill] sm:$0xff] }
 0xa50   :  { %v2522_v39 = vmul.f32 %v8589_v59, %v10531_v5  ;;  %v2521_v55 = vmul.f32 %v8589_v59, %v10522_v56 }
 0xa53   :  { %2550 = vperm.xlu1 %8348, %v2507_v20   ;;  %2545 = vperm.xlu0 %8349, %v2506_v51   ;;  %v12205_v51 = vld [vmem:[#allocation28_spill] sm:$0xff] }
 0xa57   :  { %2560 = vperm.xlu1 %8348, %v2510_v58   ;;  %2555 = vperm.xlu0 %8349, %v2509_v37  }
 0xa5b   :  { %2570 = vperm.xlu1 %8348, %v2513_v21   ;;  %2565 = vperm.xlu0 %8349, %v2512_v16  }
 0xa5f   :  { %2580 = vperm.xlu1 %8348, %v2516_v43   ;;  %2575 = vperm.xlu0 %8349, %v2515_v35   ;;  %v12207_v35 = vld [vmem:[#allocation30_spill] sm:$0xff] }
 0xa63   :  { %2590 = vperm.xlu1 %8348, %v2519_v41   ;;  %2585 = vperm.xlu0 %8349, %v2518_v61  }
 0xa67   :  { %2600 = vperm.xlu1 %8348, %v2522_v39   ;;  %2595 = vperm.xlu0 %8349, %v2521_v55  }
 0xa6b   :  { %2681 = vperm.xlu0 %8349, %v2678_v8  }
 0xaca   :  { %v2526_v62 = vpop.permute.xlu0 %2525  ;;  %v2531_v30 = vpop.permute.xlu1 %2530 }
 0xacb   :  { %v2603_v12 = vmul.f32 %v12200_v19, %v2526_v62  ;;  %v2604_v5 = vmul.f32 %v12201_v13, %v2531_v30  ;;  %v12208_v30 = vld [vmem:[#allocation31_spill] sm:$0xff] }
 0xacd   :  { %v2619_v0 = vadd.f32 %v2604_v5, %v2603_v12 }
 0xace   :  { %v2536_v14 = vpop.permute.xlu0 %2535  ;;  %v2541_v28 = vpop.permute.xlu1 %2540 }
 0xacf   :  { %v2605_v57 = vmul.f32 %v12198_v10, %v2536_v14  ;;  %v2606_v18 = vmul.f32 %v12199_v38, %v2541_v28  ;;  %v2620_v58 = vrot.slane %v2619_v0, 4  ;;  %v12209_v28 = vld [vmem:[#allocation32_spill] sm:$0xff] }
 0xad1   :  { %v2626_v4 = vadd.f32 %v2606_v18, %v2605_v57  ;;  %v2621_v39 = vadd.f32 %v2620_v58, %v2619_v0  ;;  %v12211_v0 = vld [vmem:[#allocation34_spill] sm:$0xff] }
 0xad2   :  { %v2546_v49 = vpop.permute.xlu0 %2545  ;;  %v2551_v56 = vpop.permute.xlu1 %2550 }
 0xad3   :  { %v2607_v36 = vmul.f32 %v12202_v23, %v2546_v49  ;;  %v2608_v40 = vmul.f32 %v12203_v42, %v2551_v56  ;;  %v2627_v6 = vrot.slane %v2626_v4, 4  ;;  %v2622_v5 = vrot.slane %v2621_v39, 2 }
 0xad5   :  { %v2633_v1 = vadd.f32 %v2608_v40, %v2607_v36  ;;  %v2628_v61 = vadd.f32 %v2627_v6, %v2626_v4  ;;  %v12210_v4 = vld [vmem:[#allocation33_spill] sm:$0xff] }
 0xad6   :  { %v2556_v34 = vpop.permute.xlu0 %2555  ;;  %v2561_v63 = vpop.permute.xlu1 %2560 }
 0xad7   :  { %v2609_v20 = vmul.f32 %v12204_v31, %v2556_v34  ;;  %v2610_v29 = vmul.f32 %v12205_v51, %v2561_v63  ;;  %v2634_v37 = vrot.slane %v2633_v1, 4  ;;  %v2629_v18 = vrot.slane %v2628_v61, 2 }
 0xad9   :  { %v2640_v52 = vadd.f32 %v2610_v29, %v2609_v20  ;;  %v2635_v55 = vadd.f32 %v2634_v37, %v2633_v1  ;;  %v2630_v6 = vadd.f32 %v2629_v18, %v2628_v61  ;;  %v2623_v37 = vadd.f32 %v2622_v5, %v2621_v39 }
 0xada   :  { %v2566_v21 = vpop.permute.xlu0 %2565  ;;  %v2571_v16 = vpop.permute.xlu1 %2570 }
 0xadb   :  { %v2611_v43 = vmul.f32 %v12206_v2, %v2566_v21  ;;  %v2612_v11 = vmul.f32 %v12207_v35, %v2571_v16  ;;  %v2641_v41 = vrot.slane %v2640_v52, 4  ;;  %v2636_v49 = vrot.slane %v2635_v55, 2 }
 0xadc   :  { %v2624_v61 = vrot.slane %v2623_v37, 1 }
 0xadd   :  { %v2647_v59 = vadd.f32 %v2612_v11, %v2611_v43  ;;  %v2642_v8 = vadd.f32 %v2641_v41, %v2640_v52  ;;  %v2637_v52 = vadd.f32 %v2636_v49, %v2635_v55 }
 0xade   :  { %v2576_v53 = vpop.permute.xlu0 %2575  ;;  %v2581_v50 = vpop.permute.xlu1 %2580 }
 0xadf   :  { %v2648_v62 = vrot.slane %v2647_v59, 4  ;;  %v2613_v14 = vmul.f32 %v12208_v30, %v2576_v53  ;;  %v2614_v57 = vmul.f32 %v12209_v28, %v2581_v50  ;;  %v2643_v34 = vrot.slane %v2642_v8, 2 }
 0xae1   :  { %v2649_v12 = vadd.f32 %v2648_v62, %v2647_v59  ;;  %v2654_v56 = vadd.f32 %v2614_v57, %v2613_v14  ;;  %v2644_v11 = vadd.f32 %v2643_v34, %v2642_v8  ;;  %v2631_v14 = vrot.slane %v2630_v6, 1 }
 0xae2   :  { %v2586_v36 = vpop.permute.xlu0 %2585  ;;  %v2591_v40 = vpop.permute.xlu1 %2590 }
 0xae3   :  { %v2615_v63 = vmul.f32 %v12210_v4, %v2586_v36  ;;  %v2616_v1 = vmul.f32 %v12211_v0, %v2591_v40  ;;  %v2650_v20 = vrot.slane %v2649_v12, 2  ;;  %v2655_v29 = vrot.slane %v2654_v56, 4 }
 0xae4   :  { %v2638_v40 = vrot.slane %v2637_v52, 1  ;;  %v2645_v18 = vrot.slane %v2644_v11, 1  ;;  %v2632_v49 = vadd.f32 %v2631_v14, %v2630_v6 }
 0xae5   :  { %v2661_v58 = vadd.f32 %v2616_v1, %v2615_v63  ;;  %v2656_v21 = vadd.f32 %v2655_v29, %v2654_v56  ;;  %v2651_v50 = vadd.f32 %v2650_v20, %v2649_v12  ;;  %v2625_v1 = vadd.f32 %v2624_v61, %v2623_v37  ;;  %v8955_v61 = vld [vmem:[#allocation14 + $0x24] ss:$16 sps:$4 sm:$0xff]  }
 0xae6   :  { %v2596_v16 = vpop.permute.xlu0 %2595  ;;  %v2601_v43 = vpop.permute.xlu1 %2600  ;;  %v2639_v63 = vadd.f32 %v2638_v40, %v2637_v52  ;;  %v2646_v29 = vadd.f32 %v2645_v18, %v2644_v11  ;;  %v8954_v40 = vld [vmem:[#allocation14 + $0x8] ss:$16 sps:$4 sm:$0xff]   ;;  %v8956_v18 = vld [vmem:[#allocation14 + $0x2c] ss:$16 sps:$4 sm:$0xff]  }
 0xae7   :  { %v2662_v41 = vrot.slane %v2661_v58, 4  ;;  %v2617_v59 = vmul.f32 %v12175_v48, %v2596_v16  ;;  %v2618_v53 = vmul.f32 %v12176_v54, %v2601_v43  ;;  %v2657_v62 = vrot.slane %v2656_v21, 2 }
 0xae8   :  { %v2652_v5 = vrot.slane %v2651_v50, 1 }
 0xae9   :  { %v2663_v57 = vadd.f32 %v2662_v41, %v2661_v58  ;;  %v2668_v36 = vadd.f32 %v2618_v53, %v2617_v59  ;;  %v2658_v0 = vadd.f32 %v2657_v62, %v2656_v21  ;;  %v2692_v58 = vsel %vm391_vm0, %v2632_v49, %v2625_v1  ;;  %v8960_v49 = vld [vmem:[#allocation14 + $0x4c] ss:$16 sps:$4 sm:$0xff]   ;;  %v8965_v1 = vld [vmem:[#allocation14 + $0x60] ss:$16 sps:$4 sm:$0xff]  }
 0xaea   :  { %v2653_v20 = vadd.f32 %v2652_v5, %v2651_v50  ;;  %v2693_v59 = vsel %vm393_vm1, %v2639_v63, %v2692_v58  ;;  %v2682_v11 = vpop.permute.xlu0 %2681  ;;  %v8959_v5 = vld [vmem:[#allocation14 + $0x44] ss:$16 sps:$4 sm:$0xff]   ;;  %v8964_v63 = vld [vmem:[#allocation14 + $0x6c] ss:$16 sps:$4 sm:$0xff]   ;;  %v8970_v58 = vld [vmem:[#allocation14 + $0x88] ss:$16 sps:$4 sm:$0xff]  }
 0xaeb   :  { %v2664_v39 = vrot.slane %v2663_v57, 2  ;;  %v2669_v55 = vrot.slane %v2668_v36, 4  ;;  %v2659_v56 = vrot.slane %v2658_v0, 1  ;;  %v2694_v62 = vsel %vm395_vm2, %v2646_v29, %v2693_v59  ;;  %v8966_v29 = vld [vmem:[#allocation14 + $0x68] ss:$16 sps:$4 sm:$0xff]  }
 0xaec   :  { %v2695_v6 = vsel %vm397_vm3, %v2653_v20, %v2694_v62  ;;  %v8969_v20 = vld [vmem:[#allocation14 + $0x80] ss:$16 sps:$4 sm:$0xff]   ;;  %v8974_v59 = vld [vmem:[#allocation14 + $0xa8] ss:$16 sps:$4 sm:$0xff]   ;;  %v8976_v62 = vld [vmem:[#allocation14 + $0xcc] ss:$16 sps:$4 sm:$0xff]  }
 0xaed   :  { %v2665_v8 = vadd.f32 %v2664_v39, %v2663_v57  ;;  %v2670_v34 = vadd.f32 %v2669_v55, %v2668_v36  ;;  %v2660_v43 = vadd.f32 %v2659_v56, %v2658_v0  ;;  %v8953_v0 = vld [vmem:[#allocation14] ss:$16 sps:$4 sm:$0xff]   ;;  %v8958_v55 = vld [vmem:[#allocation14 + $0x28] ss:$16 sps:$4 sm:$0xff]  }
 0xaee   :  { %v8957_v39 = vld [vmem:[#allocation14 + $0x20] ss:$16 sps:$4 sm:$0xff]  }
 0xaef   :  { %v2666_v16 = vrot.slane %v2665_v8, 1  ;;  %v2671_v12 = vrot.slane %v2670_v34, 2  ;;  %v2696_v52 = vsel %vm399_vm4, %v2660_v43, %v2695_v6  ;;  %v8961_v56 = vld [vmem:[#allocation14 + $0x40] ss:$16 sps:$4 sm:$0xff]   ;;  %v8971_v43 = vld [vmem:[#allocation14 + $0xa4] ss:$16 sps:$4 sm:$0xff]  }
 0xaf0   :  { %v8977_v6 = vld [vmem:[#allocation14 + $0xc0] ss:$16 sps:$4 sm:$0xff]  }
 0xaf1   :  { %v2672_v41 = vadd.f32 %v2671_v12, %v2670_v34  ;;  %v2667_v21 = vadd.f32 %v2666_v16, %v2665_v8  ;;  %v8962_v8 = vld [vmem:[#allocation14 + $0x48] ss:$16 sps:$4 sm:$0xff]   ;;  %v8963_v34 = vld [vmem:[#allocation14 + $0x64] ss:$16 sps:$4 sm:$0xff]   ;;  %v8968_v12 = vld [vmem:[#allocation14 + $0x8c] ss:$16 sps:$4 sm:$0xff]  }
 0xaf2   :  { %v8967_v16 = vld [vmem:[#allocation14 + $0x84] ss:$16 sps:$4 sm:$0xff]  }
 0xaf3   :  { %v2673_v53 = vrot.slane %v2672_v41, 1  ;;  %v2697_v37 = vsel %vm401_vm5, %v2667_v21, %v2696_v52  ;;  %v8973_v21 = vld [vmem:[#allocation14 + $0xa0] ss:$16 sps:$4 sm:$0xff]   ;;  %v8979_v52 = vld [vmem:[#allocation14 + $0xe4] ss:$16 sps:$4 sm:$0xff]  }
 0xaf5   :  { %v2674_v14 = vadd.f32 %v2673_v53, %v2672_v41  ;;  %v8972_v41 = vld [vmem:[#allocation14 + $0xac] ss:$16 sps:$4 sm:$0xff]   ;;  %v8975_v53 = vld [vmem:[#allocation14 + $0xc4] ss:$16 sps:$4 sm:$0xff]  }
 0xaf7   :  { %v2698_v50 = vsel %vm403_vm6, %v2674_v14, %v2697_v37  ;;  %v8978_v14 = vld [vmem:[#allocation14 + $0xc8] ss:$16 sps:$4 sm:$0xff]   ;;  %v8980_v37 = vld [vmem:[#allocation14 + $0xec] ss:$16 sps:$4 sm:$0xff]  }
 0xaf8   :  { %v2700_v57 = vmul.f32 %v2698_v50, %v2682_v11  ;;  %v8981_v11 = vld [vmem:[#allocation14 + $0xe0] ss:$16 sps:$4 sm:$0xff]   ;;  %v8982_v50 = vld [vmem:[#allocation14 + $0xe8] ss:$16 sps:$4 sm:$0xff]  }
 0xafa   :  { %v2706_v36 = vpack.c.bf16 %v2700_v57, %v2700_v57  ;;  %v8983_v57 = vld [vmem:[#allocation12 + $0x4] ss:$16 sps:$4 sm:$0xff]  }
 0xafc   :  { %2740 = vmatmul.mubr.bf16.vlgmr.msra.gmra.mrb[8].mxu1 %v2706_v36  ;;  %2781 = vmatmul.mubr.bf16.vlgmr.msra.gmra.mrb[12].mxu0 %v2706_v36  ;;  %v8984_v36 = vld [vmem:[#allocation11] sm:$0xff]  }
 0xafd   :  { %2794 = vmatpush1.bf16.msra.mxu1 %v8953_v0  ;;  %2835 = vmatpush1.bf16.msra.mxu0 %v8954_v40  ;;  %v8985_v0 = vld [vmem:[#allocation12] ss:$16 sps:$4 sm:$0xff]   ;;  %v8986_v40 = vld [vmem:[#allocation12 + $0x24] ss:$16 sps:$4 sm:$0xff]  }
 0xafe   :  { %2795 = vmatprep.subr.bf16.mxu1 %v8955_v61  ;;  %2836 = vmatprep.subr.bf16.mxu0 %v8956_v18  ;;  %v8987_v61 = vld [vmem:[#allocation11 + $0x8] sm:$0xff]   ;;  %v8988_v18 = vld [vmem:[#allocation12 + $0x20] ss:$16 sps:$4 sm:$0xff]  }
 0xaff   :  { %2825 = vmatprep.mubr.bf16.mxu1 %v12177_v15  ;;  %2866 = vmatprep.mubr.bf16.mxu0 %v12177_v15 }
 0xb01   :  { %2796 = vmatpush1.bf16.msra.mxu1 %v8957_v39  ;;  %2837 = vmatpush1.bf16.msra.mxu0 %v8958_v55  ;;  %v8990_v39 = vld [vmem:[#allocation11 + $0x10] sm:$0xff]  }
 0xb02   :  { %2797 = vmatprep.subr.bf16.mxu1 %v8959_v5  ;;  %2838 = vmatprep.subr.bf16.mxu0 %v8960_v49  ;;  %v8991_v55 = vld [vmem:[#allocation12 + $0x40] ss:$16 sps:$4 sm:$0xff]   ;;  %v8992_v5 = vld [vmem:[#allocation12 + $0x64] ss:$16 sps:$4 sm:$0xff]   ;;  %v8993_v49 = vld [vmem:[#allocation11 + $0x18] sm:$0xff]  }
 0xb05   :  { %2798 = vmatpush1.bf16.msra.mxu1 %v8961_v56  ;;  %2839 = vmatpush1.bf16.msra.mxu0 %v8962_v8  ;;  %v8994_v56 = vld [vmem:[#allocation12 + $0x60] ss:$16 sps:$4 sm:$0xff]   ;;  %v8995_v8 = vld [vmem:[#allocation12 + $0x84] ss:$16 sps:$4 sm:$0xff]  }
 0xb06   :  { %2799 = vmatprep.subr.bf16.mxu1 %v8963_v34  ;;  %2840 = vmatprep.subr.bf16.mxu0 %v8964_v63  ;;  %v8996_v34 = vld [vmem:[#allocation11 + $0x20] sm:$0xff]  }
 0xb07   :  { %v8997_v63 = vld [vmem:[#allocation12 + $0x80] ss:$16 sps:$4 sm:$0xff]  }
 0xb09   :  { %2800 = vmatpush1.bf16.msra.mxu1 %v8965_v1  ;;  %2841 = vmatpush1.bf16.msra.mxu0 %v8966_v29  ;;  %v8998_v1 = vld [vmem:[#allocation12 + $0xa4] ss:$16 sps:$4 sm:$0xff]   ;;  %v8999_v29 = vld [vmem:[#allocation11 + $0x28] sm:$0xff]  }
 0xb0a   :  { %2801 = vmatprep.subr.bf16.mxu1 %v8967_v16  ;;  %2842 = vmatprep.subr.bf16.mxu0 %v8968_v12  ;;  %v9000_v16 = vld [vmem:[#allocation12 + $0xa0] ss:$16 sps:$4 sm:$0xff]   ;;  %v9001_v12 = vld [vmem:[#allocation12 + $0xc4] ss:$16 sps:$4 sm:$0xff]  }
 0xb0d   :  { %2802 = vmatpush1.bf16.msra.mxu1 %v8969_v20  ;;  %2843 = vmatpush1.bf16.msra.mxu0 %v8970_v58  ;;  %v9002_v20 = vld [vmem:[#allocation11 + $0x30] sm:$0xff]  }
 0xb0e   :  { %2803 = vmatprep.subr.bf16.mxu1 %v8971_v43  ;;  %2844 = vmatprep.subr.bf16.mxu0 %v8972_v41  ;;  %v9003_v58 = vld [vmem:[#allocation12 + $0xc0] ss:$16 sps:$4 sm:$0xff]   ;;  %v9004_v43 = vld [vmem:[#allocation12 + $0xe4] ss:$16 sps:$4 sm:$0xff]   ;;  %v9005_v41 = vld [vmem:[#allocation11 + $0x38] sm:$0xff]  }
 0xb11   :  { %2804 = vmatpush1.bf16.msra.mxu1 %v8973_v21  ;;  %2845 = vmatpush1.bf16.msra.mxu0 %v8974_v59  ;;  %v9006_v21 = vld [vmem:[#allocation12 + $0xc] ss:$16 sps:$4 sm:$0xff]   ;;  %v9007_v59 = vld [vmem:[#allocation12 + $0xe0] ss:$16 sps:$4 sm:$0xff]  }
 0xb12   :  { %2805 = vmatprep.subr.bf16.mxu1 %v8975_v53  ;;  %2846 = vmatprep.subr.bf16.mxu0 %v8976_v62  ;;  %v9008_v53 = vld [vmem:[#allocation14 + $0x4] ss:$16 sps:$4 sm:$0xff]  }
 0xb13   :  { %v2702_v62 = vld [vmem:[#allocation8 + $0x20] sm:$0xff] }
 0xb15   :  { %2806 = vmatpush1.bf16.msra.mxu1 %v8977_v6  ;;  %2847 = vmatpush1.bf16.msra.mxu0 %v8978_v14  ;;  %v2703_v6 = vld [vmem:[#allocation8 + $0x28] sm:$0xff] }
 0xb16   :  { %2807 = vmatprep.subr.bf16.mxu1 %v8979_v52  ;;  %2848 = vmatprep.subr.bf16.mxu0 %v8980_v37 }
 0xb19   :  { %2808 = vmatpush1.bf16.msra.mxu1 %v8981_v11  ;;  %2849 = vmatpush1.bf16.msra.mxu0 %v8982_v50 }
 0xb1a   :  { %8144 = vmatprep.subr.bf16.mxu1 %v12178_v27  ;;  %3700 = vmatprep.subr.bf16.mxu0 %v8983_v57 }
 0xb1c   :  { %2826 = vmatmul.mubr.bf16.vlgmr.msra.gmra.mrb[8].mxu1 %v10348_v25  ;;  %2867 = vmatmul.mubr.bf16.vlgmr.msra.gmra.mrb[12].mxu0 %v10348_v25  ;;  %v8989_v25 = vld [vmem:[#allocation12 + $0x44] ss:$16 sps:$4 sm:$0xff]  }
 0xb1d   :  { %8145 = vmatpush3.bf16.msra.mxu1 %v8984_v36  ;;  %8160 = vmatprep.mubr.msk.bf16.mxu1 %vm9636_vm7, %v12178_v27 }
 0xb1e   :  { %8146 = vmatprep.subr.bf16.mxu1 %v12178_v27  ;;  %3701 = vmatpush1.bf16.msra.mxu0 %v8985_v0 }
 0xb1f   :  { %3702 = vmatprep.subr.bf16.mxu0 %v8986_v40  ;;  %3732 = vmatprep.mubr.bf16.mxu0 %v12177_v15 }
 0xb21   :  { %8147 = vmatpush3.bf16.msra.mxu1 %v8987_v61 }
 0xb22   :  { %8148 = vmatprep.subr.bf16.mxu1 %v12178_v27  ;;  %3703 = vmatpush1.bf16.msra.mxu0 %v8988_v18 }
 0xb23   :  { %3704 = vmatprep.subr.bf16.mxu0 %v8989_v25 }
 0xb25   :  { %8149 = vmatpush3.bf16.msra.mxu1 %v8990_v39  ;;  %v2705_v39 = vld [vmem:[#allocation8 + $0x38] sm:$0xff] }
 0xb26   :  { %8150 = vmatprep.subr.bf16.mxu1 %v12178_v27  ;;  %3705 = vmatpush1.bf16.msra.mxu0 %v8991_v55 }
 0xb27   :  { %3706 = vmatprep.subr.bf16.mxu0 %v8992_v5  ;;  %v2704_v5 = vld [vmem:[#allocation8 + $0x30] sm:$0xff] }
 0xb29   :  { %8151 = vmatpush3.bf16.msra.mxu1 %v8993_v49 }
 0xb2a   :  { %8152 = vmatprep.subr.bf16.mxu1 %v12178_v27  ;;  %3707 = vmatpush1.bf16.msra.mxu0 %v8994_v56 }
 0xb2b   :  { %3708 = vmatprep.subr.bf16.mxu0 %v8995_v8 }
 0xb2d   :  { %8153 = vmatpush3.bf16.msra.mxu1 %v8996_v34 }
 0xb2e   :  { %8154 = vmatprep.subr.bf16.mxu1 %v12178_v27  ;;  %3709 = vmatpush1.bf16.msra.mxu0 %v8997_v63 }
 0xb2f   :  { %3710 = vmatprep.subr.bf16.mxu0 %v8998_v1 }
 0xb31   :  { %8155 = vmatpush3.bf16.msra.mxu1 %v8999_v29 }
 0xb32   :  { %8156 = vmatprep.subr.bf16.mxu1 %v12178_v27  ;;  %3711 = vmatpush1.bf16.msra.mxu0 %v9000_v16 }
 0xb33   :  { %3712 = vmatprep.subr.bf16.mxu0 %v9001_v12 }
 0xb35   :  { %8157 = vmatpush3.bf16.msra.mxu1 %v9002_v20 }
 0xb36   :  { %8158 = vmatprep.subr.bf16.mxu1 %v12178_v27  ;;  %3713 = vmatpush1.bf16.msra.mxu0 %v9003_v58 }
 0xb37   :  { %3714 = vmatprep.subr.bf16.mxu0 %v9004_v43 }
 0xb39   :  { %8159 = vmatpush3.bf16.msra.mxu1 %v9005_v41 }
 0xb3a   :  { %3741 = vmatprep.subr.bf16.mxu1 %v9006_v21  ;;  %3715 = vmatpush1.bf16.msra.mxu0 %v9007_v59 }
 0xb3b   :  { %3786 = vmatprep.subr.bf16.mxu0 %v9008_v53 }
 0xbef   :  { %v2827_v14 = vpop.f32.mrb[8].mxu1  ;;  %v2868_v52 = vpop.f32.mrb[12].mxu0 }
 0xbf0   :  { %v8248_v37 = vadd.f32 %v2827_v14, %v2702_v62  ;;  %v2829_v11 = vpop.f32.mrb[9].mxu1  ;;  %v2870_v50 = vpop.f32.mrb[13].mxu0  ;;  %v8250_v56 = vadd.f32 %v2868_v52, %v2704_v5  ;;  %v9009_v14 = vld [vmem:[#allocation12 + $0x8] ss:$16 sps:$4 sm:$0xff]   ;;  %v9024_v5 = vld [vmem:[#allocation14 + $0xc] ss:$16 sps:$4 sm:$0xff]  }
 0xbf1   :  { %v8249_v57 = vadd.f32 %v2829_v11, %v2703_v6  ;;  %v2831_v36 = vpop.f32.mrb[10].mxu1  ;;  %v2872_v0 = vpop.f32.mrb[14].mxu0  ;;  %v8251_v55 = vadd.f32 %v2870_v50, %v2705_v39  ;;  %v9011_v52 = vld [vmem:[#allocation12 + $0x28] ss:$16 sps:$4 sm:$0xff]   ;;  %v9014_v50 = vld [vmem:[#allocation12 + $0x6c] ss:$16 sps:$4 sm:$0xff]  }
 0xbf2   :  { %v7984_v40 = vmul.f32 -1.442695, %v8248_v37  ;;  %v2832_v61 = vpop.f32.mrb[11].mxu1  ;;  %v2873_v18 = vpop.f32.mrb[15].mxu0  ;;  %v9012_v37 = vld [vmem:[#allocation12 + $0x4c] ss:$16 sps:$4 sm:$0xff]  }
 0xbf3   :  { %v7985_v25 = vmul.f32 -1.442695, %v8249_v57  ;;  %v7986_v49 = vmul.f32 -1.442695, %v8251_v55  ;;  %v9013_v11 = vld [vmem:[#allocation12 + $0x48] ss:$16 sps:$4 sm:$0xff]  }
 0xbf4   :  { %8590 = vpow2.f32 %v7984_v40  ;;  %v9015_v57 = vld [vmem:[#allocation12 + $0x68] ss:$16 sps:$4 sm:$0xff]   ;;  %v9016_v36 = vld [vmem:[#allocation12 + $0x8c] ss:$16 sps:$4 sm:$0xff]  }
 0xbf5   :  { %8592 = vpow2.f32 %v7985_v25  ;;  %v9017_v0 = vld [vmem:[#allocation12 + $0x88] ss:$16 sps:$4 sm:$0xff]   ;;  %v9018_v40 = vld [vmem:[#allocation12 + $0xac] ss:$16 sps:$4 sm:$0xff]  }
 0xbf6   :  { %8594 = vpow2.f32 %v7986_v49  ;;  %v9019_v61 = vld [vmem:[#allocation12 + $0xa8] ss:$16 sps:$4 sm:$0xff]   ;;  %v9020_v18 = vld [vmem:[#allocation12 + $0xcc] ss:$16 sps:$4 sm:$0xff]  }
 0xbf7   :  { %8596 = vtanh.f32 %v8250_v56  ;;  %v9021_v25 = vld [vmem:[#allocation12 + $0xc8] ss:$16 sps:$4 sm:$0xff]   ;;  %v9022_v39 = vld [vmem:[#allocation12 + $0xec] ss:$16 sps:$4 sm:$0xff]  }
 0xbf8   :  { %v9023_v55 = vld [vmem:[#allocation12 + $0xe8] ss:$16 sps:$4 sm:$0xff]   ;;  %v9025_v56 = vld [vmem:[%s12031_s6] ss:$0 sm:$0xff] }
 0xbfe   :  { %v8591_v8 = vpop.eup %8590 }
 0xbff   :  { %v8593_v34 = vpop.eup %8592  ;;  %v2882_v63 = vadd.f32 1.0, %v8591_v8 }
 0xc00   :  { %v2888_v1 = vadd.f32 1.0, %v8593_v34  ;;  %v8595_v29 = vpop.eup %8594 }
 0xc01   :  { %8598 = vrcp.f32 %v2882_v63  ;;  %v8597_v16 = vpop.eup %8596  ;;  %v2895_v43 = vadd.f32 1.0, %v8595_v29 }
 0xc02   :  { %8600 = vrcp.f32 %v2888_v1 }
 0xc03   :  { %8602 = vrcp.f32 %v2895_v43 }
 0xc0b   :  { %v8599_v12 = vpop.eup %8598 }
 0xc0c   :  { %v8601_v20 = vpop.eup %8600  ;;  %v2899_v58 = vmul.f32 %v8599_v12, %v8597_v16 }
 0xc0d   :  { %v2898_v41 = vmul.f32 %v8601_v20, %v10341_v33  ;;  %v8603_v59 = vpop.eup %8602  ;;  %v9010_v33 = vld [vmem:[#allocation12 + $0x2c] ss:$16 sps:$4 sm:$0xff]  }
 0xc0f   :  { %v10631_v21 = vadd.f32 %v2899_v58, %v2898_v41 }
 0xc11   :  { %12212 = vst [vmem:[#allocation39_spill] sm:$0xff] %v10631_v21  ;;  %8604 = vtanh.f32 %v10631_v21 }
 0xc1b   :  { %v8605_v53 = vpop.eup %8604 }
 0xc1c   :  { %v10634_v62 = vmul.f32 %v8605_v53, %v8603_v59 }
 0xc1e   :  { %v10638_v6 = vpack.c.bf16 %v10634_v62, %v10634_v62 }
 0xc20   :  { %12213 = vst [vmem:[#allocation38_spill] sm:$0xff] %v10638_v6  ;;  %2905 = vst [vmem:[#allocation15 + $0x4] sm:$0xf] %v10638_v6  ;;  %8161 = vmatmul.mubr.bf16.vlgmr.msra.gmra.mrb[12].mxu1 %v10638_v6 }
 0xc21   :  { %3742 = vmatpush1.bf16.msra.mxu1 %v9009_v14  ;;  %3773 = vmatprep.mubr.bf16.mxu1 %v12177_v15 }
 0xc22   :  { %3743 = vmatprep.subr.bf16.mxu1 %v9010_v33  ;;  %v9026_v33 = vld [vmem:[#allocation6 + $0x8] sm:$0xff] }
 0xc25   :  { %3744 = vmatpush1.bf16.msra.mxu1 %v9011_v52 }
 0xc26   :  { %3745 = vmatprep.subr.bf16.mxu1 %v9012_v37  ;;  %v9027_v37 = vld [vmem:[#allocation6] sm:$0xff] }
 0xc29   :  { %3746 = vmatpush1.bf16.msra.mxu1 %v9013_v11 }
 0xc2a   :  { %3747 = vmatprep.subr.bf16.mxu1 %v9014_v50 }
 0xc2d   :  { %3748 = vmatpush1.bf16.msra.mxu1 %v9015_v57  ;;  %v9028_v57 = vld [vmem:[#allocation6 + $0x18] sm:$0xff] }
 0xc2e   :  { %3749 = vmatprep.subr.bf16.mxu1 %v9016_v36 }
 0xc31   :  { %3750 = vmatpush1.bf16.msra.mxu1 %v9017_v0  ;;  %v9029_v0 = vld [vmem:[#allocation6 + $0x10] sm:$0xff] }
 0xc32   :  { %3751 = vmatprep.subr.bf16.mxu1 %v9018_v40 }
 0xc35   :  { %3752 = vmatpush1.bf16.msra.mxu1 %v9019_v61 }
 0xc36   :  { %3753 = vmatprep.subr.bf16.mxu1 %v9020_v18 }
 0xc39   :  { %3754 = vmatpush1.bf16.msra.mxu1 %v9021_v25 }
 0xc3a   :  { %3755 = vmatprep.subr.bf16.mxu1 %v9022_v39 }
 0xc3d   :  { %3756 = vmatpush1.bf16.msra.mxu1 %v9023_v55  ;;  %v9030_v55 = vld [vmem:[#allocation6 + $0x28] sm:$0xff] }
 0xc3e   :  { %3827 = vmatprep.subr.bf16.mxu1 %v9024_v5 }
 0xcf3   :  { %v2940_v49 = vpop.f32.mrb[12].mxu1 }
 0xcf4   :  { %v2941_v8 = vadd.f32 %v9025_v56, %v2940_v49  ;;  %v8162_v34 = vpop.f32.mrb[13].mxu1  ;;  %v9031_v49 = vld [vmem:[#allocation6 + $0x20] sm:$0xff] }
 0xcf5   :  { %v2943_v63 = vpop.f32.mrb[14].mxu1 }
 0xcf6   :  { %v2947_v1 = vcombine.high %v2941_v8, %v2941_v8  ;;  %v2954_v29 = vrot.slane %v2941_v8, %v12186_v24  ;;  %v8163_v16 = vpop.f32.mrb[15].mxu1 }
 0xcf8   :  { %v2961_v12 = vrot.slane %v2947_v1, %v12186_v24  ;;  %v2962_v20 = vcombine.high %v2954_v29, %v2954_v29  ;;  %v2970_v58 = vrot.slane %v2954_v29, %v12186_v24 }
 0xcfa   :  { %v2984_v43 = vrot.slane %v2962_v20, %v12186_v24  ;;  %v2992_v41 = vcombine.high %v2970_v58, %v2970_v58  ;;  %v2999_v59 = vrot.slane %v2970_v58, %v12187_v9  ;;  %v2977_v53 = vrot.slane %v2961_v12, %v12186_v24  ;;  %v9033_v58 = vld [vmem:[#allocation6 + $0x40] sm:$0xff] }
 0xcfb   :  { %v2963_v61 = vcombine.high %v2961_v12, %v2961_v12  ;;  %v9032_v12 = vld [vmem:[#allocation6 + $0x48] sm:$0xff] }
 0xcfc   :  { %v3003_v14 = vrot.slane %v2984_v43, %v12187_v9  ;;  %v3037_v52 = vadd.f32 %v9026_v33, %v2999_v59  ;;  %v3036_v11 = vadd.f32 %v9027_v37, %v2999_v59  ;;  %v3007_v50 = vrot.slane %v2992_v41, %v12187_v9 }
 0xcfd   :  { %v2994_v39 = vcombine.high %v2984_v43, %v2984_v43  ;;  %v3015_v8 = vrot.slane %v2977_v53, %v12187_v9  ;;  %v2991_v16 = vrot.slane %v2963_v61, %v12186_v24  ;;  %v2993_v37 = vcombine.high %v2977_v53, %v2977_v53  ;;  %v9037_v53 = vld [vmem:[#allocation6 + $0x50] sm:$0xff] }
 0xcfe   :  { %v3039_v36 = vadd.f32 %v9028_v57, %v3003_v14  ;;  %v3038_v40 = vadd.f32 %v9029_v0, %v3003_v14  ;;  %v3053_v18 = vmax.f32 %v3037_v52, 0.0  ;;  %v3052_v25 = vmax.f32 %v3036_v11, 0.0 }
 0xcff   :  { %v3041_v5 = vadd.f32 %v9030_v55, %v3007_v50  ;;  %v3040_v56 = vadd.f32 %v9031_v49, %v3007_v50  ;;  %v3045_v20 = vadd.f32 %v9032_v12, %v3015_v8  ;;  %v3044_v43 = vadd.f32 %v9033_v58, %v3015_v8  ;;  %v9034_v50 = vld [vmem:[#allocation6 + $0x38] sm:$0xff] }
 0xd00   :  { %v3069_v34 = vmul.f32 %v3053_v18, %v12188_v46  ;;  %v3068_v63 = vmul.f32 %v3052_v25, %v12188_v46  ;;  %v3055_v1 = vmax.f32 %v3039_v36, 0.0  ;;  %v3054_v29 = vmax.f32 %v3038_v40, 0.0  ;;  %v9035_v18 = vld [vmem:[#allocation6 + $0x30] sm:$0xff] }
 0xd01   :  { %v3011_v41 = vrot.slane %v2994_v39, %v12187_v9  ;;  %v3057_v33 = vmax.f32 %v3041_v5, 0.0  ;;  %v3056_v52 = vmax.f32 %v3040_v56, 0.0  ;;  %v3061_v11 = vmax.f32 %v3045_v20, 0.0  ;;  %v9036_v5 = vld [vmem:[#allocation6 + $0x58] sm:$0xff] }
 0xd02   :  { %3086 = vadd.xlane.f32.xlu0 %v3069_v34  ;;  %3084 = vadd.xlane.f32.xlu1 %v3068_v63  ;;  %v3071_v59 = vmul.f32 %v3055_v1, %v12188_v46  ;;  %v3070_v14 = vmul.f32 %v3054_v29, %v12188_v46  ;;  %v3019_v36 = vrot.slane %v2991_v16, %v12187_v9  ;;  %v3060_v61 = vmax.f32 %v3044_v43, 0.0  ;;  %v9038_v43 = vld [vmem:[#allocation6 + $0x68] sm:$0xff] }
 0xd03   :  { %v3043_v57 = vadd.f32 %v9034_v50, %v3011_v41  ;;  %v3073_v0 = vmul.f32 %v3057_v33, %v12188_v46  ;;  %v3072_v40 = vmul.f32 %v3056_v52, %v12188_v46  ;;  %v3042_v25 = vadd.f32 %v9035_v18, %v3011_v41  ;;  %v9040_v50 = vld [vmem:[#allocation6 + $0x78] sm:$0xff] }
 0xd04   :  { %v3077_v39 = vmul.f32 %v3061_v11, %v12188_v46  ;;  %v3047_v49 = vadd.f32 %v9036_v5, %v3019_v36  ;;  %v3046_v56 = vadd.f32 %v9037_v53, %v3019_v36  ;;  %v3076_v8 = vmul.f32 %v3060_v61, %v12188_v46  ;;  %v9041_v36 = vld [vmem:[#allocation6 + $0x70] sm:$0xff] }
 0xd05   :  { %v3059_v55 = vmax.f32 %v3043_v57, 0.0  ;;  %v3058_v34 = vmax.f32 %v3042_v25, 0.0  ;;  %v3023_v63 = vrot.slane %v2993_v37, %v12187_v9  ;;  %v2995_v1 = vcombine.high %v2991_v16, %v2991_v16 }
 0xd06   :  { %3090 = vadd.xlane.f32.xlu1 %v3071_v59  ;;  %3088 = vadd.xlane.f32.xlu0 %v3070_v14  ;;  %v3063_v12 = vmax.f32 %v3047_v49, 0.0  ;;  %v3062_v20 = vmax.f32 %v3046_v56, 0.0  ;;  %v9039_v59 = vld [vmem:[#allocation6 + $0x60] sm:$0xff] }
 0xd07   :  { %v3075_v29 = vmul.f32 %v3059_v55, %v12188_v46  ;;  %v3074_v58 = vmul.f32 %v3058_v34, %v12188_v46  ;;  %v3049_v41 = vadd.f32 %v9038_v43, %v3023_v63  ;;  %v3048_v14 = vadd.f32 %v9039_v59, %v3023_v63 }
 0xd08   :  { %v3027_v33 = vrot.slane %v2995_v1, %v12187_v9  ;;  %v3079_v52 = vmul.f32 %v3063_v12, %v12188_v46  ;;  %v3078_v16 = vmul.f32 %v3062_v20, %v12188_v46 }
 0xd09   :  { %v3065_v37 = vmax.f32 %v3049_v41, 0.0  ;;  %v3064_v11 = vmax.f32 %v3048_v14, 0.0 }
 0xd0a   :  { %3094 = vadd.xlane.f32.xlu1 %v3073_v0  ;;  %3092 = vadd.xlane.f32.xlu0 %v3072_v40  ;;  %v3051_v57 = vadd.f32 %v9040_v50, %v3027_v33  ;;  %v3050_v0 = vadd.f32 %v9041_v36, %v3027_v33 }
 0xd0b   :  { %v3081_v40 = vmul.f32 %v3065_v37, %v12188_v46  ;;  %v3080_v61 = vmul.f32 %v3064_v11, %v12188_v46 }
 0xd0c   :  { %v3067_v18 = vmax.f32 %v3051_v57, 0.0  ;;  %v3066_v25 = vmax.f32 %v3050_v0, 0.0 }
 0xd0e   :  { %3102 = vadd.xlane.f32.xlu1 %v3077_v39  ;;  %3100 = vadd.xlane.f32.xlu0 %v3076_v8  ;;  %v3083_v39 = vmul.f32 %v3067_v18, %v12188_v46  ;;  %v3082_v55 = vmul.f32 %v3066_v25, %v12188_v46 }
 0xd12   :  { %3098 = vadd.xlane.f32.xlu1 %v3075_v29  ;;  %3096 = vadd.xlane.f32.xlu0 %v3074_v58 }
 0xd16   :  { %3106 = vadd.xlane.f32.xlu1 %v3079_v52  ;;  %3104 = vadd.xlane.f32.xlu0 %v3078_v16 }
 0xd1a   :  { %3110 = vadd.xlane.f32.xlu1 %v3081_v40  ;;  %3108 = vadd.xlane.f32.xlu0 %v3080_v61 }
 0xd1e   :  { %3114 = vadd.xlane.f32.xlu1 %v3083_v39  ;;  %3112 = vadd.xlane.f32.xlu0 %v3082_v55 }
 0xd8f   :  { %v3087_v5 = vpop.xlane.xlu0 %3086  ;;  %v3085_v49 = vpop.xlane.xlu1 %3084 }
 0xd90   :  { %v3139_v59 = vrot.slane %v3087_v5, %v12189_v17  ;;  %v3135_v14 = vrot.slane %v3085_v49, %v12190_v45 }
 0xd92   :  { %v3140_v57 = vsel %vm824_vm8, %v3139_v59, %v3135_v14 }
 0xd93   :  { %v10676_v53 = vpop.xlane.xlu1 %3090  ;;  %v3089_v56 = vpop.xlane.xlu0 %3088 }
 0xd94   :  { %v3148_v20 = vrot.slane %v10676_v53, %v12189_v17  ;;  %v3144_v58 = vrot.slane %v3089_v56, %v12190_v45 }
 0xd96   :  { %v3149_v11 = vsel %vm824_vm8, %v3148_v20, %v3144_v58 }
 0xd97   :  { %v10678_v8 = vpop.xlane.xlu1 %3094  ;;  %v3093_v34 = vpop.xlane.xlu0 %3092  ;;  %v3204_v61 = vsel %vm391_vm0, %v3149_v11, %v3140_v57 }
 0xd98   :  { %v3157_v43 = vrot.slane %v10678_v8, %v12189_v17  ;;  %v3153_v41 = vrot.slane %v3093_v34, %v12190_v45 }
 0xd9a   :  { %v3158_v50 = vsel %vm824_vm8, %v3157_v43, %v3153_v41 }
 0xd9b   :  { %v10680_v63 = vpop.xlane.xlu1 %3102  ;;  %v10682_v1 = vpop.xlane.xlu0 %3100  ;;  %v3205_v20 = vsel %vm393_vm1, %v3158_v50, %v3204_v61 }
 0xd9c   :  { %v3175_v18 = vrot.slane %v10680_v63, %v12189_v17  ;;  %v3171_v25 = vrot.slane %v10682_v1, %v12190_v45 }
 0xd9e   :  { %v3176_v14 = vsel %vm824_vm8, %v3175_v18, %v3171_v25 }
 0xd9f   :  { %v10684_v29 = vpop.xlane.xlu1 %3098  ;;  %v10686_v12 = vpop.xlane.xlu0 %3096 }
 0xda0   :  { %v3166_v33 = vrot.slane %v10684_v29, %v12189_v17  ;;  %v3162_v52 = vrot.slane %v10686_v12, %v12190_v45 }
 0xda2   :  { %v3167_v36 = vsel %vm824_vm8, %v3166_v33, %v3162_v52 }
 0xda3   :  { %v10700_v16 = vpop.xlane.xlu1 %3106  ;;  %v10702_v37 = vpop.xlane.xlu0 %3104  ;;  %v3206_v41 = vsel %vm395_vm2, %v3167_v36, %v3205_v20 }
 0xda4   :  { %v3184_v0 = vrot.slane %v10700_v16, %v12189_v17  ;;  %v3180_v40 = vrot.slane %v10702_v37, %v12190_v45  ;;  %v3207_v61 = vsel %vm397_vm3, %v3176_v14, %v3206_v41 }
 0xda6   :  { %v3185_v59 = vsel %vm824_vm8, %v3184_v0, %v3180_v40 }
 0xda7   :  { %v10717_v39 = vpop.xlane.xlu1 %3110  ;;  %v10719_v55 = vpop.xlane.xlu0 %3108  ;;  %v3208_v36 = vsel %vm399_vm4, %v3185_v59, %v3207_v61 }
 0xda8   :  { %v3193_v58 = vrot.slane %v10717_v39, %v12189_v17  ;;  %v3189_v43 = vrot.slane %v10719_v55, %v12190_v45 }
 0xdaa   :  { %v3194_v11 = vsel %vm824_vm8, %v3193_v58, %v3189_v43 }
 0xdab   :  { %v10729_v33 = vpop.xlane.xlu1 %3114  ;;  %v10731_v52 = vpop.xlane.xlu0 %3112  ;;  %v3209_v40 = vsel %vm401_vm5, %v3194_v11, %v3208_v36 }
 0xdac   :  { %v3202_v50 = vrot.slane %v10729_v33, %v12189_v17  ;;  %v3198_v57 = vrot.slane %v10731_v52, %v12190_v45 }
 0xdae   :  { %v3203_v0 = vsel %vm824_vm8, %v3202_v50, %v3198_v57 }
 0xdaf   :  { %v3210_v18 = vsel %vm403_vm6, %v3203_v0, %v3209_v40 }
 0xdb0   :  { %v3212_v25 = vsel %vm897_vm9, %v3210_v18, -inf }
 0xdb1   :  { %3213 = vmax.xlane.f32.xlu0 %v3212_v25 }
 0xe3e   :  { %v3214_v20 = vpop.xlane.xlu0 %3213 }
 0xe3f   :  { %v3219_v58 = vrot.slane %v3214_v20, %v12187_v9  ;;  %v3223_v43 = vrot.slane %v3214_v20, %v10016_v7  ;;  %v3227_v46 = vrot.slane %v3214_v20, %v12191_v47  ;;  %v3231_v59 = vrot.slane %v3214_v20, %v12192_v60 }
 0xe40   :  { %v3235_v0 = vrot.slane %v3214_v20, %v12193_v22 }
 0xe41   :  { %v3256_v24 = vsub.f32 %v3085_v49, %v3219_v58  ;;  %v3257_v41 = vsub.f32 %v3087_v5, %v3219_v58  ;;  %v3258_v14 = vsub.f32 %v3089_v56, %v3223_v43  ;;  %v3260_v50 = vsub.f32 %v3093_v34, %v3227_v46 }
 0xe42   :  { %v3259_v61 = vsub.f32 %v10676_v53, %v3223_v43  ;;  %v3262_v40 = vsub.f32 %v10686_v12, %v3231_v59  ;;  %v3261_v25 = vsub.f32 %v10678_v8, %v3227_v46  ;;  %v3239_v49 = vrot.slane %v3214_v20, %v12194_v44 }
 0xe43   :  { %v3272_v57 = vmul.f32 1.442695, %v3256_v24  ;;  %v3274_v11 = vmul.f32 1.442695, %v3257_v41  ;;  %v3276_v36 = vmul.f32 1.442695, %v3258_v14  ;;  %v3264_v56 = vsub.f32 %v10682_v1, %v3235_v0 }
 0xe44   :  { %v3280_v18 = vmul.f32 1.442695, %v3260_v50  ;;  %v3278_v5 = vmul.f32 1.442695, %v3259_v61  ;;  %v3284_v24 = vmul.f32 1.442695, %v3262_v40  ;;  %v3263_v53 = vsub.f32 %v10684_v29, %v3231_v59 }
 0xe45   :  { %8606 = vpow2.f32 %v3272_v57  ;;  %v3282_v34 = vmul.f32 1.442695, %v3261_v25  ;;  %v3243_v58 = vrot.slane %v3214_v20, %v12195_v26  ;;  %v3266_v12 = vsub.f32 %v10702_v37, %v3239_v49 }
 0xe46   :  { %8608 = vpow2.f32 %v3274_v11  ;;  %v3288_v43 = vmul.f32 1.442695, %v3264_v56  ;;  %v3265_v8 = vsub.f32 %v10680_v63, %v3235_v0  ;;  %v3286_v1 = vmul.f32 1.442695, %v3263_v53 }
 0xe47   :  { %8610 = vpow2.f32 %v3276_v36  ;;  %v3247_v29 = vrot.slane %v3214_v20, %v12196_v32  ;;  %v3268_v14 = vsub.f32 %v10719_v55, %v3243_v58  ;;  %v3292_v37 = vmul.f32 1.442695, %v3266_v12 }
 0xe48   :  { %8612 = vpow2.f32 %v3280_v18  ;;  %v3267_v57 = vsub.f32 %v10700_v16, %v3239_v49  ;;  %v3290_v63 = vmul.f32 1.442695, %v3265_v8  ;;  %v3269_v36 = vsub.f32 %v10717_v39, %v3243_v58 }
 0xe49   :  { %8614 = vpow2.f32 %v3278_v5  ;;  %v3270_v11 = vsub.f32 %v10731_v52, %v3247_v29  ;;  %v3296_v20 = vmul.f32 1.442695, %v3268_v14  ;;  %v3271_v52 = vsub.f32 %v10729_v33, %v3247_v29 }
 0xe4a   :  { %8616 = vpow2.f32 %v3284_v24  ;;  %v3294_v0 = vmul.f32 1.442695, %v3267_v57  ;;  %v3298_v25 = vmul.f32 1.442695, %v3269_v36  ;;  %v3668_v12 = vmul.f32 %v10634_v62, %v12197_v3 }
 0xe4b   :  { %8618 = vpow2.f32 %v3282_v34  ;;  %v3300_v16 = vmul.f32 1.442695, %v3270_v11  ;;  %v3302_v49 = vmul.f32 1.442695, %v3271_v52 }
 0xe4c   :  { %8620 = vpow2.f32 %v3288_v43 }
 0xe4d   :  { %8622 = vpow2.f32 %v3286_v1 }
 0xe4e   :  { %8624 = vpow2.f32 %v3292_v37 }
 0xe4f   :  { %v10757_v41 = vpop.eup %8606  ;;  %8626 = vpow2.f32 %v3290_v63 }
 0xe50   :  { %v10759_v46 = vpop.eup %8608  ;;  %3321 = vperm.xlu1 %8348, %v10757_v41   ;;  %8628 = vpow2.f32 %v3296_v20 }
 0xe51   :  { %3324 = vperm.xlu0 %8349, %v10759_v46   ;;  %v10766_v59 = vpop.eup %8610  ;;  %8630 = vpow2.f32 %v3294_v0 }
 0xe52   :  { %v10768_v50 = vpop.eup %8612  ;;  %8632 = vpow2.f32 %v3300_v16 }
 0xe53   :  { %v10774_v61 = vpop.eup %8614  ;;  %8634 = vpow2.f32 %v3298_v25 }
 0xe54   :  { %3327 = vperm.xlu1 %8348, %v10766_v59   ;;  %v10776_v55 = vpop.eup %8616  ;;  %8636 = vpow2.f32 %v3302_v49 }
 0xe55   :  { %3333 = vperm.xlu0 %8349, %v10768_v50   ;;  %v10781_v40 = vpop.eup %8618 }
 0xe56   :  { %v10783_v18 = vpop.eup %8620 }
 0xe57   :  { %v10788_v39 = vpop.eup %8622 }
 0xe58   :  { %3330 = vperm.xlu1 %8348, %v10774_v61   ;;  %v10790_v5 = vpop.eup %8624 }
 0xe59   :  { %3339 = vperm.xlu0 %8349, %v10776_v55   ;;  %v10794_v56 = vpop.eup %8626 }
 0xe5a   :  { %v10796_v24 = vpop.eup %8628 }
 0xe5b   :  { %v10800_v33 = vpop.eup %8630 }
 0xe5c   :  { %3336 = vperm.xlu1 %8348, %v10781_v40   ;;  %v10802_v53 = vpop.eup %8632 }
 0xe5d   :  { %3345 = vperm.xlu0 %8349, %v10783_v18   ;;  %v10806_v34 = vpop.eup %8634 }
 0xe5e   :  { %v10809_v58 = vpop.eup %8636 }
 0xe60   :  { %3342 = vperm.xlu1 %8348, %v10788_v39  }
 0xe61   :  { %3351 = vperm.xlu0 %8349, %v10790_v5  }
 0xe64   :  { %3348 = vperm.xlu1 %8348, %v10794_v56  }
 0xe65   :  { %3357 = vperm.xlu0 %8349, %v10796_v24  }
 0xe68   :  { %3354 = vperm.xlu1 %8348, %v10800_v33  }
 0xe69   :  { %3363 = vperm.xlu0 %8349, %v10802_v53  }
 0xe6c   :  { %3360 = vperm.xlu1 %8348, %v10806_v34  }
 0xe70   :  { %3366 = vperm.xlu1 %8348, %v10809_v58  }
 0xe94   :  { %3669 = vadd.xlane.f32.xlu1 %v3668_v12 }
 0xecf   :  { %v3322_v43 = vpop.permute.xlu1 %3321 }
 0xed0   :  { %v3325_v8 = vpop.permute.xlu0 %3324  ;;  %v3371_v49 = vrot.slane %v3322_v43, %v12190_v45 }
 0xed1   :  { %v3375_v62 = vrot.slane %v3325_v8, %v12189_v17 }
 0xed3   :  { %v3328_v1 = vpop.permute.xlu1 %3327  ;;  %v3376_v43 = vsel %vm824_vm8, %v3375_v62, %v3371_v49 }
 0xed4   :  { %v3334_v29 = vpop.permute.xlu0 %3333  ;;  %v3380_v12 = vrot.slane %v3328_v1, %v12190_v45 }
 0xed5   :  { %v3389_v21 = vrot.slane %v3334_v29, %v12190_v45 }
 0xed7   :  { %v3331_v14 = vpop.permute.xlu1 %3330 }
 0xed8   :  { %v3340_v37 = vpop.permute.xlu0 %3339  ;;  %v3384_v0 = vrot.slane %v3331_v14, %v12189_v17 }
 0xed9   :  { %v3398_v27 = vrot.slane %v3340_v37, %v12190_v45 }
 0xeda   :  { %v3385_v14 = vsel %vm824_vm8, %v3384_v0, %v3380_v12 }
 0xedb   :  { %v3337_v57 = vpop.permute.xlu1 %3336 }
 0xedc   :  { %v3346_v63 = vpop.permute.xlu0 %3345  ;;  %v3393_v16 = vrot.slane %v3337_v57, %v12189_v17 }
 0xedd   :  { %v3407_v15 = vrot.slane %v3346_v63, %v12190_v45 }
 0xede   :  { %v3394_v8 = vsel %vm824_vm8, %v3393_v16, %v3389_v21 }
 0xedf   :  { %v3343_v11 = vpop.permute.xlu1 %3342 }
 0xee0   :  { %v3352_v20 = vpop.permute.xlu0 %3351  ;;  %v3402_v3 = vrot.slane %v3343_v11, %v12189_v17 }
 0xee1   :  { %v3416_v1 = vrot.slane %v3352_v20, %v12190_v45 }
 0xee2   :  { %v3403_v11 = vsel %vm824_vm8, %v3402_v3, %v3398_v27 }
 0xee3   :  { %v3349_v36 = vpop.permute.xlu1 %3348 }
 0xee4   :  { %v3358_v52 = vpop.permute.xlu0 %3357  ;;  %v3411_v6 = vrot.slane %v3349_v36, %v12189_v17  ;;  %v3440_v36 = vsel %vm391_vm0, %v3385_v14, %v3376_v43 }
 0xee5   :  { %v3425_v37 = vrot.slane %v3358_v52, %v12190_v45  ;;  %v3441_v63 = vsel %vm393_vm1, %v3394_v8, %v3440_v36 }
 0xee6   :  { %v3412_v0 = vsel %vm824_vm8, %v3411_v6, %v3407_v15  ;;  %v3442_v16 = vsel %vm395_vm2, %v3403_v11, %v3441_v63 }
 0xee7   :  { %v3355_v25 = vpop.permute.xlu1 %3354  ;;  %v3443_v27 = vsel %vm397_vm3, %v3412_v0, %v3442_v16 }
 0xee8   :  { %v3420_v57 = vrot.slane %v3355_v25, %v12189_v17  ;;  %v3364_v25 = vpop.permute.xlu0 %3363 }
 0xeea   :  { %v3421_v21 = vsel %vm824_vm8, %v3420_v57, %v3416_v1 }
 0xeeb   :  { %v3361_v54 = vpop.permute.xlu1 %3360  ;;  %v3444_v52 = vsel %vm399_vm4, %v3421_v21, %v3443_v27 }
 0xeec   :  { %v3429_v29 = vrot.slane %v3361_v54, %v12189_v17  ;;  %v3434_v54 = vrot.slane %v3364_v25, %v12190_v45 }
 0xeee   :  { %v3430_v62 = vsel %vm824_vm8, %v3429_v29, %v3425_v37 }
 0xeef   :  { %v3367_v20 = vpop.permute.xlu1 %3366  ;;  %v3445_v6 = vsel %vm401_vm5, %v3430_v62, %v3444_v52 }
 0xef0   :  { %v3438_v3 = vrot.slane %v3367_v20, %v12189_v17 }
 0xef2   :  { %v3439_v15 = vsel %vm824_vm8, %v3438_v3, %v3434_v54 }
 0xef3   :  { %v3446_v49 = vsel %vm403_vm6, %v3439_v15, %v3445_v6 }
 0xef4   :  { %v3448_v12 = vsel %vm897_vm9, %v3446_v49, 0.0 }
 0xef5   :  { %3449 = vadd.xlane.f32.xlu0 %v3448_v12 }
 0xf21   :  { %v3670_v12 = vpop.xlane.xlu1 %3669 }
 0xf82   :  { %v3450_v14 = vpop.xlane.xlu0 %3449 }
 0xf83   :  { %v3455_v57 = vrot.slane %v3450_v14, %v12187_v9  ;;  %v3459_v8 = vrot.slane %v3450_v14, %v10016_v7  ;;  %v3463_v43 = vrot.slane %v3450_v14, %v12191_v47  ;;  %v3467_v1 = vrot.slane %v3450_v14, %v12192_v60 }
 0xf84   :  { %v3471_v29 = vrot.slane %v3450_v14, %v12193_v22  ;;  %v3475_v25 = vrot.slane %v3450_v14, %v12194_v44  ;;  %v3479_v62 = vrot.slane %v3450_v14, %v12195_v26  ;;  %v3483_v27 = vrot.slane %v3450_v14, %v12196_v32 }
 0xf85   :  { %8638 = vrcp.f32 %v3455_v57 }
 0xf86   :  { %8640 = vrcp.f32 %v3459_v8 }
 0xf87   :  { %8642 = vrcp.f32 %v3463_v43 }
 0xf88   :  { %8644 = vrcp.f32 %v3467_v1 }
 0xf89   :  { %8646 = vrcp.f32 %v3471_v29 }
 0xf8a   :  { %8648 = vrcp.f32 %v3475_v25 }
 0xf8b   :  { %8650 = vrcp.f32 %v3479_v62 }
 0xf8c   :  { %8652 = vrcp.f32 %v3483_v27 }
 0xf8f   :  { %v8639_v11 = vpop.eup %8638 }
 0xf90   :  { %v3494_v36 = vmul.f32 %v8639_v11, %v10759_v46  ;;  %v3493_v37 = vmul.f32 %v8639_v11, %v10757_v41  ;;  %v8641_v0 = vpop.eup %8640 }
 0xf91   :  { %v3497_v63 = vmul.f32 %v8641_v0, %v10774_v61  ;;  %v3496_v21 = vmul.f32 %v8641_v0, %v10766_v59  ;;  %v8643_v16 = vpop.eup %8642 }
 0xf92   :  { %3523 = vperm.xlu1 %8348, %v3494_v36   ;;  %3518 = vperm.xlu0 %8349, %v3493_v37   ;;  %v3500_v46 = vmul.f32 %v8643_v16, %v10781_v40  ;;  %v3499_v41 = vmul.f32 %v8643_v16, %v10768_v50  ;;  %v8645_v20 = vpop.eup %8644 }
 0xf93   :  { %v3503_v61 = vmul.f32 %v8645_v20, %v10788_v39  ;;  %v3502_v59 = vmul.f32 %v8645_v20, %v10776_v55  ;;  %v8647_v54 = vpop.eup %8646 }
 0xf94   :  { %v3506_v3 = vmul.f32 %v8647_v54, %v10794_v56  ;;  %v3505_v40 = vmul.f32 %v8647_v54, %v10783_v18  ;;  %v8649_v52 = vpop.eup %8648 }
 0xf95   :  { %v3509_v50 = vmul.f32 %v8649_v52, %v10800_v33  ;;  %v3508_v15 = vmul.f32 %v8649_v52, %v10790_v5  ;;  %v8651_v6 = vpop.eup %8650  ;;  %v9042_v33 = vld [vmem:[#allocation2] ss:$0 sm:$0xff] }
 0xf96   :  { %3533 = vperm.xlu1 %8348, %v3497_v63   ;;  %3528 = vperm.xlu0 %8349, %v3496_v21   ;;  %v3512_v55 = vmul.f32 %v8651_v6, %v10806_v34  ;;  %v3511_v39 = vmul.f32 %v8651_v6, %v10796_v24  ;;  %v8653_v49 = vpop.eup %8652  ;;  %v3671_v14 = vadd.f32 %v9042_v33, %v3670_v12 }
 0xf97   :  { %v3515_v56 = vmul.f32 %v8653_v49, %v10809_v58  ;;  %v3514_v18 = vmul.f32 %v8653_v49, %v10802_v53 }
 0xf9a   :  { %3543 = vperm.xlu1 %8348, %v3500_v46   ;;  %3538 = vperm.xlu0 %8349, %v3499_v41  }
 0xf9e   :  { %3553 = vperm.xlu1 %8348, %v3503_v61   ;;  %3548 = vperm.xlu0 %8349, %v3502_v59  }
 0xfa2   :  { %3563 = vperm.xlu1 %8348, %v3506_v3   ;;  %3558 = vperm.xlu0 %8349, %v3505_v40  }
 0xfa6   :  { %3573 = vperm.xlu1 %8348, %v3509_v50   ;;  %3568 = vperm.xlu0 %8349, %v3508_v15  }
 0xfaa   :  { %3583 = vperm.xlu1 %8348, %v3512_v55   ;;  %3578 = vperm.xlu0 %8349, %v3511_v39  }
 0xfae   :  { %3593 = vperm.xlu1 %8348, %v3515_v56   ;;  %3588 = vperm.xlu0 %8349, %v3514_v18  }
 0xfb2   :  { %3674 = vperm.xlu0 %8349, %v3671_v14  }
0x1011   :  { %v3519_v5 = vpop.permute.xlu0 %3518  ;;  %v3524_v57 = vpop.permute.xlu1 %3523 }
0x1012   :  { %v3596_v1 = vmul.f32 %v12200_v19, %v3519_v5  ;;  %v3597_v58 = vmul.f32 %v12201_v13, %v3524_v57 }
0x1014   :  { %v3612_v0 = vadd.f32 %v3597_v58, %v3596_v1  ;;  %v12214_v58 = vld [vmem:[#allocation34_spill] sm:$0xff] }
0x1015   :  { %v3529_v8 = vpop.permute.xlu0 %3528  ;;  %v3534_v43 = vpop.permute.xlu1 %3533 }
0x1016   :  { %v3598_v34 = vmul.f32 %v12198_v10, %v3529_v8  ;;  %v3599_v24 = vmul.f32 %v12199_v38, %v3534_v43  ;;  %v3613_v41 = vrot.slane %v3612_v0, 4 }
0x1018   :  { %v3619_v37 = vadd.f32 %v3599_v24, %v3598_v34  ;;  %v3614_v15 = vadd.f32 %v3613_v41, %v3612_v0 }
0x1019   :  { %v3539_v11 = vpop.permute.xlu0 %3538  ;;  %v3544_v53 = vpop.permute.xlu1 %3543 }
0x101a   :  { %v3600_v29 = vmul.f32 %v12202_v23, %v3539_v11  ;;  %v3601_v36 = vmul.f32 %v12203_v42, %v3544_v53  ;;  %v3620_v46 = vrot.slane %v3619_v37, 4  ;;  %v3615_v5 = vrot.slane %v3614_v15, 2 }
0x101c   :  { %v3626_v25 = vadd.f32 %v3601_v36, %v3600_v29  ;;  %v3621_v52 = vadd.f32 %v3620_v46, %v3619_v37  ;;  %v3616_v0 = vadd.f32 %v3615_v5, %v3614_v15 }
0x101d   :  { %v3549_v63 = vpop.permute.xlu0 %3548  ;;  %v3554_v21 = vpop.permute.xlu1 %3553 }
0x101e   :  { %v3602_v16 = vmul.f32 %v12204_v31, %v3549_v63  ;;  %v3603_v62 = vmul.f32 %v12205_v51, %v3554_v21  ;;  %v3627_v20 = vrot.slane %v3626_v25, 4  ;;  %v3622_v33 = vrot.slane %v3621_v52, 2 }
0x1020   :  { %v3633_v27 = vadd.f32 %v3603_v62, %v3602_v16  ;;  %v3628_v6 = vadd.f32 %v3627_v20, %v3626_v25  ;;  %v3623_v36 = vadd.f32 %v3622_v33, %v3621_v52  ;;  %v12215_v20 = vld [vmem:[#allocation36_spill] sm:$0xff]  ;;  %v3617_v52 = vrot.slane %v3616_v0, 1 }
0x1021   :  { %v3559_v61 = vpop.permute.xlu0 %3558  ;;  %v3564_v59 = vpop.permute.xlu1 %3563 }
0x1022   :  { %v3604_v54 = vmul.f32 %v12206_v2, %v3559_v61  ;;  %v3605_v3 = vmul.f32 %v12207_v35, %v3564_v59  ;;  %v3634_v40 = vrot.slane %v3633_v27, 4  ;;  %v3629_v57 = vrot.slane %v3628_v6, 2 }
0x1024   :  { %v3640_v50 = vadd.f32 %v3605_v3, %v3604_v54  ;;  %v3635_v49 = vadd.f32 %v3634_v40, %v3633_v27  ;;  %v3630_v25 = vadd.f32 %v3629_v57, %v3628_v6  ;;  %v3624_v54 = vrot.slane %v3623_v36, 1 }
0x1025   :  { %v3569_v55 = vpop.permute.xlu0 %3568  ;;  %v3574_v39 = vpop.permute.xlu1 %3573  ;;  %v3618_v57 = vadd.f32 %v3617_v52, %v3616_v0  ;;  %v9050_v52 = vld [vmem:[#allocation14 + $0x4c] ss:$16 sps:$4 sm:$0xff]  }
0x1026   :  { %v3641_v56 = vrot.slane %v3640_v50, 4  ;;  %v3606_v18 = vmul.f32 %v12208_v30, %v3569_v55  ;;  %v3607_v12 = vmul.f32 %v12209_v28, %v3574_v39  ;;  %v3636_v24 = vrot.slane %v3635_v49, 2 }
0x1028   :  { %v3642_v14 = vadd.f32 %v3641_v56, %v3640_v50  ;;  %v3647_v8 = vadd.f32 %v3607_v12, %v3606_v18  ;;  %v3637_v62 = vadd.f32 %v3636_v24, %v3635_v49  ;;  %v3631_v50 = vrot.slane %v3630_v25, 1 }
0x1029   :  { %v3579_v43 = vpop.permute.xlu0 %3578  ;;  %v3584_v34 = vpop.permute.xlu1 %3583  ;;  %v3625_v18 = vadd.f32 %v3624_v54, %v3623_v36  ;;  %v9046_v54 = vld [vmem:[#allocation14 + $0x2c] ss:$16 sps:$4 sm:$0xff]  }
0x102a   :  { %v3608_v1 = vmul.f32 %v12210_v4, %v3579_v43  ;;  %v3609_v11 = vmul.f32 %v12214_v58, %v3584_v34  ;;  %v3643_v53 = vrot.slane %v3642_v14, 2  ;;  %v3648_v29 = vrot.slane %v3647_v8, 4 }
0x102b   :  { %v3638_v39 = vrot.slane %v3637_v62, 1  ;;  %v3632_v5 = vadd.f32 %v3631_v50, %v3630_v25  ;;  %v3685_v24 = vsel %vm391_vm0, %v3625_v18, %v3618_v57  ;;  %v9048_v50 = vld [vmem:[#allocation14 + $0x28] ss:$16 sps:$4 sm:$0xff]   ;;  %v9055_v18 = vld [vmem:[#allocation14 + $0x60] ss:$16 sps:$4 sm:$0xff]  }
0x102c   :  { %v3654_v37 = vadd.f32 %v3609_v11, %v3608_v1  ;;  %v3649_v63 = vadd.f32 %v3648_v29, %v3647_v8  ;;  %v3644_v61 = vadd.f32 %v3643_v53, %v3642_v14  ;;  %v9060_v57 = vld [vmem:[#allocation14 + $0x88] ss:$16 sps:$4 sm:$0xff]  }
0x102d   :  { %v3589_v21 = vpop.permute.xlu0 %3588  ;;  %v3594_v16 = vpop.permute.xlu1 %3593  ;;  %v3639_v8 = vadd.f32 %v3638_v39, %v3637_v62  ;;  %v3686_v29 = vsel %vm393_vm1, %v3632_v5, %v3685_v24  ;;  %v9051_v39 = vld [vmem:[#allocation14 + $0x40] ss:$16 sps:$4 sm:$0xff]   ;;  %v9065_v24 = vld [vmem:[#allocation14 + $0xc4] ss:$16 sps:$4 sm:$0xff]  }
0x102e   :  { %v3655_v46 = vrot.slane %v3654_v37, 4  ;;  %v3610_v41 = vmul.f32 %v12175_v48, %v3589_v21  ;;  %v3611_v27 = vmul.f32 %v12215_v20, %v3594_v16  ;;  %v3650_v59 = vrot.slane %v3649_v63, 2  ;;  %v9059_v5 = vld [vmem:[#allocation14 + $0x80] ss:$16 sps:$4 sm:$0xff]  }
0x102f   :  { %v3645_v56 = vrot.slane %v3644_v61, 1 }
0x1030   :  { %v3656_v3 = vadd.f32 %v3655_v46, %v3654_v37  ;;  %v3661_v40 = vadd.f32 %v3611_v27, %v3610_v41  ;;  %v3651_v55 = vadd.f32 %v3650_v59, %v3649_v63  ;;  %v3687_v63 = vsel %vm395_vm2, %v3639_v8, %v3686_v29  ;;  %v9043_v27 = vld [vmem:[#allocation14] ss:$16 sps:$4 sm:$0xff]   ;;  %v9045_v59 = vld [vmem:[#allocation14 + $0x24] ss:$16 sps:$4 sm:$0xff]  }
0x1031   :  { %v3646_v34 = vadd.f32 %v3645_v56, %v3644_v61  ;;  %v3675_v16 = vpop.permute.xlu0 %3674  ;;  %v9044_v61 = vld [vmem:[#allocation14 + $0x8] ss:$16 sps:$4 sm:$0xff]   ;;  %v9054_v56 = vld [vmem:[#allocation14 + $0x6c] ss:$16 sps:$4 sm:$0xff]   ;;  %v9061_v8 = vld [vmem:[#allocation14 + $0xa4] ss:$16 sps:$4 sm:$0xff]  }
0x1032   :  { %v3657_v15 = vrot.slane %v3656_v3, 2  ;;  %v3662_v6 = vrot.slane %v3661_v40, 4  ;;  %v3652_v12 = vrot.slane %v3651_v55, 1  ;;  %v9069_v29 = vld [vmem:[#allocation14 + $0xe4] ss:$16 sps:$4 sm:$0xff]  }
0x1033   :  { %v3688_v36 = vsel %vm397_vm3, %v3646_v34, %v3687_v63  ;;  %v9064_v34 = vld [vmem:[#allocation14 + $0xa8] ss:$16 sps:$4 sm:$0xff]   ;;  %v9071_v63 = vld [vmem:[#allocation14 + $0xe0] ss:$16 sps:$4 sm:$0xff]  }
0x1034   :  { %v3658_v49 = vadd.f32 %v3657_v15, %v3656_v3  ;;  %v3663_v33 = vadd.f32 %v3662_v6, %v3661_v40  ;;  %v3653_v1 = vadd.f32 %v3652_v12, %v3651_v55  ;;  %v12216_v3 = vmov 0   ;;  %v9047_v40 = vld [vmem:[#allocation14 + $0x20] ss:$16 sps:$4 sm:$0xff]   ;;  %v9049_v55 = vld [vmem:[#allocation14 + $0x44] ss:$16 sps:$4 sm:$0xff]  }
0x1035   :  { %v9052_v15 = vld [vmem:[#allocation14 + $0x48] ss:$16 sps:$4 sm:$0xff]   ;;  %v9053_v6 = vld [vmem:[#allocation14 + $0x64] ss:$16 sps:$4 sm:$0xff]  }
0x1036   :  { %v3659_v43 = vrot.slane %v3658_v49, 1  ;;  %v3664_v14 = vrot.slane %v3663_v33, 2  ;;  %v3689_v25 = vsel %vm399_vm4, %v3653_v1, %v3688_v36  ;;  %v9056_v12 = vld [vmem:[#allocation14 + $0x68] ss:$16 sps:$4 sm:$0xff]   ;;  %v9066_v1 = vld [vmem:[#allocation14 + $0xcc] ss:$16 sps:$4 sm:$0xff]  }
0x1037   :  { %v9072_v36 = vld [vmem:[#allocation14 + $0xe8] ss:$16 sps:$4 sm:$0xff]  }
0x1038   :  { %v3665_v11 = vadd.f32 %v3664_v14, %v3663_v33  ;;  %v3660_v53 = vadd.f32 %v3659_v43, %v3658_v49  ;;  %v9057_v49 = vld [vmem:[#allocation14 + $0x84] ss:$16 sps:$4 sm:$0xff]   ;;  %v9058_v33 = vld [vmem:[#allocation14 + $0x8c] ss:$16 sps:$4 sm:$0xff]   ;;  %v9063_v14 = vld [vmem:[#allocation14 + $0xa0] ss:$16 sps:$4 sm:$0xff]  }
0x1039   :  { %v9062_v43 = vld [vmem:[#allocation14 + $0xac] ss:$16 sps:$4 sm:$0xff]  }
0x103a   :  { %v3666_v37 = vrot.slane %v3665_v11, 1  ;;  %v3690_v0 = vsel %vm401_vm5, %v3660_v53, %v3689_v25  ;;  %v9068_v53 = vld [vmem:[#allocation14 + $0xc8] ss:$16 sps:$4 sm:$0xff]   ;;  %v9073_v25 = vld [vmem:[#allocation12 + $0x4] ss:$16 sps:$4 sm:$0xff]  }
0x103c   :  { %v3667_v21 = vadd.f32 %v3666_v37, %v3665_v11  ;;  %v9067_v11 = vld [vmem:[#allocation14 + $0xc0] ss:$16 sps:$4 sm:$0xff]   ;;  %v9070_v37 = vld [vmem:[#allocation14 + $0xec] ss:$16 sps:$4 sm:$0xff]  }
0x103e   :  { %v3691_v62 = vsel %vm403_vm6, %v3667_v21, %v3690_v0  ;;  %v12217_v21 = vmov 0.0   ;;  %v12218_v0 = vld [vmem:[#allocation38_spill] sm:$0xff] }
0x103f   :  { %v3693_v46 = vmul.f32 %v3691_v62, %v3675_v16  ;;  %v9074_v16 = vld [vmem:[#allocation11] sm:$0xff]  }
0x1040   :  { %v9075_v62 = vld [vmem:[#allocation12] ss:$16 sps:$4 sm:$0xff]  }
0x1041   :  { %v3699_v41 = vpack.c.bf16 %v3693_v46, %v3693_v46  ;;  %v9076_v46 = vld [vmem:[#allocation12 + $0x24] ss:$16 sps:$4 sm:$0xff]  }
0x1043   :  { %3733 = vmatmul.mubr.bf16.vlgmr.msra.gmra.mrb[16].mxu0 %v3699_v41  ;;  %3774 = vmatmul.mubr.bf16.vlgmr.msra.gmra.mrb[16].mxu1 %v3699_v41  ;;  %v9077_v41 = vld [vmem:[#allocation11 + $0x8] sm:$0xff]  }
0x1044   :  { %3787 = vmatpush1.bf16.msra.mxu0 %v9043_v27  ;;  %3828 = vmatpush1.bf16.msra.mxu1 %v9044_v61  ;;  %v9078_v27 = vld [vmem:[#allocation12 + $0x20] ss:$16 sps:$4 sm:$0xff]   ;;  %v9079_v61 = vld [vmem:[#allocation12 + $0x44] ss:$16 sps:$4 sm:$0xff]  }
0x1045   :  { %3788 = vmatprep.subr.bf16.mxu0 %v9045_v59  ;;  %3829 = vmatprep.subr.bf16.mxu1 %v9046_v54  ;;  %v9080_v59 = vld [vmem:[#allocation11 + $0x10] sm:$0xff]  }
0x1046   :  { %3818 = vmatprep.mubr.bf16.mxu0 %v12216_v3  ;;  %3859 = vmatprep.mubr.bf16.mxu1 %v12216_v3  ;;  %v9081_v54 = vld [vmem:[#allocation12 + $0x40] ss:$16 sps:$4 sm:$0xff]  }
0x1048   :  { %3789 = vmatpush1.bf16.msra.mxu0 %v9047_v40  ;;  %3830 = vmatpush1.bf16.msra.mxu1 %v9048_v50  ;;  %v9082_v40 = vld [vmem:[#allocation12 + $0x64] ss:$16 sps:$4 sm:$0xff]   ;;  %v9083_v50 = vld [vmem:[#allocation11 + $0x18] sm:$0xff]  }
0x1049   :  { %3790 = vmatprep.subr.bf16.mxu0 %v9049_v55  ;;  %3831 = vmatprep.subr.bf16.mxu1 %v9050_v52  ;;  %v9084_v55 = vld [vmem:[#allocation12 + $0x60] ss:$16 sps:$4 sm:$0xff]   ;;  %v9085_v52 = vld [vmem:[#allocation12 + $0x84] ss:$16 sps:$4 sm:$0xff]  }
0x104c   :  { %3791 = vmatpush1.bf16.msra.mxu0 %v9051_v39  ;;  %3832 = vmatpush1.bf16.msra.mxu1 %v9052_v15  ;;  %v9086_v39 = vld [vmem:[#allocation11 + $0x20] sm:$0xff]  }
0x104d   :  { %3792 = vmatprep.subr.bf16.mxu0 %v9053_v6  ;;  %3833 = vmatprep.subr.bf16.mxu1 %v9054_v56  ;;  %v9087_v15 = vld [vmem:[#allocation12 + $0x80] ss:$16 sps:$4 sm:$0xff]   ;;  %v9088_v6 = vld [vmem:[#allocation12 + $0xa4] ss:$16 sps:$4 sm:$0xff]   ;;  %v9089_v56 = vld [vmem:[#allocation11 + $0x28] sm:$0xff]  }
0x1050   :  { %3793 = vmatpush1.bf16.msra.mxu0 %v9055_v18  ;;  %3834 = vmatpush1.bf16.msra.mxu1 %v9056_v12  ;;  %v9090_v18 = vld [vmem:[#allocation12 + $0xa0] ss:$16 sps:$4 sm:$0xff]   ;;  %v9091_v12 = vld [vmem:[#allocation12 + $0xc4] ss:$16 sps:$4 sm:$0xff]  }
0x1051   :  { %3794 = vmatprep.subr.bf16.mxu0 %v9057_v49  ;;  %3835 = vmatprep.subr.bf16.mxu1 %v9058_v33  ;;  %v9092_v49 = vld [vmem:[#allocation11 + $0x30] sm:$0xff]  }
0x1052   :  { %v9093_v33 = vld [vmem:[#allocation12 + $0xc0] ss:$16 sps:$4 sm:$0xff]  }
0x1054   :  { %3795 = vmatpush1.bf16.msra.mxu0 %v9059_v5  ;;  %3836 = vmatpush1.bf16.msra.mxu1 %v9060_v57  ;;  %v9094_v5 = vld [vmem:[#allocation12 + $0xe4] ss:$16 sps:$4 sm:$0xff]   ;;  %v9095_v57 = vld [vmem:[#allocation11 + $0x38] sm:$0xff]  }
0x1055   :  { %3796 = vmatprep.subr.bf16.mxu0 %v9061_v8  ;;  %3837 = vmatprep.subr.bf16.mxu1 %v9062_v43  ;;  %v9096_v8 = vld [vmem:[#allocation12 + $0xc] ss:$16 sps:$4 sm:$0xff]   ;;  %v9097_v43 = vld [vmem:[#allocation12 + $0xe0] ss:$16 sps:$4 sm:$0xff]  }
0x1058   :  { %3797 = vmatpush1.bf16.msra.mxu0 %v9063_v14  ;;  %3838 = vmatpush1.bf16.msra.mxu1 %v9064_v34  ;;  %v9098_v14 = vld [vmem:[#allocation14 + $0x4] ss:$16 sps:$4 sm:$0xff]  }
0x1059   :  { %3798 = vmatprep.subr.bf16.mxu0 %v9065_v24  ;;  %3839 = vmatprep.subr.bf16.mxu1 %v9066_v1  ;;  %v3695_v34 = vld [vmem:[#allocation8 + $0x40] sm:$0xff]  ;;  %v3696_v24 = vld [vmem:[#allocation8 + $0x48] sm:$0xff] }
0x105c   :  { %3799 = vmatpush1.bf16.msra.mxu0 %v9067_v11  ;;  %3840 = vmatpush1.bf16.msra.mxu1 %v9068_v53 }
0x105d   :  { %3800 = vmatprep.subr.bf16.mxu0 %v9069_v29  ;;  %3841 = vmatprep.subr.bf16.mxu1 %v9070_v37 }
0x1060   :  { %3801 = vmatpush1.bf16.msra.mxu0 %v9071_v63  ;;  %3842 = vmatpush1.bf16.msra.mxu1 %v9072_v36 }
0x1061   :  { %8164 = vmatprep.subr.bf16.mxu0 %v12217_v21  ;;  %4693 = vmatprep.subr.bf16.mxu1 %v9073_v25 }
0x1063   :  { %3819 = vmatmul.mubr.bf16.vlgmr.msra.gmra.mrb[16].mxu0 %v12218_v0  ;;  %3860 = vmatmul.mubr.bf16.vlgmr.msra.gmra.mrb[16].mxu1 %v12218_v0 }
0x1064   :  { %8165 = vmatpush3.bf16.msra.mxu0 %v9074_v16  ;;  %8180 = vmatprep.mubr.msk.bf16.mxu0 %vm9636_vm7, %v12217_v21 }
0x1065   :  { %8166 = vmatprep.subr.bf16.mxu0 %v12217_v21  ;;  %4694 = vmatpush1.bf16.msra.mxu1 %v9075_v62 }
0x1066   :  { %4695 = vmatprep.subr.bf16.mxu1 %v9076_v46  ;;  %4725 = vmatprep.mubr.bf16.mxu1 %v12216_v3 }
0x1068   :  { %8167 = vmatpush3.bf16.msra.mxu0 %v9077_v41  ;;  %v3698_v41 = vld [vmem:[#allocation8 + $0x58] sm:$0xff] }
0x1069   :  { %8168 = vmatprep.subr.bf16.mxu0 %v12217_v21  ;;  %4696 = vmatpush1.bf16.msra.mxu1 %v9078_v27 }
0x106a   :  { %4697 = vmatprep.subr.bf16.mxu1 %v9079_v61  ;;  %v3697_v61 = vld [vmem:[#allocation8 + $0x50] sm:$0xff] }
0x106c   :  { %8169 = vmatpush3.bf16.msra.mxu0 %v9080_v59 }
0x106d   :  { %8170 = vmatprep.subr.bf16.mxu0 %v12217_v21  ;;  %4698 = vmatpush1.bf16.msra.mxu1 %v9081_v54 }
0x106e   :  { %4699 = vmatprep.subr.bf16.mxu1 %v9082_v40 }
0x1070   :  { %8171 = vmatpush3.bf16.msra.mxu0 %v9083_v50 }
0x1071   :  { %8172 = vmatprep.subr.bf16.mxu0 %v12217_v21  ;;  %4700 = vmatpush1.bf16.msra.mxu1 %v9084_v55 }
0x1072   :  { %4701 = vmatprep.subr.bf16.mxu1 %v9085_v52 }
0x1074   :  { %8173 = vmatpush3.bf16.msra.mxu0 %v9086_v39 }
0x1075   :  { %8174 = vmatprep.subr.bf16.mxu0 %v12217_v21  ;;  %4702 = vmatpush1.bf16.msra.mxu1 %v9087_v15 }
0x1076   :  { %4703 = vmatprep.subr.bf16.mxu1 %v9088_v6 }
0x1078   :  { %8175 = vmatpush3.bf16.msra.mxu0 %v9089_v56 }
0x1079   :  { %8176 = vmatprep.subr.bf16.mxu0 %v12217_v21  ;;  %4704 = vmatpush1.bf16.msra.mxu1 %v9090_v18 }
0x107a   :  { %4705 = vmatprep.subr.bf16.mxu1 %v9091_v12 }
0x107c   :  { %8177 = vmatpush3.bf16.msra.mxu0 %v9092_v49  ;;  %v12219_v49 = vld [vmem:[#allocation39_spill] sm:$0xff] }
0x107d   :  { %8178 = vmatprep.subr.bf16.mxu0 %v12217_v21  ;;  %4706 = vmatpush1.bf16.msra.mxu1 %v9093_v33 }
0x107e   :  { %4707 = vmatprep.subr.bf16.mxu1 %v9094_v5 }
0x1080   :  { %8179 = vmatpush3.bf16.msra.mxu0 %v9095_v57 }
0x1081   :  { %4734 = vmatprep.subr.bf16.mxu0 %v9096_v8  ;;  %4708 = vmatpush1.bf16.msra.mxu1 %v9097_v43 }
0x1082   :  { %4779 = vmatprep.subr.bf16.mxu1 %v9098_v14 }
0x1136   :  { %v3820_v1 = vpop.f32.mrb[16].mxu0  ;;  %v3861_v11 = vpop.f32.mrb[16].mxu1 }
0x1137   :  { %v8252_v53 = vadd.f32 %v3820_v1, %v3695_v34  ;;  %v3822_v29 = vpop.f32.mrb[17].mxu0  ;;  %v3863_v37 = vpop.f32.mrb[17].mxu1  ;;  %v8254_v54 = vadd.f32 %v3861_v11, %v3697_v61  ;;  %v9099_v34 = vld [vmem:[#allocation12 + $0x8] ss:$16 sps:$4 sm:$0xff]   ;;  %v9102_v11 = vld [vmem:[#allocation12 + $0x4c] ss:$16 sps:$4 sm:$0xff]  }
0x1138   :  { %v8253_v63 = vadd.f32 %v3822_v29, %v3696_v24  ;;  %v3824_v36 = vpop.f32.mrb[18].mxu0  ;;  %v3865_v25 = vpop.f32.mrb[18].mxu1  ;;  %v8255_v27 = vadd.f32 %v3863_v37, %v3698_v41  ;;  %v9100_v24 = vld [vmem:[#allocation12 + $0x2c] ss:$16 sps:$4 sm:$0xff]   ;;  %v9101_v1 = vld [vmem:[#allocation12 + $0x28] ss:$16 sps:$4 sm:$0xff]  }
0x1139   :  { %v7987_v0 = vmul.f32 -1.442695, %v8252_v53  ;;  %v3825_v16 = vpop.f32.mrb[19].mxu0  ;;  %v3866_v62 = vpop.f32.mrb[19].mxu1  ;;  %v9103_v53 = vld [vmem:[#allocation12 + $0x48] ss:$16 sps:$4 sm:$0xff]  }
0x113a   :  { %v7988_v46 = vmul.f32 -1.442695, %v8253_v63  ;;  %v7989_v59 = vmul.f32 -1.442695, %v8255_v27  ;;  %v9104_v29 = vld [vmem:[#allocation12 + $0x6c] ss:$16 sps:$4 sm:$0xff]  }
0x113b   :  { %8654 = vpow2.f32 %v7987_v0  ;;  %v9105_v37 = vld [vmem:[#allocation12 + $0x68] ss:$16 sps:$4 sm:$0xff]   ;;  %v9106_v63 = vld [vmem:[#allocation12 + $0x8c] ss:$16 sps:$4 sm:$0xff]  }
0x113c   :  { %8656 = vpow2.f32 %v7988_v46  ;;  %v9107_v36 = vld [vmem:[#allocation12 + $0x88] ss:$16 sps:$4 sm:$0xff]   ;;  %v9108_v25 = vld [vmem:[#allocation12 + $0xac] ss:$16 sps:$4 sm:$0xff]  }
0x113d   :  { %8658 = vpow2.f32 %v7989_v59  ;;  %v9109_v0 = vld [vmem:[#allocation12 + $0xa8] ss:$16 sps:$4 sm:$0xff]   ;;  %v9110_v16 = vld [vmem:[#allocation12 + $0xcc] ss:$16 sps:$4 sm:$0xff]  }
0x113e   :  { %8660 = vtanh.f32 %v8254_v54  ;;  %v9111_v62 = vld [vmem:[#allocation12 + $0xc8] ss:$16 sps:$4 sm:$0xff]   ;;  %v9112_v46 = vld [vmem:[#allocation12 + $0xec] ss:$16 sps:$4 sm:$0xff]  }
0x113f   :  { %v9113_v41 = vld [vmem:[#allocation12 + $0xe8] ss:$16 sps:$4 sm:$0xff]   ;;  %v9114_v27 = vld [vmem:[#allocation14 + $0xc] ss:$16 sps:$4 sm:$0xff]  }
0x1140   :  { %v9115_v59 = vld [vmem:[%s12031_s6] ss:$0 sm:$0xff] }
0x1145   :  { %v8655_v40 = vpop.eup %8654 }
0x1146   :  { %v8657_v50 = vpop.eup %8656  ;;  %v3875_v55 = vadd.f32 1.0, %v8655_v40 }
0x1147   :  { %v3881_v52 = vadd.f32 1.0, %v8657_v50  ;;  %v8659_v39 = vpop.eup %8658 }
0x1148   :  { %8662 = vrcp.f32 %v3875_v55  ;;  %v8661_v15 = vpop.eup %8660  ;;  %v3888_v12 = vadd.f32 1.0, %v8659_v39 }
0x1149   :  { %8664 = vrcp.f32 %v3881_v52  ;;  %v12222_v52 = vld [vmem:[#allocation40_spill] sm:$0xff] }
0x114a   :  { %8666 = vrcp.f32 %v3888_v12 }
0x1152   :  { %v8663_v6 = vpop.eup %8662 }
0x1153   :  { %v8665_v56 = vpop.eup %8664  ;;  %v3892_v18 = vmul.f32 %v8663_v6, %v8661_v15 }
0x1154   :  { %v3891_v33 = vmul.f32 %v8665_v56, %v12219_v49  ;;  %v8667_v57 = vpop.eup %8666 }
0x1156   :  { %v10909_v5 = vadd.f32 %v3892_v18, %v3891_v33 }
0x1158   :  { %12220 = vst [vmem:[#allocation51_spill] sm:$0xff] %v10909_v5  ;;  %8668 = vtanh.f32 %v10909_v5 }
0x1162   :  { %v8669_v8 = vpop.eup %8668 }
0x1163   :  { %v10912_v43 = vmul.f32 %v8669_v8, %v8667_v57 }
0x1165   :  { %v10916_v14 = vpack.c.bf16 %v10912_v43, %v10912_v43 }
0x1167   :  { %12221 = vst [vmem:[#allocation52_spill] sm:$0xff] %v10916_v14  ;;  %3898 = vst [vmem:[#allocation15 + $0x8] sm:$0xf] %v10916_v14  ;;  %8181 = vmatmul.mubr.bf16.vlgmr.msra.gmra.mrb[20].mxu0 %v10916_v14 }
0x1168   :  { %4735 = vmatpush1.bf16.msra.mxu0 %v9099_v34  ;;  %4766 = vmatprep.mubr.bf16.mxu0 %v12216_v3  ;;  %v9116_v34 = vld [vmem:[#allocation6 + $0x8] sm:$0xff] }
0x1169   :  { %4736 = vmatprep.subr.bf16.mxu0 %v9100_v24 }
0x116c   :  { %4737 = vmatpush1.bf16.msra.mxu0 %v9101_v1  ;;  %v9117_v1 = vld [vmem:[#allocation6] sm:$0xff] }
0x116d   :  { %4738 = vmatprep.subr.bf16.mxu0 %v9102_v11 }
0x1170   :  { %4739 = vmatpush1.bf16.msra.mxu0 %v9103_v53 }
0x1171   :  { %4740 = vmatprep.subr.bf16.mxu0 %v9104_v29  ;;  %v9118_v29 = vld [vmem:[#allocation6 + $0x18] sm:$0xff] }
0x1174   :  { %4741 = vmatpush1.bf16.msra.mxu0 %v9105_v37 }
0x1175   :  { %4742 = vmatprep.subr.bf16.mxu0 %v9106_v63  ;;  %v9119_v63 = vld [vmem:[#allocation6 + $0x10] sm:$0xff] }
0x1178   :  { %4743 = vmatpush1.bf16.msra.mxu0 %v9107_v36 }
0x1179   :  { %4744 = vmatprep.subr.bf16.mxu0 %v9108_v25 }
0x117c   :  { %4745 = vmatpush1.bf16.msra.mxu0 %v9109_v0 }
0x117d   :  { %4746 = vmatprep.subr.bf16.mxu0 %v9110_v16 }
0x1180   :  { %4747 = vmatpush1.bf16.msra.mxu0 %v9111_v62 }
0x1181   :  { %4748 = vmatprep.subr.bf16.mxu0 %v9112_v46  ;;  %v9120_v46 = vld [vmem:[#allocation6 + $0x28] sm:$0xff] }
0x1184   :  { %4749 = vmatpush1.bf16.msra.mxu0 %v9113_v41 }
0x1185   :  { %4820 = vmatprep.subr.bf16.mxu0 %v9114_v27  ;;  %v9121_v27 = vld [vmem:[#allocation6 + $0x20] sm:$0xff] }
0x123a   :  { %v3933_v61 = vpop.f32.mrb[20].mxu0 }
0x123b   :  { %v3934_v54 = vadd.f32 %v9115_v59, %v3933_v61  ;;  %v8182_v40 = vpop.f32.mrb[21].mxu0 }
0x123c   :  { %v3936_v50 = vpop.f32.mrb[22].mxu0 }
0x123d   :  { %v3940_v55 = vcombine.high %v3934_v54, %v3934_v54  ;;  %v3947_v39 = vrot.slane %v3934_v54, %v12222_v52  ;;  %v8183_v15 = vpop.f32.mrb[23].mxu0  ;;  %v12223_v54 = vld [vmem:[#allocation41_spill] sm:$0xff] }
0x123f   :  { %v3954_v6 = vrot.slane %v3940_v55, %v12222_v52  ;;  %v3955_v56 = vcombine.high %v3947_v39, %v3947_v39  ;;  %v3963_v18 = vrot.slane %v3947_v39, %v12222_v52 }
0x1241   :  { %v3977_v12 = vrot.slane %v3955_v56, %v12222_v52  ;;  %v3985_v49 = vcombine.high %v3963_v18, %v3963_v18  ;;  %v3992_v33 = vrot.slane %v3963_v18, %v12187_v9  ;;  %v3970_v57 = vrot.slane %v3954_v6, %v12222_v52  ;;  %v9123_v18 = vld [vmem:[#allocation6 + $0x40] sm:$0xff] }
0x1242   :  { %v3956_v25 = vcombine.high %v3954_v6, %v3954_v6  ;;  %v9122_v6 = vld [vmem:[#allocation6 + $0x48] sm:$0xff] }
0x1243   :  { %v3996_v8 = vrot.slane %v3977_v12, %v12187_v9  ;;  %v4030_v24 = vadd.f32 %v9116_v34, %v3992_v33  ;;  %v4029_v11 = vadd.f32 %v9117_v1, %v3992_v33  ;;  %v4000_v53 = vrot.slane %v3985_v49, %v12187_v9 }
0x1244   :  { %v3987_v62 = vcombine.high %v3977_v12, %v3977_v12  ;;  %v4008_v59 = vrot.slane %v3970_v57, %v12187_v9  ;;  %v3984_v15 = vrot.slane %v3956_v25, %v12222_v52  ;;  %v3986_v1 = vcombine.high %v3970_v57, %v3970_v57  ;;  %v9127_v57 = vld [vmem:[#allocation6 + $0x50] sm:$0xff] }
0x1245   :  { %v4032_v37 = vadd.f32 %v9118_v29, %v3996_v8  ;;  %v4031_v36 = vadd.f32 %v9119_v63, %v3996_v8  ;;  %v4046_v0 = vmax.f32 %v4030_v24, 0.0  ;;  %v4045_v16 = vmax.f32 %v4029_v11, 0.0 }
0x1246   :  { %v4034_v41 = vadd.f32 %v9120_v46, %v4000_v53  ;;  %v4033_v61 = vadd.f32 %v9121_v27, %v4000_v53  ;;  %v4038_v56 = vadd.f32 %v9122_v6, %v4008_v59  ;;  %v4037_v12 = vadd.f32 %v9123_v18, %v4008_v59  ;;  %v9124_v53 = vld [vmem:[#allocation6 + $0x38] sm:$0xff] }
0x1247   :  { %v4062_v40 = vmul.f32 %v4046_v0, %v12223_v54  ;;  %v4061_v50 = vmul.f32 %v4045_v16, %v12223_v54  ;;  %v4048_v55 = vmax.f32 %v4032_v37, 0.0  ;;  %v4047_v39 = vmax.f32 %v4031_v36, 0.0  ;;  %v9125_v0 = vld [vmem:[#allocation6 + $0x30] sm:$0xff] }
0x1248   :  { %v4004_v49 = vrot.slane %v3987_v62, %v12187_v9  ;;  %v4050_v34 = vmax.f32 %v4034_v41, 0.0  ;;  %v4049_v24 = vmax.f32 %v4033_v61, 0.0  ;;  %v4054_v11 = vmax.f32 %v4038_v56, 0.0  ;;  %v9126_v41 = vld [vmem:[#allocation6 + $0x58] sm:$0xff] }
0x1249   :  { %4079 = vadd.xlane.f32.xlu0 %v4062_v40  ;;  %4077 = vadd.xlane.f32.xlu1 %v4061_v50  ;;  %v4064_v33 = vmul.f32 %v4048_v55, %v12223_v54  ;;  %v4063_v8 = vmul.f32 %v4047_v39, %v12223_v54  ;;  %v4012_v37 = vrot.slane %v3984_v15, %v12187_v9  ;;  %v4053_v25 = vmax.f32 %v4037_v12, 0.0  ;;  %v9128_v12 = vld [vmem:[#allocation6 + $0x68] sm:$0xff] }
0x124a   :  { %v4036_v29 = vadd.f32 %v9124_v53, %v4004_v49  ;;  %v4066_v63 = vmul.f32 %v4050_v34, %v12223_v54  ;;  %v4065_v36 = vmul.f32 %v4049_v24, %v12223_v54  ;;  %v4035_v16 = vadd.f32 %v9125_v0, %v4004_v49  ;;  %v9130_v53 = vld [vmem:[#allocation6 + $0x78] sm:$0xff] }
0x124b   :  { %v4070_v62 = vmul.f32 %v4054_v11, %v12223_v54  ;;  %v4040_v27 = vadd.f32 %v9126_v41, %v4012_v37  ;;  %v4039_v61 = vadd.f32 %v9127_v57, %v4012_v37  ;;  %v4069_v59 = vmul.f32 %v4053_v25, %v12223_v54  ;;  %v9131_v37 = vld [vmem:[#allocation6 + $0x70] sm:$0xff] }
0x124c   :  { %v4052_v46 = vmax.f32 %v4036_v29, 0.0  ;;  %v4051_v40 = vmax.f32 %v4035_v16, 0.0  ;;  %v4016_v50 = vrot.slane %v3986_v1, %v12187_v9  ;;  %v3988_v55 = vcombine.high %v3984_v15, %v3984_v15 }
0x124d   :  { %4083 = vadd.xlane.f32.xlu1 %v4064_v33  ;;  %4081 = vadd.xlane.f32.xlu0 %v4063_v8  ;;  %v4056_v6 = vmax.f32 %v4040_v27, 0.0  ;;  %v4055_v56 = vmax.f32 %v4039_v61, 0.0  ;;  %v9129_v33 = vld [vmem:[#allocation6 + $0x60] sm:$0xff] }
0x124e   :  { %v4068_v39 = vmul.f32 %v4052_v46, %v12223_v54  ;;  %v4067_v18 = vmul.f32 %v4051_v40, %v12223_v54  ;;  %v4042_v49 = vadd.f32 %v9128_v12, %v4016_v50  ;;  %v4041_v8 = vadd.f32 %v9129_v33, %v4016_v50 }
0x124f   :  { %v4020_v34 = vrot.slane %v3988_v55, %v12187_v9  ;;  %v4072_v24 = vmul.f32 %v4056_v6, %v12223_v54  ;;  %v4071_v15 = vmul.f32 %v4055_v56, %v12223_v54 }
0x1250   :  { %v4058_v1 = vmax.f32 %v4042_v49, 0.0  ;;  %v4057_v11 = vmax.f32 %v4041_v8, 0.0 }
0x1251   :  { %4087 = vadd.xlane.f32.xlu1 %v4066_v63  ;;  %4085 = vadd.xlane.f32.xlu0 %v4065_v36  ;;  %v4044_v29 = vadd.f32 %v9130_v53, %v4020_v34  ;;  %v4043_v63 = vadd.f32 %v9131_v37, %v4020_v34 }
0x1252   :  { %v4074_v36 = vmul.f32 %v4058_v1, %v12223_v54  ;;  %v4073_v25 = vmul.f32 %v4057_v11, %v12223_v54 }
0x1253   :  { %v4060_v0 = vmax.f32 %v4044_v29, 0.0  ;;  %v4059_v16 = vmax.f32 %v4043_v63, 0.0 }
0x1255   :  { %4095 = vadd.xlane.f32.xlu1 %v4070_v62  ;;  %4093 = vadd.xlane.f32.xlu0 %v4069_v59  ;;  %v4076_v62 = vmul.f32 %v4060_v0, %v12223_v54  ;;  %v4075_v46 = vmul.f32 %v4059_v16, %v12223_v54 }
0x1259   :  { %4091 = vadd.xlane.f32.xlu1 %v4068_v39  ;;  %4089 = vadd.xlane.f32.xlu0 %v4067_v18 }
0x125d   :  { %4099 = vadd.xlane.f32.xlu1 %v4072_v24  ;;  %4097 = vadd.xlane.f32.xlu0 %v4071_v15 }
0x1261   :  { %4103 = vadd.xlane.f32.xlu1 %v4074_v36  ;;  %4101 = vadd.xlane.f32.xlu0 %v4073_v25 }
0x1265   :  { %4107 = vadd.xlane.f32.xlu1 %v4076_v62  ;;  %4105 = vadd.xlane.f32.xlu0 %v4075_v46 }
0x12d6   :  { %v4080_v41 = vpop.xlane.xlu0 %4079  ;;  %v4078_v27 = vpop.xlane.xlu1 %4077 }
0x12d7   :  { %v4132_v33 = vrot.slane %v4080_v41, %v12189_v17  ;;  %v4128_v8 = vrot.slane %v4078_v27, %v12190_v45 }
0x12d9   :  { %v4133_v29 = vsel %vm824_vm8, %v4132_v33, %v4128_v8 }
0x12da   :  { %v10954_v57 = vpop.xlane.xlu1 %4083  ;;  %v4082_v61 = vpop.xlane.xlu0 %4081 }
0x12db   :  { %v4141_v56 = vrot.slane %v10954_v57, %v12189_v17  ;;  %v4137_v18 = vrot.slane %v4082_v61, %v12190_v45 }
0x12dd   :  { %v4142_v11 = vsel %vm824_vm8, %v4141_v56, %v4137_v18 }
0x12de   :  { %v10956_v59 = vpop.xlane.xlu1 %4087  ;;  %v4086_v40 = vpop.xlane.xlu0 %4085  ;;  %v4197_v25 = vsel %vm391_vm0, %v4142_v11, %v4133_v29 }
0x12df   :  { %v4150_v12 = vrot.slane %v10956_v59, %v12189_v17  ;;  %v4146_v49 = vrot.slane %v4086_v40, %v12190_v45 }
0x12e1   :  { %v4151_v53 = vsel %vm824_vm8, %v4150_v12, %v4146_v49 }
0x12e2   :  { %v10958_v50 = vpop.xlane.xlu1 %4095  ;;  %v10960_v55 = vpop.xlane.xlu0 %4093  ;;  %v4198_v56 = vsel %vm393_vm1, %v4151_v53, %v4197_v25 }
0x12e3   :  { %v4168_v0 = vrot.slane %v10958_v50, %v12189_v17  ;;  %v4164_v16 = vrot.slane %v10960_v55, %v12190_v45 }
0x12e5   :  { %v4169_v8 = vsel %vm824_vm8, %v4168_v0, %v4164_v16 }
0x12e6   :  { %v10962_v39 = vpop.xlane.xlu1 %4091  ;;  %v10964_v6 = vpop.xlane.xlu0 %4089 }
0x12e7   :  { %v4159_v34 = vrot.slane %v10962_v39, %v12189_v17  ;;  %v4155_v24 = vrot.slane %v10964_v6, %v12190_v45 }
0x12e9   :  { %v4160_v37 = vsel %vm824_vm8, %v4159_v34, %v4155_v24 }
0x12ea   :  { %v10978_v15 = vpop.xlane.xlu1 %4099  ;;  %v10980_v1 = vpop.xlane.xlu0 %4097  ;;  %v4199_v49 = vsel %vm395_vm2, %v4160_v37, %v4198_v56 }
0x12eb   :  { %v4177_v63 = vrot.slane %v10978_v15, %v12189_v17  ;;  %v4173_v36 = vrot.slane %v10980_v1, %v12190_v45  ;;  %v4200_v25 = vsel %vm397_vm3, %v4169_v8, %v4199_v49 }
0x12ed   :  { %v4178_v33 = vsel %vm824_vm8, %v4177_v63, %v4173_v36 }
0x12ee   :  { %v10995_v62 = vpop.xlane.xlu1 %4103  ;;  %v10997_v46 = vpop.xlane.xlu0 %4101  ;;  %v4201_v37 = vsel %vm399_vm4, %v4178_v33, %v4200_v25 }
0x12ef   :  { %v4186_v18 = vrot.slane %v10995_v62, %v12189_v17  ;;  %v4182_v12 = vrot.slane %v10997_v46, %v12190_v45 }
0x12f1   :  { %v4187_v11 = vsel %vm824_vm8, %v4186_v18, %v4182_v12 }
0x12f2   :  { %v11007_v34 = vpop.xlane.xlu1 %4107  ;;  %v11009_v24 = vpop.xlane.xlu0 %4105  ;;  %v4202_v36 = vsel %vm401_vm5, %v4187_v11, %v4201_v37 }
0x12f3   :  { %v4195_v53 = vrot.slane %v11007_v34, %v12189_v17  ;;  %v4191_v29 = vrot.slane %v11009_v24, %v12190_v45 }
0x12f5   :  { %v4196_v63 = vsel %vm824_vm8, %v4195_v53, %v4191_v29 }
0x12f6   :  { %v4203_v0 = vsel %vm403_vm6, %v4196_v63, %v4202_v36 }
0x12f7   :  { %v4205_v16 = vsel %vm897_vm9, %v4203_v0, -inf }
0x12f8   :  { %4206 = vmax.xlane.f32.xlu0 %v4205_v16 }
0x1385   :  { %v4207_v56 = vpop.xlane.xlu0 %4206 }
0x1386   :  { %v4212_v18 = vrot.slane %v4207_v56, %v12187_v9  ;;  %v4216_v12 = vrot.slane %v4207_v56, %v10016_v7  ;;  %v4220_v54 = vrot.slane %v4207_v56, %v12191_v47  ;;  %v4224_v33 = vrot.slane %v4207_v56, %v12192_v60 }
0x1387   :  { %v4228_v63 = vrot.slane %v4207_v56, %v12193_v22 }
0x1388   :  { %v4249_v52 = vsub.f32 %v4078_v27, %v4212_v18  ;;  %v4250_v49 = vsub.f32 %v4080_v41, %v4212_v18  ;;  %v4251_v8 = vsub.f32 %v4082_v61, %v4216_v12  ;;  %v4253_v53 = vsub.f32 %v4086_v40, %v4220_v54 }
0x1389   :  { %v4252_v25 = vsub.f32 %v10954_v57, %v4216_v12  ;;  %v4255_v36 = vsub.f32 %v10964_v6, %v4224_v33  ;;  %v4254_v16 = vsub.f32 %v10956_v59, %v4220_v54  ;;  %v4232_v27 = vrot.slane %v4207_v56, %v12194_v44 }
0x138a   :  { %v4265_v29 = vmul.f32 1.442695, %v4249_v52  ;;  %v4267_v11 = vmul.f32 1.442695, %v4250_v49  ;;  %v4269_v37 = vmul.f32 1.442695, %v4251_v8  ;;  %v4257_v61 = vsub.f32 %v10960_v55, %v4228_v63 }
0x138b   :  { %v4273_v0 = vmul.f32 1.442695, %v4253_v53  ;;  %v4271_v41 = vmul.f32 1.442695, %v4252_v25  ;;  %v4277_v52 = vmul.f32 1.442695, %v4255_v36  ;;  %v4256_v57 = vsub.f32 %v10962_v39, %v4224_v33 }
0x138c   :  { %8670 = vpow2.f32 %v4265_v29  ;;  %v4275_v40 = vmul.f32 1.442695, %v4254_v16  ;;  %v4236_v18 = vrot.slane %v4207_v56, %v12195_v26  ;;  %v4259_v6 = vsub.f32 %v10980_v1, %v4232_v27 }
0x138d   :  { %8672 = vpow2.f32 %v4267_v11  ;;  %v4281_v12 = vmul.f32 1.442695, %v4257_v61  ;;  %v4258_v59 = vsub.f32 %v10958_v50, %v4228_v63  ;;  %v4279_v55 = vmul.f32 1.442695, %v4256_v57 }
0x138e   :  { %8674 = vpow2.f32 %v4269_v37  ;;  %v4240_v39 = vrot.slane %v4207_v56, %v12196_v32  ;;  %v4261_v8 = vsub.f32 %v10997_v46, %v4236_v18  ;;  %v4285_v1 = vmul.f32 1.442695, %v4259_v6  ;;  %v12224_v6 = vld [vmem:[#allocation50_spill] sm:$0xff] }
0x138f   :  { %8676 = vpow2.f32 %v4273_v0  ;;  %v4260_v29 = vsub.f32 %v10978_v15, %v4232_v27  ;;  %v4283_v50 = vmul.f32 1.442695, %v4258_v59  ;;  %v4262_v37 = vsub.f32 %v10995_v62, %v4236_v18 }
0x1390   :  { %8678 = vpow2.f32 %v4271_v41  ;;  %v4263_v11 = vsub.f32 %v11009_v24, %v4240_v39  ;;  %v4289_v56 = vmul.f32 1.442695, %v4261_v8  ;;  %v4264_v24 = vsub.f32 %v11007_v34, %v4240_v39 }
0x1391   :  { %8680 = vpow2.f32 %v4277_v52  ;;  %v4287_v63 = vmul.f32 1.442695, %v4260_v29  ;;  %v4291_v16 = vmul.f32 1.442695, %v4262_v37 }
0x1392   :  { %8682 = vpow2.f32 %v4275_v40  ;;  %v4293_v15 = vmul.f32 1.442695, %v4263_v11  ;;  %v4295_v27 = vmul.f32 1.442695, %v4264_v24 }
0x1393   :  { %8684 = vpow2.f32 %v4281_v12  ;;  %v4661_v12 = vmul.f32 %v10912_v43, %v12224_v6 }
0x1394   :  { %8686 = vpow2.f32 %v4279_v55 }
0x1395   :  { %8688 = vpow2.f32 %v4285_v1 }
0x1396   :  { %v11035_v49 = vpop.eup %8670  ;;  %8690 = vpow2.f32 %v4283_v50 }
0x1397   :  { %v11037_v54 = vpop.eup %8672  ;;  %4314 = vperm.xlu1 %8348, %v11035_v49   ;;  %8692 = vpow2.f32 %v4289_v56 }
0x1398   :  { %4317 = vperm.xlu0 %8349, %v11037_v54   ;;  %v11044_v33 = vpop.eup %8674  ;;  %8694 = vpow2.f32 %v4287_v63 }
0x1399   :  { %v11046_v53 = vpop.eup %8676  ;;  %8696 = vpow2.f32 %v4293_v15 }
0x139a   :  { %v11052_v25 = vpop.eup %8678  ;;  %8698 = vpow2.f32 %v4291_v16 }
0x139b   :  { %4320 = vperm.xlu1 %8348, %v11044_v33   ;;  %v11054_v46 = vpop.eup %8680  ;;  %8700 = vpow2.f32 %v4295_v27 }
0x139c   :  { %4326 = vperm.xlu0 %8349, %v11046_v53   ;;  %v11059_v36 = vpop.eup %8682 }
0x139d   :  { %v11061_v0 = vpop.eup %8684 }
0x139e   :  { %v11066_v62 = vpop.eup %8686 }
0x139f   :  { %4323 = vperm.xlu1 %8348, %v11052_v25   ;;  %v11068_v41 = vpop.eup %8688 }
0x13a0   :  { %4332 = vperm.xlu0 %8349, %v11054_v46   ;;  %v11072_v61 = vpop.eup %8690 }
0x13a1   :  { %v11074_v52 = vpop.eup %8692 }
0x13a2   :  { %v11078_v34 = vpop.eup %8694 }
0x13a3   :  { %4329 = vperm.xlu1 %8348, %v11059_v36   ;;  %v11080_v57 = vpop.eup %8696 }
0x13a4   :  { %4338 = vperm.xlu0 %8349, %v11061_v0   ;;  %v11084_v40 = vpop.eup %8698 }
0x13a5   :  { %v11087_v18 = vpop.eup %8700 }
0x13a7   :  { %4335 = vperm.xlu1 %8348, %v11066_v62  }
0x13a8   :  { %4344 = vperm.xlu0 %8349, %v11068_v41  }
0x13ab   :  { %4341 = vperm.xlu1 %8348, %v11072_v61  }
0x13ac   :  { %4350 = vperm.xlu0 %8349, %v11074_v52  }
0x13af   :  { %4347 = vperm.xlu1 %8348, %v11078_v34  }
0x13b0   :  { %4356 = vperm.xlu0 %8349, %v11080_v57  }
0x13b3   :  { %4353 = vperm.xlu1 %8348, %v11084_v40  }
0x13b7   :  { %4359 = vperm.xlu1 %8348, %v11087_v18  }
0x13db   :  { %4662 = vadd.xlane.f32.xlu1 %v4661_v12 }
0x1416   :  { %v4315_v59 = vpop.permute.xlu1 %4314 }
0x1417   :  { %v4318_v55 = vpop.permute.xlu0 %4317  ;;  %v4364_v12 = vrot.slane %v4315_v59, %v12190_v45 }
0x1418   :  { %v4368_v43 = vrot.slane %v4318_v55, %v12189_v17 }
0x141a   :  { %v4321_v39 = vpop.permute.xlu1 %4320  ;;  %v4369_v59 = vsel %vm824_vm8, %v4368_v43, %v4364_v12 }
0x141b   :  { %v4327_v8 = vpop.permute.xlu0 %4326  ;;  %v4373_v6 = vrot.slane %v4321_v39, %v12190_v45 }
0x141c   :  { %v4382_v14 = vrot.slane %v4327_v8, %v12190_v45 }
0x141e   :  { %v4324_v1 = vpop.permute.xlu1 %4323 }
0x141f   :  { %v4333_v29 = vpop.permute.xlu0 %4332  ;;  %v4377_v15 = vrot.slane %v4324_v1, %v12189_v17 }
0x1420   :  { %v4391_v3 = vrot.slane %v4333_v29, %v12190_v45 }
0x1421   :  { %v4378_v1 = vsel %vm824_vm8, %v4377_v15, %v4373_v6 }
0x1422   :  { %v4330_v50 = vpop.permute.xlu1 %4329 }
0x1423   :  { %v4339_v11 = vpop.permute.xlu0 %4338  ;;  %v4386_v24 = vrot.slane %v4330_v50, %v12189_v17 }
0x1424   :  { %v4400_v20 = vrot.slane %v4339_v11, %v12190_v45 }
0x1425   :  { %v4387_v55 = vsel %vm824_vm8, %v4386_v24, %v4382_v14 }
0x1426   :  { %v4336_v56 = vpop.permute.xlu1 %4335 }
0x1427   :  { %v4345_v37 = vpop.permute.xlu0 %4344  ;;  %v4395_v5 = vrot.slane %v4336_v56, %v12189_v17 }
0x1428   :  { %v4409_v39 = vrot.slane %v4345_v37, %v12190_v45 }
0x1429   :  { %v4396_v56 = vsel %vm824_vm8, %v4395_v5, %v4391_v3 }
0x142a   :  { %v4342_v63 = vpop.permute.xlu1 %4341 }
0x142b   :  { %v4351_v16 = vpop.permute.xlu0 %4350  ;;  %v4404_v21 = vrot.slane %v4342_v63, %v12189_v17  ;;  %v4433_v63 = vsel %vm391_vm0, %v4378_v1, %v4369_v59 }
0x142c   :  { %v4418_v29 = vrot.slane %v4351_v16, %v12190_v45  ;;  %v4434_v11 = vsel %vm393_vm1, %v4387_v55, %v4433_v63 }
0x142d   :  { %v4405_v6 = vsel %vm824_vm8, %v4404_v21, %v4400_v20  ;;  %v4435_v24 = vsel %vm395_vm2, %v4396_v56, %v4434_v11 }
0x142e   :  { %v4348_v27 = vpop.permute.xlu1 %4347  ;;  %v4436_v3 = vsel %vm397_vm3, %v4405_v6, %v4435_v24 }
0x142f   :  { %v4413_v50 = vrot.slane %v4348_v27, %v12189_v17  ;;  %v4357_v15 = vpop.permute.xlu0 %4356 }
0x1431   :  { %v4414_v14 = vsel %vm824_vm8, %v4413_v50, %v4409_v39 }
0x1432   :  { %v4354_v48 = vpop.permute.xlu1 %4353  ;;  %v4437_v16 = vsel %vm399_vm4, %v4414_v14, %v4436_v3 }
0x1433   :  { %v4422_v8 = vrot.slane %v4354_v48, %v12189_v17  ;;  %v4427_v48 = vrot.slane %v4357_v15, %v12190_v45 }
0x1435   :  { %v4423_v27 = vsel %vm824_vm8, %v4422_v8, %v4418_v29 }
0x1436   :  { %v4360_v37 = vpop.permute.xlu1 %4359  ;;  %v4438_v21 = vsel %vm401_vm5, %v4423_v27, %v4437_v16 }
0x1437   :  { %v4431_v5 = vrot.slane %v4360_v37, %v12189_v17 }
0x1439   :  { %v4432_v20 = vsel %vm824_vm8, %v4431_v5, %v4427_v48 }
0x143a   :  { %v4439_v43 = vsel %vm403_vm6, %v4432_v20, %v4438_v21 }
0x143b   :  { %v4441_v12 = vsel %vm897_vm9, %v4439_v43, 0.0 }
0x143c   :  { %4442 = vadd.xlane.f32.xlu0 %v4441_v12 }
0x1468   :  { %v4663_v12 = vpop.xlane.xlu1 %4662 }
0x14c9   :  { %v4443_v1 = vpop.xlane.xlu0 %4442 }
0x14ca   :  { %v4448_v50 = vrot.slane %v4443_v1, %v12187_v9  ;;  %v4452_v55 = vrot.slane %v4443_v1, %v10016_v7  ;;  %v4456_v59 = vrot.slane %v4443_v1, %v12191_v47  ;;  %v4460_v39 = vrot.slane %v4443_v1, %v12192_v60 }
0x14cb   :  { %v4464_v8 = vrot.slane %v4443_v1, %v12193_v22  ;;  %v4468_v15 = vrot.slane %v4443_v1, %v12194_v44  ;;  %v4472_v27 = vrot.slane %v4443_v1, %v12195_v26  ;;  %v4476_v3 = vrot.slane %v4443_v1, %v12196_v32 }
0x14cc   :  { %8702 = vrcp.f32 %v4448_v50 }
0x14cd   :  { %8704 = vrcp.f32 %v4452_v55 }
0x14ce   :  { %8706 = vrcp.f32 %v4456_v59 }
0x14cf   :  { %8708 = vrcp.f32 %v4460_v39 }
0x14d0   :  { %8710 = vrcp.f32 %v4464_v8 }
0x14d1   :  { %8712 = vrcp.f32 %v4468_v15 }
0x14d2   :  { %8714 = vrcp.f32 %v4472_v27 }
0x14d3   :  { %8716 = vrcp.f32 %v4476_v3 }
0x14d6   :  { %v8703_v56 = vpop.eup %8702 }
0x14d7   :  { %v4487_v63 = vmul.f32 %v8703_v56, %v11037_v54  ;;  %v4486_v29 = vmul.f32 %v8703_v56, %v11035_v49  ;;  %v8705_v6 = vpop.eup %8704 }
0x14d8   :  { %v4490_v11 = vmul.f32 %v8705_v6, %v11052_v25  ;;  %v4489_v14 = vmul.f32 %v8705_v6, %v11044_v33  ;;  %v8707_v24 = vpop.eup %8706 }
0x14d9   :  { %4516 = vperm.xlu1 %8348, %v4487_v63   ;;  %4511 = vperm.xlu0 %8349, %v4486_v29   ;;  %v4493_v54 = vmul.f32 %v8707_v24, %v11059_v36  ;;  %v4492_v49 = vmul.f32 %v8707_v24, %v11046_v53  ;;  %v8709_v37 = vpop.eup %8708 }
0x14da   :  { %v4496_v25 = vmul.f32 %v8709_v37, %v11066_v62  ;;  %v4495_v33 = vmul.f32 %v8709_v37, %v11054_v46  ;;  %v8711_v48 = vpop.eup %8710 }
0x14db   :  { %v4499_v5 = vmul.f32 %v8711_v48, %v11072_v61  ;;  %v4498_v36 = vmul.f32 %v8711_v48, %v11061_v0  ;;  %v8713_v16 = vpop.eup %8712 }
0x14dc   :  { %v4502_v53 = vmul.f32 %v8713_v16, %v11078_v34  ;;  %v4501_v20 = vmul.f32 %v8713_v16, %v11068_v41  ;;  %v8715_v21 = vpop.eup %8714  ;;  %v9132_v34 = vld [vmem:[#allocation2] ss:$0 sm:$0xff] }
0x14dd   :  { %4526 = vperm.xlu1 %8348, %v4490_v11   ;;  %4521 = vperm.xlu0 %8349, %v4489_v14   ;;  %v4505_v46 = vmul.f32 %v8715_v21, %v11084_v40  ;;  %v4504_v62 = vmul.f32 %v8715_v21, %v11074_v52  ;;  %v8717_v43 = vpop.eup %8716  ;;  %v4664_v1 = vadd.f32 %v9132_v34, %v4663_v12 }
0x14de   :  { %v4508_v61 = vmul.f32 %v8717_v43, %v11087_v18  ;;  %v4507_v0 = vmul.f32 %v8717_v43, %v11080_v57 }
0x14e1   :  { %4536 = vperm.xlu1 %8348, %v4493_v54   ;;  %4531 = vperm.xlu0 %8349, %v4492_v49  }
0x14e5   :  { %4546 = vperm.xlu1 %8348, %v4496_v25   ;;  %4541 = vperm.xlu0 %8349, %v4495_v33  }
0x14e9   :  { %4556 = vperm.xlu1 %8348, %v4499_v5   ;;  %4551 = vperm.xlu0 %8349, %v4498_v36  }
0x14ed   :  { %4566 = vperm.xlu1 %8348, %v4502_v53   ;;  %4561 = vperm.xlu0 %8349, %v4501_v20  }
0x14f1   :  { %4576 = vperm.xlu1 %8348, %v4505_v46   ;;  %4571 = vperm.xlu0 %8349, %v4504_v62  }
0x14f5   :  { %4586 = vperm.xlu1 %8348, %v4508_v61   ;;  %4581 = vperm.xlu0 %8349, %v4507_v0  }
0x14f9   :  { %4667 = vperm.xlu0 %8349, %v4664_v1  }
0x1558   :  { %v4512_v41 = vpop.permute.xlu0 %4511  ;;  %v4517_v50 = vpop.permute.xlu1 %4516 }
0x1559   :  { %v4589_v39 = vmul.f32 %v12200_v19, %v4512_v41  ;;  %v4590_v18 = vmul.f32 %v12201_v13, %v4517_v50 }
0x155b   :  { %v4605_v6 = vadd.f32 %v4590_v18, %v4589_v39 }
0x155c   :  { %v4522_v55 = vpop.permute.xlu0 %4521  ;;  %v4527_v59 = vpop.permute.xlu1 %4526 }
0x155d   :  { %v4591_v40 = vmul.f32 %v12198_v10, %v4522_v55  ;;  %v4592_v52 = vmul.f32 %v12199_v38, %v4527_v59  ;;  %v4606_v49 = vrot.slane %v4605_v6, 4 }
0x155f   :  { %v4612_v29 = vadd.f32 %v4592_v52, %v4591_v40  ;;  %v4607_v20 = vadd.f32 %v4606_v49, %v4605_v6 }
0x1560   :  { %v4532_v56 = vpop.permute.xlu0 %4531  ;;  %v4537_v57 = vpop.permute.xlu1 %4536 }
0x1561   :  { %v4593_v8 = vmul.f32 %v12202_v23, %v4532_v56  ;;  %v4594_v63 = vmul.f32 %v12203_v42, %v4537_v57  ;;  %v4613_v54 = vrot.slane %v4612_v29, 4  ;;  %v4608_v41 = vrot.slane %v4607_v20, 2 }
0x1563   :  { %v4619_v15 = vadd.f32 %v4594_v63, %v4593_v8  ;;  %v4614_v16 = vadd.f32 %v4613_v54, %v4612_v29  ;;  %v4609_v29 = vadd.f32 %v4608_v41, %v4607_v20  ;;  %v12225_v54 = vld [vmem:[#allocation35_spill] sm:$0xff] }
0x1564   :  { %v4542_v11 = vpop.permute.xlu0 %4541  ;;  %v4547_v14 = vpop.permute.xlu1 %4546 }
0x1565   :  { %v4595_v24 = vmul.f32 %v12204_v31, %v4542_v11  ;;  %v4596_v27 = vmul.f32 %v12205_v51, %v4547_v14  ;;  %v4620_v37 = vrot.slane %v4619_v15, 4  ;;  %v4615_v34 = vrot.slane %v4614_v16, 2 }
0x1567   :  { %v4626_v3 = vadd.f32 %v4596_v27, %v4595_v24  ;;  %v4621_v21 = vadd.f32 %v4620_v37, %v4619_v15  ;;  %v4616_v8 = vadd.f32 %v4615_v34, %v4614_v16  ;;  %v12226_v37 = vld [vmem:[#allocation36_spill] sm:$0xff]  ;;  %v4610_v16 = vrot.slane %v4609_v29, 1 }
0x1568   :  { %v4552_v25 = vpop.permute.xlu0 %4551  ;;  %v4557_v33 = vpop.permute.xlu1 %4556 }
0x1569   :  { %v4597_v48 = vmul.f32 %v12206_v2, %v4552_v25  ;;  %v4598_v5 = vmul.f32 %v12207_v35, %v4557_v33  ;;  %v4627_v36 = vrot.slane %v4626_v3, 4  ;;  %v4622_v50 = vrot.slane %v4621_v21, 2 }
0x156b   :  { %v4633_v53 = vadd.f32 %v4598_v5, %v4597_v48  ;;  %v4628_v43 = vadd.f32 %v4627_v36, %v4626_v3  ;;  %v4623_v6 = vadd.f32 %v4622_v50, %v4621_v21  ;;  %v4617_v48 = vrot.slane %v4616_v8, 1 }
0x156c   :  { %v4562_v46 = vpop.permute.xlu0 %4561  ;;  %v4567_v62 = vpop.permute.xlu1 %4566  ;;  %v4611_v50 = vadd.f32 %v4610_v16, %v4609_v29  ;;  %v9140_v16 = vld [vmem:[#allocation14 + $0x4c] ss:$16 sps:$4 sm:$0xff]  }
0x156d   :  { %v4634_v61 = vrot.slane %v4633_v53, 4  ;;  %v4599_v0 = vmul.f32 %v12208_v30, %v4562_v46  ;;  %v4600_v12 = vmul.f32 %v12209_v28, %v4567_v62  ;;  %v4629_v52 = vrot.slane %v4628_v43, 2 }
0x156f   :  { %v4635_v1 = vadd.f32 %v4634_v61, %v4633_v53  ;;  %v4640_v55 = vadd.f32 %v4600_v12, %v4599_v0  ;;  %v4630_v24 = vadd.f32 %v4629_v52, %v4628_v43  ;;  %v4624_v53 = vrot.slane %v4623_v6, 1 }
0x1570   :  { %v4572_v59 = vpop.permute.xlu0 %4571  ;;  %v4577_v40 = vpop.permute.xlu1 %4576  ;;  %v4618_v0 = vadd.f32 %v4617_v48, %v4616_v8  ;;  %v9136_v48 = vld [vmem:[#allocation14 + $0x2c] ss:$16 sps:$4 sm:$0xff]  }
0x1571   :  { %v4601_v39 = vmul.f32 %v12210_v4, %v4572_v59  ;;  %v4602_v18 = vmul.f32 %v12214_v58, %v4577_v40  ;;  %v4636_v56 = vrot.slane %v4635_v1, 2  ;;  %v4641_v57 = vrot.slane %v4640_v55, 4 }
0x1572   :  { %v4631_v62 = vrot.slane %v4630_v24, 1  ;;  %v4625_v41 = vadd.f32 %v4624_v53, %v4623_v6  ;;  %v4678_v52 = vsel %vm391_vm0, %v4618_v0, %v4611_v50  ;;  %v9138_v53 = vld [vmem:[#allocation14 + $0x28] ss:$16 sps:$4 sm:$0xff]   ;;  %v9145_v0 = vld [vmem:[#allocation14 + $0x60] ss:$16 sps:$4 sm:$0xff]  }
0x1573   :  { %v4647_v63 = vadd.f32 %v4602_v18, %v4601_v39  ;;  %v4642_v15 = vadd.f32 %v4641_v57, %v4640_v55  ;;  %v4637_v25 = vadd.f32 %v4636_v56, %v4635_v1  ;;  %v9150_v50 = vld [vmem:[#allocation14 + $0x88] ss:$16 sps:$4 sm:$0xff]  }
0x1574   :  { %v4582_v11 = vpop.permute.xlu0 %4581  ;;  %v4587_v14 = vpop.permute.xlu1 %4586  ;;  %v4632_v55 = vadd.f32 %v4631_v62, %v4630_v24  ;;  %v4679_v57 = vsel %vm393_vm1, %v4625_v41, %v4678_v52  ;;  %v9141_v62 = vld [vmem:[#allocation14 + $0x40] ss:$16 sps:$4 sm:$0xff]   ;;  %v9155_v52 = vld [vmem:[#allocation14 + $0xc4] ss:$16 sps:$4 sm:$0xff]  }
0x1575   :  { %v4648_v27 = vrot.slane %v4647_v63, 4  ;;  %v4603_v49 = vmul.f32 %v12225_v54, %v4582_v11  ;;  %v4604_v3 = vmul.f32 %v12226_v37, %v4587_v14  ;;  %v4643_v33 = vrot.slane %v4642_v15, 2  ;;  %v9149_v41 = vld [vmem:[#allocation14 + $0x80] ss:$16 sps:$4 sm:$0xff]  }
0x1576   :  { %v4638_v61 = vrot.slane %v4637_v25, 1 }
0x1577   :  { %v4649_v5 = vadd.f32 %v4648_v27, %v4647_v63  ;;  %v4654_v36 = vadd.f32 %v4604_v3, %v4603_v49  ;;  %v4644_v46 = vadd.f32 %v4643_v33, %v4642_v15  ;;  %v4680_v15 = vsel %vm395_vm2, %v4632_v55, %v4679_v57  ;;  %v9133_v3 = vld [vmem:[#allocation14] ss:$16 sps:$4 sm:$0xff]   ;;  %v9135_v33 = vld [vmem:[#allocation14 + $0x24] ss:$16 sps:$4 sm:$0xff]  }
0x1578   :  { %v4639_v40 = vadd.f32 %v4638_v61, %v4637_v25  ;;  %v4668_v14 = vpop.permute.xlu0 %4667  ;;  %v9134_v25 = vld [vmem:[#allocation14 + $0x8] ss:$16 sps:$4 sm:$0xff]   ;;  %v9144_v61 = vld [vmem:[#allocation14 + $0x6c] ss:$16 sps:$4 sm:$0xff]   ;;  %v9151_v55 = vld [vmem:[#allocation14 + $0xa4] ss:$16 sps:$4 sm:$0xff]  }
0x1579   :  { %v4650_v20 = vrot.slane %v4649_v5, 2  ;;  %v4655_v21 = vrot.slane %v4654_v36, 4  ;;  %v4645_v12 = vrot.slane %v4644_v46, 1  ;;  %v9159_v57 = vld [vmem:[#allocation14 + $0xe4] ss:$16 sps:$4 sm:$0xff]  }
0x157a   :  { %v4681_v8 = vsel %vm397_vm3, %v4639_v40, %v4680_v15  ;;  %v9154_v40 = vld [vmem:[#allocation14 + $0xa8] ss:$16 sps:$4 sm:$0xff]   ;;  %v9161_v15 = vld [vmem:[#allocation14 + $0xe0] ss:$16 sps:$4 sm:$0xff]  }
0x157b   :  { %v4651_v43 = vadd.f32 %v4650_v20, %v4649_v5  ;;  %v4656_v34 = vadd.f32 %v4655_v21, %v4654_v36  ;;  %v4646_v39 = vadd.f32 %v4645_v12, %v4644_v46  ;;  %v12227_v5 = vmov 0   ;;  %v9137_v36 = vld [vmem:[#allocation14 + $0x20] ss:$16 sps:$4 sm:$0xff]   ;;  %v9139_v46 = vld [vmem:[#allocation14 + $0x44] ss:$16 sps:$4 sm:$0xff]  }
0x157c   :  { %v9142_v20 = vld [vmem:[#allocation14 + $0x48] ss:$16 sps:$4 sm:$0xff]   ;;  %v9143_v21 = vld [vmem:[#allocation14 + $0x64] ss:$16 sps:$4 sm:$0xff]  }
0x157d   :  { %v4652_v59 = vrot.slane %v4651_v43, 1  ;;  %v4657_v1 = vrot.slane %v4656_v34, 2  ;;  %v4682_v6 = vsel %vm399_vm4, %v4646_v39, %v4681_v8  ;;  %v9146_v12 = vld [vmem:[#allocation14 + $0x68] ss:$16 sps:$4 sm:$0xff]   ;;  %v9156_v39 = vld [vmem:[#allocation14 + $0xcc] ss:$16 sps:$4 sm:$0xff]  }
0x157e   :  { %v9162_v8 = vld [vmem:[#allocation14 + $0xe8] ss:$16 sps:$4 sm:$0xff]  }
0x157f   :  { %v4658_v18 = vadd.f32 %v4657_v1, %v4656_v34  ;;  %v4653_v56 = vadd.f32 %v4652_v59, %v4651_v43  ;;  %v9147_v43 = vld [vmem:[#allocation14 + $0x84] ss:$16 sps:$4 sm:$0xff]   ;;  %v9148_v34 = vld [vmem:[#allocation14 + $0x8c] ss:$16 sps:$4 sm:$0xff]   ;;  %v9153_v1 = vld [vmem:[#allocation14 + $0xa0] ss:$16 sps:$4 sm:$0xff]  }
0x1580   :  { %v9152_v59 = vld [vmem:[#allocation14 + $0xac] ss:$16 sps:$4 sm:$0xff]  }
0x1581   :  { %v4659_v63 = vrot.slane %v4658_v18, 1  ;;  %v4683_v29 = vsel %vm401_vm5, %v4653_v56, %v4682_v6  ;;  %v9158_v56 = vld [vmem:[#allocation14 + $0xc8] ss:$16 sps:$4 sm:$0xff]   ;;  %v9163_v6 = vld [vmem:[#allocation12 + $0x4] ss:$16 sps:$4 sm:$0xff]  }
0x1583   :  { %v4660_v11 = vadd.f32 %v4659_v63, %v4658_v18  ;;  %v9157_v18 = vld [vmem:[#allocation14 + $0xc0] ss:$16 sps:$4 sm:$0xff]   ;;  %v9160_v63 = vld [vmem:[#allocation14 + $0xec] ss:$16 sps:$4 sm:$0xff]  }
0x1585   :  { %v4684_v24 = vsel %vm403_vm6, %v4660_v11, %v4683_v29  ;;  %v12228_v11 = vmov 0.0   ;;  %v12229_v29 = vld [vmem:[#allocation52_spill] sm:$0xff] }
0x1586   :  { %v4686_v27 = vmul.f32 %v4684_v24, %v4668_v14  ;;  %v9164_v14 = vld [vmem:[#allocation11] sm:$0xff]  }
0x1587   :  { %v9165_v24 = vld [vmem:[#allocation12] ss:$16 sps:$4 sm:$0xff]  }
0x1588   :  { %v4692_v49 = vpack.c.bf16 %v4686_v27, %v4686_v27  ;;  %v9166_v27 = vld [vmem:[#allocation12 + $0x24] ss:$16 sps:$4 sm:$0xff]  }
0x158a   :  { %4726 = vmatmul.mubr.bf16.vlgmr.msra.gmra.mrb[20].mxu1 %v4692_v49  ;;  %4767 = vmatmul.mubr.bf16.vlgmr.msra.gmra.mrb[24].mxu0 %v4692_v49  ;;  %v9167_v49 = vld [vmem:[#allocation11 + $0x8] sm:$0xff]  }
0x158b   :  { %4780 = vmatpush1.bf16.msra.mxu1 %v9133_v3  ;;  %4821 = vmatpush1.bf16.msra.mxu0 %v9134_v25  ;;  %v9168_v3 = vld [vmem:[#allocation12 + $0x20] ss:$16 sps:$4 sm:$0xff]   ;;  %v9169_v25 = vld [vmem:[#allocation12 + $0x44] ss:$16 sps:$4 sm:$0xff]  }
0x158c   :  { %4781 = vmatprep.subr.bf16.mxu1 %v9135_v33  ;;  %4822 = vmatprep.subr.bf16.mxu0 %v9136_v48  ;;  %v9170_v33 = vld [vmem:[#allocation11 + $0x10] sm:$0xff]  }
0x158d   :  { %4811 = vmatprep.mubr.bf16.mxu1 %v12227_v5  ;;  %4852 = vmatprep.mubr.bf16.mxu0 %v12227_v5  ;;  %v9171_v48 = vld [vmem:[#allocation12 + $0x40] ss:$16 sps:$4 sm:$0xff]  }
0x158f   :  { %4782 = vmatpush1.bf16.msra.mxu1 %v9137_v36  ;;  %4823 = vmatpush1.bf16.msra.mxu0 %v9138_v53  ;;  %v9172_v36 = vld [vmem:[#allocation12 + $0x64] ss:$16 sps:$4 sm:$0xff]   ;;  %v9173_v53 = vld [vmem:[#allocation11 + $0x18] sm:$0xff]  }
0x1590   :  { %4783 = vmatprep.subr.bf16.mxu1 %v9139_v46  ;;  %4824 = vmatprep.subr.bf16.mxu0 %v9140_v16  ;;  %v9174_v46 = vld [vmem:[#allocation12 + $0x60] ss:$16 sps:$4 sm:$0xff]   ;;  %v9175_v16 = vld [vmem:[#allocation12 + $0x84] ss:$16 sps:$4 sm:$0xff]  }
0x1593   :  { %4784 = vmatpush1.bf16.msra.mxu1 %v9141_v62  ;;  %4825 = vmatpush1.bf16.msra.mxu0 %v9142_v20  ;;  %v9176_v62 = vld [vmem:[#allocation11 + $0x20] sm:$0xff]  }
0x1594   :  { %4785 = vmatprep.subr.bf16.mxu1 %v9143_v21  ;;  %4826 = vmatprep.subr.bf16.mxu0 %v9144_v61  ;;  %v9177_v20 = vld [vmem:[#allocation12 + $0x80] ss:$16 sps:$4 sm:$0xff]   ;;  %v9178_v21 = vld [vmem:[#allocation12 + $0xa4] ss:$16 sps:$4 sm:$0xff]   ;;  %v9179_v61 = vld [vmem:[#allocation11 + $0x28] sm:$0xff]  }
0x1597   :  { %4786 = vmatpush1.bf16.msra.mxu1 %v9145_v0  ;;  %4827 = vmatpush1.bf16.msra.mxu0 %v9146_v12  ;;  %v9180_v0 = vld [vmem:[#allocation12 + $0xa0] ss:$16 sps:$4 sm:$0xff]   ;;  %v9181_v12 = vld [vmem:[#allocation12 + $0xc4] ss:$16 sps:$4 sm:$0xff]  }
0x1598   :  { %4787 = vmatprep.subr.bf16.mxu1 %v9147_v43  ;;  %4828 = vmatprep.subr.bf16.mxu0 %v9148_v34  ;;  %v9182_v43 = vld [vmem:[#allocation11 + $0x30] sm:$0xff]  }
0x1599   :  { %v9183_v34 = vld [vmem:[#allocation12 + $0xc0] ss:$16 sps:$4 sm:$0xff]  }
0x159b   :  { %4788 = vmatpush1.bf16.msra.mxu1 %v9149_v41  ;;  %4829 = vmatpush1.bf16.msra.mxu0 %v9150_v50  ;;  %v9184_v41 = vld [vmem:[#allocation12 + $0xe4] ss:$16 sps:$4 sm:$0xff]   ;;  %v9185_v50 = vld [vmem:[#allocation11 + $0x38] sm:$0xff]  }
0x159c   :  { %4789 = vmatprep.subr.bf16.mxu1 %v9151_v55  ;;  %4830 = vmatprep.subr.bf16.mxu0 %v9152_v59  ;;  %v9186_v55 = vld [vmem:[#allocation12 + $0xc] ss:$16 sps:$4 sm:$0xff]   ;;  %v9187_v59 = vld [vmem:[#allocation12 + $0xe0] ss:$16 sps:$4 sm:$0xff]  }
0x159f   :  { %4790 = vmatpush1.bf16.msra.mxu1 %v9153_v1  ;;  %4831 = vmatpush1.bf16.msra.mxu0 %v9154_v40  ;;  %v9188_v1 = vld [vmem:[#allocation14 + $0x4] ss:$16 sps:$4 sm:$0xff]  }
0x15a0   :  { %4791 = vmatprep.subr.bf16.mxu1 %v9155_v52  ;;  %4832 = vmatprep.subr.bf16.mxu0 %v9156_v39  ;;  %v4688_v40 = vld [vmem:[#allocation8 + $0x60] sm:$0xff]  ;;  %v4689_v52 = vld [vmem:[#allocation8 + $0x68] sm:$0xff] }
0x15a3   :  { %4792 = vmatpush1.bf16.msra.mxu1 %v9157_v18  ;;  %4833 = vmatpush1.bf16.msra.mxu0 %v9158_v56 }
0x15a4   :  { %4793 = vmatprep.subr.bf16.mxu1 %v9159_v57  ;;  %4834 = vmatprep.subr.bf16.mxu0 %v9160_v63 }
0x15a7   :  { %4794 = vmatpush1.bf16.msra.mxu1 %v9161_v15  ;;  %4835 = vmatpush1.bf16.msra.mxu0 %v9162_v8 }
0x15a8   :  { %8184 = vmatprep.subr.bf16.mxu1 %v12228_v11  ;;  %5686 = vmatprep.subr.bf16.mxu0 %v9163_v6 }
0x15aa   :  { %4812 = vmatmul.mubr.bf16.vlgmr.msra.gmra.mrb[20].mxu1 %v12229_v29  ;;  %4853 = vmatmul.mubr.bf16.vlgmr.msra.gmra.mrb[24].mxu0 %v12229_v29 }
0x15ab   :  { %8185 = vmatpush3.bf16.msra.mxu1 %v9164_v14  ;;  %8200 = vmatprep.mubr.msk.bf16.mxu1 %vm9636_vm7, %v12228_v11 }
0x15ac   :  { %8186 = vmatprep.subr.bf16.mxu1 %v12228_v11  ;;  %5687 = vmatpush1.bf16.msra.mxu0 %v9165_v24 }
0x15ad   :  { %5688 = vmatprep.subr.bf16.mxu0 %v9166_v27  ;;  %5718 = vmatprep.mubr.bf16.mxu0 %v12227_v5 }
0x15af   :  { %8187 = vmatpush3.bf16.msra.mxu1 %v9167_v49  ;;  %v4691_v49 = vld [vmem:[#allocation8 + $0x78] sm:$0xff] }
0x15b0   :  { %8188 = vmatprep.subr.bf16.mxu1 %v12228_v11  ;;  %5689 = vmatpush1.bf16.msra.mxu0 %v9168_v3 }
0x15b1   :  { %5690 = vmatprep.subr.bf16.mxu0 %v9169_v25  ;;  %v4690_v25 = vld [vmem:[#allocation8 + $0x70] sm:$0xff] }
0x15b3   :  { %8189 = vmatpush3.bf16.msra.mxu1 %v9170_v33 }
0x15b4   :  { %8190 = vmatprep.subr.bf16.mxu1 %v12228_v11  ;;  %5691 = vmatpush1.bf16.msra.mxu0 %v9171_v48 }
0x15b5   :  { %5692 = vmatprep.subr.bf16.mxu0 %v9172_v36 }
0x15b7   :  { %8191 = vmatpush3.bf16.msra.mxu1 %v9173_v53 }
0x15b8   :  { %8192 = vmatprep.subr.bf16.mxu1 %v12228_v11  ;;  %5693 = vmatpush1.bf16.msra.mxu0 %v9174_v46 }
0x15b9   :  { %5694 = vmatprep.subr.bf16.mxu0 %v9175_v16 }
0x15bb   :  { %8193 = vmatpush3.bf16.msra.mxu1 %v9176_v62 }
0x15bc   :  { %8194 = vmatprep.subr.bf16.mxu1 %v12228_v11  ;;  %5695 = vmatpush1.bf16.msra.mxu0 %v9177_v20 }
0x15bd   :  { %5696 = vmatprep.subr.bf16.mxu0 %v9178_v21 }
0x15bf   :  { %8195 = vmatpush3.bf16.msra.mxu1 %v9179_v61 }
0x15c0   :  { %8196 = vmatprep.subr.bf16.mxu1 %v12228_v11  ;;  %5697 = vmatpush1.bf16.msra.mxu0 %v9180_v0 }
0x15c1   :  { %5698 = vmatprep.subr.bf16.mxu0 %v9181_v12 }
0x15c3   :  { %8197 = vmatpush3.bf16.msra.mxu1 %v9182_v43  ;;  %v12230_v43 = vld [vmem:[#allocation51_spill] sm:$0xff] }
0x15c4   :  { %8198 = vmatprep.subr.bf16.mxu1 %v12228_v11  ;;  %5699 = vmatpush1.bf16.msra.mxu0 %v9183_v34 }
0x15c5   :  { %5700 = vmatprep.subr.bf16.mxu0 %v9184_v41 }
0x15c7   :  { %8199 = vmatpush3.bf16.msra.mxu1 %v9185_v50 }
0x15c8   :  { %5727 = vmatprep.subr.bf16.mxu1 %v9186_v55  ;;  %5701 = vmatpush1.bf16.msra.mxu0 %v9187_v59 }
0x15c9   :  { %5772 = vmatprep.subr.bf16.mxu0 %v9188_v1 }
0x167d   :  { %v4813_v39 = vpop.f32.mrb[20].mxu1  ;;  %v4854_v18 = vpop.f32.mrb[24].mxu0 }
0x167e   :  { %v8256_v56 = vadd.f32 %v4813_v39, %v4688_v40  ;;  %v4815_v57 = vpop.f32.mrb[21].mxu1  ;;  %v4856_v63 = vpop.f32.mrb[25].mxu0  ;;  %v8258_v48 = vadd.f32 %v4854_v18, %v4690_v25  ;;  %v9189_v40 = vld [vmem:[#allocation12 + $0x8] ss:$16 sps:$4 sm:$0xff]   ;;  %v9192_v18 = vld [vmem:[#allocation12 + $0x4c] ss:$16 sps:$4 sm:$0xff]  }
0x167f   :  { %v8257_v15 = vadd.f32 %v4815_v57, %v4689_v52  ;;  %v4817_v8 = vpop.f32.mrb[22].mxu1  ;;  %v4858_v6 = vpop.f32.mrb[26].mxu0  ;;  %v8259_v3 = vadd.f32 %v4856_v63, %v4691_v49  ;;  %v9190_v52 = vld [vmem:[#allocation12 + $0x2c] ss:$16 sps:$4 sm:$0xff]   ;;  %v9191_v39 = vld [vmem:[#allocation12 + $0x28] ss:$16 sps:$4 sm:$0xff]  }
0x1680   :  { %v7990_v29 = vmul.f32 -1.442695, %v8256_v56  ;;  %v4818_v14 = vpop.f32.mrb[23].mxu1  ;;  %v4859_v24 = vpop.f32.mrb[27].mxu0  ;;  %v9193_v56 = vld [vmem:[#allocation12 + $0x48] ss:$16 sps:$4 sm:$0xff]  }
0x1681   :  { %v7991_v27 = vmul.f32 -1.442695, %v8257_v15  ;;  %v7992_v33 = vmul.f32 -1.442695, %v8259_v3  ;;  %v9194_v57 = vld [vmem:[#allocation12 + $0x6c] ss:$16 sps:$4 sm:$0xff]  }
0x1682   :  { %8718 = vpow2.f32 %v7990_v29  ;;  %v9195_v63 = vld [vmem:[#allocation12 + $0x68] ss:$16 sps:$4 sm:$0xff]   ;;  %v9196_v15 = vld [vmem:[#allocation12 + $0x8c] ss:$16 sps:$4 sm:$0xff]  }
0x1683   :  { %8720 = vpow2.f32 %v7991_v27  ;;  %v9197_v8 = vld [vmem:[#allocation12 + $0x88] ss:$16 sps:$4 sm:$0xff]   ;;  %v9198_v6 = vld [vmem:[#allocation12 + $0xac] ss:$16 sps:$4 sm:$0xff]  }
0x1684   :  { %8722 = vpow2.f32 %v7992_v33  ;;  %v9199_v29 = vld [vmem:[#allocation12 + $0xa8] ss:$16 sps:$4 sm:$0xff]   ;;  %v9200_v14 = vld [vmem:[#allocation12 + $0xcc] ss:$16 sps:$4 sm:$0xff]  }
0x1685   :  { %8724 = vtanh.f32 %v8258_v48  ;;  %v9201_v24 = vld [vmem:[#allocation12 + $0xc8] ss:$16 sps:$4 sm:$0xff]   ;;  %v9202_v27 = vld [vmem:[#allocation12 + $0xec] ss:$16 sps:$4 sm:$0xff]  }
0x1686   :  { %v9203_v49 = vld [vmem:[#allocation12 + $0xe8] ss:$16 sps:$4 sm:$0xff]   ;;  %v9204_v3 = vld [vmem:[#allocation14 + $0xc] ss:$16 sps:$4 sm:$0xff]  }
0x1687   :  { %v9205_v33 = vld [vmem:[%s12031_s6] ss:$0 sm:$0xff] }
0x168c   :  { %v8719_v36 = vpop.eup %8718 }
0x168d   :  { %v8721_v53 = vpop.eup %8720  ;;  %v4868_v46 = vadd.f32 1.0, %v8719_v36 }
0x168e   :  { %v4874_v16 = vadd.f32 1.0, %v8721_v53  ;;  %v8723_v62 = vpop.eup %8722 }
0x168f   :  { %8726 = vrcp.f32 %v4868_v46  ;;  %v8725_v20 = vpop.eup %8724  ;;  %v4881_v12 = vadd.f32 1.0, %v8723_v62 }
0x1690   :  { %8728 = vrcp.f32 %v4874_v16  ;;  %v12233_v16 = vld [vmem:[#allocation40_spill] sm:$0xff] }
0x1691   :  { %8730 = vrcp.f32 %v4881_v12 }
0x1699   :  { %v8727_v21 = vpop.eup %8726 }
0x169a   :  { %v8729_v61 = vpop.eup %8728  ;;  %v4885_v0 = vmul.f32 %v8727_v21, %v8725_v20 }
0x169b   :  { %v4884_v34 = vmul.f32 %v8729_v61, %v12230_v43  ;;  %v8731_v50 = vpop.eup %8730 }
0x169d   :  { %v11187_v41 = vadd.f32 %v4885_v0, %v4884_v34 }
0x169f   :  { %12231 = vst [vmem:[#allocation53_spill] sm:$0xff] %v11187_v41  ;;  %8732 = vtanh.f32 %v11187_v41 }
0x16a9   :  { %v8733_v55 = vpop.eup %8732 }
0x16aa   :  { %v11190_v59 = vmul.f32 %v8733_v55, %v8731_v50 }
0x16ac   :  { %v11194_v1 = vpack.c.bf16 %v11190_v59, %v11190_v59 }
0x16ae   :  { %12232 = vst [vmem:[#allocation54_spill] sm:$0xff] %v11194_v1  ;;  %4891 = vst [vmem:[#allocation15 + $0xc] sm:$0xf] %v11194_v1  ;;  %8201 = vmatmul.mubr.bf16.vlgmr.msra.gmra.mrb[24].mxu1 %v11194_v1 }
0x16af   :  { %5728 = vmatpush1.bf16.msra.mxu1 %v9189_v40  ;;  %5759 = vmatprep.mubr.bf16.mxu1 %v12227_v5  ;;  %v9206_v40 = vld [vmem:[#allocation6 + $0x8] sm:$0xff] }
0x16b0   :  { %5729 = vmatprep.subr.bf16.mxu1 %v9190_v52 }
0x16b3   :  { %5730 = vmatpush1.bf16.msra.mxu1 %v9191_v39  ;;  %v9207_v39 = vld [vmem:[#allocation6] sm:$0xff] }
0x16b4   :  { %5731 = vmatprep.subr.bf16.mxu1 %v9192_v18 }
0x16b7   :  { %5732 = vmatpush1.bf16.msra.mxu1 %v9193_v56 }
0x16b8   :  { %5733 = vmatprep.subr.bf16.mxu1 %v9194_v57  ;;  %v9208_v57 = vld [vmem:[#allocation6 + $0x18] sm:$0xff] }
0x16bb   :  { %5734 = vmatpush1.bf16.msra.mxu1 %v9195_v63 }
0x16bc   :  { %5735 = vmatprep.subr.bf16.mxu1 %v9196_v15  ;;  %v9209_v15 = vld [vmem:[#allocation6 + $0x10] sm:$0xff] }
0x16bf   :  { %5736 = vmatpush1.bf16.msra.mxu1 %v9197_v8 }
0x16c0   :  { %5737 = vmatprep.subr.bf16.mxu1 %v9198_v6 }
0x16c3   :  { %5738 = vmatpush1.bf16.msra.mxu1 %v9199_v29 }
0x16c4   :  { %5739 = vmatprep.subr.bf16.mxu1 %v9200_v14 }
0x16c7   :  { %5740 = vmatpush1.bf16.msra.mxu1 %v9201_v24 }
0x16c8   :  { %5741 = vmatprep.subr.bf16.mxu1 %v9202_v27  ;;  %v9210_v27 = vld [vmem:[#allocation6 + $0x28] sm:$0xff] }
0x16cb   :  { %5742 = vmatpush1.bf16.msra.mxu1 %v9203_v49 }
0x16cc   :  { %5813 = vmatprep.subr.bf16.mxu1 %v9204_v3  ;;  %v9211_v3 = vld [vmem:[#allocation6 + $0x20] sm:$0xff] }
0x1781   :  { %v4926_v25 = vpop.f32.mrb[24].mxu1 }
0x1782   :  { %v4927_v48 = vadd.f32 %v9205_v33, %v4926_v25  ;;  %v8202_v36 = vpop.f32.mrb[25].mxu1 }
0x1783   :  { %v4929_v53 = vpop.f32.mrb[26].mxu1 }
0x1784   :  { %v4933_v46 = vcombine.high %v4927_v48, %v4927_v48  ;;  %v4940_v62 = vrot.slane %v4927_v48, %v12233_v16  ;;  %v8203_v20 = vpop.f32.mrb[27].mxu1  ;;  %v12234_v48 = vld [vmem:[#allocation41_spill] sm:$0xff] }
0x1786   :  { %v4947_v21 = vrot.slane %v4933_v46, %v12233_v16  ;;  %v4948_v61 = vcombine.high %v4940_v62, %v4940_v62  ;;  %v4956_v0 = vrot.slane %v4940_v62, %v12233_v16 }
0x1788   :  { %v4970_v12 = vrot.slane %v4948_v61, %v12233_v16  ;;  %v4978_v43 = vcombine.high %v4956_v0, %v4956_v0  ;;  %v4985_v34 = vrot.slane %v4956_v0, %v12187_v9  ;;  %v4963_v50 = vrot.slane %v4947_v21, %v12233_v16  ;;  %v9213_v0 = vld [vmem:[#allocation6 + $0x40] sm:$0xff] }
0x1789   :  { %v4949_v6 = vcombine.high %v4947_v21, %v4947_v21  ;;  %v9212_v21 = vld [vmem:[#allocation6 + $0x48] sm:$0xff] }
0x178a   :  { %v4989_v55 = vrot.slane %v4970_v12, %v12187_v9  ;;  %v5023_v52 = vadd.f32 %v9206_v40, %v4985_v34  ;;  %v5022_v18 = vadd.f32 %v9207_v39, %v4985_v34  ;;  %v4993_v56 = vrot.slane %v4978_v43, %v12187_v9 }
0x178b   :  { %v4980_v24 = vcombine.high %v4970_v12, %v4970_v12  ;;  %v5001_v33 = vrot.slane %v4963_v50, %v12187_v9  ;;  %v4977_v20 = vrot.slane %v4949_v6, %v12233_v16  ;;  %v4979_v39 = vcombine.high %v4963_v50, %v4963_v50  ;;  %v9217_v50 = vld [vmem:[#allocation6 + $0x50] sm:$0xff] }
0x178c   :  { %v5025_v63 = vadd.f32 %v9208_v57, %v4989_v55  ;;  %v5024_v8 = vadd.f32 %v9209_v15, %v4989_v55  ;;  %v5039_v29 = vmax.f32 %v5023_v52, 0.0  ;;  %v5038_v14 = vmax.f32 %v5022_v18, 0.0 }
0x178d   :  { %v5027_v49 = vadd.f32 %v9210_v27, %v4993_v56  ;;  %v5026_v25 = vadd.f32 %v9211_v3, %v4993_v56  ;;  %v5031_v61 = vadd.f32 %v9212_v21, %v5001_v33  ;;  %v5030_v12 = vadd.f32 %v9213_v0, %v5001_v33  ;;  %v9214_v56 = vld [vmem:[#allocation6 + $0x38] sm:$0xff] }
0x178e   :  { %v5055_v36 = vmul.f32 %v5039_v29, %v12234_v48  ;;  %v5054_v53 = vmul.f32 %v5038_v14, %v12234_v48  ;;  %v5041_v46 = vmax.f32 %v5025_v63, 0.0  ;;  %v5040_v62 = vmax.f32 %v5024_v8, 0.0  ;;  %v9215_v29 = vld [vmem:[#allocation6 + $0x30] sm:$0xff] }
0x178f   :  { %v4997_v43 = vrot.slane %v4980_v24, %v12187_v9  ;;  %v5043_v40 = vmax.f32 %v5027_v49, 0.0  ;;  %v5042_v52 = vmax.f32 %v5026_v25, 0.0  ;;  %v5047_v18 = vmax.f32 %v5031_v61, 0.0  ;;  %v9216_v49 = vld [vmem:[#allocation6 + $0x58] sm:$0xff] }
0x1790   :  { %5072 = vadd.xlane.f32.xlu0 %v5055_v36  ;;  %5070 = vadd.xlane.f32.xlu1 %v5054_v53  ;;  %v5057_v34 = vmul.f32 %v5041_v46, %v12234_v48  ;;  %v5056_v55 = vmul.f32 %v5040_v62, %v12234_v48  ;;  %v5005_v63 = vrot.slane %v4977_v20, %v12187_v9  ;;  %v5046_v6 = vmax.f32 %v5030_v12, 0.0  ;;  %v9218_v12 = vld [vmem:[#allocation6 + $0x68] sm:$0xff] }
0x1791   :  { %v5029_v57 = vadd.f32 %v9214_v56, %v4997_v43  ;;  %v5059_v15 = vmul.f32 %v5043_v40, %v12234_v48  ;;  %v5058_v8 = vmul.f32 %v5042_v52, %v12234_v48  ;;  %v5028_v14 = vadd.f32 %v9215_v29, %v4997_v43  ;;  %v9220_v56 = vld [vmem:[#allocation6 + $0x78] sm:$0xff] }
0x1792   :  { %v5063_v24 = vmul.f32 %v5047_v18, %v12234_v48  ;;  %v5033_v3 = vadd.f32 %v9216_v49, %v5005_v63  ;;  %v5032_v25 = vadd.f32 %v9217_v50, %v5005_v63  ;;  %v5062_v33 = vmul.f32 %v5046_v6, %v12234_v48  ;;  %v9221_v63 = vld [vmem:[#allocation6 + $0x70] sm:$0xff] }
0x1793   :  { %v5045_v27 = vmax.f32 %v5029_v57, 0.0  ;;  %v5044_v36 = vmax.f32 %v5028_v14, 0.0  ;;  %v5009_v53 = vrot.slane %v4979_v39, %v12187_v9  ;;  %v4981_v46 = vcombine.high %v4977_v20, %v4977_v20 }
0x1794   :  { %5076 = vadd.xlane.f32.xlu1 %v5057_v34  ;;  %5074 = vadd.xlane.f32.xlu0 %v5056_v55  ;;  %v5049_v21 = vmax.f32 %v5033_v3, 0.0  ;;  %v5048_v61 = vmax.f32 %v5032_v25, 0.0  ;;  %v9219_v34 = vld [vmem:[#allocation6 + $0x60] sm:$0xff] }
0x1795   :  { %v5061_v62 = vmul.f32 %v5045_v27, %v12234_v48  ;;  %v5060_v0 = vmul.f32 %v5044_v36, %v12234_v48  ;;  %v5035_v43 = vadd.f32 %v9218_v12, %v5009_v53  ;;  %v5034_v55 = vadd.f32 %v9219_v34, %v5009_v53 }
0x1796   :  { %v5013_v40 = vrot.slane %v4981_v46, %v12187_v9  ;;  %v5065_v52 = vmul.f32 %v5049_v21, %v12234_v48  ;;  %v5064_v20 = vmul.f32 %v5048_v61, %v12234_v48 }
0x1797   :  { %v5051_v39 = vmax.f32 %v5035_v43, 0.0  ;;  %v5050_v18 = vmax.f32 %v5034_v55, 0.0 }
0x1798   :  { %5080 = vadd.xlane.f32.xlu1 %v5059_v15  ;;  %5078 = vadd.xlane.f32.xlu0 %v5058_v8  ;;  %v5037_v57 = vadd.f32 %v9220_v56, %v5013_v40  ;;  %v5036_v15 = vadd.f32 %v9221_v63, %v5013_v40 }
0x1799   :  { %v5067_v8 = vmul.f32 %v5051_v39, %v12234_v48  ;;  %v5066_v6 = vmul.f32 %v5050_v18, %v12234_v48 }
0x179a   :  { %v5053_v29 = vmax.f32 %v5037_v57, 0.0  ;;  %v5052_v14 = vmax.f32 %v5036_v15, 0.0 }
0x179c   :  { %5088 = vadd.xlane.f32.xlu1 %v5063_v24  ;;  %5086 = vadd.xlane.f32.xlu0 %v5062_v33  ;;  %v5069_v24 = vmul.f32 %v5053_v29, %v12234_v48  ;;  %v5068_v27 = vmul.f32 %v5052_v14, %v12234_v48 }
0x17a0   :  { %5084 = vadd.xlane.f32.xlu1 %v5061_v62  ;;  %5082 = vadd.xlane.f32.xlu0 %v5060_v0 }
0x17a4   :  { %5092 = vadd.xlane.f32.xlu1 %v5065_v52  ;;  %5090 = vadd.xlane.f32.xlu0 %v5064_v20 }
0x17a8   :  { %5096 = vadd.xlane.f32.xlu1 %v5067_v8  ;;  %5094 = vadd.xlane.f32.xlu0 %v5066_v6 }
0x17ac   :  { %5100 = vadd.xlane.f32.xlu1 %v5069_v24  ;;  %5098 = vadd.xlane.f32.xlu0 %v5068_v27 }
0x181d   :  { %v5073_v49 = vpop.xlane.xlu0 %5072  ;;  %v5071_v3 = vpop.xlane.xlu1 %5070 }
0x181e   :  { %v5125_v34 = vrot.slane %v5073_v49, %v12189_v17  ;;  %v5121_v55 = vrot.slane %v5071_v3, %v12190_v45 }
0x1820   :  { %v5126_v57 = vsel %vm824_vm8, %v5125_v34, %v5121_v55 }
0x1821   :  { %v11232_v50 = vpop.xlane.xlu1 %5076  ;;  %v5075_v25 = vpop.xlane.xlu0 %5074 }
0x1822   :  { %v5134_v61 = vrot.slane %v11232_v50, %v12189_v17  ;;  %v5130_v0 = vrot.slane %v5075_v25, %v12190_v45 }
0x1824   :  { %v5135_v18 = vsel %vm824_vm8, %v5134_v61, %v5130_v0 }
0x1825   :  { %v11234_v33 = vpop.xlane.xlu1 %5080  ;;  %v5079_v36 = vpop.xlane.xlu0 %5078  ;;  %v5190_v6 = vsel %vm391_vm0, %v5135_v18, %v5126_v57 }
0x1826   :  { %v5143_v12 = vrot.slane %v11234_v33, %v12189_v17  ;;  %v5139_v43 = vrot.slane %v5079_v36, %v12190_v45 }
0x1828   :  { %v5144_v56 = vsel %vm824_vm8, %v5143_v12, %v5139_v43 }
0x1829   :  { %v11236_v53 = vpop.xlane.xlu1 %5088  ;;  %v11238_v46 = vpop.xlane.xlu0 %5086  ;;  %v5191_v61 = vsel %vm393_vm1, %v5144_v56, %v5190_v6 }
0x182a   :  { %v5161_v29 = vrot.slane %v11236_v53, %v12189_v17  ;;  %v5157_v14 = vrot.slane %v11238_v46, %v12190_v45 }
0x182c   :  { %v5162_v55 = vsel %vm824_vm8, %v5161_v29, %v5157_v14 }
0x182d   :  { %v11240_v62 = vpop.xlane.xlu1 %5084  ;;  %v11242_v21 = vpop.xlane.xlu0 %5082 }
0x182e   :  { %v5152_v40 = vrot.slane %v11240_v62, %v12189_v17  ;;  %v5148_v52 = vrot.slane %v11242_v21, %v12190_v45 }
0x1830   :  { %v5153_v63 = vsel %vm824_vm8, %v5152_v40, %v5148_v52 }
0x1831   :  { %v11256_v20 = vpop.xlane.xlu1 %5092  ;;  %v11258_v39 = vpop.xlane.xlu0 %5090  ;;  %v5192_v43 = vsel %vm395_vm2, %v5153_v63, %v5191_v61 }
0x1832   :  { %v5170_v15 = vrot.slane %v11256_v20, %v12189_v17  ;;  %v5166_v8 = vrot.slane %v11258_v39, %v12190_v45  ;;  %v5193_v6 = vsel %vm397_vm3, %v5162_v55, %v5192_v43 }
0x1834   :  { %v5171_v34 = vsel %vm824_vm8, %v5170_v15, %v5166_v8 }
0x1835   :  { %v11273_v24 = vpop.xlane.xlu1 %5096  ;;  %v11275_v27 = vpop.xlane.xlu0 %5094  ;;  %v5194_v63 = vsel %vm399_vm4, %v5171_v34, %v5193_v6 }
0x1836   :  { %v5179_v0 = vrot.slane %v11273_v24, %v12189_v17  ;;  %v5175_v12 = vrot.slane %v11275_v27, %v12190_v45 }
0x1838   :  { %v5180_v18 = vsel %vm824_vm8, %v5179_v0, %v5175_v12 }
0x1839   :  { %v11285_v40 = vpop.xlane.xlu1 %5100  ;;  %v11287_v52 = vpop.xlane.xlu0 %5098  ;;  %v5195_v8 = vsel %vm401_vm5, %v5180_v18, %v5194_v63 }
0x183a   :  { %v5188_v56 = vrot.slane %v11285_v40, %v12189_v17  ;;  %v5184_v57 = vrot.slane %v11287_v52, %v12190_v45 }
0x183c   :  { %v5189_v15 = vsel %vm824_vm8, %v5188_v56, %v5184_v57 }
0x183d   :  { %v5196_v29 = vsel %vm403_vm6, %v5189_v15, %v5195_v8 }
0x183e   :  { %v5198_v14 = vsel %vm897_vm9, %v5196_v29, -inf }
0x183f   :  { %5199 = vmax.xlane.f32.xlu0 %v5198_v14 }
0x18cc   :  { %v5200_v61 = vpop.xlane.xlu0 %5199 }
0x18cd   :  { %v5205_v0 = vrot.slane %v5200_v61, %v12187_v9  ;;  %v5209_v12 = vrot.slane %v5200_v61, %v10016_v7  ;;  %v5213_v48 = vrot.slane %v5200_v61, %v12191_v47  ;;  %v5217_v34 = vrot.slane %v5200_v61, %v12192_v60 }
0x18ce   :  { %v5221_v15 = vrot.slane %v5200_v61, %v12193_v22 }
0x18cf   :  { %v5242_v16 = vsub.f32 %v5071_v3, %v5205_v0  ;;  %v5243_v43 = vsub.f32 %v5073_v49, %v5205_v0  ;;  %v5244_v55 = vsub.f32 %v5075_v25, %v5209_v12  ;;  %v5246_v56 = vsub.f32 %v5079_v36, %v5213_v48 }
0x18d0   :  { %v5245_v6 = vsub.f32 %v11232_v50, %v5209_v12  ;;  %v5248_v8 = vsub.f32 %v11242_v21, %v5217_v34  ;;  %v5247_v14 = vsub.f32 %v11234_v33, %v5213_v48  ;;  %v5225_v3 = vrot.slane %v5200_v61, %v12194_v44 }
0x18d1   :  { %v5258_v57 = vmul.f32 1.442695, %v5242_v16  ;;  %v5260_v18 = vmul.f32 1.442695, %v5243_v43  ;;  %v5262_v63 = vmul.f32 1.442695, %v5244_v55  ;;  %v5250_v25 = vsub.f32 %v11238_v46, %v5221_v15 }
0x18d2   :  { %v5266_v29 = vmul.f32 1.442695, %v5246_v56  ;;  %v5264_v49 = vmul.f32 1.442695, %v5245_v6  ;;  %v5270_v16 = vmul.f32 1.442695, %v5248_v8  ;;  %v5249_v50 = vsub.f32 %v11240_v62, %v5217_v34 }
0x18d3   :  { %8734 = vpow2.f32 %v5258_v57  ;;  %v5268_v36 = vmul.f32 1.442695, %v5247_v14  ;;  %v5229_v0 = vrot.slane %v5200_v61, %v12195_v26  ;;  %v5252_v21 = vsub.f32 %v11258_v39, %v5225_v3 }
0x18d4   :  { %8736 = vpow2.f32 %v5260_v18  ;;  %v5274_v12 = vmul.f32 1.442695, %v5250_v25  ;;  %v5251_v33 = vsub.f32 %v11236_v53, %v5221_v15  ;;  %v5272_v46 = vmul.f32 1.442695, %v5249_v50 }
0x18d5   :  { %8738 = vpow2.f32 %v5262_v63  ;;  %v5233_v62 = vrot.slane %v5200_v61, %v12196_v32  ;;  %v5254_v55 = vsub.f32 %v11275_v27, %v5229_v0  ;;  %v5278_v39 = vmul.f32 1.442695, %v5252_v21  ;;  %v12235_v21 = vld [vmem:[#allocation50_spill] sm:$0xff] }
0x18d6   :  { %8740 = vpow2.f32 %v5266_v29  ;;  %v5253_v57 = vsub.f32 %v11256_v20, %v5225_v3  ;;  %v5276_v53 = vmul.f32 1.442695, %v5251_v33  ;;  %v5255_v63 = vsub.f32 %v11273_v24, %v5229_v0 }
0x18d7   :  { %8742 = vpow2.f32 %v5264_v49  ;;  %v5256_v18 = vsub.f32 %v11287_v52, %v5233_v62  ;;  %v5282_v61 = vmul.f32 1.442695, %v5254_v55  ;;  %v5257_v52 = vsub.f32 %v11285_v40, %v5233_v62 }
0x18d8   :  { %8744 = vpow2.f32 %v5270_v16  ;;  %v5280_v15 = vmul.f32 1.442695, %v5253_v57  ;;  %v5284_v14 = vmul.f32 1.442695, %v5255_v63 }
0x18d9   :  { %8746 = vpow2.f32 %v5268_v36  ;;  %v5286_v20 = vmul.f32 1.442695, %v5256_v18  ;;  %v5288_v3 = vmul.f32 1.442695, %v5257_v52 }
0x18da   :  { %8748 = vpow2.f32 %v5274_v12  ;;  %v5654_v12 = vmul.f32 %v11190_v59, %v12235_v21 }
0x18db   :  { %8750 = vpow2.f32 %v5272_v46 }
0x18dc   :  { %8752 = vpow2.f32 %v5278_v39 }
0x18dd   :  { %v11313_v43 = vpop.eup %8734  ;;  %8754 = vpow2.f32 %v5276_v53 }
0x18de   :  { %v11315_v48 = vpop.eup %8736  ;;  %5307 = vperm.xlu1 %8348, %v11313_v43   ;;  %8756 = vpow2.f32 %v5282_v61 }
0x18df   :  { %5310 = vperm.xlu0 %8349, %v11315_v48   ;;  %v11322_v34 = vpop.eup %8738  ;;  %8758 = vpow2.f32 %v5280_v15 }
0x18e0   :  { %v11324_v56 = vpop.eup %8740  ;;  %8760 = vpow2.f32 %v5286_v20 }
0x18e1   :  { %v11330_v6 = vpop.eup %8742  ;;  %8762 = vpow2.f32 %v5284_v14 }
0x18e2   :  { %5313 = vperm.xlu1 %8348, %v11322_v34   ;;  %v11332_v27 = vpop.eup %8744  ;;  %8764 = vpow2.f32 %v5288_v3 }
0x18e3   :  { %5319 = vperm.xlu0 %8349, %v11324_v56   ;;  %v11337_v8 = vpop.eup %8746 }
0x18e4   :  { %v11339_v29 = vpop.eup %8748 }
0x18e5   :  { %v11344_v24 = vpop.eup %8750 }
0x18e6   :  { %5316 = vperm.xlu1 %8348, %v11330_v6   ;;  %v11346_v49 = vpop.eup %8752 }
0x18e7   :  { %5325 = vperm.xlu0 %8349, %v11332_v27   ;;  %v11350_v25 = vpop.eup %8754 }
0x18e8   :  { %v11352_v16 = vpop.eup %8756 }
0x18e9   :  { %v11356_v40 = vpop.eup %8758 }
0x18ea   :  { %5322 = vperm.xlu1 %8348, %v11337_v8   ;;  %v11358_v50 = vpop.eup %8760 }
0x18eb   :  { %5331 = vperm.xlu0 %8349, %v11339_v29   ;;  %v11362_v36 = vpop.eup %8762 }
0x18ec   :  { %v11365_v0 = vpop.eup %8764 }
0x18ee   :  { %5328 = vperm.xlu1 %8348, %v11344_v24  }
0x18ef   :  { %5337 = vperm.xlu0 %8349, %v11346_v49  }
0x18f2   :  { %5334 = vperm.xlu1 %8348, %v11350_v25  }
0x18f3   :  { %5343 = vperm.xlu0 %8349, %v11352_v16  }
0x18f6   :  { %5340 = vperm.xlu1 %8348, %v11356_v40  }
0x18f7   :  { %5349 = vperm.xlu0 %8349, %v11358_v50  }
0x18fa   :  { %5346 = vperm.xlu1 %8348, %v11362_v36  }
0x18fe   :  { %5352 = vperm.xlu1 %8348, %v11365_v0  }
0x1922   :  { %5655 = vadd.xlane.f32.xlu1 %v5654_v12 }
0x195d   :  { %v5308_v33 = vpop.permute.xlu1 %5307 }
0x195e   :  { %v5311_v46 = vpop.permute.xlu0 %5310  ;;  %v5357_v12 = vrot.slane %v5308_v33, %v12190_v45 }
0x195f   :  { %v5361_v59 = vrot.slane %v5311_v46, %v12189_v17 }
0x1961   :  { %v5314_v62 = vpop.permute.xlu1 %5313  ;;  %v5362_v33 = vsel %vm824_vm8, %v5361_v59, %v5357_v12 }
0x1962   :  { %v5320_v55 = vpop.permute.xlu0 %5319  ;;  %v5366_v21 = vrot.slane %v5314_v62, %v12190_v45 }
0x1963   :  { %v5375_v1 = vrot.slane %v5320_v55, %v12190_v45 }
0x1965   :  { %v5317_v39 = vpop.permute.xlu1 %5316 }
0x1966   :  { %v5326_v57 = vpop.permute.xlu0 %5325  ;;  %v5370_v20 = vrot.slane %v5317_v39, %v12189_v17 }
0x1967   :  { %v5384_v5 = vrot.slane %v5326_v57, %v12190_v45 }
0x1968   :  { %v5371_v39 = vsel %vm824_vm8, %v5370_v20, %v5366_v21 }
0x1969   :  { %v5323_v53 = vpop.permute.xlu1 %5322 }
0x196a   :  { %v5332_v18 = vpop.permute.xlu0 %5331  ;;  %v5379_v52 = vrot.slane %v5323_v53, %v12189_v17 }
0x196b   :  { %v5393_v37 = vrot.slane %v5332_v18, %v12190_v45 }
0x196c   :  { %v5380_v46 = vsel %vm824_vm8, %v5379_v52, %v5375_v1 }
0x196d   :  { %v5329_v61 = vpop.permute.xlu1 %5328 }
0x196e   :  { %v5338_v63 = vpop.permute.xlu0 %5337  ;;  %v5388_v41 = vrot.slane %v5329_v61, %v12189_v17 }
0x196f   :  { %v5402_v62 = vrot.slane %v5338_v63, %v12190_v45 }
0x1970   :  { %v5389_v61 = vsel %vm824_vm8, %v5388_v41, %v5384_v5 }
0x1971   :  { %v5335_v15 = vpop.permute.xlu1 %5334 }
0x1972   :  { %v5344_v14 = vpop.permute.xlu0 %5343  ;;  %v5397_v11 = vrot.slane %v5335_v15, %v12189_v17  ;;  %v5426_v15 = vsel %vm391_vm0, %v5371_v39, %v5362_v33 }
0x1973   :  { %v5411_v57 = vrot.slane %v5344_v14, %v12190_v45  ;;  %v5427_v18 = vsel %vm393_vm1, %v5380_v46, %v5426_v15 }
0x1974   :  { %v5398_v21 = vsel %vm824_vm8, %v5397_v11, %v5393_v37  ;;  %v5428_v52 = vsel %vm395_vm2, %v5389_v61, %v5427_v18 }
0x1975   :  { %v5341_v3 = vpop.permute.xlu1 %5340  ;;  %v5429_v5 = vsel %vm397_vm3, %v5398_v21, %v5428_v52 }
0x1976   :  { %v5406_v53 = vrot.slane %v5341_v3, %v12189_v17  ;;  %v5350_v20 = vpop.permute.xlu0 %5349 }
0x1978   :  { %v5407_v1 = vsel %vm824_vm8, %v5406_v53, %v5402_v62 }
0x1979   :  { %v5347_v54 = vpop.permute.xlu1 %5346  ;;  %v5430_v14 = vsel %vm399_vm4, %v5407_v1, %v5429_v5 }
0x197a   :  { %v5415_v55 = vrot.slane %v5347_v54, %v12189_v17  ;;  %v5420_v54 = vrot.slane %v5350_v20, %v12190_v45 }
0x197c   :  { %v5416_v3 = vsel %vm824_vm8, %v5415_v55, %v5411_v57 }
0x197d   :  { %v5353_v63 = vpop.permute.xlu1 %5352  ;;  %v5431_v11 = vsel %vm401_vm5, %v5416_v3, %v5430_v14 }
0x197e   :  { %v5424_v41 = vrot.slane %v5353_v63, %v12189_v17 }
0x1980   :  { %v5425_v37 = vsel %vm824_vm8, %v5424_v41, %v5420_v54 }
0x1981   :  { %v5432_v59 = vsel %vm403_vm6, %v5425_v37, %v5431_v11 }
0x1982   :  { %v5434_v12 = vsel %vm897_vm9, %v5432_v59, 0.0 }
0x1983   :  { %5435 = vadd.xlane.f32.xlu0 %v5434_v12 }
0x19af   :  { %v5656_v12 = vpop.xlane.xlu1 %5655 }
0x1a10   :  { %v5436_v39 = vpop.xlane.xlu0 %5435 }
0x1a11   :  { %v5441_v53 = vrot.slane %v5436_v39, %v12187_v9  ;;  %v5445_v46 = vrot.slane %v5436_v39, %v10016_v7  ;;  %v5449_v33 = vrot.slane %v5436_v39, %v12191_v47  ;;  %v5453_v62 = vrot.slane %v5436_v39, %v12192_v60 }
0x1a12   :  { %v5457_v55 = vrot.slane %v5436_v39, %v12193_v22  ;;  %v5461_v20 = vrot.slane %v5436_v39, %v12194_v44  ;;  %v5465_v3 = vrot.slane %v5436_v39, %v12195_v26  ;;  %v5469_v5 = vrot.slane %v5436_v39, %v12196_v32 }
0x1a13   :  { %8766 = vrcp.f32 %v5441_v53 }
0x1a14   :  { %8768 = vrcp.f32 %v5445_v46 }
0x1a15   :  { %8770 = vrcp.f32 %v5449_v33 }
0x1a16   :  { %8772 = vrcp.f32 %v5453_v62 }
0x1a17   :  { %8774 = vrcp.f32 %v5457_v55 }
0x1a18   :  { %8776 = vrcp.f32 %v5461_v20 }
0x1a19   :  { %8778 = vrcp.f32 %v5465_v3 }
0x1a1a   :  { %8780 = vrcp.f32 %v5469_v5 }
0x1a1d   :  { %v8767_v61 = vpop.eup %8766 }
0x1a1e   :  { %v5480_v15 = vmul.f32 %v8767_v61, %v11315_v48  ;;  %v5479_v57 = vmul.f32 %v8767_v61, %v11313_v43  ;;  %v8769_v21 = vpop.eup %8768 }
0x1a1f   :  { %v5483_v18 = vmul.f32 %v8769_v21, %v11330_v6  ;;  %v5482_v1 = vmul.f32 %v8769_v21, %v11322_v34  ;;  %v8771_v52 = vpop.eup %8770 }
0x1a20   :  { %5509 = vperm.xlu1 %8348, %v5480_v15   ;;  %5504 = vperm.xlu0 %8349, %v5479_v57   ;;  %v5486_v48 = vmul.f32 %v8771_v52, %v11337_v8  ;;  %v5485_v43 = vmul.f32 %v8771_v52, %v11324_v56  ;;  %v8773_v63 = vpop.eup %8772 }
0x1a21   :  { %v5489_v6 = vmul.f32 %v8773_v63, %v11344_v24  ;;  %v5488_v34 = vmul.f32 %v8773_v63, %v11332_v27  ;;  %v8775_v54 = vpop.eup %8774 }
0x1a22   :  { %v5492_v41 = vmul.f32 %v8775_v54, %v11350_v25  ;;  %v5491_v8 = vmul.f32 %v8775_v54, %v11339_v29  ;;  %v8777_v14 = vpop.eup %8776 }
0x1a23   :  { %v5495_v56 = vmul.f32 %v8777_v14, %v11356_v40  ;;  %v5494_v37 = vmul.f32 %v8777_v14, %v11346_v49  ;;  %v8779_v11 = vpop.eup %8778  ;;  %v9222_v40 = vld [vmem:[#allocation2] ss:$0 sm:$0xff] }
0x1a24   :  { %5519 = vperm.xlu1 %8348, %v5483_v18   ;;  %5514 = vperm.xlu0 %8349, %v5482_v1   ;;  %v5498_v27 = vmul.f32 %v8779_v11, %v11362_v36  ;;  %v5497_v24 = vmul.f32 %v8779_v11, %v11352_v16  ;;  %v8781_v59 = vpop.eup %8780  ;;  %v5657_v39 = vadd.f32 %v9222_v40, %v5656_v12 }
0x1a25   :  { %v5501_v25 = vmul.f32 %v8781_v59, %v11365_v0  ;;  %v5500_v29 = vmul.f32 %v8781_v59, %v11358_v50 }
0x1a28   :  { %5529 = vperm.xlu1 %8348, %v5486_v48   ;;  %5524 = vperm.xlu0 %8349, %v5485_v43  }
0x1a2c   :  { %5539 = vperm.xlu1 %8348, %v5489_v6   ;;  %5534 = vperm.xlu0 %8349, %v5488_v34  }
0x1a30   :  { %5549 = vperm.xlu1 %8348, %v5492_v41   ;;  %5544 = vperm.xlu0 %8349, %v5491_v8  }
0x1a34   :  { %5559 = vperm.xlu1 %8348, %v5495_v56   ;;  %5554 = vperm.xlu0 %8349, %v5494_v37  }
0x1a38   :  { %5569 = vperm.xlu1 %8348, %v5498_v27   ;;  %5564 = vperm.xlu0 %8349, %v5497_v24  }
0x1a3c   :  { %5579 = vperm.xlu1 %8348, %v5501_v25   ;;  %5574 = vperm.xlu0 %8349, %v5500_v29  }
0x1a40   :  { %5660 = vperm.xlu0 %8349, %v5657_v39  }
0x1a9f   :  { %v5505_v49 = vpop.permute.xlu0 %5504  ;;  %v5510_v53 = vpop.permute.xlu1 %5509 }
0x1aa0   :  { %v5582_v62 = vmul.f32 %v12200_v19, %v5505_v49  ;;  %v5583_v0 = vmul.f32 %v12201_v13, %v5510_v53 }
0x1aa2   :  { %v5598_v21 = vadd.f32 %v5583_v0, %v5582_v62 }
0x1aa3   :  { %v5515_v46 = vpop.permute.xlu0 %5514  ;;  %v5520_v33 = vpop.permute.xlu1 %5519 }
0x1aa4   :  { %v5584_v36 = vmul.f32 %v12198_v10, %v5515_v46  ;;  %v5585_v16 = vmul.f32 %v12199_v38, %v5520_v33  ;;  %v5599_v43 = vrot.slane %v5598_v21, 4 }
0x1aa6   :  { %v5605_v57 = vadd.f32 %v5585_v16, %v5584_v36  ;;  %v5600_v37 = vadd.f32 %v5599_v43, %v5598_v21 }
0x1aa7   :  { %v5525_v61 = vpop.permute.xlu0 %5524  ;;  %v5530_v50 = vpop.permute.xlu1 %5529 }
0x1aa8   :  { %v5586_v55 = vmul.f32 %v12202_v23, %v5525_v61  ;;  %v5587_v15 = vmul.f32 %v12203_v42, %v5530_v50  ;;  %v5606_v48 = vrot.slane %v5605_v57, 4  ;;  %v5601_v49 = vrot.slane %v5600_v37, 2 }
0x1aaa   :  { %v5612_v20 = vadd.f32 %v5587_v15, %v5586_v55  ;;  %v5607_v14 = vadd.f32 %v5606_v48, %v5605_v57  ;;  %v5602_v57 = vadd.f32 %v5601_v49, %v5600_v37  ;;  %v12236_v48 = vld [vmem:[#allocation35_spill] sm:$0xff] }
0x1aab   :  { %v5535_v18 = vpop.permute.xlu0 %5534  ;;  %v5540_v1 = vpop.permute.xlu1 %5539 }
0x1aac   :  { %v5588_v52 = vmul.f32 %v12204_v31, %v5535_v18  ;;  %v5589_v3 = vmul.f32 %v12205_v51, %v5540_v1  ;;  %v5613_v63 = vrot.slane %v5612_v20, 4  ;;  %v5608_v40 = vrot.slane %v5607_v14, 2 }
0x1aae   :  { %v5619_v5 = vadd.f32 %v5589_v3, %v5588_v52  ;;  %v5614_v11 = vadd.f32 %v5613_v63, %v5612_v20  ;;  %v5609_v55 = vadd.f32 %v5608_v40, %v5607_v14  ;;  %v12237_v63 = vld [vmem:[#allocation36_spill] sm:$0xff]  ;;  %v5603_v14 = vrot.slane %v5602_v57, 1 }
0x1aaf   :  { %v5545_v6 = vpop.permute.xlu0 %5544  ;;  %v5550_v34 = vpop.permute.xlu1 %5549 }
0x1ab0   :  { %v5590_v54 = vmul.f32 %v12206_v2, %v5545_v6  ;;  %v5591_v41 = vmul.f32 %v12207_v35, %v5550_v34  ;;  %v5620_v8 = vrot.slane %v5619_v5, 4  ;;  %v5615_v53 = vrot.slane %v5614_v11, 2 }
0x1ab2   :  { %v5626_v56 = vadd.f32 %v5591_v41, %v5590_v54  ;;  %v5621_v59 = vadd.f32 %v5620_v8, %v5619_v5  ;;  %v5616_v21 = vadd.f32 %v5615_v53, %v5614_v11  ;;  %v5610_v54 = vrot.slane %v5609_v55, 1 }
0x1ab3   :  { %v5555_v27 = vpop.permute.xlu0 %5554  ;;  %v5560_v24 = vpop.permute.xlu1 %5559  ;;  %v5604_v53 = vadd.f32 %v5603_v14, %v5602_v57  ;;  %v9230_v14 = vld [vmem:[#allocation14 + $0x4c] ss:$16 sps:$4 sm:$0xff]  }
0x1ab4   :  { %v5627_v25 = vrot.slane %v5626_v56, 4  ;;  %v5592_v29 = vmul.f32 %v12208_v30, %v5555_v27  ;;  %v5593_v12 = vmul.f32 %v12209_v28, %v5560_v24  ;;  %v5622_v16 = vrot.slane %v5621_v59, 2 }
0x1ab6   :  { %v5628_v39 = vadd.f32 %v5627_v25, %v5626_v56  ;;  %v5633_v46 = vadd.f32 %v5593_v12, %v5592_v29  ;;  %v5623_v52 = vadd.f32 %v5622_v16, %v5621_v59  ;;  %v5617_v56 = vrot.slane %v5616_v21, 1 }
0x1ab7   :  { %v5565_v33 = vpop.permute.xlu0 %5564  ;;  %v5570_v36 = vpop.permute.xlu1 %5569  ;;  %v5611_v29 = vadd.f32 %v5610_v54, %v5609_v55  ;;  %v9226_v54 = vld [vmem:[#allocation14 + $0x2c] ss:$16 sps:$4 sm:$0xff]  }
0x1ab8   :  { %v5594_v62 = vmul.f32 %v12210_v4, %v5565_v33  ;;  %v5595_v0 = vmul.f32 %v12214_v58, %v5570_v36  ;;  %v5629_v61 = vrot.slane %v5628_v39, 2  ;;  %v5634_v50 = vrot.slane %v5633_v46, 4 }
0x1ab9   :  { %v5624_v24 = vrot.slane %v5623_v52, 1  ;;  %v5618_v49 = vadd.f32 %v5617_v56, %v5616_v21  ;;  %v5671_v16 = vsel %vm391_vm0, %v5611_v29, %v5604_v53  ;;  %v9228_v56 = vld [vmem:[#allocation14 + $0x28] ss:$16 sps:$4 sm:$0xff]   ;;  %v9235_v29 = vld [vmem:[#allocation14 + $0x60] ss:$16 sps:$4 sm:$0xff]  }
0x1aba   :  { %v5640_v15 = vadd.f32 %v5595_v0, %v5594_v62  ;;  %v5635_v20 = vadd.f32 %v5634_v50, %v5633_v46  ;;  %v5630_v6 = vadd.f32 %v5629_v61, %v5628_v39  ;;  %v9240_v53 = vld [vmem:[#allocation14 + $0x88] ss:$16 sps:$4 sm:$0xff]  }
0x1abb   :  { %v5575_v18 = vpop.permute.xlu0 %5574  ;;  %v5580_v1 = vpop.permute.xlu1 %5579  ;;  %v5625_v46 = vadd.f32 %v5624_v24, %v5623_v52  ;;  %v5672_v50 = vsel %vm393_vm1, %v5618_v49, %v5671_v16  ;;  %v9231_v24 = vld [vmem:[#allocation14 + $0x40] ss:$16 sps:$4 sm:$0xff]   ;;  %v9245_v16 = vld [vmem:[#allocation14 + $0xc4] ss:$16 sps:$4 sm:$0xff]  }
0x1abc   :  { %v5641_v3 = vrot.slane %v5640_v15, 4  ;;  %v5596_v43 = vmul.f32 %v12236_v48, %v5575_v18  ;;  %v5597_v5 = vmul.f32 %v12237_v63, %v5580_v1  ;;  %v5636_v34 = vrot.slane %v5635_v20, 2  ;;  %v9239_v49 = vld [vmem:[#allocation14 + $0x80] ss:$16 sps:$4 sm:$0xff]  }
0x1abd   :  { %v5631_v25 = vrot.slane %v5630_v6, 1 }
0x1abe   :  { %v5642_v41 = vadd.f32 %v5641_v3, %v5640_v15  ;;  %v5647_v8 = vadd.f32 %v5597_v5, %v5596_v43  ;;  %v5637_v27 = vadd.f32 %v5636_v34, %v5635_v20  ;;  %v5673_v20 = vsel %vm395_vm2, %v5625_v46, %v5672_v50  ;;  %v9223_v5 = vld [vmem:[#allocation14] ss:$16 sps:$4 sm:$0xff]   ;;  %v9225_v34 = vld [vmem:[#allocation14 + $0x24] ss:$16 sps:$4 sm:$0xff]  }
0x1abf   :  { %v5632_v36 = vadd.f32 %v5631_v25, %v5630_v6  ;;  %v5661_v1 = vpop.permute.xlu0 %5660  ;;  %v9224_v6 = vld [vmem:[#allocation14 + $0x8] ss:$16 sps:$4 sm:$0xff]   ;;  %v9234_v25 = vld [vmem:[#allocation14 + $0x6c] ss:$16 sps:$4 sm:$0xff]   ;;  %v9241_v46 = vld [vmem:[#allocation14 + $0xa4] ss:$16 sps:$4 sm:$0xff]  }
0x1ac0   :  { %v5643_v37 = vrot.slane %v5642_v41, 2  ;;  %v5648_v11 = vrot.slane %v5647_v8, 4  ;;  %v5638_v12 = vrot.slane %v5637_v27, 1  ;;  %v9249_v50 = vld [vmem:[#allocation14 + $0xe4] ss:$16 sps:$4 sm:$0xff]  }
0x1ac1   :  { %v5674_v55 = vsel %vm397_vm3, %v5632_v36, %v5673_v20  ;;  %v9244_v36 = vld [vmem:[#allocation14 + $0xa8] ss:$16 sps:$4 sm:$0xff]   ;;  %v9251_v20 = vld [vmem:[#allocation14 + $0xe0] ss:$16 sps:$4 sm:$0xff]  }
0x1ac2   :  { %v5644_v59 = vadd.f32 %v5643_v37, %v5642_v41  ;;  %v5649_v40 = vadd.f32 %v5648_v11, %v5647_v8  ;;  %v5639_v62 = vadd.f32 %v5638_v12, %v5637_v27  ;;  %v12238_v41 = vmov 0   ;;  %v9227_v8 = vld [vmem:[#allocation14 + $0x20] ss:$16 sps:$4 sm:$0xff]   ;;  %v9229_v27 = vld [vmem:[#allocation14 + $0x44] ss:$16 sps:$4 sm:$0xff]  }
0x1ac3   :  { %v9232_v37 = vld [vmem:[#allocation14 + $0x48] ss:$16 sps:$4 sm:$0xff]   ;;  %v9233_v11 = vld [vmem:[#allocation14 + $0x64] ss:$16 sps:$4 sm:$0xff]  }
0x1ac4   :  { %v5645_v33 = vrot.slane %v5644_v59, 1  ;;  %v5650_v39 = vrot.slane %v5649_v40, 2  ;;  %v5675_v21 = vsel %vm399_vm4, %v5639_v62, %v5674_v55  ;;  %v9236_v12 = vld [vmem:[#allocation14 + $0x68] ss:$16 sps:$4 sm:$0xff]   ;;  %v9246_v62 = vld [vmem:[#allocation14 + $0xcc] ss:$16 sps:$4 sm:$0xff]  }
0x1ac5   :  { %v9252_v55 = vld [vmem:[#allocation14 + $0xe8] ss:$16 sps:$4 sm:$0xff]  }
0x1ac6   :  { %v5651_v0 = vadd.f32 %v5650_v39, %v5649_v40  ;;  %v5646_v61 = vadd.f32 %v5645_v33, %v5644_v59  ;;  %v9237_v59 = vld [vmem:[#allocation14 + $0x84] ss:$16 sps:$4 sm:$0xff]   ;;  %v9238_v40 = vld [vmem:[#allocation14 + $0x8c] ss:$16 sps:$4 sm:$0xff]   ;;  %v9243_v39 = vld [vmem:[#allocation14 + $0xa0] ss:$16 sps:$4 sm:$0xff]  }
0x1ac7   :  { %v9242_v33 = vld [vmem:[#allocation14 + $0xac] ss:$16 sps:$4 sm:$0xff]  }
0x1ac8   :  { %v5652_v15 = vrot.slane %v5651_v0, 1  ;;  %v5676_v57 = vsel %vm401_vm5, %v5646_v61, %v5675_v21  ;;  %v9248_v61 = vld [vmem:[#allocation14 + $0xc8] ss:$16 sps:$4 sm:$0xff]   ;;  %v9253_v21 = vld [vmem:[#allocation12 + $0x4] ss:$16 sps:$4 sm:$0xff]  }
0x1aca   :  { %v5653_v18 = vadd.f32 %v5652_v15, %v5651_v0  ;;  %v9247_v0 = vld [vmem:[#allocation14 + $0xc0] ss:$16 sps:$4 sm:$0xff]   ;;  %v9250_v15 = vld [vmem:[#allocation14 + $0xec] ss:$16 sps:$4 sm:$0xff]  }
0x1acc   :  { %v5677_v52 = vsel %vm403_vm6, %v5653_v18, %v5676_v57  ;;  %v12239_v18 = vmov 0.0   ;;  %v12240_v57 = vld [vmem:[#allocation54_spill] sm:$0xff] }
0x1acd   :  { %v5679_v3 = vmul.f32 %v5677_v52, %v5661_v1  ;;  %v9254_v1 = vld [vmem:[#allocation11] sm:$0xff]  }
0x1ace   :  { %v9255_v52 = vld [vmem:[#allocation12] ss:$16 sps:$4 sm:$0xff]  }
0x1acf   :  { %v5685_v43 = vpack.c.bf16 %v5679_v3, %v5679_v3  ;;  %v9256_v3 = vld [vmem:[#allocation12 + $0x24] ss:$16 sps:$4 sm:$0xff]  }
0x1ad1   :  { %5719 = vmatmul.mubr.bf16.vlgmr.msra.gmra.mrb[28].mxu0 %v5685_v43  ;;  %5760 = vmatmul.mubr.bf16.vlgmr.msra.gmra.mrb[28].mxu1 %v5685_v43  ;;  %v9257_v43 = vld [vmem:[#allocation11 + $0x8] sm:$0xff]  }
0x1ad2   :  { %5773 = vmatpush1.bf16.msra.mxu0 %v9223_v5  ;;  %5814 = vmatpush1.bf16.msra.mxu1 %v9224_v6  ;;  %v9258_v5 = vld [vmem:[#allocation12 + $0x20] ss:$16 sps:$4 sm:$0xff]   ;;  %v9259_v6 = vld [vmem:[#allocation12 + $0x44] ss:$16 sps:$4 sm:$0xff]  }
0x1ad3   :  { %5774 = vmatprep.subr.bf16.mxu0 %v9225_v34  ;;  %5815 = vmatprep.subr.bf16.mxu1 %v9226_v54  ;;  %v9260_v34 = vld [vmem:[#allocation11 + $0x10] sm:$0xff]  }
0x1ad4   :  { %5804 = vmatprep.mubr.bf16.mxu0 %v12238_v41  ;;  %5845 = vmatprep.mubr.bf16.mxu1 %v12238_v41  ;;  %v9261_v54 = vld [vmem:[#allocation12 + $0x40] ss:$16 sps:$4 sm:$0xff]  }
0x1ad6   :  { %5775 = vmatpush1.bf16.msra.mxu0 %v9227_v8  ;;  %5816 = vmatpush1.bf16.msra.mxu1 %v9228_v56  ;;  %v9262_v8 = vld [vmem:[#allocation12 + $0x64] ss:$16 sps:$4 sm:$0xff]   ;;  %v9263_v56 = vld [vmem:[#allocation11 + $0x18] sm:$0xff]  }
0x1ad7   :  { %5776 = vmatprep.subr.bf16.mxu0 %v9229_v27  ;;  %5817 = vmatprep.subr.bf16.mxu1 %v9230_v14  ;;  %v9264_v27 = vld [vmem:[#allocation12 + $0x60] ss:$16 sps:$4 sm:$0xff]   ;;  %v9265_v14 = vld [vmem:[#allocation12 + $0x84] ss:$16 sps:$4 sm:$0xff]  }
0x1ada   :  { %5777 = vmatpush1.bf16.msra.mxu0 %v9231_v24  ;;  %5818 = vmatpush1.bf16.msra.mxu1 %v9232_v37  ;;  %v9266_v24 = vld [vmem:[#allocation11 + $0x20] sm:$0xff]  }
0x1adb   :  { %5778 = vmatprep.subr.bf16.mxu0 %v9233_v11  ;;  %5819 = vmatprep.subr.bf16.mxu1 %v9234_v25  ;;  %v9267_v37 = vld [vmem:[#allocation12 + $0x80] ss:$16 sps:$4 sm:$0xff]   ;;  %v9268_v11 = vld [vmem:[#allocation12 + $0xa4] ss:$16 sps:$4 sm:$0xff]   ;;  %v9269_v25 = vld [vmem:[#allocation11 + $0x28] sm:$0xff]  }
0x1ade   :  { %5779 = vmatpush1.bf16.msra.mxu0 %v9235_v29  ;;  %5820 = vmatpush1.bf16.msra.mxu1 %v9236_v12  ;;  %v9270_v29 = vld [vmem:[#allocation12 + $0xa0] ss:$16 sps:$4 sm:$0xff]   ;;  %v9271_v12 = vld [vmem:[#allocation12 + $0xc4] ss:$16 sps:$4 sm:$0xff]  }
0x1adf   :  { %5780 = vmatprep.subr.bf16.mxu0 %v9237_v59  ;;  %5821 = vmatprep.subr.bf16.mxu1 %v9238_v40  ;;  %v9272_v59 = vld [vmem:[#allocation11 + $0x30] sm:$0xff]  }
0x1ae0   :  { %v9273_v40 = vld [vmem:[#allocation12 + $0xc0] ss:$16 sps:$4 sm:$0xff]  }
0x1ae2   :  { %5781 = vmatpush1.bf16.msra.mxu0 %v9239_v49  ;;  %5822 = vmatpush1.bf16.msra.mxu1 %v9240_v53  ;;  %v9274_v49 = vld [vmem:[#allocation12 + $0xe4] ss:$16 sps:$4 sm:$0xff]   ;;  %v9275_v53 = vld [vmem:[#allocation11 + $0x38] sm:$0xff]  }
0x1ae3   :  { %5782 = vmatprep.subr.bf16.mxu0 %v9241_v46  ;;  %5823 = vmatprep.subr.bf16.mxu1 %v9242_v33  ;;  %v9276_v46 = vld [vmem:[#allocation12 + $0xc] ss:$16 sps:$4 sm:$0xff]   ;;  %v9277_v33 = vld [vmem:[#allocation12 + $0xe0] ss:$16 sps:$4 sm:$0xff]  }
0x1ae6   :  { %5783 = vmatpush1.bf16.msra.mxu0 %v9243_v39  ;;  %5824 = vmatpush1.bf16.msra.mxu1 %v9244_v36  ;;  %v9278_v39 = vld [vmem:[#allocation14 + $0x4] ss:$16 sps:$4 sm:$0xff]  }
0x1ae7   :  { %5784 = vmatprep.subr.bf16.mxu0 %v9245_v16  ;;  %5825 = vmatprep.subr.bf16.mxu1 %v9246_v62  ;;  %v5681_v36 = vld [vmem:[#allocation8 + $0x80] sm:$0xff]  ;;  %v5682_v16 = vld [vmem:[#allocation8 + $0x88] sm:$0xff] }
0x1aea   :  { %5785 = vmatpush1.bf16.msra.mxu0 %v9247_v0  ;;  %5826 = vmatpush1.bf16.msra.mxu1 %v9248_v61 }
0x1aeb   :  { %5786 = vmatprep.subr.bf16.mxu0 %v9249_v50  ;;  %5827 = vmatprep.subr.bf16.mxu1 %v9250_v15 }
0x1aee   :  { %5787 = vmatpush1.bf16.msra.mxu0 %v9251_v20  ;;  %5828 = vmatpush1.bf16.msra.mxu1 %v9252_v55 }
0x1aef   :  { %8204 = vmatprep.subr.bf16.mxu0 %v12239_v18  ;;  %6679 = vmatprep.subr.bf16.mxu1 %v9253_v21 }
0x1af1   :  { %5805 = vmatmul.mubr.bf16.vlgmr.msra.gmra.mrb[28].mxu0 %v12240_v57  ;;  %5846 = vmatmul.mubr.bf16.vlgmr.msra.gmra.mrb[28].mxu1 %v12240_v57 }
0x1af2   :  { %8205 = vmatpush3.bf16.msra.mxu0 %v9254_v1  ;;  %8220 = vmatprep.mubr.msk.bf16.mxu0 %vm9636_vm7, %v12239_v18 }
0x1af3   :  { %8206 = vmatprep.subr.bf16.mxu0 %v12239_v18  ;;  %6680 = vmatpush1.bf16.msra.mxu1 %v9255_v52 }
0x1af4   :  { %6681 = vmatprep.subr.bf16.mxu1 %v9256_v3  ;;  %6711 = vmatprep.mubr.bf16.mxu1 %v12238_v41 }
0x1af6   :  { %8207 = vmatpush3.bf16.msra.mxu0 %v9257_v43  ;;  %v5684_v43 = vld [vmem:[#allocation8 + $0x98] sm:$0xff] }
0x1af7   :  { %8208 = vmatprep.subr.bf16.mxu0 %v12239_v18  ;;  %6682 = vmatpush1.bf16.msra.mxu1 %v9258_v5 }
0x1af8   :  { %6683 = vmatprep.subr.bf16.mxu1 %v9259_v6  ;;  %v5683_v6 = vld [vmem:[#allocation8 + $0x90] sm:$0xff] }
0x1afa   :  { %8209 = vmatpush3.bf16.msra.mxu0 %v9260_v34 }
0x1afb   :  { %8210 = vmatprep.subr.bf16.mxu0 %v12239_v18  ;;  %6684 = vmatpush1.bf16.msra.mxu1 %v9261_v54 }
0x1afc   :  { %6685 = vmatprep.subr.bf16.mxu1 %v9262_v8 }
0x1afe   :  { %8211 = vmatpush3.bf16.msra.mxu0 %v9263_v56 }
0x1aff   :  { %8212 = vmatprep.subr.bf16.mxu0 %v12239_v18  ;;  %6686 = vmatpush1.bf16.msra.mxu1 %v9264_v27 }
0x1b00   :  { %6687 = vmatprep.subr.bf16.mxu1 %v9265_v14 }
0x1b02   :  { %8213 = vmatpush3.bf16.msra.mxu0 %v9266_v24 }
0x1b03   :  { %8214 = vmatprep.subr.bf16.mxu0 %v12239_v18  ;;  %6688 = vmatpush1.bf16.msra.mxu1 %v9267_v37 }
0x1b04   :  { %6689 = vmatprep.subr.bf16.mxu1 %v9268_v11 }
0x1b06   :  { %8215 = vmatpush3.bf16.msra.mxu0 %v9269_v25 }
0x1b07   :  { %8216 = vmatprep.subr.bf16.mxu0 %v12239_v18  ;;  %6690 = vmatpush1.bf16.msra.mxu1 %v9270_v29 }
0x1b08   :  { %6691 = vmatprep.subr.bf16.mxu1 %v9271_v12 }
0x1b0a   :  { %8217 = vmatpush3.bf16.msra.mxu0 %v9272_v59  ;;  %v12241_v59 = vld [vmem:[#allocation53_spill] sm:$0xff] }
0x1b0b   :  { %8218 = vmatprep.subr.bf16.mxu0 %v12239_v18  ;;  %6692 = vmatpush1.bf16.msra.mxu1 %v9273_v40 }
0x1b0c   :  { %6693 = vmatprep.subr.bf16.mxu1 %v9274_v49 }
0x1b0e   :  { %8219 = vmatpush3.bf16.msra.mxu0 %v9275_v53 }
0x1b0f   :  { %6720 = vmatprep.subr.bf16.mxu0 %v9276_v46  ;;  %6694 = vmatpush1.bf16.msra.mxu1 %v9277_v33 }
0x1b10   :  { %6765 = vmatprep.subr.bf16.mxu1 %v9278_v39 }
0x1bc4   :  { %v5806_v62 = vpop.f32.mrb[28].mxu0  ;;  %v5847_v0 = vpop.f32.mrb[28].mxu1 }
0x1bc5   :  { %v8260_v61 = vadd.f32 %v5806_v62, %v5681_v36  ;;  %v5808_v50 = vpop.f32.mrb[29].mxu0  ;;  %v5849_v15 = vpop.f32.mrb[29].mxu1  ;;  %v8262_v54 = vadd.f32 %v5847_v0, %v5683_v6  ;;  %v9279_v36 = vld [vmem:[#allocation12 + $0x8] ss:$16 sps:$4 sm:$0xff]   ;;  %v9282_v0 = vld [vmem:[#allocation12 + $0x4c] ss:$16 sps:$4 sm:$0xff]  }
0x1bc6   :  { %v8261_v20 = vadd.f32 %v5808_v50, %v5682_v16  ;;  %v5810_v55 = vpop.f32.mrb[30].mxu0  ;;  %v5851_v21 = vpop.f32.mrb[30].mxu1  ;;  %v8263_v5 = vadd.f32 %v5849_v15, %v5684_v43  ;;  %v9280_v16 = vld [vmem:[#allocation12 + $0x2c] ss:$16 sps:$4 sm:$0xff]   ;;  %v9281_v62 = vld [vmem:[#allocation12 + $0x28] ss:$16 sps:$4 sm:$0xff]  }
0x1bc7   :  { %v7993_v57 = vmul.f32 -1.442695, %v8260_v61  ;;  %v5811_v1 = vpop.f32.mrb[31].mxu0  ;;  %v5852_v52 = vpop.f32.mrb[31].mxu1  ;;  %v9283_v61 = vld [vmem:[#allocation12 + $0x48] ss:$16 sps:$4 sm:$0xff]  }
0x1bc8   :  { %v7994_v3 = vmul.f32 -1.442695, %v8261_v20  ;;  %v7995_v34 = vmul.f32 -1.442695, %v8263_v5  ;;  %v9284_v50 = vld [vmem:[#allocation12 + $0x6c] ss:$16 sps:$4 sm:$0xff]  }
0x1bc9   :  { %8782 = vpow2.f32 %v7993_v57  ;;  %v9285_v15 = vld [vmem:[#allocation12 + $0x68] ss:$16 sps:$4 sm:$0xff]   ;;  %v9286_v20 = vld [vmem:[#allocation12 + $0x8c] ss:$16 sps:$4 sm:$0xff]  }
0x1bca   :  { %8784 = vpow2.f32 %v7994_v3  ;;  %v9287_v55 = vld [vmem:[#allocation12 + $0x88] ss:$16 sps:$4 sm:$0xff]   ;;  %v9288_v21 = vld [vmem:[#allocation12 + $0xac] ss:$16 sps:$4 sm:$0xff]  }
0x1bcb   :  { %8786 = vpow2.f32 %v7995_v34  ;;  %v9289_v57 = vld [vmem:[#allocation12 + $0xa8] ss:$16 sps:$4 sm:$0xff]   ;;  %v9290_v1 = vld [vmem:[#allocation12 + $0xcc] ss:$16 sps:$4 sm:$0xff]  }
0x1bcc   :  { %8788 = vtanh.f32 %v8262_v54  ;;  %v9291_v52 = vld [vmem:[#allocation12 + $0xc8] ss:$16 sps:$4 sm:$0xff]   ;;  %v9292_v3 = vld [vmem:[#allocation12 + $0xec] ss:$16 sps:$4 sm:$0xff]  }
0x1bcd   :  { %v9293_v43 = vld [vmem:[#allocation12 + $0xe8] ss:$16 sps:$4 sm:$0xff]   ;;  %v9294_v5 = vld [vmem:[#allocation14 + $0xc] ss:$16 sps:$4 sm:$0xff]  }
0x1bce   :  { %v9295_v34 = vld [vmem:[%s12031_s6] ss:$0 sm:$0xff] }
0x1bd3   :  { %v8783_v8 = vpop.eup %8782 }
0x1bd4   :  { %v8785_v56 = vpop.eup %8784  ;;  %v5861_v27 = vadd.f32 1.0, %v8783_v8 }
0x1bd5   :  { %v5867_v14 = vadd.f32 1.0, %v8785_v56  ;;  %v8787_v24 = vpop.eup %8786 }
0x1bd6   :  { %8790 = vrcp.f32 %v5861_v27  ;;  %v8789_v37 = vpop.eup %8788  ;;  %v5874_v12 = vadd.f32 1.0, %v8787_v24 }
0x1bd7   :  { %8792 = vrcp.f32 %v5867_v14  ;;  %v12244_v14 = vld [vmem:[#allocation40_spill] sm:$0xff] }
0x1bd8   :  { %8794 = vrcp.f32 %v5874_v12 }
0x1be0   :  { %v8791_v11 = vpop.eup %8790 }
0x1be1   :  { %v8793_v25 = vpop.eup %8792  ;;  %v5878_v29 = vmul.f32 %v8791_v11, %v8789_v37 }
0x1be2   :  { %v5877_v40 = vmul.f32 %v8793_v25, %v12241_v59  ;;  %v8795_v53 = vpop.eup %8794 }
0x1be4   :  { %v11465_v49 = vadd.f32 %v5878_v29, %v5877_v40 }
0x1be6   :  { %12242 = vst [vmem:[#allocation55_spill] sm:$0xff] %v11465_v49  ;;  %8796 = vtanh.f32 %v11465_v49 }
0x1bf0   :  { %v8797_v46 = vpop.eup %8796 }
0x1bf1   :  { %v11468_v33 = vmul.f32 %v8797_v46, %v8795_v53 }
0x1bf3   :  { %v11472_v39 = vpack.c.bf16 %v11468_v33, %v11468_v33 }
0x1bf5   :  { %12243 = vst [vmem:[#allocation37_spill] sm:$0xff] %v11472_v39  ;;  %5884 = vst [vmem:[#allocation15 + $0x10] sm:$0xf] %v11472_v39  ;;  %8221 = vmatmul.mubr.bf16.vlgmr.msra.gmra.mrb[32].mxu0 %v11472_v39 }
0x1bf6   :  { %6721 = vmatpush1.bf16.msra.mxu0 %v9279_v36  ;;  %6752 = vmatprep.mubr.bf16.mxu0 %v12238_v41  ;;  %v9296_v36 = vld [vmem:[#allocation6 + $0x8] sm:$0xff] }
0x1bf7   :  { %6722 = vmatprep.subr.bf16.mxu0 %v9280_v16 }
0x1bfa   :  { %6723 = vmatpush1.bf16.msra.mxu0 %v9281_v62  ;;  %v9297_v62 = vld [vmem:[#allocation6] sm:$0xff] }
0x1bfb   :  { %6724 = vmatprep.subr.bf16.mxu0 %v9282_v0 }
0x1bfe   :  { %6725 = vmatpush1.bf16.msra.mxu0 %v9283_v61 }
0x1bff   :  { %6726 = vmatprep.subr.bf16.mxu0 %v9284_v50  ;;  %v9298_v50 = vld [vmem:[#allocation6 + $0x18] sm:$0xff] }
0x1c02   :  { %6727 = vmatpush1.bf16.msra.mxu0 %v9285_v15 }
0x1c03   :  { %6728 = vmatprep.subr.bf16.mxu0 %v9286_v20  ;;  %v9299_v20 = vld [vmem:[#allocation6 + $0x10] sm:$0xff] }
0x1c06   :  { %6729 = vmatpush1.bf16.msra.mxu0 %v9287_v55 }
0x1c07   :  { %6730 = vmatprep.subr.bf16.mxu0 %v9288_v21 }
0x1c0a   :  { %6731 = vmatpush1.bf16.msra.mxu0 %v9289_v57 }
0x1c0b   :  { %6732 = vmatprep.subr.bf16.mxu0 %v9290_v1 }
0x1c0e   :  { %6733 = vmatpush1.bf16.msra.mxu0 %v9291_v52 }
0x1c0f   :  { %6734 = vmatprep.subr.bf16.mxu0 %v9292_v3  ;;  %v9300_v3 = vld [vmem:[#allocation6 + $0x28] sm:$0xff] }
0x1c12   :  { %6735 = vmatpush1.bf16.msra.mxu0 %v9293_v43 }
0x1c13   :  { %6806 = vmatprep.subr.bf16.mxu0 %v9294_v5  ;;  %v9301_v5 = vld [vmem:[#allocation6 + $0x20] sm:$0xff] }
0x1cc8   :  { %v5919_v6 = vpop.f32.mrb[32].mxu0 }
0x1cc9   :  { %v5920_v54 = vadd.f32 %v9295_v34, %v5919_v6  ;;  %v8222_v8 = vpop.f32.mrb[33].mxu0 }
0x1cca   :  { %v5922_v56 = vpop.f32.mrb[34].mxu0 }
0x1ccb   :  { %v5926_v27 = vcombine.high %v5920_v54, %v5920_v54  ;;  %v5933_v24 = vrot.slane %v5920_v54, %v12244_v14  ;;  %v8223_v37 = vpop.f32.mrb[35].mxu0  ;;  %v12245_v54 = vld [vmem:[#allocation41_spill] sm:$0xff] }
0x1ccd   :  { %v5940_v11 = vrot.slane %v5926_v27, %v12244_v14  ;;  %v5941_v25 = vcombine.high %v5933_v24, %v5933_v24  ;;  %v5949_v29 = vrot.slane %v5933_v24, %v12244_v14 }
0x1ccf   :  { %v5963_v12 = vrot.slane %v5941_v25, %v12244_v14  ;;  %v5971_v59 = vcombine.high %v5949_v29, %v5949_v29  ;;  %v5978_v40 = vrot.slane %v5949_v29, %v12187_v9  ;;  %v5956_v53 = vrot.slane %v5940_v11, %v12244_v14  ;;  %v9303_v29 = vld [vmem:[#allocation6 + $0x40] sm:$0xff] }
0x1cd0   :  { %v5942_v21 = vcombine.high %v5940_v11, %v5940_v11  ;;  %v9302_v11 = vld [vmem:[#allocation6 + $0x48] sm:$0xff] }
0x1cd1   :  { %v5982_v46 = vrot.slane %v5963_v12, %v12187_v9  ;;  %v6016_v16 = vadd.f32 %v9296_v36, %v5978_v40  ;;  %v6015_v0 = vadd.f32 %v9297_v62, %v5978_v40  ;;  %v5986_v61 = vrot.slane %v5971_v59, %v12187_v9 }
0x1cd2   :  { %v5973_v52 = vcombine.high %v5963_v12, %v5963_v12  ;;  %v5994_v34 = vrot.slane %v5956_v53, %v12187_v9  ;;  %v5970_v37 = vrot.slane %v5942_v21, %v12244_v14  ;;  %v5972_v62 = vcombine.high %v5956_v53, %v5956_v53  ;;  %v9307_v53 = vld [vmem:[#allocation6 + $0x50] sm:$0xff] }
0x1cd3   :  { %v6018_v15 = vadd.f32 %v9298_v50, %v5982_v46  ;;  %v6017_v55 = vadd.f32 %v9299_v20, %v5982_v46  ;;  %v6032_v57 = vmax.f32 %v6016_v16, 0.0  ;;  %v6031_v1 = vmax.f32 %v6015_v0, 0.0 }
0x1cd4   :  { %v6020_v43 = vadd.f32 %v9300_v3, %v5986_v61  ;;  %v6019_v6 = vadd.f32 %v9301_v5, %v5986_v61  ;;  %v6024_v25 = vadd.f32 %v9302_v11, %v5994_v34  ;;  %v6023_v12 = vadd.f32 %v9303_v29, %v5994_v34  ;;  %v9304_v61 = vld [vmem:[#allocation6 + $0x38] sm:$0xff] }
0x1cd5   :  { %v6048_v8 = vmul.f32 %v6032_v57, %v12245_v54  ;;  %v6047_v56 = vmul.f32 %v6031_v1, %v12245_v54  ;;  %v6034_v27 = vmax.f32 %v6018_v15, 0.0  ;;  %v6033_v24 = vmax.f32 %v6017_v55, 0.0  ;;  %v9305_v57 = vld [vmem:[#allocation6 + $0x30] sm:$0xff] }
0x1cd6   :  { %v5990_v59 = vrot.slane %v5973_v52, %v12187_v9  ;;  %v6036_v36 = vmax.f32 %v6020_v43, 0.0  ;;  %v6035_v16 = vmax.f32 %v6019_v6, 0.0  ;;  %v6040_v0 = vmax.f32 %v6024_v25, 0.0  ;;  %v9306_v43 = vld [vmem:[#allocation6 + $0x58] sm:$0xff] }
0x1cd7   :  { %6065 = vadd.xlane.f32.xlu0 %v6048_v8  ;;  %6063 = vadd.xlane.f32.xlu1 %v6047_v56  ;;  %v6050_v40 = vmul.f32 %v6034_v27, %v12245_v54  ;;  %v6049_v46 = vmul.f32 %v6033_v24, %v12245_v54  ;;  %v5998_v15 = vrot.slane %v5970_v37, %v12187_v9  ;;  %v6039_v21 = vmax.f32 %v6023_v12, 0.0  ;;  %v9308_v12 = vld [vmem:[#allocation6 + $0x68] sm:$0xff] }
0x1cd8   :  { %v6022_v50 = vadd.f32 %v9304_v61, %v5990_v59  ;;  %v6052_v20 = vmul.f32 %v6036_v36, %v12245_v54  ;;  %v6051_v55 = vmul.f32 %v6035_v16, %v12245_v54  ;;  %v6021_v1 = vadd.f32 %v9305_v57, %v5990_v59  ;;  %v9310_v61 = vld [vmem:[#allocation6 + $0x78] sm:$0xff] }
0x1cd9   :  { %v6056_v52 = vmul.f32 %v6040_v0, %v12245_v54  ;;  %v6026_v5 = vadd.f32 %v9306_v43, %v5998_v15  ;;  %v6025_v6 = vadd.f32 %v9307_v53, %v5998_v15  ;;  %v6055_v34 = vmul.f32 %v6039_v21, %v12245_v54  ;;  %v9311_v15 = vld [vmem:[#allocation6 + $0x70] sm:$0xff] }
0x1cda   :  { %v6038_v3 = vmax.f32 %v6022_v50, 0.0  ;;  %v6037_v8 = vmax.f32 %v6021_v1, 0.0  ;;  %v6002_v56 = vrot.slane %v5972_v62, %v12187_v9  ;;  %v5974_v27 = vcombine.high %v5970_v37, %v5970_v37 }
0x1cdb   :  { %6069 = vadd.xlane.f32.xlu1 %v6050_v40  ;;  %6067 = vadd.xlane.f32.xlu0 %v6049_v46  ;;  %v6042_v11 = vmax.f32 %v6026_v5, 0.0  ;;  %v6041_v25 = vmax.f32 %v6025_v6, 0.0  ;;  %v9309_v40 = vld [vmem:[#allocation6 + $0x60] sm:$0xff] }
0x1cdc   :  { %v6054_v24 = vmul.f32 %v6038_v3, %v12245_v54  ;;  %v6053_v29 = vmul.f32 %v6037_v8, %v12245_v54  ;;  %v6028_v59 = vadd.f32 %v9308_v12, %v6002_v56  ;;  %v6027_v46 = vadd.f32 %v9309_v40, %v6002_v56 }
0x1cdd   :  { %v6006_v36 = vrot.slane %v5974_v27, %v12187_v9  ;;  %v6058_v16 = vmul.f32 %v6042_v11, %v12245_v54  ;;  %v6057_v37 = vmul.f32 %v6041_v25, %v12245_v54 }
0x1cde   :  { %v6044_v62 = vmax.f32 %v6028_v59, 0.0  ;;  %v6043_v0 = vmax.f32 %v6027_v46, 0.0 }
0x1cdf   :  { %6073 = vadd.xlane.f32.xlu1 %v6052_v20  ;;  %6071 = vadd.xlane.f32.xlu0 %v6051_v55  ;;  %v6030_v50 = vadd.f32 %v9310_v61, %v6006_v36  ;;  %v6029_v20 = vadd.f32 %v9311_v15, %v6006_v36 }
0x1ce0   :  { %v6060_v55 = vmul.f32 %v6044_v62, %v12245_v54  ;;  %v6059_v21 = vmul.f32 %v6043_v0, %v12245_v54 }
0x1ce1   :  { %v6046_v57 = vmax.f32 %v6030_v50, 0.0  ;;  %v6045_v1 = vmax.f32 %v6029_v20, 0.0 }
0x1ce3   :  { %6081 = vadd.xlane.f32.xlu1 %v6056_v52  ;;  %6079 = vadd.xlane.f32.xlu0 %v6055_v34  ;;  %v6062_v52 = vmul.f32 %v6046_v57, %v12245_v54  ;;  %v6061_v3 = vmul.f32 %v6045_v1, %v12245_v54 }
0x1ce7   :  { %6077 = vadd.xlane.f32.xlu1 %v6054_v24  ;;  %6075 = vadd.xlane.f32.xlu0 %v6053_v29 }
0x1ceb   :  { %6085 = vadd.xlane.f32.xlu1 %v6058_v16  ;;  %6083 = vadd.xlane.f32.xlu0 %v6057_v37 }
0x1cef   :  { %6089 = vadd.xlane.f32.xlu1 %v6060_v55  ;;  %6087 = vadd.xlane.f32.xlu0 %v6059_v21 }
0x1cf3   :  { %6093 = vadd.xlane.f32.xlu1 %v6062_v52  ;;  %6091 = vadd.xlane.f32.xlu0 %v6061_v3 }
0x1d64   :  { %v6066_v43 = vpop.xlane.xlu0 %6065  ;;  %v6064_v5 = vpop.xlane.xlu1 %6063 }
0x1d65   :  { %v6118_v40 = vrot.slane %v6066_v43, %v12189_v17  ;;  %v6114_v46 = vrot.slane %v6064_v5, %v12190_v45 }
0x1d67   :  { %v6119_v50 = vsel %vm824_vm8, %v6118_v40, %v6114_v46 }
0x1d68   :  { %v11510_v53 = vpop.xlane.xlu1 %6069  ;;  %v6068_v6 = vpop.xlane.xlu0 %6067 }
0x1d69   :  { %v6127_v25 = vrot.slane %v11510_v53, %v12189_v17  ;;  %v6123_v29 = vrot.slane %v6068_v6, %v12190_v45 }
0x1d6b   :  { %v6128_v0 = vsel %vm824_vm8, %v6127_v25, %v6123_v29 }
0x1d6c   :  { %v11512_v34 = vpop.xlane.xlu1 %6073  ;;  %v6072_v8 = vpop.xlane.xlu0 %6071  ;;  %v6183_v21 = vsel %vm391_vm0, %v6128_v0, %v6119_v50 }
0x1d6d   :  { %v6136_v12 = vrot.slane %v11512_v34, %v12189_v17  ;;  %v6132_v59 = vrot.slane %v6072_v8, %v12190_v45 }
0x1d6f   :  { %v6137_v61 = vsel %vm824_vm8, %v6136_v12, %v6132_v59 }
0x1d70   :  { %v11514_v56 = vpop.xlane.xlu1 %6081  ;;  %v11516_v27 = vpop.xlane.xlu0 %6079  ;;  %v6184_v25 = vsel %vm393_vm1, %v6137_v61, %v6183_v21 }
0x1d71   :  { %v6154_v57 = vrot.slane %v11514_v56, %v12189_v17  ;;  %v6150_v1 = vrot.slane %v11516_v27, %v12190_v45 }
0x1d73   :  { %v6155_v46 = vsel %vm824_vm8, %v6154_v57, %v6150_v1 }
0x1d74   :  { %v11518_v24 = vpop.xlane.xlu1 %6077  ;;  %v11520_v11 = vpop.xlane.xlu0 %6075 }
0x1d75   :  { %v6145_v36 = vrot.slane %v11518_v24, %v12189_v17  ;;  %v6141_v16 = vrot.slane %v11520_v11, %v12190_v45 }
0x1d77   :  { %v6146_v15 = vsel %vm824_vm8, %v6145_v36, %v6141_v16 }
0x1d78   :  { %v11534_v37 = vpop.xlane.xlu1 %6085  ;;  %v11536_v62 = vpop.xlane.xlu0 %6083  ;;  %v6185_v59 = vsel %vm395_vm2, %v6146_v15, %v6184_v25 }
0x1d79   :  { %v6163_v20 = vrot.slane %v11534_v37, %v12189_v17  ;;  %v6159_v55 = vrot.slane %v11536_v62, %v12190_v45  ;;  %v6186_v21 = vsel %vm397_vm3, %v6155_v46, %v6185_v59 }
0x1d7b   :  { %v6164_v40 = vsel %vm824_vm8, %v6163_v20, %v6159_v55 }
0x1d7c   :  { %v11551_v52 = vpop.xlane.xlu1 %6089  ;;  %v11553_v3 = vpop.xlane.xlu0 %6087  ;;  %v6187_v15 = vsel %vm399_vm4, %v6164_v40, %v6186_v21 }
0x1d7d   :  { %v6172_v29 = vrot.slane %v11551_v52, %v12189_v17  ;;  %v6168_v12 = vrot.slane %v11553_v3, %v12190_v45 }
0x1d7f   :  { %v6173_v36 = vsel %vm824_vm8, %v6172_v29, %v6168_v12 }
0x1d80   :  { %v11564_v16 = vpop.xlane.xlu1 %6093  ;;  %v11566_v0 = vpop.xlane.xlu0 %6091  ;;  %v6188_v55 = vsel %vm401_vm5, %v6173_v36, %v6187_v15 }
0x1d81   :  { %v6181_v61 = vrot.slane %v11564_v16, %v12189_v17  ;;  %v6177_v50 = vrot.slane %v11566_v0, %v12190_v45 }
0x1d83   :  { %v6182_v20 = vsel %vm824_vm8, %v6181_v61, %v6177_v50 }
0x1d84   :  { %v6189_v57 = vsel %vm403_vm6, %v6182_v20, %v6188_v55 }
0x1d85   :  { %v6191_v1 = vsel %vm897_vm9, %v6189_v57, -inf }
0x1d86   :  { %6192 = vmax.xlane.f32.xlu0 %v6191_v1 }
0x1e13   :  { %v6193_v25 = vpop.xlane.xlu0 %6192 }
0x1e14   :  { %v6198_v29 = vrot.slane %v6193_v25, %v12187_v9  ;;  %v6202_v12 = vrot.slane %v6193_v25, %v10016_v7  ;;  %v6206_v54 = vrot.slane %v6193_v25, %v12191_v47  ;;  %v6210_v40 = vrot.slane %v6193_v25, %v12192_v60 }
0x1e15   :  { %v6214_v20 = vrot.slane %v6193_v25, %v12193_v22 }
0x1e16   :  { %v6235_v14 = vsub.f32 %v6064_v5, %v6198_v29  ;;  %v6236_v59 = vsub.f32 %v6066_v43, %v6198_v29  ;;  %v6237_v46 = vsub.f32 %v6068_v6, %v6202_v12  ;;  %v6239_v61 = vsub.f32 %v6072_v8, %v6206_v54 }
0x1e17   :  { %v6238_v21 = vsub.f32 %v11510_v53, %v6202_v12  ;;  %v6241_v55 = vsub.f32 %v11520_v11, %v6210_v40  ;;  %v6240_v1 = vsub.f32 %v11512_v34, %v6206_v54  ;;  %v6218_v5 = vrot.slane %v6193_v25, %v12194_v44 }
0x1e18   :  { %v6251_v50 = vmul.f32 1.442695, %v6235_v14  ;;  %v6253_v36 = vmul.f32 1.442695, %v6236_v59  ;;  %v6255_v15 = vmul.f32 1.442695, %v6237_v46  ;;  %v6243_v6 = vsub.f32 %v11516_v27, %v6214_v20 }
0x1e19   :  { %v6259_v57 = vmul.f32 1.442695, %v6239_v61  ;;  %v6257_v43 = vmul.f32 1.442695, %v6238_v21  ;;  %v6263_v14 = vmul.f32 1.442695, %v6241_v55  ;;  %v6242_v53 = vsub.f32 %v11518_v24, %v6210_v40 }
0x1e1a   :  { %8798 = vpow2.f32 %v6251_v50  ;;  %v6261_v8 = vmul.f32 1.442695, %v6240_v1  ;;  %v6222_v29 = vrot.slane %v6193_v25, %v12195_v26  ;;  %v6245_v11 = vsub.f32 %v11536_v62, %v6218_v5 }
0x1e1b   :  { %8800 = vpow2.f32 %v6253_v36  ;;  %v6267_v12 = vmul.f32 1.442695, %v6243_v6  ;;  %v6244_v34 = vsub.f32 %v11514_v56, %v6214_v20  ;;  %v6265_v27 = vmul.f32 1.442695, %v6242_v53 }
0x1e1c   :  { %8802 = vpow2.f32 %v6255_v15  ;;  %v6226_v24 = vrot.slane %v6193_v25, %v12196_v32  ;;  %v6247_v46 = vsub.f32 %v11553_v3, %v6222_v29  ;;  %v6271_v62 = vmul.f32 1.442695, %v6245_v11  ;;  %v12246_v11 = vld [vmem:[#allocation50_spill] sm:$0xff] }
0x1e1d   :  { %8804 = vpow2.f32 %v6259_v57  ;;  %v6246_v50 = vsub.f32 %v11534_v37, %v6218_v5  ;;  %v6269_v56 = vmul.f32 1.442695, %v6244_v34  ;;  %v6248_v15 = vsub.f32 %v11551_v52, %v6222_v29 }
0x1e1e   :  { %8806 = vpow2.f32 %v6257_v43  ;;  %v6249_v36 = vsub.f32 %v11566_v0, %v6226_v24  ;;  %v6275_v25 = vmul.f32 1.442695, %v6247_v46  ;;  %v6250_v0 = vsub.f32 %v11564_v16, %v6226_v24 }
0x1e1f   :  { %8808 = vpow2.f32 %v6263_v14  ;;  %v6273_v20 = vmul.f32 1.442695, %v6246_v50  ;;  %v6277_v1 = vmul.f32 1.442695, %v6248_v15 }
0x1e20   :  { %8810 = vpow2.f32 %v6261_v8  ;;  %v6279_v37 = vmul.f32 1.442695, %v6249_v36  ;;  %v6281_v5 = vmul.f32 1.442695, %v6250_v0 }
0x1e21   :  { %8812 = vpow2.f32 %v6267_v12  ;;  %v6647_v12 = vmul.f32 %v11468_v33, %v12246_v11 }
0x1e22   :  { %8814 = vpow2.f32 %v6265_v27 }
0x1e23   :  { %8816 = vpow2.f32 %v6271_v62 }
0x1e24   :  { %v11591_v59 = vpop.eup %8798  ;;  %8818 = vpow2.f32 %v6269_v56 }
0x1e25   :  { %v11593_v54 = vpop.eup %8800  ;;  %6300 = vperm.xlu1 %8348, %v11591_v59   ;;  %8820 = vpow2.f32 %v6275_v25 }
0x1e26   :  { %6303 = vperm.xlu0 %8349, %v11593_v54   ;;  %v11600_v40 = vpop.eup %8802  ;;  %8822 = vpow2.f32 %v6273_v20 }
0x1e27   :  { %v11602_v61 = vpop.eup %8804  ;;  %8824 = vpow2.f32 %v6279_v37 }
0x1e28   :  { %v11608_v21 = vpop.eup %8806  ;;  %8826 = vpow2.f32 %v6277_v1 }
0x1e29   :  { %6306 = vperm.xlu1 %8348, %v11600_v40   ;;  %v11610_v3 = vpop.eup %8808  ;;  %8828 = vpow2.f32 %v6281_v5 }
0x1e2a   :  { %6312 = vperm.xlu0 %8349, %v11602_v61   ;;  %v11615_v55 = vpop.eup %8810 }
0x1e2b   :  { %v11617_v57 = vpop.eup %8812 }
0x1e2c   :  { %v11622_v52 = vpop.eup %8814 }
0x1e2d   :  { %6309 = vperm.xlu1 %8348, %v11608_v21   ;;  %v11624_v43 = vpop.eup %8816 }
0x1e2e   :  { %6318 = vperm.xlu0 %8349, %v11610_v3   ;;  %v11628_v6 = vpop.eup %8818 }
0x1e2f   :  { %v11630_v14 = vpop.eup %8820 }
0x1e30   :  { %v11634_v16 = vpop.eup %8822 }
0x1e31   :  { %6315 = vperm.xlu1 %8348, %v11615_v55   ;;  %v11636_v53 = vpop.eup %8824 }
0x1e32   :  { %6324 = vperm.xlu0 %8349, %v11617_v57   ;;  %v11640_v8 = vpop.eup %8826 }
0x1e33   :  { %v11643_v29 = vpop.eup %8828 }
0x1e35   :  { %6321 = vperm.xlu1 %8348, %v11622_v52  }
0x1e36   :  { %6330 = vperm.xlu0 %8349, %v11624_v43  }
0x1e39   :  { %6327 = vperm.xlu1 %8348, %v11628_v6  }
0x1e3a   :  { %6336 = vperm.xlu0 %8349, %v11630_v14  }
0x1e3d   :  { %6333 = vperm.xlu1 %8348, %v11634_v16  }
0x1e3e   :  { %6342 = vperm.xlu0 %8349, %v11636_v53  }
0x1e41   :  { %6339 = vperm.xlu1 %8348, %v11640_v8  }
0x1e45   :  { %6345 = vperm.xlu1 %8348, %v11643_v29  }
0x1e69   :  { %6648 = vadd.xlane.f32.xlu1 %v6647_v12 }
0x1ea4   :  { %v6301_v34 = vpop.permute.xlu1 %6300 }
0x1ea5   :  { %v6304_v27 = vpop.permute.xlu0 %6303  ;;  %v6350_v12 = vrot.slane %v6301_v34, %v12190_v45 }
0x1ea6   :  { %v6354_v33 = vrot.slane %v6304_v27, %v12189_v17 }
0x1ea8   :  { %v6307_v24 = vpop.permute.xlu1 %6306  ;;  %v6355_v34 = vsel %vm824_vm8, %v6354_v33, %v6350_v12 }
0x1ea9   :  { %v6313_v46 = vpop.permute.xlu0 %6312  ;;  %v6359_v11 = vrot.slane %v6307_v24, %v12190_v45 }
0x1eaa   :  { %v6368_v39 = vrot.slane %v6313_v46, %v12190_v45 }
0x1eac   :  { %v6310_v62 = vpop.permute.xlu1 %6309 }
0x1ead   :  { %v6319_v50 = vpop.permute.xlu0 %6318  ;;  %v6363_v37 = vrot.slane %v6310_v62, %v12189_v17 }
0x1eae   :  { %v6377_v41 = vrot.slane %v6319_v50, %v12190_v45 }
0x1eaf   :  { %v6364_v62 = vsel %vm824_vm8, %v6363_v37, %v6359_v11 }
0x1eb0   :  { %v6316_v56 = vpop.permute.xlu1 %6315 }
0x1eb1   :  { %v6325_v36 = vpop.permute.xlu0 %6324  ;;  %v6372_v0 = vrot.slane %v6316_v56, %v12189_v17 }
0x1eb2   :  { %v6386_v63 = vrot.slane %v6325_v36, %v12190_v45 }
0x1eb3   :  { %v6373_v27 = vsel %vm824_vm8, %v6372_v0, %v6368_v39 }
0x1eb4   :  { %v6322_v25 = vpop.permute.xlu1 %6321 }
0x1eb5   :  { %v6331_v15 = vpop.permute.xlu0 %6330  ;;  %v6381_v49 = vrot.slane %v6322_v25, %v12189_v17 }
0x1eb6   :  { %v6395_v24 = vrot.slane %v6331_v15, %v12190_v45 }
0x1eb7   :  { %v6382_v25 = vsel %vm824_vm8, %v6381_v49, %v6377_v41 }
0x1eb8   :  { %v6328_v20 = vpop.permute.xlu1 %6327 }
0x1eb9   :  { %v6337_v1 = vpop.permute.xlu0 %6336  ;;  %v6390_v18 = vrot.slane %v6328_v20, %v12189_v17  ;;  %v6419_v20 = vsel %vm391_vm0, %v6364_v62, %v6355_v34 }
0x1eba   :  { %v6404_v50 = vrot.slane %v6337_v1, %v12190_v45  ;;  %v6420_v36 = vsel %vm393_vm1, %v6373_v27, %v6419_v20 }
0x1ebb   :  { %v6391_v11 = vsel %vm824_vm8, %v6390_v18, %v6386_v63  ;;  %v6421_v0 = vsel %vm395_vm2, %v6382_v25, %v6420_v36 }
0x1ebc   :  { %v6334_v5 = vpop.permute.xlu1 %6333  ;;  %v6422_v41 = vsel %vm397_vm3, %v6391_v11, %v6421_v0 }
0x1ebd   :  { %v6399_v56 = vrot.slane %v6334_v5, %v12189_v17  ;;  %v6343_v37 = vpop.permute.xlu0 %6342 }
0x1ebf   :  { %v6400_v39 = vsel %vm824_vm8, %v6399_v56, %v6395_v24 }
0x1ec0   :  { %v6340_v48 = vpop.permute.xlu1 %6339  ;;  %v6423_v1 = vsel %vm399_vm4, %v6400_v39, %v6422_v41 }
0x1ec1   :  { %v6408_v46 = vrot.slane %v6340_v48, %v12189_v17  ;;  %v6413_v48 = vrot.slane %v6343_v37, %v12190_v45 }
0x1ec3   :  { %v6409_v5 = vsel %vm824_vm8, %v6408_v46, %v6404_v50 }
0x1ec4   :  { %v6346_v15 = vpop.permute.xlu1 %6345  ;;  %v6424_v18 = vsel %vm401_vm5, %v6409_v5, %v6423_v1 }
0x1ec5   :  { %v6417_v49 = vrot.slane %v6346_v15, %v12189_v17 }
0x1ec7   :  { %v6418_v63 = vsel %vm824_vm8, %v6417_v49, %v6413_v48 }
0x1ec8   :  { %v6425_v33 = vsel %vm403_vm6, %v6418_v63, %v6424_v18 }
0x1ec9   :  { %v6427_v12 = vsel %vm897_vm9, %v6425_v33, 0.0 }
0x1eca   :  { %6428 = vadd.xlane.f32.xlu0 %v6427_v12 }
0x1ef6   :  { %v6649_v12 = vpop.xlane.xlu1 %6648 }
0x1f57   :  { %v6429_v62 = vpop.xlane.xlu0 %6428 }
0x1f58   :  { %v6434_v56 = vrot.slane %v6429_v62, %v12187_v9  ;;  %v6438_v27 = vrot.slane %v6429_v62, %v10016_v7  ;;  %v6442_v34 = vrot.slane %v6429_v62, %v12191_v47  ;;  %v6446_v24 = vrot.slane %v6429_v62, %v12192_v60 }
0x1f59   :  { %v6450_v46 = vrot.slane %v6429_v62, %v12193_v22  ;;  %v6454_v37 = vrot.slane %v6429_v62, %v12194_v44  ;;  %v6458_v5 = vrot.slane %v6429_v62, %v12195_v26  ;;  %v6462_v41 = vrot.slane %v6429_v62, %v12196_v32 }
0x1f5a   :  { %8830 = vrcp.f32 %v6434_v56 }
0x1f5b   :  { %8832 = vrcp.f32 %v6438_v27 }
0x1f5c   :  { %8834 = vrcp.f32 %v6442_v34 }
0x1f5d   :  { %8836 = vrcp.f32 %v6446_v24 }
0x1f5e   :  { %8838 = vrcp.f32 %v6450_v46 }
0x1f5f   :  { %8840 = vrcp.f32 %v6454_v37 }
0x1f60   :  { %8842 = vrcp.f32 %v6458_v5 }
0x1f61   :  { %8844 = vrcp.f32 %v6462_v41 }
0x1f64   :  { %v8831_v25 = vpop.eup %8830 }
0x1f65   :  { %v6473_v20 = vmul.f32 %v8831_v25, %v11593_v54  ;;  %v6472_v50 = vmul.f32 %v8831_v25, %v11591_v59  ;;  %v8833_v11 = vpop.eup %8832 }
0x1f66   :  { %v6476_v36 = vmul.f32 %v8833_v11, %v11608_v21  ;;  %v6475_v39 = vmul.f32 %v8833_v11, %v11600_v40  ;;  %v8835_v0 = vpop.eup %8834 }
0x1f67   :  { %6502 = vperm.xlu1 %8348, %v6473_v20   ;;  %6497 = vperm.xlu0 %8349, %v6472_v50   ;;  %v6479_v54 = vmul.f32 %v8835_v0, %v11615_v55  ;;  %v6478_v59 = vmul.f32 %v8835_v0, %v11602_v61  ;;  %v8837_v15 = vpop.eup %8836 }
0x1f68   :  { %v6482_v21 = vmul.f32 %v8837_v15, %v11622_v52  ;;  %v6481_v40 = vmul.f32 %v8837_v15, %v11610_v3  ;;  %v8839_v48 = vpop.eup %8838 }
0x1f69   :  { %v6485_v49 = vmul.f32 %v8839_v48, %v11628_v6  ;;  %v6484_v55 = vmul.f32 %v8839_v48, %v11617_v57  ;;  %v8841_v1 = vpop.eup %8840 }
0x1f6a   :  { %v6488_v61 = vmul.f32 %v8841_v1, %v11634_v16  ;;  %v6487_v63 = vmul.f32 %v8841_v1, %v11624_v43  ;;  %v8843_v18 = vpop.eup %8842  ;;  %v9312_v16 = vld [vmem:[#allocation2] ss:$0 sm:$0xff] }
0x1f6b   :  { %6512 = vperm.xlu1 %8348, %v6476_v36   ;;  %6507 = vperm.xlu0 %8349, %v6475_v39   ;;  %v6491_v3 = vmul.f32 %v8843_v18, %v11640_v8  ;;  %v6490_v52 = vmul.f32 %v8843_v18, %v11630_v14  ;;  %v8845_v33 = vpop.eup %8844  ;;  %v6650_v62 = vadd.f32 %v9312_v16, %v6649_v12 }
0x1f6c   :  { %v6494_v6 = vmul.f32 %v8845_v33, %v11643_v29  ;;  %v6493_v57 = vmul.f32 %v8845_v33, %v11636_v53 }
0x1f6f   :  { %6522 = vperm.xlu1 %8348, %v6479_v54   ;;  %6517 = vperm.xlu0 %8349, %v6478_v59  }
0x1f73   :  { %6532 = vperm.xlu1 %8348, %v6482_v21   ;;  %6527 = vperm.xlu0 %8349, %v6481_v40  }
0x1f77   :  { %6542 = vperm.xlu1 %8348, %v6485_v49   ;;  %6537 = vperm.xlu0 %8349, %v6484_v55  }
0x1f7b   :  { %6552 = vperm.xlu1 %8348, %v6488_v61   ;;  %6547 = vperm.xlu0 %8349, %v6487_v63  }
0x1f7f   :  { %6562 = vperm.xlu1 %8348, %v6491_v3   ;;  %6557 = vperm.xlu0 %8349, %v6490_v52  }
0x1f83   :  { %6572 = vperm.xlu1 %8348, %v6494_v6   ;;  %6567 = vperm.xlu0 %8349, %v6493_v57  }
0x1f87   :  { %6653 = vperm.xlu0 %8349, %v6650_v62  }
0x1fe6   :  { %v6498_v43 = vpop.permute.xlu0 %6497  ;;  %v6503_v56 = vpop.permute.xlu1 %6502 }
0x1fe7   :  { %v6575_v24 = vmul.f32 %v12200_v19, %v6498_v43  ;;  %v6576_v29 = vmul.f32 %v12201_v13, %v6503_v56 }
0x1fe9   :  { %v6591_v11 = vadd.f32 %v6576_v29, %v6575_v24 }
0x1fea   :  { %v6508_v27 = vpop.permute.xlu0 %6507  ;;  %v6513_v34 = vpop.permute.xlu1 %6512 }
0x1feb   :  { %v6577_v8 = vmul.f32 %v12198_v10, %v6508_v27  ;;  %v6578_v14 = vmul.f32 %v12199_v38, %v6513_v34  ;;  %v6592_v59 = vrot.slane %v6591_v11, 4 }
0x1fed   :  { %v6598_v50 = vadd.f32 %v6578_v14, %v6577_v8  ;;  %v6593_v63 = vadd.f32 %v6592_v59, %v6591_v11 }
0x1fee   :  { %v6518_v25 = vpop.permute.xlu0 %6517  ;;  %v6523_v53 = vpop.permute.xlu1 %6522 }
0x1fef   :  { %v6579_v46 = vmul.f32 %v12202_v23, %v6518_v25  ;;  %v6580_v20 = vmul.f32 %v12203_v42, %v6523_v53  ;;  %v6599_v54 = vrot.slane %v6598_v50, 4  ;;  %v6594_v43 = vrot.slane %v6593_v63, 2 }
0x1ff1   :  { %v6605_v37 = vadd.f32 %v6580_v20, %v6579_v46  ;;  %v6600_v1 = vadd.f32 %v6599_v54, %v6598_v50  ;;  %v6595_v50 = vadd.f32 %v6594_v43, %v6593_v63  ;;  %v12247_v54 = vld [vmem:[#allocation35_spill] sm:$0xff] }
0x1ff2   :  { %v6528_v36 = vpop.permute.xlu0 %6527  ;;  %v6533_v39 = vpop.permute.xlu1 %6532 }
0x1ff3   :  { %v6581_v0 = vmul.f32 %v12204_v31, %v6528_v36  ;;  %v6582_v5 = vmul.f32 %v12205_v51, %v6533_v39  ;;  %v6606_v15 = vrot.slane %v6605_v37, 4  ;;  %v6601_v16 = vrot.slane %v6600_v1, 2 }
0x1ff5   :  { %v6612_v41 = vadd.f32 %v6582_v5, %v6581_v0  ;;  %v6607_v18 = vadd.f32 %v6606_v15, %v6605_v37  ;;  %v6602_v46 = vadd.f32 %v6601_v16, %v6600_v1  ;;  %v12248_v15 = vld [vmem:[#allocation36_spill] sm:$0xff]  ;;  %v6596_v1 = vrot.slane %v6595_v50, 1 }
0x1ff6   :  { %v6538_v21 = vpop.permute.xlu0 %6537  ;;  %v6543_v40 = vpop.permute.xlu1 %6542 }
0x1ff7   :  { %v6583_v48 = vmul.f32 %v12206_v2, %v6538_v21  ;;  %v6584_v49 = vmul.f32 %v12207_v35, %v6543_v40  ;;  %v6613_v55 = vrot.slane %v6612_v41, 4  ;;  %v6608_v56 = vrot.slane %v6607_v18, 2 }
0x1ff9   :  { %v6619_v61 = vadd.f32 %v6584_v49, %v6583_v48  ;;  %v6614_v33 = vadd.f32 %v6613_v55, %v6612_v41  ;;  %v6609_v11 = vadd.f32 %v6608_v56, %v6607_v18  ;;  %v6603_v48 = vrot.slane %v6602_v46, 1 }
0x1ffa   :  { %v6548_v3 = vpop.permute.xlu0 %6547  ;;  %v6553_v52 = vpop.permute.xlu1 %6552  ;;  %v6597_v56 = vadd.f32 %v6596_v1, %v6595_v50  ;;  %v9320_v1 = vld [vmem:[#allocation14 + $0x4c] ss:$16 sps:$4 sm:$0xff]  }
0x1ffb   :  { %v6620_v6 = vrot.slane %v6619_v61, 4  ;;  %v6585_v57 = vmul.f32 %v12208_v30, %v6548_v3  ;;  %v6586_v12 = vmul.f32 %v12209_v28, %v6553_v52  ;;  %v6615_v14 = vrot.slane %v6614_v33, 2 }
0x1ffd   :  { %v6621_v62 = vadd.f32 %v6620_v6, %v6619_v61  ;;  %v6626_v27 = vadd.f32 %v6586_v12, %v6585_v57  ;;  %v6616_v0 = vadd.f32 %v6615_v14, %v6614_v33  ;;  %v6610_v61 = vrot.slane %v6609_v11, 1 }
0x1ffe   :  { %v6558_v34 = vpop.permute.xlu0 %6557  ;;  %v6563_v8 = vpop.permute.xlu1 %6562  ;;  %v6604_v57 = vadd.f32 %v6603_v48, %v6602_v46  ;;  %v9316_v48 = vld [vmem:[#allocation14 + $0x2c] ss:$16 sps:$4 sm:$0xff]  }
0x1fff   :  { %v6587_v24 = vmul.f32 %v12210_v4, %v6558_v34  ;;  %v6588_v29 = vmul.f32 %v12214_v58, %v6563_v8  ;;  %v6622_v25 = vrot.slane %v6621_v62, 2  ;;  %v6627_v53 = vrot.slane %v6626_v27, 4 }
0x2000   :  { %v6617_v52 = vrot.slane %v6616_v0, 1  ;;  %v6611_v43 = vadd.f32 %v6610_v61, %v6609_v11  ;;  %v6664_v14 = vsel %vm391_vm0, %v6604_v57, %v6597_v56  ;;  %v9318_v61 = vld [vmem:[#allocation14 + $0x28] ss:$16 sps:$4 sm:$0xff]   ;;  %v9325_v57 = vld [vmem:[#allocation14 + $0x60] ss:$16 sps:$4 sm:$0xff]  }
0x2001   :  { %v6633_v20 = vadd.f32 %v6588_v29, %v6587_v24  ;;  %v6628_v37 = vadd.f32 %v6627_v53, %v6626_v27  ;;  %v6623_v21 = vadd.f32 %v6622_v25, %v6621_v62  ;;  %v9330_v56 = vld [vmem:[#allocation14 + $0x88] ss:$16 sps:$4 sm:$0xff]  }
0x2002   :  { %v6568_v36 = vpop.permute.xlu0 %6567  ;;  %v6573_v39 = vpop.permute.xlu1 %6572  ;;  %v6618_v27 = vadd.f32 %v6617_v52, %v6616_v0  ;;  %v6665_v53 = vsel %vm393_vm1, %v6611_v43, %v6664_v14  ;;  %v9321_v52 = vld [vmem:[#allocation14 + $0x40] ss:$16 sps:$4 sm:$0xff]   ;;  %v9335_v14 = vld [vmem:[#allocation14 + $0xc4] ss:$16 sps:$4 sm:$0xff]  }
0x2003   :  { %v6634_v5 = vrot.slane %v6633_v20, 4  ;;  %v6589_v59 = vmul.f32 %v12247_v54, %v6568_v36  ;;  %v6590_v41 = vmul.f32 %v12248_v15, %v6573_v39  ;;  %v6629_v40 = vrot.slane %v6628_v37, 2  ;;  %v9329_v43 = vld [vmem:[#allocation14 + $0x80] ss:$16 sps:$4 sm:$0xff]  }
0x2004   :  { %v6624_v6 = vrot.slane %v6623_v21, 1 }
0x2005   :  { %v6635_v49 = vadd.f32 %v6634_v5, %v6633_v20  ;;  %v6640_v55 = vadd.f32 %v6590_v41, %v6589_v59  ;;  %v6630_v3 = vadd.f32 %v6629_v40, %v6628_v37  ;;  %v6666_v37 = vsel %vm395_vm2, %v6618_v27, %v6665_v53  ;;  %v9313_v41 = vld [vmem:[#allocation14] ss:$16 sps:$4 sm:$0xff]   ;;  %v9315_v40 = vld [vmem:[#allocation14 + $0x24] ss:$16 sps:$4 sm:$0xff]  }
0x2006   :  { %v6625_v8 = vadd.f32 %v6624_v6, %v6623_v21  ;;  %v6654_v39 = vpop.permute.xlu0 %6653  ;;  %v9314_v21 = vld [vmem:[#allocation14 + $0x8] ss:$16 sps:$4 sm:$0xff]   ;;  %v9324_v6 = vld [vmem:[#allocation14 + $0x6c] ss:$16 sps:$4 sm:$0xff]   ;;  %v9331_v27 = vld [vmem:[#allocation14 + $0xa4] ss:$16 sps:$4 sm:$0xff]  }
0x2007   :  { %v6636_v63 = vrot.slane %v6635_v49, 2  ;;  %v6641_v18 = vrot.slane %v6640_v55, 4  ;;  %v6631_v12 = vrot.slane %v6630_v3, 1  ;;  %v9339_v53 = vld [vmem:[#allocation14 + $0xe4] ss:$16 sps:$4 sm:$0xff]  }
0x2008   :  { %v6667_v46 = vsel %vm397_vm3, %v6625_v8, %v6666_v37  ;;  %v9334_v8 = vld [vmem:[#allocation14 + $0xa8] ss:$16 sps:$4 sm:$0xff]   ;;  %v9341_v37 = vld [vmem:[#allocation14 + $0xe0] ss:$16 sps:$4 sm:$0xff]  }
0x2009   :  { %v6637_v33 = vadd.f32 %v6636_v63, %v6635_v49  ;;  %v6642_v16 = vadd.f32 %v6641_v18, %v6640_v55  ;;  %v6632_v24 = vadd.f32 %v6631_v12, %v6630_v3  ;;  %v12249_v49 = vmov 0   ;;  %v9317_v55 = vld [vmem:[#allocation14 + $0x20] ss:$16 sps:$4 sm:$0xff]   ;;  %v9319_v3 = vld [vmem:[#allocation14 + $0x44] ss:$16 sps:$4 sm:$0xff]  }
0x200a   :  { %v9322_v63 = vld [vmem:[#allocation14 + $0x48] ss:$16 sps:$4 sm:$0xff]   ;;  %v9323_v18 = vld [vmem:[#allocation14 + $0x64] ss:$16 sps:$4 sm:$0xff]  }
0x200b   :  { %v6638_v34 = vrot.slane %v6637_v33, 1  ;;  %v6643_v62 = vrot.slane %v6642_v16, 2  ;;  %v6668_v11 = vsel %vm399_vm4, %v6632_v24, %v6667_v46  ;;  %v9326_v12 = vld [vmem:[#allocation14 + $0x68] ss:$16 sps:$4 sm:$0xff]   ;;  %v9336_v24 = vld [vmem:[#allocation14 + $0xcc] ss:$16 sps:$4 sm:$0xff]  }
0x200c   :  { %v9342_v46 = vld [vmem:[#allocation14 + $0xe8] ss:$16 sps:$4 sm:$0xff]  }
0x200d   :  { %v6644_v29 = vadd.f32 %v6643_v62, %v6642_v16  ;;  %v6639_v25 = vadd.f32 %v6638_v34, %v6637_v33  ;;  %v9327_v33 = vld [vmem:[#allocation14 + $0x84] ss:$16 sps:$4 sm:$0xff]   ;;  %v9328_v16 = vld [vmem:[#allocation14 + $0x8c] ss:$16 sps:$4 sm:$0xff]   ;;  %v9333_v62 = vld [vmem:[#allocation14 + $0xa0] ss:$16 sps:$4 sm:$0xff]  }
0x200e   :  { %v9332_v34 = vld [vmem:[#allocation14 + $0xac] ss:$16 sps:$4 sm:$0xff]  }
0x200f   :  { %v6645_v20 = vrot.slane %v6644_v29, 1  ;;  %v6669_v50 = vsel %vm401_vm5, %v6639_v25, %v6668_v11  ;;  %v9338_v25 = vld [vmem:[#allocation14 + $0xc8] ss:$16 sps:$4 sm:$0xff]   ;;  %v9343_v11 = vld [vmem:[#allocation12 + $0x4] ss:$16 sps:$4 sm:$0xff]  }
0x2011   :  { %v6646_v36 = vadd.f32 %v6645_v20, %v6644_v29  ;;  %v9337_v29 = vld [vmem:[#allocation14 + $0xc0] ss:$16 sps:$4 sm:$0xff]   ;;  %v9340_v20 = vld [vmem:[#allocation14 + $0xec] ss:$16 sps:$4 sm:$0xff]  }
0x2013   :  { %v6670_v0 = vsel %vm403_vm6, %v6646_v36, %v6669_v50  ;;  %v12250_v36 = vmov 0.0   ;;  %v12251_v50 = vld [vmem:[#allocation37_spill] sm:$0xff] }
0x2014   :  { %v6672_v5 = vmul.f32 %v6670_v0, %v6654_v39  ;;  %v9344_v39 = vld [vmem:[#allocation11] sm:$0xff]  }
0x2015   :  { %v9345_v0 = vld [vmem:[#allocation12] ss:$16 sps:$4 sm:$0xff]  }
0x2016   :  { %v6678_v59 = vpack.c.bf16 %v6672_v5, %v6672_v5  ;;  %v9346_v5 = vld [vmem:[#allocation12 + $0x24] ss:$16 sps:$4 sm:$0xff]  }
0x2018   :  { %6712 = vmatmul.mubr.bf16.vlgmr.msra.gmra.mrb[32].mxu1 %v6678_v59  ;;  %6753 = vmatmul.mubr.bf16.vlgmr.msra.gmra.mrb[36].mxu0 %v6678_v59  ;;  %v9347_v59 = vld [vmem:[#allocation11 + $0x8] sm:$0xff]  }
0x2019   :  { %6766 = vmatpush1.bf16.msra.mxu1 %v9313_v41  ;;  %6807 = vmatpush1.bf16.msra.mxu0 %v9314_v21  ;;  %v9348_v41 = vld [vmem:[#allocation12 + $0x20] ss:$16 sps:$4 sm:$0xff]   ;;  %v9349_v21 = vld [vmem:[#allocation12 + $0x44] ss:$16 sps:$4 sm:$0xff]  }
0x201a   :  { %6767 = vmatprep.subr.bf16.mxu1 %v9315_v40  ;;  %6808 = vmatprep.subr.bf16.mxu0 %v9316_v48  ;;  %v9350_v40 = vld [vmem:[#allocation11 + $0x10] sm:$0xff]  }
0x201b   :  { %6797 = vmatprep.mubr.bf16.mxu1 %v12249_v49  ;;  %6838 = vmatprep.mubr.bf16.mxu0 %v12249_v49  ;;  %v9351_v48 = vld [vmem:[#allocation12 + $0x40] ss:$16 sps:$4 sm:$0xff]  }
0x201d   :  { %6768 = vmatpush1.bf16.msra.mxu1 %v9317_v55  ;;  %6809 = vmatpush1.bf16.msra.mxu0 %v9318_v61  ;;  %v9352_v55 = vld [vmem:[#allocation12 + $0x64] ss:$16 sps:$4 sm:$0xff]   ;;  %v9353_v61 = vld [vmem:[#allocation11 + $0x18] sm:$0xff]  }
0x201e   :  { %6769 = vmatprep.subr.bf16.mxu1 %v9319_v3  ;;  %6810 = vmatprep.subr.bf16.mxu0 %v9320_v1  ;;  %v9354_v3 = vld [vmem:[#allocation12 + $0x60] ss:$16 sps:$4 sm:$0xff]   ;;  %v9355_v1 = vld [vmem:[#allocation12 + $0x84] ss:$16 sps:$4 sm:$0xff]  }
0x2021   :  { %6770 = vmatpush1.bf16.msra.mxu1 %v9321_v52  ;;  %6811 = vmatpush1.bf16.msra.mxu0 %v9322_v63  ;;  %v9356_v52 = vld [vmem:[#allocation11 + $0x20] sm:$0xff]  }
0x2022   :  { %6771 = vmatprep.subr.bf16.mxu1 %v9323_v18  ;;  %6812 = vmatprep.subr.bf16.mxu0 %v9324_v6  ;;  %v9357_v63 = vld [vmem:[#allocation12 + $0x80] ss:$16 sps:$4 sm:$0xff]   ;;  %v9358_v18 = vld [vmem:[#allocation12 + $0xa4] ss:$16 sps:$4 sm:$0xff]   ;;  %v9359_v6 = vld [vmem:[#allocation11 + $0x28] sm:$0xff]  }
0x2025   :  { %6772 = vmatpush1.bf16.msra.mxu1 %v9325_v57  ;;  %6813 = vmatpush1.bf16.msra.mxu0 %v9326_v12  ;;  %v9360_v57 = vld [vmem:[#allocation12 + $0xa0] ss:$16 sps:$4 sm:$0xff]   ;;  %v9361_v12 = vld [vmem:[#allocation12 + $0xc4] ss:$16 sps:$4 sm:$0xff]  }
0x2026   :  { %6773 = vmatprep.subr.bf16.mxu1 %v9327_v33  ;;  %6814 = vmatprep.subr.bf16.mxu0 %v9328_v16  ;;  %v9362_v33 = vld [vmem:[#allocation11 + $0x30] sm:$0xff]  }
0x2027   :  { %v9363_v16 = vld [vmem:[#allocation12 + $0xc0] ss:$16 sps:$4 sm:$0xff]  }
0x2029   :  { %6774 = vmatpush1.bf16.msra.mxu1 %v9329_v43  ;;  %6815 = vmatpush1.bf16.msra.mxu0 %v9330_v56  ;;  %v9364_v43 = vld [vmem:[#allocation12 + $0xe4] ss:$16 sps:$4 sm:$0xff]   ;;  %v9365_v56 = vld [vmem:[#allocation11 + $0x38] sm:$0xff]  }
0x202a   :  { %6775 = vmatprep.subr.bf16.mxu1 %v9331_v27  ;;  %6816 = vmatprep.subr.bf16.mxu0 %v9332_v34  ;;  %v9366_v27 = vld [vmem:[#allocation12 + $0xc] ss:$16 sps:$4 sm:$0xff]   ;;  %v9367_v34 = vld [vmem:[#allocation12 + $0xe0] ss:$16 sps:$4 sm:$0xff]  }
0x202d   :  { %6776 = vmatpush1.bf16.msra.mxu1 %v9333_v62  ;;  %6817 = vmatpush1.bf16.msra.mxu0 %v9334_v8  ;;  %v9368_v62 = vld [vmem:[#allocation14 + $0x4] ss:$16 sps:$4 sm:$0xff]  }
0x202e   :  { %6777 = vmatprep.subr.bf16.mxu1 %v9335_v14  ;;  %6818 = vmatprep.subr.bf16.mxu0 %v9336_v24  ;;  %v6674_v8 = vld [vmem:[#allocation8 + $0xa0] sm:$0xff]  ;;  %v6675_v14 = vld [vmem:[#allocation8 + $0xa8] sm:$0xff] }
0x2031   :  { %6778 = vmatpush1.bf16.msra.mxu1 %v9337_v29  ;;  %6819 = vmatpush1.bf16.msra.mxu0 %v9338_v25 }
0x2032   :  { %6779 = vmatprep.subr.bf16.mxu1 %v9339_v53  ;;  %6820 = vmatprep.subr.bf16.mxu0 %v9340_v20 }
0x2035   :  { %6780 = vmatpush1.bf16.msra.mxu1 %v9341_v37  ;;  %6821 = vmatpush1.bf16.msra.mxu0 %v9342_v46 }
0x2036   :  { %8224 = vmatprep.subr.bf16.mxu1 %v12250_v36  ;;  %7672 = vmatprep.subr.bf16.mxu0 %v9343_v11 }
0x2038   :  { %6798 = vmatmul.mubr.bf16.vlgmr.msra.gmra.mrb[32].mxu1 %v12251_v50  ;;  %6839 = vmatmul.mubr.bf16.vlgmr.msra.gmra.mrb[36].mxu0 %v12251_v50 }
0x2039   :  { %8225 = vmatpush3.bf16.msra.mxu1 %v9344_v39  ;;  %8240 = vmatprep.mubr.msk.bf16.mxu1 %vm9636_vm7, %v12250_v36 }
0x203a   :  { %8226 = vmatprep.subr.bf16.mxu1 %v12250_v36  ;;  %7673 = vmatpush1.bf16.msra.mxu0 %v9345_v0 }
0x203b   :  { %7674 = vmatprep.subr.bf16.mxu0 %v9346_v5  ;;  %7704 = vmatprep.mubr.bf16.mxu0 %v12249_v49  ;;  %v6677_v5 = vld [vmem:[#allocation8 + $0xb8] sm:$0xff] }
0x203d   :  { %8227 = vmatpush3.bf16.msra.mxu1 %v9347_v59 }
0x203e   :  { %8228 = vmatprep.subr.bf16.mxu1 %v12250_v36  ;;  %7675 = vmatpush1.bf16.msra.mxu0 %v9348_v41  ;;  %v6676_v41 = vld [vmem:[#allocation8 + $0xb0] sm:$0xff] }
0x203f   :  { %7676 = vmatprep.subr.bf16.mxu0 %v9349_v21 }
0x2041   :  { %8229 = vmatpush3.bf16.msra.mxu1 %v9350_v40 }
0x2042   :  { %8230 = vmatprep.subr.bf16.mxu1 %v12250_v36  ;;  %7677 = vmatpush1.bf16.msra.mxu0 %v9351_v48 }
0x2043   :  { %7678 = vmatprep.subr.bf16.mxu0 %v9352_v55 }
0x2045   :  { %8231 = vmatpush3.bf16.msra.mxu1 %v9353_v61 }
0x2046   :  { %8232 = vmatprep.subr.bf16.mxu1 %v12250_v36  ;;  %7679 = vmatpush1.bf16.msra.mxu0 %v9354_v3 }
0x2047   :  { %7680 = vmatprep.subr.bf16.mxu0 %v9355_v1 }
0x2049   :  { %8233 = vmatpush3.bf16.msra.mxu1 %v9356_v52 }
0x204a   :  { %8234 = vmatprep.subr.bf16.mxu1 %v12250_v36  ;;  %7681 = vmatpush1.bf16.msra.mxu0 %v9357_v63 }
0x204b   :  { %7682 = vmatprep.subr.bf16.mxu0 %v9358_v18 }
0x204d   :  { %8235 = vmatpush3.bf16.msra.mxu1 %v9359_v6 }
0x204e   :  { %8236 = vmatprep.subr.bf16.mxu1 %v12250_v36  ;;  %7683 = vmatpush1.bf16.msra.mxu0 %v9360_v57 }
0x204f   :  { %7684 = vmatprep.subr.bf16.mxu0 %v9361_v12  ;;  %v12252_v12 = vld [vmem:[#allocation55_spill] sm:$0xff] }
0x2051   :  { %8237 = vmatpush3.bf16.msra.mxu1 %v9362_v33 }
0x2052   :  { %8238 = vmatprep.subr.bf16.mxu1 %v12250_v36  ;;  %7685 = vmatpush1.bf16.msra.mxu0 %v9363_v16 }
0x2053   :  { %7686 = vmatprep.subr.bf16.mxu0 %v9364_v43 }
0x2055   :  { %8239 = vmatpush3.bf16.msra.mxu1 %v9365_v56 }
0x2056   :  { %7713 = vmatprep.subr.bf16.mxu1 %v9366_v27  ;;  %7687 = vmatpush1.bf16.msra.mxu0 %v9367_v34 }
0x2057   :  { %7758 = vmatprep.subr.bf16.mxu0 %v9368_v62  ;;  %v9369_v62 = vld [vmem:[#allocation12 + $0x8] ss:$16 sps:$4 sm:$0xff]  }
0x210b   :  { %v6799_v24 = vpop.f32.mrb[32].mxu1  ;;  %v6840_v29 = vpop.f32.mrb[36].mxu0 }
0x210c   :  { %v8264_v25 = vadd.f32 %v6799_v24, %v6674_v8  ;;  %v6801_v53 = vpop.f32.mrb[33].mxu1  ;;  %v6842_v20 = vpop.f32.mrb[37].mxu0  ;;  %v8266_v40 = vadd.f32 %v6840_v29, %v6676_v41  ;;  %v9370_v8 = vld [vmem:[#allocation12 + $0x2c] ss:$16 sps:$4 sm:$0xff]   ;;  %v9373_v29 = vld [vmem:[#allocation12 + $0x48] ss:$16 sps:$4 sm:$0xff]  }
0x210d   :  { %v8265_v37 = vadd.f32 %v6801_v53, %v6675_v14  ;;  %v6803_v46 = vpop.f32.mrb[34].mxu1  ;;  %v6844_v36 = vpop.f32.mrb[38].mxu0  ;;  %v8267_v59 = vadd.f32 %v6842_v20, %v6677_v5  ;;  %v9371_v14 = vld [vmem:[#allocation12 + $0x28] ss:$16 sps:$4 sm:$0xff]   ;;  %v9372_v24 = vld [vmem:[#allocation12 + $0x4c] ss:$16 sps:$4 sm:$0xff]  }
0x210e   :  { %v7996_v11 = vmul.f32 -1.442695, %v8264_v25  ;;  %v6804_v50 = vpop.f32.mrb[35].mxu1  ;;  %v6845_v39 = vpop.f32.mrb[39].mxu0  ;;  %v9374_v25 = vld [vmem:[#allocation12 + $0x6c] ss:$16 sps:$4 sm:$0xff]  }
0x210f   :  { %v7997_v0 = vmul.f32 -1.442695, %v8265_v37  ;;  %v7998_v21 = vmul.f32 -1.442695, %v8267_v59  ;;  %v9375_v53 = vld [vmem:[#allocation12 + $0x68] ss:$16 sps:$4 sm:$0xff]  }
0x2110   :  { %8846 = vpow2.f32 %v7996_v11  ;;  %v9376_v20 = vld [vmem:[#allocation12 + $0x8c] ss:$16 sps:$4 sm:$0xff]   ;;  %v9377_v37 = vld [vmem:[#allocation12 + $0x88] ss:$16 sps:$4 sm:$0xff]  }
0x2111   :  { %8848 = vpow2.f32 %v7997_v0  ;;  %v9378_v46 = vld [vmem:[#allocation12 + $0xac] ss:$16 sps:$4 sm:$0xff]   ;;  %v9379_v36 = vld [vmem:[#allocation12 + $0xa8] ss:$16 sps:$4 sm:$0xff]  }
0x2112   :  { %8850 = vpow2.f32 %v7998_v21  ;;  %v9380_v11 = vld [vmem:[#allocation12 + $0xcc] ss:$16 sps:$4 sm:$0xff]   ;;  %v9381_v50 = vld [vmem:[#allocation12 + $0xc8] ss:$16 sps:$4 sm:$0xff]  }
0x2113   :  { %8852 = vtanh.f32 %v8266_v40  ;;  %v9382_v39 = vld [vmem:[#allocation12 + $0xec] ss:$16 sps:$4 sm:$0xff]   ;;  %v9383_v0 = vld [vmem:[#allocation12 + $0xe8] ss:$16 sps:$4 sm:$0xff]  }
0x2114   :  { %v9384_v5 = vld [vmem:[#allocation14 + $0xc] ss:$16 sps:$4 sm:$0xff]  }
0x2115   :  { %v9385_v41 = vld [vmem:[%s12031_s6] ss:$0 sm:$0xff]  ;;  %s9638_s6 = smov [#allocation15]  }
0x2116   :  { %s7876_s24 = sshll.u32 %s9638_s6, 4  ;;  %s7877_s24 = int_to_ptr.vmem [resolvable:$true] %s7876_s24 }
0x2117   :  { %s9587_s30 = scalar_lea.vmem %s7877_s24, 448  ;;  %p9592_p1 = scmp.lt.s32.totalorder %s7877_s24, %s7877_s24 }
0x2118   :  { %p9588_p0 = scmp.ne.s32.totalorder %s7877_s24, %s9587_s30  ;;  %p9593_p2 = scmp.lt.s32.totalorder %s9587_s30, %s9587_s30 }
0x211a   :  { %v8847_v48 = vpop.eup %8846  ;;  %p9594_p3 = por %p9593_p2, %p9592_p1 }
0x211b   :  { %v8849_v55 = vpop.eup %8848  ;;  %v6854_v61 = vadd.f32 1.0, %v8847_v48 }
0x211c   :  { %v6860_v3 = vadd.f32 1.0, %v8849_v55  ;;  %v8851_v1 = vpop.eup %8850  ;;  %p9595_p4 = pnand %p9594_p3, %p9588_p0 }
0x211d   :  { %8854 = vrcp.f32 %v6854_v61  ;;  %v8853_v52 = vpop.eup %8852  ;;  %v6867_v57 = vadd.f32 1.0, %v8851_v1  ;;  %v12255_v61 = vld [vmem:[#allocation40_spill] sm:$0xff] }
0x211e   :  { %8856 = vrcp.f32 %v6860_v3 }
0x211f   :  { %8858 = vrcp.f32 %v6867_v57 }
0x2127   :  { %v8855_v63 = vpop.eup %8854 }
0x2128   :  { %v8857_v18 = vpop.eup %8856  ;;  %v6871_v6 = vmul.f32 %v8855_v63, %v8853_v52 }
0x2129   :  { %v6870_v33 = vmul.f32 %v8857_v18, %v12252_v12  ;;  %v8859_v43 = vpop.eup %8858 }
0x212b   :  { %v11743_v16 = vadd.f32 %v6871_v6, %v6870_v33 }
0x212d   :  { %12253 = vst [vmem:[#allocation42_spill] sm:$0xff] %v11743_v16  ;;  %8860 = vtanh.f32 %v11743_v16 }
0x2137   :  { %v8861_v56 = vpop.eup %8860 }
0x2138   :  { %v11746_v27 = vmul.f32 %v8861_v56, %v8859_v43  ;;  %v9386_v56 = vld [vmem:[#allocation6 + $0x8] sm:$0xff] }
0x213a   :  { %v11750_v34 = vpack.c.bf16 %v11746_v27, %v11746_v27 }
0x213c   :  { %12254 = vst [vmem:[#allocation43_spill] sm:$0xff] %v11750_v34  ;;  %6877 = vst [vmem:[#allocation15 + $0x14] sm:$0xf] %v11750_v34  ;;  %8241 = vmatmul.mubr.bf16.vlgmr.msra.gmra.mrb[36].mxu1 %v11750_v34 }
0x213d   :  { %7714 = vmatpush1.bf16.msra.mxu1 %v9369_v62  ;;  %7745 = vmatprep.mubr.bf16.mxu1 %v12249_v49 }
0x213e   :  { %7715 = vmatprep.subr.bf16.mxu1 %v9370_v8  ;;  %v9387_v8 = vld [vmem:[#allocation6] sm:$0xff] }
0x2141   :  { %7716 = vmatpush1.bf16.msra.mxu1 %v9371_v14 }
0x2142   :  { %7717 = vmatprep.subr.bf16.mxu1 %v9372_v24 }
0x2145   :  { %7718 = vmatpush1.bf16.msra.mxu1 %v9373_v29  ;;  %v9388_v29 = vld [vmem:[#allocation6 + $0x18] sm:$0xff] }
0x2146   :  { %7719 = vmatprep.subr.bf16.mxu1 %v9374_v25 }
0x2149   :  { %7720 = vmatpush1.bf16.msra.mxu1 %v9375_v53  ;;  %v9389_v53 = vld [vmem:[#allocation6 + $0x10] sm:$0xff] }
0x214a   :  { %7721 = vmatprep.subr.bf16.mxu1 %v9376_v20 }
0x214d   :  { %7722 = vmatpush1.bf16.msra.mxu1 %v9377_v37 }
0x214e   :  { %7723 = vmatprep.subr.bf16.mxu1 %v9378_v46 }
0x2151   :  { %7724 = vmatpush1.bf16.msra.mxu1 %v9379_v36 }
0x2152   :  { %7725 = vmatprep.subr.bf16.mxu1 %v9380_v11 }
0x2155   :  { %7726 = vmatpush1.bf16.msra.mxu1 %v9381_v50  ;;  %v9390_v50 = vld [vmem:[#allocation6 + $0x28] sm:$0xff] }
0x2156   :  { %7727 = vmatprep.subr.bf16.mxu1 %v9382_v39 }
0x2159   :  { %7728 = vmatpush1.bf16.msra.mxu1 %v9383_v0  ;;  %v9391_v0 = vld [vmem:[#allocation6 + $0x20] sm:$0xff] }
0x215a   :  { %7799 = vmatprep.subr.bf16.mxu1 %v9384_v5 }
0x220f   :  { %v6912_v59 = vpop.f32.mrb[36].mxu1 }
0x2210   :  { %v6913_v21 = vadd.f32 %v9385_v41, %v6912_v59  ;;  %v8242_v40 = vpop.f32.mrb[37].mxu1  ;;  %v12256_v41 = vld [vmem:[#allocation41_spill] sm:$0xff] }
0x2211   :  { %v6915_v48 = vpop.f32.mrb[38].mxu1 }
0x2212   :  { %v6919_v55 = vcombine.high %v6913_v21, %v6913_v21  ;;  %v6926_v3 = vrot.slane %v6913_v21, %v12255_v61  ;;  %v8243_v1 = vpop.f32.mrb[39].mxu1 }
0x2213   :  { %v9392_v1 = vld [vmem:[#allocation6 + $0x48] sm:$0xff] }
0x2214   :  { %v6933_v52 = vrot.slane %v6919_v55, %v12255_v61  ;;  %v6934_v63 = vcombine.high %v6926_v3, %v6926_v3  ;;  %v6942_v18 = vrot.slane %v6926_v3, %v12255_v61 }
0x2216   :  { %v6956_v6 = vrot.slane %v6934_v63, %v12255_v61  ;;  %v6964_v57 = vcombine.high %v6942_v18, %v6942_v18  ;;  %v6971_v12 = vrot.slane %v6942_v18, %v12187_v9  ;;  %v6949_v33 = vrot.slane %v6933_v52, %v12255_v61  ;;  %v9393_v63 = vld [vmem:[#allocation6 + $0x40] sm:$0xff] }
0x2217   :  { %v6935_v37 = vcombine.high %v6933_v52, %v6933_v52 }
0x2218   :  { %v6975_v43 = vrot.slane %v6956_v6, %v12187_v9  ;;  %v7009_v62 = vadd.f32 %v9386_v56, %v6971_v12  ;;  %v7008_v14 = vadd.f32 %v9387_v8, %v6971_v12  ;;  %v6979_v24 = vrot.slane %v6964_v57, %v12187_v9 }
0x2219   :  { %v6966_v11 = vcombine.high %v6956_v6, %v6956_v6  ;;  %v6987_v59 = vrot.slane %v6949_v33, %v12187_v9  ;;  %v6963_v3 = vrot.slane %v6935_v37, %v12255_v61 }
0x221a   :  { %v7011_v25 = vadd.f32 %v9388_v29, %v6975_v43  ;;  %v7010_v20 = vadd.f32 %v9389_v53, %v6975_v43  ;;  %v7025_v46 = vmax.f32 %v7009_v62, 0.0  ;;  %v7024_v36 = vmax.f32 %v7008_v14, 0.0  ;;  %v9394_v14 = vld [vmem:[#allocation6 + $0x38] sm:$0xff] }
0x221b   :  { %v7013_v39 = vadd.f32 %v9390_v50, %v6979_v24  ;;  %v7012_v5 = vadd.f32 %v9391_v0, %v6979_v24  ;;  %v7017_v52 = vadd.f32 %v9392_v1, %v6987_v59  ;;  %v7016_v18 = vadd.f32 %v9393_v63, %v6987_v59 }
0x221c   :  { %v7041_v21 = vmul.f32 %v7025_v46, %v12256_v41  ;;  %v7040_v40 = vmul.f32 %v7024_v36, %v12256_v41  ;;  %v7027_v48 = vmax.f32 %v7011_v25, 0.0  ;;  %v7026_v55 = vmax.f32 %v7010_v20, 0.0  ;;  %v9395_v20 = vld [vmem:[#allocation6 + $0x30] sm:$0xff] }
0x221d   :  { %v6983_v6 = vrot.slane %v6966_v11, %v12187_v9  ;;  %v7029_v43 = vmax.f32 %v7013_v39, 0.0  ;;  %v7028_v56 = vmax.f32 %v7012_v5, 0.0  ;;  %v6965_v62 = vcombine.high %v6949_v33, %v6949_v33  ;;  %v9396_v11 = vld [vmem:[#allocation6 + $0x58] sm:$0xff]  ;;  %v9397_v33 = vld [vmem:[#allocation6 + $0x50] sm:$0xff] }
0x221e   :  { %7058 = vadd.xlane.f32.xlu0 %v7041_v21  ;;  %7056 = vadd.xlane.f32.xlu1 %v7040_v40  ;;  %v7043_v57 = vmul.f32 %v7027_v48, %v12256_v41  ;;  %v7042_v12 = vmul.f32 %v7026_v55, %v12256_v41  ;;  %v7033_v8 = vmax.f32 %v7017_v52, 0.0  ;;  %v6991_v61 = vrot.slane %v6963_v3, %v12187_v9  ;;  %v9398_v52 = vld [vmem:[#allocation6 + $0x68] sm:$0xff] }
0x221f   :  { %v7015_v24 = vadd.f32 %v9394_v14, %v6983_v6  ;;  %v7045_v29 = vmul.f32 %v7029_v43, %v12256_v41  ;;  %v7044_v25 = vmul.f32 %v7028_v56, %v12256_v41  ;;  %v7032_v53 = vmax.f32 %v7016_v18, 0.0  ;;  %v9399_v18 = vld [vmem:[#allocation6 + $0x60] sm:$0xff]  ;;  %v9401_v14 = vld [vmem:[#allocation6 + $0x70] sm:$0xff] }
0x2220   :  { %v7014_v37 = vadd.f32 %v9395_v20, %v6983_v6  ;;  %v7049_v46 = vmul.f32 %v7033_v8, %v12256_v41  ;;  %v7019_v50 = vadd.f32 %v9396_v11, %v6991_v61  ;;  %v7018_v39 = vadd.f32 %v9397_v33, %v6991_v61 }
0x2221   :  { %v7031_v36 = vmax.f32 %v7015_v24, 0.0  ;;  %v7048_v0 = vmul.f32 %v7032_v53, %v12256_v41  ;;  %v6995_v59 = vrot.slane %v6965_v62, %v12187_v9  ;;  %v6967_v21 = vcombine.high %v6963_v3, %v6963_v3  ;;  %v9400_v62 = vld [vmem:[#allocation6 + $0x78] sm:$0xff] }
0x2222   :  { %7062 = vadd.xlane.f32.xlu1 %v7043_v57  ;;  %7060 = vadd.xlane.f32.xlu0 %v7042_v12  ;;  %v7030_v5 = vmax.f32 %v7014_v37, 0.0  ;;  %v7035_v48 = vmax.f32 %v7019_v50, 0.0  ;;  %v7034_v55 = vmax.f32 %v7018_v39, 0.0 }
0x2223   :  { %v7047_v40 = vmul.f32 %v7031_v36, %v12256_v41  ;;  %v7021_v63 = vadd.f32 %v9398_v52, %v6995_v59  ;;  %v7020_v6 = vadd.f32 %v9399_v18, %v6995_v59  ;;  %v6999_v57 = vrot.slane %v6967_v21, %v12187_v9 }
0x2224   :  { %v7046_v1 = vmul.f32 %v7030_v5, %v12256_v41  ;;  %v7051_v12 = vmul.f32 %v7035_v48, %v12256_v41  ;;  %v7050_v3 = vmul.f32 %v7034_v55, %v12256_v41 }
0x2225   :  { %v7037_v43 = vmax.f32 %v7021_v63, 0.0  ;;  %v7036_v56 = vmax.f32 %v7020_v6, 0.0  ;;  %v7023_v8 = vadd.f32 %v9400_v62, %v6999_v57  ;;  %v7022_v24 = vadd.f32 %v9401_v14, %v6999_v57 }
0x2226   :  { %7066 = vadd.xlane.f32.xlu1 %v7045_v29  ;;  %7064 = vadd.xlane.f32.xlu0 %v7044_v25 }
0x2227   :  { %v7053_v61 = vmul.f32 %v7037_v43, %v12256_v41  ;;  %v7052_v29 = vmul.f32 %v7036_v56, %v12256_v41  ;;  %v7039_v25 = vmax.f32 %v7023_v8, 0.0  ;;  %v7038_v53 = vmax.f32 %v7022_v24, 0.0 }
0x2229   :  { %v7055_v20 = vmul.f32 %v7039_v25, %v12256_v41  ;;  %v7054_v37 = vmul.f32 %v7038_v53, %v12256_v41 }
0x222a   :  { %7074 = vadd.xlane.f32.xlu1 %v7049_v46  ;;  %7072 = vadd.xlane.f32.xlu0 %v7048_v0 }
0x222e   :  { %7070 = vadd.xlane.f32.xlu1 %v7047_v40  ;;  %7068 = vadd.xlane.f32.xlu0 %v7046_v1 }
0x2232   :  { %7078 = vadd.xlane.f32.xlu1 %v7051_v12  ;;  %7076 = vadd.xlane.f32.xlu0 %v7050_v3 }
0x2236   :  { %7082 = vadd.xlane.f32.xlu1 %v7053_v61  ;;  %7080 = vadd.xlane.f32.xlu0 %v7052_v29 }
0x223a   :  { %7086 = vadd.xlane.f32.xlu1 %v7055_v20  ;;  %7084 = vadd.xlane.f32.xlu0 %v7054_v37 }
0x22ab   :  { %v7059_v46 = vpop.xlane.xlu0 %7058  ;;  %v7057_v36 = vpop.xlane.xlu1 %7056 }
0x22ac   :  { %v7111_v1 = vrot.slane %v7059_v46, %v12189_v17  ;;  %v7107_v52 = vrot.slane %v7057_v36, %v12190_v45 }
0x22ae   :  { %v7112_v43 = vsel %vm824_vm8, %v7111_v1, %v7107_v52 }
0x22af   :  { %v11788_v11 = vpop.xlane.xlu1 %7062  ;;  %v7061_v50 = vpop.xlane.xlu0 %7060 }
0x22b0   :  { %v7120_v41 = vrot.slane %v11788_v11, %v12189_v17  ;;  %v7116_v40 = vrot.slane %v7061_v50, %v12190_v45 }
0x22b2   :  { %v7121_v12 = vsel %vm824_vm8, %v7120_v41, %v7116_v40 }
0x22b3   :  { %v11790_v33 = vpop.xlane.xlu1 %7066  ;;  %v7065_v39 = vpop.xlane.xlu0 %7064  ;;  %v7176_v14 = vsel %vm391_vm0, %v7121_v12, %v7112_v43 }
0x22b4   :  { %v7129_v48 = vrot.slane %v11790_v33, %v12189_v17  ;;  %v7125_v55 = vrot.slane %v7065_v39, %v12190_v45 }
0x22b6   :  { %v7130_v3 = vsel %vm824_vm8, %v7129_v48, %v7125_v55 }
0x22b7   :  { %v11792_v0 = vpop.xlane.xlu1 %7074  ;;  %v11794_v5 = vpop.xlane.xlu0 %7072  ;;  %v7177_v53 = vsel %vm393_vm1, %v7130_v3, %v7176_v14 }
0x22b8   :  { %v7147_v24 = vrot.slane %v11792_v0, %v12189_v17  ;;  %v7143_v61 = vrot.slane %v11794_v5, %v12190_v45 }
0x22ba   :  { %v7148_v48 = vsel %vm824_vm8, %v7147_v24, %v7143_v61 }
0x22bb   :  { %v11796_v59 = vpop.xlane.xlu1 %7070  ;;  %v11798_v21 = vpop.xlane.xlu0 %7068 }
0x22bc   :  { %v7138_v63 = vrot.slane %v11796_v59, %v12189_v17  ;;  %v7134_v18 = vrot.slane %v11798_v21, %v12190_v45 }
0x22be   :  { %v7139_v56 = vsel %vm824_vm8, %v7138_v63, %v7134_v18 }
0x22bf   :  { %v11812_v6 = vpop.xlane.xlu1 %7078  ;;  %v11814_v57 = vpop.xlane.xlu0 %7076  ;;  %v7178_v41 = vsel %vm395_vm2, %v7139_v56, %v7177_v53 }
0x22c0   :  { %v7156_v62 = vrot.slane %v11812_v6, %v12189_v17  ;;  %v7152_v8 = vrot.slane %v11814_v57, %v12190_v45  ;;  %v7179_v12 = vsel %vm397_vm3, %v7148_v48, %v7178_v41 }
0x22c2   :  { %v7157_v40 = vsel %vm824_vm8, %v7156_v62, %v7152_v8 }
0x22c3   :  { %v11829_v29 = vpop.xlane.xlu1 %7082  ;;  %v11831_v25 = vpop.xlane.xlu0 %7080  ;;  %v7180_v3 = vsel %vm399_vm4, %v7157_v40, %v7179_v12 }
0x22c4   :  { %v7165_v20 = vrot.slane %v11829_v29, %v12189_v17  ;;  %v7161_v37 = vrot.slane %v11831_v25, %v12190_v45 }
0x22c6   :  { %v7166_v55 = vsel %vm824_vm8, %v7165_v20, %v7161_v37 }
0x22c7   :  { %v11842_v1 = vpop.xlane.xlu1 %7086  ;;  %v11844_v52 = vpop.xlane.xlu0 %7084  ;;  %v7181_v56 = vsel %vm401_vm5, %v7166_v55, %v7180_v3 }
0x22c8   :  { %v7174_v63 = vrot.slane %v11842_v1, %v12189_v17  ;;  %v7170_v18 = vrot.slane %v11844_v52, %v12190_v45 }
0x22ca   :  { %v7175_v43 = vsel %vm824_vm8, %v7174_v63, %v7170_v18 }
0x22cb   :  { %v7182_v62 = vsel %vm403_vm6, %v7175_v43, %v7181_v56 }
0x22cc   :  { %v7184_v8 = vsel %vm897_vm9, %v7182_v62, -inf }
0x22cd   :  { %7185 = vmax.xlane.f32.xlu0 %v7184_v8 }
0x235a   :  { %v7186_v14 = vpop.xlane.xlu0 %7185 }
0x235b   :  { %v7191_v24 = vrot.slane %v7186_v14, %v12187_v9  ;;  %v7195_v61 = vrot.slane %v7186_v14, %v10016_v7  ;;  %v7199_v53 = vrot.slane %v7186_v14, %v12191_v47  ;;  %v7203_v40 = vrot.slane %v7186_v14, %v12192_v60 }
0x235c   :  { %v7207_v3 = vrot.slane %v7186_v14, %v12193_v22 }
0x235d   :  { %v7228_v20 = vsub.f32 %v7057_v36, %v7191_v24  ;;  %v7229_v37 = vsub.f32 %v7059_v46, %v7191_v24  ;;  %v7230_v41 = vsub.f32 %v7061_v50, %v7195_v61  ;;  %v7232_v48 = vsub.f32 %v7065_v39, %v7199_v53 }
0x235e   :  { %v7231_v18 = vsub.f32 %v11788_v11, %v7195_v61  ;;  %v7234_v43 = vsub.f32 %v11798_v21, %v7203_v40  ;;  %v7233_v62 = vsub.f32 %v11790_v33, %v7199_v53  ;;  %v7211_v36 = vrot.slane %v7186_v14, %v12194_v44 }
0x235f   :  { %v7244_v63 = vmul.f32 1.442695, %v7228_v20  ;;  %v7246_v55 = vmul.f32 1.442695, %v7229_v37  ;;  %v7248_v12 = vmul.f32 1.442695, %v7230_v41  ;;  %v7236_v50 = vsub.f32 %v11794_v5, %v7207_v3 }
0x2360   :  { %v7252_v56 = vmul.f32 1.442695, %v7232_v48  ;;  %v7250_v46 = vmul.f32 1.442695, %v7231_v18  ;;  %v7256_v39 = vmul.f32 1.442695, %v7234_v43  ;;  %v7235_v11 = vsub.f32 %v11796_v59, %v7203_v40 }
0x2361   :  { %8862 = vpow2.f32 %v7244_v63  ;;  %v7254_v8 = vmul.f32 1.442695, %v7233_v62  ;;  %v7215_v24 = vrot.slane %v7186_v14, %v12195_v26  ;;  %v7238_v21 = vsub.f32 %v11814_v57, %v7211_v36 }
0x2362   :  { %8864 = vpow2.f32 %v7246_v55  ;;  %v7260_v61 = vmul.f32 1.442695, %v7236_v50  ;;  %v7237_v5 = vsub.f32 %v11792_v0, %v7207_v3  ;;  %v7258_v53 = vmul.f32 1.442695, %v7235_v11 }
0x2363   :  { %8866 = vpow2.f32 %v7248_v12  ;;  %v7219_v59 = vrot.slane %v7186_v14, %v12196_v32  ;;  %v7240_v37 = vsub.f32 %v11831_v25, %v7215_v24  ;;  %v7264_v57 = vmul.f32 1.442695, %v7238_v21 }
0x2364   :  { %8868 = vpow2.f32 %v7252_v56  ;;  %v7239_v48 = vsub.f32 %v11812_v6, %v7211_v36  ;;  %v7262_v0 = vmul.f32 1.442695, %v7237_v5  ;;  %v7241_v18 = vsub.f32 %v11829_v29, %v7215_v24  ;;  %v12257_v24 = vld [vmem:[#allocation50_spill] sm:$0xff] }
0x2365   :  { %8870 = vpow2.f32 %v7250_v46  ;;  %v7242_v63 = vsub.f32 %v11844_v52, %v7219_v59  ;;  %v7268_v14 = vmul.f32 1.442695, %v7240_v37  ;;  %v7243_v52 = vsub.f32 %v11842_v1, %v7219_v59 }
0x2366   :  { %8872 = vpow2.f32 %v7256_v39  ;;  %v7266_v12 = vmul.f32 1.442695, %v7239_v48  ;;  %v7270_v56 = vmul.f32 1.442695, %v7241_v18  ;;  %v7640_v21 = vmul.f32 %v11746_v27, %v12257_v24 }
0x2367   :  { %8874 = vpow2.f32 %v7254_v8  ;;  %v7272_v6 = vmul.f32 1.442695, %v7242_v63  ;;  %v7274_v46 = vmul.f32 1.442695, %v7243_v52 }
0x2368   :  { %8876 = vpow2.f32 %v7260_v61 }
0x2369   :  { %8878 = vpow2.f32 %v7258_v53 }
0x236a   :  { %8880 = vpow2.f32 %v7264_v57 }
0x236b   :  { %v11869_v20 = vpop.eup %8862  ;;  %8882 = vpow2.f32 %v7262_v0 }
0x236c   :  { %v11871_v33 = vpop.eup %8864  ;;  %7293 = vperm.xlu1 %8348, %v11869_v20   ;;  %8884 = vpow2.f32 %v7268_v14 }
0x236d   :  { %7296 = vperm.xlu0 %8349, %v11871_v33   ;;  %v11878_v41 = vpop.eup %8866  ;;  %8886 = vpow2.f32 %v7266_v12 }
0x236e   :  { %v11880_v40 = vpop.eup %8868  ;;  %8888 = vpow2.f32 %v7272_v6 }
0x236f   :  { %v11886_v55 = vpop.eup %8870  ;;  %8890 = vpow2.f32 %v7270_v56 }
0x2370   :  { %7299 = vperm.xlu1 %8348, %v11878_v41   ;;  %v11888_v25 = vpop.eup %8872  ;;  %8892 = vpow2.f32 %v7274_v46 }
0x2371   :  { %7305 = vperm.xlu0 %8349, %v11880_v40   ;;  %v11893_v3 = vpop.eup %8874 }
0x2372   :  { %v11895_v43 = vpop.eup %8876 }
0x2373   :  { %v11900_v29 = vpop.eup %8878 }
0x2374   :  { %7302 = vperm.xlu1 %8348, %v11886_v55   ;;  %v11902_v62 = vpop.eup %8880 }
0x2375   :  { %7311 = vperm.xlu0 %8349, %v11888_v25   ;;  %v11906_v36 = vpop.eup %8882 }
0x2376   :  { %v11908_v50 = vpop.eup %8884 }
0x2377   :  { %v11912_v1 = vpop.eup %8886 }
0x2378   :  { %7308 = vperm.xlu1 %8348, %v11893_v3   ;;  %v11914_v39 = vpop.eup %8888 }
0x2379   :  { %7317 = vperm.xlu0 %8349, %v11895_v43   ;;  %v11918_v11 = vpop.eup %8890 }
0x237a   :  { %v11921_v8 = vpop.eup %8892 }
0x237c   :  { %7314 = vperm.xlu1 %8348, %v11900_v29  }
0x237d   :  { %7323 = vperm.xlu0 %8349, %v11902_v62  }
0x2380   :  { %7320 = vperm.xlu1 %8348, %v11906_v36  }
0x2381   :  { %7329 = vperm.xlu0 %8349, %v11908_v50  }
0x2384   :  { %7326 = vperm.xlu1 %8348, %v11912_v1  }
0x2385   :  { %7335 = vperm.xlu0 %8349, %v11914_v39  }
0x2388   :  { %7332 = vperm.xlu1 %8348, %v11918_v11  }
0x238c   :  { %7338 = vperm.xlu1 %8348, %v11921_v8  }
0x23b0   :  { %7641 = vadd.xlane.f32.xlu1 %v7640_v21 }
0x23eb   :  { %v7294_v61 = vpop.permute.xlu1 %7293 }
0x23ec   :  { %v7297_v5 = vpop.permute.xlu0 %7296  ;;  %v7343_v46 = vrot.slane %v7294_v61, %v12190_v45 }
0x23ed   :  { %v7347_v27 = vrot.slane %v7297_v5, %v12189_v17 }
0x23ef   :  { %v7300_v53 = vpop.permute.xlu1 %7299  ;;  %v7348_v61 = vsel %vm824_vm8, %v7347_v27, %v7343_v46 }
0x23f0   :  { %v7306_v59 = vpop.permute.xlu0 %7305  ;;  %v7352_v24 = vrot.slane %v7300_v53, %v12190_v45 }
0x23f1   :  { %v7361_v16 = vrot.slane %v7306_v59, %v12190_v45 }
0x23f3   :  { %v7303_v37 = vpop.permute.xlu1 %7302 }
0x23f4   :  { %v7312_v57 = vpop.permute.xlu0 %7311  ;;  %v7356_v12 = vrot.slane %v7303_v37, %v12189_v17 }
0x23f5   :  { %v7370_v49 = vrot.slane %v7312_v57, %v12190_v45 }
0x23f6   :  { %v7357_v37 = vsel %vm824_vm8, %v7356_v12, %v7352_v24 }
0x23f7   :  { %v7309_v48 = vpop.permute.xlu1 %7308 }
0x23f8   :  { %v7318_v0 = vpop.permute.xlu0 %7317  ;;  %v7365_v6 = vrot.slane %v7309_v48, %v12189_v17 }
0x23f9   :  { %v7379_v15 = vrot.slane %v7318_v0, %v12190_v45 }
0x23fa   :  { %v7366_v5 = vsel %vm824_vm8, %v7365_v6, %v7361_v16 }
0x23fb   :  { %v7315_v63 = vpop.permute.xlu1 %7314 }
0x23fc   :  { %v7324_v14 = vpop.permute.xlu0 %7323  ;;  %v7374_v21 = vrot.slane %v7315_v63, %v12189_v17 }
0x23fd   :  { %v7388_v53 = vrot.slane %v7324_v14, %v12190_v45 }
0x23fe   :  { %v7375_v63 = vsel %vm824_vm8, %v7374_v21, %v7370_v49 }
0x23ff   :  { %v7321_v18 = vpop.permute.xlu1 %7320 }
0x2400   :  { %v7330_v52 = vpop.permute.xlu0 %7329  ;;  %v7383_v34 = vrot.slane %v7321_v18, %v12189_v17  ;;  %v7412_v18 = vsel %vm391_vm0, %v7357_v37, %v7348_v61 }
0x2401   :  { %v7397_v57 = vrot.slane %v7330_v52, %v12190_v45  ;;  %v7413_v0 = vsel %vm393_vm1, %v7366_v5, %v7412_v18 }
0x2402   :  { %v7384_v12 = vsel %vm824_vm8, %v7383_v34, %v7379_v15  ;;  %v7414_v6 = vsel %vm395_vm2, %v7375_v63, %v7413_v0 }
0x2403   :  { %v7327_v56 = vpop.permute.xlu1 %7326  ;;  %v7415_v49 = vsel %vm397_vm3, %v7384_v12, %v7414_v6 }
0x2404   :  { %v7392_v48 = vrot.slane %v7327_v56, %v12189_v17  ;;  %v7336_v56 = vpop.permute.xlu0 %7335 }
0x2406   :  { %v7393_v16 = vsel %vm824_vm8, %v7392_v48, %v7388_v53 }
0x2407   :  { %v7333_v54 = vpop.permute.xlu1 %7332  ;;  %v7416_v52 = vsel %vm399_vm4, %v7393_v16, %v7415_v49 }
0x2408   :  { %v7401_v59 = vrot.slane %v7333_v54, %v12189_v17  ;;  %v7406_v54 = vrot.slane %v7336_v56, %v12190_v45 }
0x240a   :  { %v7402_v27 = vsel %vm824_vm8, %v7401_v59, %v7397_v57 }
0x240b   :  { %v7339_v14 = vpop.permute.xlu1 %7338  ;;  %v7417_v34 = vsel %vm401_vm5, %v7402_v27, %v7416_v52 }
0x240c   :  { %v7410_v46 = vrot.slane %v7339_v14, %v12189_v17 }
0x240e   :  { %v7411_v15 = vsel %vm824_vm8, %v7410_v46, %v7406_v54 }
0x240f   :  { %v7418_v24 = vsel %vm403_vm6, %v7411_v15, %v7417_v34 }
0x2410   :  { %v7420_v21 = vsel %vm897_vm9, %v7418_v24, 0.0 }
0x2411   :  { %7421 = vadd.xlane.f32.xlu0 %v7420_v21 }
0x243d   :  { %v7642_v6 = vpop.xlane.xlu1 %7641 }
0x249e   :  { %v7422_v37 = vpop.xlane.xlu0 %7421 }
0x249f   :  { %v7427_v48 = vrot.slane %v7422_v37, %v12187_v9  ;;  %v7431_v5 = vrot.slane %v7422_v37, %v10016_v7  ;;  %v7435_v17 = vrot.slane %v7422_v37, %v12191_v47  ;;  %v7439_v45 = vrot.slane %v7422_v37, %v12192_v60 }
0x24a0   :  { %v7443_v53 = vrot.slane %v7422_v37, %v12193_v22  ;;  %v7447_v7 = vrot.slane %v7422_v37, %v12194_v44  ;;  %v7451_v60 = vrot.slane %v7422_v37, %v12195_v26  ;;  %v7455_v44 = vrot.slane %v7422_v37, %v12196_v32 }
0x24a1   :  { %8894 = vrcp.f32 %v7427_v48 }
0x24a2   :  { %8896 = vrcp.f32 %v7431_v5 }
0x24a3   :  { %8898 = vrcp.f32 %v7435_v17 }
0x24a4   :  { %8900 = vrcp.f32 %v7439_v45 }
0x24a5   :  { %8902 = vrcp.f32 %v7443_v53 }
0x24a6   :  { %8904 = vrcp.f32 %v7447_v7 }
0x24a7   :  { %8906 = vrcp.f32 %v7451_v60 }
0x24a8   :  { %8908 = vrcp.f32 %v7455_v44 }
0x24ab   :  { %v8895_v61 = vpop.eup %8894 }
0x24ac   :  { %v7466_v63 = vmul.f32 %v8895_v61, %v11871_v33  ;;  %v7465_v59 = vmul.f32 %v8895_v61, %v11869_v20  ;;  %v8897_v18 = vpop.eup %8896 }
0x24ad   :  { %v7469_v9 = vmul.f32 %v8897_v18, %v11886_v55  ;;  %v7468_v47 = vmul.f32 %v8897_v18, %v11878_v41  ;;  %v8899_v57 = vpop.eup %8898 }
0x24ae   :  { %7495 = vperm.xlu1 %8348, %v7466_v63   ;;  %7490 = vperm.xlu0 %8349, %v7465_v59   ;;  %v7472_v22 = vmul.f32 %v8899_v57, %v11893_v3  ;;  %v7471_v20 = vmul.f32 %v8899_v57, %v11880_v40  ;;  %v8901_v33 = vpop.eup %8900 }
0x24af   :  { %v7475_v55 = vmul.f32 %v8901_v33, %v11900_v29  ;;  %v7474_v41 = vmul.f32 %v8901_v33, %v11888_v25  ;;  %v8903_v12 = vpop.eup %8902 }
0x24b0   :  { %v7478_v26 = vmul.f32 %v8903_v12, %v11906_v36  ;;  %v7477_v3 = vmul.f32 %v8903_v12, %v11895_v43  ;;  %v8905_v56 = vpop.eup %8904 }
0x24b1   :  { %v7481_v40 = vmul.f32 %v8905_v56, %v11912_v1  ;;  %v7480_v0 = vmul.f32 %v8905_v56, %v11902_v62  ;;  %v8907_v32 = vpop.eup %8906  ;;  %v9402_v1 = vld [vmem:[#allocation2] ss:$0 sm:$0xff] }
0x24b2   :  { %7505 = vperm.xlu1 %8348, %v7469_v9   ;;  %7500 = vperm.xlu0 %8349, %v7468_v47   ;;  %v7484_v25 = vmul.f32 %v8907_v32, %v11918_v11  ;;  %v7483_v29 = vmul.f32 %v8907_v32, %v11908_v50  ;;  %v8909_v16 = vpop.eup %8908  ;;  %v7643_v27 = vadd.f32 %v9402_v1, %v7642_v6  ;;  %v12258_v6 = vld [vmem:[#allocation35_spill] sm:$0xff] }
0x24b3   :  { %v7487_v36 = vmul.f32 %v8909_v16, %v11921_v8  ;;  %v7486_v43 = vmul.f32 %v8909_v16, %v11914_v39 }
0x24b6   :  { %7515 = vperm.xlu1 %8348, %v7472_v22   ;;  %7510 = vperm.xlu0 %8349, %v7471_v20  }
0x24ba   :  { %7525 = vperm.xlu1 %8348, %v7475_v55   ;;  %7520 = vperm.xlu0 %8349, %v7474_v41  }
0x24be   :  { %7535 = vperm.xlu1 %8348, %v7478_v26   ;;  %7530 = vperm.xlu0 %8349, %v7477_v3  }
0x24c2   :  { %7545 = vperm.xlu1 %8348, %v7481_v40   ;;  %7540 = vperm.xlu0 %8349, %v7480_v0  }
0x24c6   :  { %7555 = vperm.xlu1 %8348, %v7484_v25   ;;  %7550 = vperm.xlu0 %8349, %v7483_v29  }
0x24ca   :  { %7565 = vperm.xlu1 %8348, %v7487_v36   ;;  %7560 = vperm.xlu0 %8349, %v7486_v43  }
0x24ce   :  { %7646 = vperm.xlu0 %8349, %v7643_v27   ;;  %v12259_v27 = vld [vmem:[#allocation36_spill] sm:$0xff] }
0x252d   :  { %v7491_v62 = vpop.permute.xlu0 %7490  ;;  %v7496_v14 = vpop.permute.xlu1 %7495 }
0x252e   :  { %v7568_v46 = vmul.f32 %v12200_v19, %v7491_v62  ;;  %v7569_v8 = vmul.f32 %v12201_v13, %v7496_v14 }
0x2530   :  { %v7584_v21 = vadd.f32 %v7569_v8, %v7568_v46 }
0x2531   :  { %v7501_v49 = vpop.permute.xlu0 %7500  ;;  %v7506_v54 = vpop.permute.xlu1 %7505 }
0x2532   :  { %v7570_v11 = vmul.f32 %v12198_v10, %v7501_v49  ;;  %v7571_v50 = vmul.f32 %v12199_v38, %v7506_v54  ;;  %v7585_v45 = vrot.slane %v7584_v21, 4 }
0x2534   :  { %v7591_v24 = vadd.f32 %v7571_v50, %v7570_v11  ;;  %v7586_v7 = vadd.f32 %v7585_v45, %v7584_v21 }
0x2535   :  { %v7511_v52 = vpop.permute.xlu0 %7510  ;;  %v7516_v39 = vpop.permute.xlu1 %7515 }
0x2536   :  { %v7572_v15 = vmul.f32 %v12202_v23, %v7511_v52  ;;  %v7573_v34 = vmul.f32 %v12203_v42, %v7516_v39  ;;  %v7592_v38 = vrot.slane %v7591_v24, 4  ;;  %v7587_v44 = vrot.slane %v7586_v7, 2 }
0x2538   :  { %v7598_v37 = vadd.f32 %v7573_v34, %v7572_v15  ;;  %v7593_v59 = vadd.f32 %v7592_v38, %v7591_v24  ;;  %v7588_v25 = vadd.f32 %v7587_v44, %v7586_v7  ;;  %v12260_v44 = vmov 0  }
0x2539   :  { %v7521_v48 = vpop.permute.xlu0 %7520  ;;  %v7526_v5 = vpop.permute.xlu1 %7525 }
0x253a   :  { %v7574_v17 = vmul.f32 %v12204_v31, %v7521_v48  ;;  %v7575_v10 = vmul.f32 %v12205_v51, %v7526_v5  ;;  %v7599_v19 = vrot.slane %v7598_v37, 4  ;;  %v7594_v20 = vrot.slane %v7593_v59, 2 }
0x253b   :  { %v7589_v46 = vrot.slane %v7588_v25, 1 }
0x253c   :  { %v7605_v61 = vadd.f32 %v7575_v10, %v7574_v17  ;;  %v7600_v9 = vadd.f32 %v7599_v19, %v7598_v37  ;;  %v7595_v0 = vadd.f32 %v7594_v20, %v7593_v59  ;;  %v9405_v20 = vld [vmem:[#allocation14 + $0x24] ss:$16 sps:$4 sm:$0xff]  }
0x253d   :  { %v7531_v13 = vpop.permute.xlu0 %7530  ;;  %v7536_v53 = vpop.permute.xlu1 %7535  ;;  %v7590_v5 = vadd.f32 %v7589_v46, %v7588_v25  ;;  %v9418_v25 = vld [vmem:[#allocation14 + $0x8c] ss:$16 sps:$4 sm:$0xff]  }
0x253e   :  { %v7576_v63 = vmul.f32 %v12206_v2, %v7531_v13  ;;  %v7577_v23 = vmul.f32 %v12207_v35, %v7536_v53  ;;  %v7606_v42 = vrot.slane %v7605_v61, 4  ;;  %v7601_v55 = vrot.slane %v7600_v9, 2 }
0x2540   :  { %v7612_v18 = vadd.f32 %v7577_v23, %v7576_v63  ;;  %v7607_v31 = vadd.f32 %v7606_v42, %v7605_v61 }
0x2541   :  { %v7541_v47 = vpop.permute.xlu0 %7540  ;;  %v7546_v57 = vpop.permute.xlu1 %7545 }
0x2542   :  { %v7613_v60 = vrot.slane %v7612_v18, 4  ;;  %v7578_v51 = vmul.f32 %v12208_v30, %v7541_v47  ;;  %v7579_v22 = vmul.f32 %v12209_v28, %v7546_v57  ;;  %v7608_v12 = vrot.slane %v7607_v31, 2 }
0x2543   :  { %v7602_v30 = vadd.f32 %v7601_v55, %v7600_v9  ;;  %v9407_v55 = vld [vmem:[#allocation14 + $0x20] ss:$16 sps:$4 sm:$0xff]  }
0x2544   :  { %v7614_v33 = vadd.f32 %v7613_v60, %v7612_v18  ;;  %v7619_v2 = vadd.f32 %v7579_v22, %v7578_v51  ;;  %v7609_v36 = vadd.f32 %v7608_v12, %v7607_v31  ;;  %v9403_v51 = vld [vmem:[#allocation14] ss:$16 sps:$4 sm:$0xff]   ;;  %v9404_v22 = vld [vmem:[#allocation14 + $0x8] ss:$16 sps:$4 sm:$0xff]  }
0x2545   :  { %v7551_v41 = vpop.permute.xlu0 %7550  ;;  %v7556_v35 = vpop.permute.xlu1 %7555  ;;  %v7603_v11 = vrot.slane %v7602_v30, 1  ;;  %v9411_v12 = vld [vmem:[#allocation14 + $0x40] ss:$16 sps:$4 sm:$0xff]  }
0x2546   :  { %v7580_v26 = vmul.f32 %v12210_v4, %v7551_v41  ;;  %v7581_v3 = vmul.f32 %v12214_v58, %v7556_v35  ;;  %v7615_v56 = vrot.slane %v7614_v33, 2  ;;  %v7620_v40 = vrot.slane %v7619_v2, 4  ;;  %v9409_v41 = vld [vmem:[#allocation14 + $0x44] ss:$16 sps:$4 sm:$0xff]   ;;  %v9410_v35 = vld [vmem:[#allocation14 + $0x4c] ss:$16 sps:$4 sm:$0xff]  }
0x2547   :  { %v7596_v4 = vrot.slane %v7595_v0, 1  ;;  %v7610_v8 = vrot.slane %v7609_v36, 1  ;;  %v7604_v48 = vadd.f32 %v7603_v11, %v7602_v30  ;;  %v9419_v30 = vld [vmem:[#allocation14 + $0x80] ss:$16 sps:$4 sm:$0xff]  }
0x2548   :  { %v7626_v32 = vadd.f32 %v7581_v3, %v7580_v26  ;;  %v7621_v29 = vadd.f32 %v7620_v40, %v7619_v2  ;;  %v7616_v14 = vadd.f32 %v7615_v56, %v7614_v33  ;;  %v9406_v33 = vld [vmem:[#allocation14 + $0x2c] ss:$16 sps:$4 sm:$0xff]   ;;  %v9408_v2 = vld [vmem:[#allocation14 + $0x28] ss:$16 sps:$4 sm:$0xff]   ;;  %v9413_v3 = vld [vmem:[#allocation14 + $0x64] ss:$16 sps:$4 sm:$0xff]  }
0x2549   :  { %v7561_v28 = vpop.permute.xlu0 %7560  ;;  %v7566_v16 = vpop.permute.xlu1 %7565  ;;  %v7597_v34 = vadd.f32 %v7596_v4, %v7595_v0  ;;  %v7611_v17 = vadd.f32 %v7610_v8, %v7609_v36  ;;  %v9412_v26 = vld [vmem:[#allocation14 + $0x48] ss:$16 sps:$4 sm:$0xff]   ;;  %v9414_v56 = vld [vmem:[#allocation14 + $0x6c] ss:$16 sps:$4 sm:$0xff]   ;;  %v9415_v40 = vld [vmem:[#allocation14 + $0x60] ss:$16 sps:$4 sm:$0xff]  }
0x254a   :  { %v7627_v43 = vrot.slane %v7626_v32, 4  ;;  %v7582_v1 = vmul.f32 %v12258_v6, %v7561_v28  ;;  %v7583_v62 = vmul.f32 %v12259_v27, %v7566_v16  ;;  %v7622_v49 = vrot.slane %v7621_v29, 2  ;;  %v9416_v0 = vld [vmem:[#allocation14 + $0x68] ss:$16 sps:$4 sm:$0xff]   ;;  %v9421_v28 = vld [vmem:[#allocation14 + $0xa4] ss:$16 sps:$4 sm:$0xff]  }
0x254b   :  { %v7617_v15 = vrot.slane %v7616_v14, 1  ;;  %v7657_v19 = vsel %vm391_vm0, %v7597_v34, %v7590_v5  ;;  %v9422_v16 = vld [vmem:[#allocation14 + $0xac] ss:$16 sps:$4 sm:$0xff]   ;;  %v9423_v36 = vld [vmem:[#allocation14 + $0xa0] ss:$16 sps:$4 sm:$0xff]  }
0x254c   :  { %v7628_v54 = vadd.f32 %v7627_v43, %v7626_v32  ;;  %v7633_v58 = vadd.f32 %v7583_v62, %v7582_v1  ;;  %v7623_v50 = vadd.f32 %v7622_v49, %v7621_v29  ;;  %v7658_v63 = vsel %vm393_vm1, %v7604_v48, %v7657_v19  ;;  %v9417_v32 = vld [vmem:[#allocation14 + $0x84] ss:$16 sps:$4 sm:$0xff]   ;;  %v9420_v29 = vld [vmem:[#allocation14 + $0x88] ss:$16 sps:$4 sm:$0xff]   ;;  %v9426_v1 = vld [vmem:[#allocation14 + $0xcc] ss:$16 sps:$4 sm:$0xff]  }
0x254d   :  { %v7618_v45 = vadd.f32 %v7617_v15, %v7616_v14  ;;  %v7659_v42 = vsel %vm395_vm2, %v7611_v17, %v7658_v63  ;;  %v7647_v47 = vpop.permute.xlu0 %7646  ;;  %v9424_v43 = vld [vmem:[#allocation14 + $0xa8] ss:$16 sps:$4 sm:$0xff]   ;;  %v9425_v6 = vld [vmem:[#allocation14 + $0xc4] ss:$16 sps:$4 sm:$0xff]   ;;  %v9427_v27 = vld [vmem:[#allocation14 + $0xc0] ss:$16 sps:$4 sm:$0xff]  }
0x254e   :  { %v7629_v52 = vrot.slane %v7628_v54, 2  ;;  %v7634_v39 = vrot.slane %v7633_v58, 4  ;;  %v7624_v24 = vrot.slane %v7623_v50, 1  ;;  %v9428_v62 = vld [vmem:[#allocation14 + $0xc8] ss:$16 sps:$4 sm:$0xff]   ;;  %v7667_v11 = vld [vmem:[#allocation8 + $0xc0] sm:$0xff] }
0x254f   :  { %v7660_v59 = vsel %vm397_vm3, %v7618_v45, %v7659_v42  ;;  %v9429_v14 = vld [vmem:[#allocation14 + $0xe4] ss:$16 sps:$4 sm:$0xff]   ;;  %v9430_v49 = vld [vmem:[#allocation14 + $0xec] ss:$16 sps:$4 sm:$0xff]   ;;  %v9431_v4 = vld [vmem:[#allocation14 + $0xe0] ss:$16 sps:$4 sm:$0xff]  }
0x2550   :  { %v7630_v21 = vadd.f32 %v7629_v52, %v7628_v54  ;;  %v7635_v37 = vadd.f32 %v7634_v39, %v7633_v58  ;;  %v7625_v61 = vadd.f32 %v7624_v24, %v7623_v50  ;;  %v9432_v54 = vld [vmem:[#allocation14 + $0xe8] ss:$16 sps:$4 sm:$0xff]   ;;  %v12261_v58 = vld [vmem:[#allocation43_spill] sm:$0xff] }
0x2551   :  { %v7668_v50 = vld [vmem:[#allocation8 + $0xc8] sm:$0xff]  ;;  %v7669_v45 = vld [vmem:[#allocation8 + $0xd0] sm:$0xff] }
0x2552   :  { %v7631_v10 = vrot.slane %v7630_v21, 1  ;;  %v7636_v38 = vrot.slane %v7635_v37, 2  ;;  %v7661_v7 = vsel %vm399_vm4, %v7625_v61, %v7660_v59 }
0x2554   :  { %v7637_v13 = vadd.f32 %v7636_v38, %v7635_v37  ;;  %v7632_v53 = vadd.f32 %v7631_v10, %v7630_v21  ;;  %v7670_v10 = vld [vmem:[#allocation8 + $0xd8] sm:$0xff] }
0x2556   :  { %v7638_v23 = vrot.slane %v7637_v13, 1  ;;  %v7662_v9 = vsel %vm401_vm5, %v7632_v53, %v7661_v7 }
0x2558   :  { %v7639_v18 = vadd.f32 %v7638_v23, %v7637_v13 }
0x255a   :  { %v7663_v57 = vsel %vm403_vm6, %v7639_v18, %v7662_v9 }
0x255b   :  { %v7665_v31 = vmul.f32 %v7663_v57, %v7647_v47  ;;  %v12262_v57 = vld [vmem:[#allocation42_spill] sm:$0xff] }
0x255d   :  { %v7671_v60 = vpack.c.bf16 %v7665_v31, %v7665_v31 }
0x255f   :  { %7705 = vmatmul.mubr.bf16.vlgmr.msra.gmra.mrb[40].mxu0 %v7671_v60  ;;  %7746 = vmatmul.mubr.bf16.vlgmr.msra.gmra.mrb[40].mxu1 %v7671_v60 }
0x2560   :  { %7759 = vmatpush1.bf16.msra.mxu0 %v9403_v51  ;;  %7800 = vmatpush1.bf16.msra.mxu1 %v9404_v22 }
0x2561   :  { %7760 = vmatprep.subr.bf16.mxu0 %v9405_v20  ;;  %7801 = vmatprep.subr.bf16.mxu1 %v9406_v33 }
0x2562   :  { %7790 = vmatprep.mubr.bf16.mxu0 %v12260_v44  ;;  %7831 = vmatprep.mubr.bf16.mxu1 %v12260_v44 }
0x2564   :  { %7761 = vmatpush1.bf16.msra.mxu0 %v9407_v55  ;;  %7802 = vmatpush1.bf16.msra.mxu1 %v9408_v2 }
0x2565   :  { %7762 = vmatprep.subr.bf16.mxu0 %v9409_v41  ;;  %7803 = vmatprep.subr.bf16.mxu1 %v9410_v35 }
0x2568   :  { %7763 = vmatpush1.bf16.msra.mxu0 %v9411_v12  ;;  %7804 = vmatpush1.bf16.msra.mxu1 %v9412_v26 }
0x2569   :  { %7764 = vmatprep.subr.bf16.mxu0 %v9413_v3  ;;  %7805 = vmatprep.subr.bf16.mxu1 %v9414_v56 }
0x256c   :  { %7765 = vmatpush1.bf16.msra.mxu0 %v9415_v40  ;;  %7806 = vmatpush1.bf16.msra.mxu1 %v9416_v0 }
0x256d   :  { %7766 = vmatprep.subr.bf16.mxu0 %v9417_v32  ;;  %7807 = vmatprep.subr.bf16.mxu1 %v9418_v25 }
0x2570   :  { %7767 = vmatpush1.bf16.msra.mxu0 %v9419_v30  ;;  %7808 = vmatpush1.bf16.msra.mxu1 %v9420_v29 }
0x2571   :  { %7768 = vmatprep.subr.bf16.mxu0 %v9421_v28  ;;  %7809 = vmatprep.subr.bf16.mxu1 %v9422_v16 }
0x2574   :  { %7769 = vmatpush1.bf16.msra.mxu0 %v9423_v36  ;;  %7810 = vmatpush1.bf16.msra.mxu1 %v9424_v43 }
0x2575   :  { %7770 = vmatprep.subr.bf16.mxu0 %v9425_v6  ;;  %7811 = vmatprep.subr.bf16.mxu1 %v9426_v1 }
0x2578   :  { %7771 = vmatpush1.bf16.msra.mxu0 %v9427_v27  ;;  %7812 = vmatpush1.bf16.msra.mxu1 %v9428_v62 }
0x2579   :  { %7772 = vmatprep.subr.bf16.mxu0 %v9429_v14  ;;  %7813 = vmatprep.subr.bf16.mxu1 %v9430_v49 }
0x257c   :  { %7773 = vmatpush1.bf16.msra.mxu0 %v9431_v4  ;;  %7814 = vmatpush1.bf16.msra.mxu1 %v9432_v54 }
0x257f   :  { %7791 = vmatmul.mubr.bf16.vlgmr.msra.gmra.mrb[40].mxu0 %v12261_v58  ;;  %7832 = vmatmul.mubr.bf16.vlgmr.msra.gmra.mrb[40].mxu1 %v12261_v58 }
0x2652   :  { %v7792_v46 = vpop.f32.mrb[40].mxu0  ;;  %v7833_v8 = vpop.f32.mrb[40].mxu1 }
0x2653   :  { %v8268_v52 = vadd.f32 %v7792_v46, %v7667_v11  ;;  %v7794_v39 = vpop.f32.mrb[41].mxu0  ;;  %v7835_v15 = vpop.f32.mrb[41].mxu1  ;;  %v8270_v61 = vadd.f32 %v7833_v8, %v7669_v45 }
0x2654   :  { %v8269_v34 = vadd.f32 %v7794_v39, %v7668_v50  ;;  %v7796_v24 = vpop.f32.mrb[42].mxu0  ;;  %v7837_v21 = vpop.f32.mrb[42].mxu1  ;;  %v8271_v38 = vadd.f32 %v7835_v15, %v7670_v10 }
0x2655   :  { %v7999_v37 = vmul.f32 -1.442695, %v8268_v52  ;;  %v7797_v48 = vpop.f32.mrb[43].mxu0  ;;  %v7838_v5 = vpop.f32.mrb[43].mxu1 }
0x2656   :  { %v8000_v17 = vmul.f32 -1.442695, %v8269_v34  ;;  %v8001_v19 = vmul.f32 -1.442695, %v8271_v38 }
0x2657   :  { %8910 = vpow2.f32 %v7999_v37 }
0x2658   :  { %8912 = vpow2.f32 %v8000_v17 }
0x2659   :  { %8914 = vpow2.f32 %v8001_v19 }
0x265a   :  { %8916 = vtanh.f32 %v8270_v61 }
0x2661   :  { %v8911_v13 = vpop.eup %8910 }
0x2662   :  { %v8913_v53 = vpop.eup %8912  ;;  %v7847_v63 = vadd.f32 1.0, %v8911_v13 }
0x2663   :  { %v7853_v23 = vadd.f32 1.0, %v8913_v53  ;;  %v8915_v42 = vpop.eup %8914 }
0x2664   :  { %8918 = vrcp.f32 %v7847_v63  ;;  %v8917_v59 = vpop.eup %8916  ;;  %v7860_v47 = vadd.f32 1.0, %v8915_v42 }
0x2665   :  { %8920 = vrcp.f32 %v7853_v23 }
0x2666   :  { %8922 = vrcp.f32 %v7860_v47 }
0x266e   :  { %v8919_v18 = vpop.eup %8918 }
0x266f   :  { %v8921_v7 = vpop.eup %8920  ;;  %v7864_v9 = vmul.f32 %v8919_v18, %v8917_v59 }
0x2670   :  { %v7863_v31 = vmul.f32 %v8921_v7, %v12262_v57  ;;  %v8923_v51 = vpop.eup %8922 }
0x2672   :  { %v7865_v60 = vadd.f32 %v7864_v9, %v7863_v31 }
0x2674   :  { %8924 = vtanh.f32 %v7865_v60 }
0x267e   :  { %v8925_v22 = vpop.eup %8924 }
0x267f   :  { %v7867_v20 = vmul.f32 %v8925_v22, %v8923_v51 }
0x2681   :  { %v7868_v33 = vpack.c.bf16 %v7867_v20, %v7867_v20 }
0x2683   :  { %7870 = vst [vmem:[#allocation15 + $0x18] sm:$0xf] %v7868_v33 }
0x2684   :  { %9598 = shalt.err (!%p9595_p4)
}
0x2685   :  { %s9599_s13 = scalar_lea.hbm %s12037_s12, 448 }
0x2686   :  { %p9600_p5 = scmp.ne.s32.totalorder %s12037_s12, %s9599_s13  ;;  %p9603_p6 = scmp.lt.u32.totalorder %s9599_s13, %s12037_s12 }
0x2688   :  { %p9605_p7 = pnand %p9603_p6, %p9600_p5 }
0x268a   :  { %9608 = shalt.err (!%p9605_p7)
}
0x268b   :  { %7882 = dma.vmem_to_hbm [thread:$0]  %s7877_s24, 448, %s12037_s12, [#allocation5], %s9627_s10, %s9627_s10, %s9628_s21  }
0x268c   :  { %9617 = dma.done.wait [#allocation5], 448  }
0x268d   :  { %9618 = vsyncadd [#allocation5], 4294966848 }
0x268e   :  { %7886 = vsyncpa [#allocation4], 1 }
0x268f   :  { %7887 = vsyncpa [#allocation7], 1 }
0x2690   :  { %7888 = vsyncpa [#allocation10], 1 }
0x2691   :  { %7889 = vsyncpa [#allocation13], 1 }
0x2692   :  { %7890 = vsyncpa [#allocation5], 1 }

</bundles_post_ra>
